<compile_context>
chip_gen: v6e
topology: v6e:2x2x1
jax: 0.10.0
libtpu: 0.0.40
codegen_flags: <defaults>
</compile_context>

<pallas_src>
import functools

import jax
import jax.numpy as jnp
import numpy as np
from jax.experimental import pallas as pl
from jax.experimental.pallas import tpu as pltpu

EPS = 1e-5
_PARAM_KEYS = ("c1m", "c1b", "c2m", "c2b", "se1", "se2", "upm", "upb")
_N_FIXED = 5  # x, pool, expand, mask_up, mask_dn


# ----------------------------- in-kernel helpers -----------------------------

def _elu(x):
    # ELU(alpha=1): x if x > 0 else exp(x) - 1
    return jnp.where(x > 0, x, jnp.exp(jnp.minimum(x, 0.0)) - 1.0)


def _sigmoid(x):
    return 1.0 / (1.0 + jnp.exp(-x))


def _conv3x3_rowstack(x, pad_ref, m_ref, b_ref, mask_up, mask_dn):
    """3x3 'same' conv (stride 1, bias = folded BN) on TB row-stacked images.

    x:        (M, Win) value, M = TB*ps rows = TB images stacked contiguously.
    pad_ref:  (M+2, Win) VMEM scratch (rows 0 and M+1 are never read unmasked).
    m_ref:    (3, Win, Wout) banded weights (horizontal halo folded in).
    b_ref:    (1, Wout) folded-BN bias, tiled to row-flat width.
    mask_up:  (M, 1) bool, False at the top row of each image.
    mask_dn:  (M, 1) bool, False at the bottom row of each image.
    returns   (M, Wout).
    """
    M = x.shape[0]
    pad_ref[1:M + 1, :] = x
    # Shifted views: row above / row below, zeroed at image boundaries so
    # neighbouring images (and the unwritten scratch rows 0 / M+1) never leak.
    xu = jnp.where(mask_up, pad_ref[0:M, :], 0.0)
    xd = jnp.where(mask_dn, pad_ref[2:M + 2, :], 0.0)
    acc = jnp.dot(xu, m_ref[0], preferred_element_type=jnp.float32)
    acc = acc + jnp.dot(x, m_ref[1], preferred_element_type=jnp.float32)
    acc = acc + jnp.dot(xd, m_ref[2], preferred_element_type=jnp.float32)
    return acc + b_ref[...]


def _se_block(x, pad_ref, prm, pool, expand, mask_up, mask_dn):
    """SEBasicBlockTrans (stride 1) on a row-stacked (M, Win) slab -> (M, Wout)."""
    c1m, c1b, c2m, c2b, se1, se2, upm, upb = prm
    # conv1 -> folded bn1 -> ELU
    h = _elu(_conv3x3_rowstack(x, pad_ref, c1m, c1b, mask_up, mask_dn))
    # conv2 -> folded bn2
    h = _conv3x3_rowstack(h, pad_ref, c2m, c2b, mask_up, mask_dn)
    # Squeeze-and-Excitation.  Per-image spatial mean via selector matmul
    # (1/ps^2 folded into se1); excitation Linears pre-tiled; scale broadcast
    # back per image via the expansion matmul.  All MXU work.
    hsum = jnp.dot(pool, h, preferred_element_type=jnp.float32)          # (TB, Wout)
    z = _elu(jnp.dot(hsum, se1[...], preferred_element_type=jnp.float32))  # (TB, crp)
    s = _sigmoid(jnp.dot(z, se2[...], preferred_element_type=jnp.float32))  # (TB, Wout)
    s_rows = jnp.dot(expand, s, preferred_element_type=jnp.float32)      # (M, Wout)
    # identity path: 1x1 ConvTranspose (block-diag lowered) + folded bn
    ident = jnp.dot(x, upm[...], preferred_element_type=jnp.float32) + upb[...]
    return _elu(h * s_rows + ident)


def _decoder_kernel(*refs):
    n = len(_PARAM_KEYS)
    x_ref, pool_ref, exp_ref, mu_ref, md_ref = refs[:_N_FIXED]
    layers = tuple(refs[_N_FIXED + i * n:_N_FIXED + (i + 1) * n] for i in range(3))
    o_ref = refs[_N_FIXED + 3 * n]
    pads = refs[_N_FIXED + 3 * n + 1:]

    mask_up = mu_ref[...] > 0.5          # (M, 1) bool, hoisted once per step
    mask_dn = md_ref[...] > 0.5
    pool = pool_ref[...]                 # (TB, M) 0/1 selector
    expand = exp_ref[...]                # (M, TB) 0/1 expansion

    h = x_ref[...]                       # (M, ps*ch3) row-flat, TB images stacked
    for i in range(3):
        h = _se_block(h, pads[i], layers[i], pool, expand, mask_up, mask_dn)
    o_ref[...] = h                       # (M, ps*in_channels), lane-dense (128)


# --------------------------------- wrapper ------------------------------------

def decoder_se_forward(x, params, *, patch_size, batch_block=16):
    """x: (B, ch3*ps*ps + out_ch). Returns NCHW (B, in_channels, ps, ps)."""
    B, _ = x.shape
    ps = patch_size
    w0 = params["fc_w"].shape[1] // ps                    # = ps * ch3
    n_out = params["layer3"]["upm"].shape[1]              # = ps * in_channels
    in_channels = n_out // ps

    # fc2 hoisted: full-batch XLA GEMM, columns pre-permuted to row-flat (h,w,c).
    h = jnp.dot(x, params["fc_w"],
                precision=jax.lax.Precision.HIGHEST) + params["fc_b"]
    h = h.reshape(B, ps, w0)

    tb = max(1, min(batch_block, B))
    bp = ((B + tb - 1) // tb) * tb                        # pad batch to multiple of TB
    if bp != B:
        h = jnp.concatenate([h, jnp.zeros((bp - B, ps, w0), h.dtype)], axis=0)
    h2d = h.reshape(bp * ps, w0)                          # TB*ps rows per grid step
    m_rows = tb * ps

    # Host-built constants (traced as literals under jit).
    pool = np.zeros((tb, m_rows), np.float32)
    for t in range(tb):
        pool[t, t * ps:(t + 1) * ps] = 1.0
    expand = np.ascontiguousarray(pool.T)
    rowpos = np.arange(m_rows) % ps
    mask_up = (rowpos != 0).astype(np.float32)[:, None]
    mask_dn = (rowpos != ps - 1).astype(np.float32)[:, None]
    consts = [jnp.asarray(pool), jnp.asarray(expand),
              jnp.asarray(mask_up), jnp.asarray(mask_dn)]

    flat = []
    for name in ("layer1", "layer2", "layer3"):
        flat += [params[name][k] for k in _PARAM_KEYS]
    pad_widths = [params[name]["upm"].shape[0]            # = ps * Cin of the block
                  for name in ("layer1", "layer2", "layer3")]

    in_specs = [pl.BlockSpec((m_rows, w0), lambda b: (b, 0))]
    for p in consts + flat:
        in_specs.append(pl.BlockSpec(p.shape, lambda b, _n=p.ndim: (0,) * _n))

    out2d = pl.pallas_call(
        _decoder_kernel,
        out_shape=jax.ShapeDtypeStruct((bp * ps, n_out), jnp.float32),
        grid=(bp // tb,),
        in_specs=in_specs,
        out_specs=pl.BlockSpec((m_rows, n_out), lambda b: (b, 0)),
        scratch_shapes=[pltpu.VMEM((m_rows + 2, w), jnp.float32)
                        for w in pad_widths],
        compiler_params=pltpu.CompilerParams(
            dimension_semantics=("parallel",)),            # batch blocks independent
    )(h2d, *consts, *flat)

    out2d = out2d[:B * ps]
    # lane-dense row-flat (B*ps, ps*C) -> NCHW to match the PyTorch module.
    return jnp.transpose(out2d.reshape(B, ps, ps, in_channels), (0, 3, 1, 2))


# -------------------- deterministic init (PyTorch layouts) --------------------

def init_raw_params(key, *, ch1, ch2, ch3, out_ch, in_channels, patch_size, r=16):
    keys = iter(jax.random.split(key, 64))

    def nrm(shape, scale=0.1):
        return scale * jax.random.normal(next(keys), shape, jnp.float32)

    def bn(c):
        return dict(
            gamma=1.0 + 0.1 * jax.random.normal(next(keys), (c,), jnp.float32),
            beta=0.1 * jax.random.normal(next(keys), (c,), jnp.float32),
            mean=0.1 * jax.random.normal(next(keys), (c,), jnp.float32),
            var=1.0 + 0.1 * jax.random.uniform(next(keys), (c,), jnp.float32))

    def block(cin, cout):
        cr = max(cout // r, 1)
        return dict(
            conv1_w=nrm((cin, cin, 3, 3)), bn1=bn(cin),        # Conv2d (out,in,kh,kw)
            conv2_w=nrm((cout, cin, 3, 3)), bn2=bn(cout),
            se1_w=nrm((cr, cout)), se2_w=nrm((cout, cr)),      # nn.Linear, bias=False
            up_w=nrm((cin, cout, 1, 1)), bn_up=bn(cout))       # ConvTranspose2d (in,out,1,1)

    d = ch3 * patch_size * patch_size
    return dict(fc_w=nrm((d, d + out_ch)), fc_b=nrm((d,)),
                l1=block(ch3, ch2), l2=block(ch2, ch1), l3=block(ch1, in_channels))


# ----------------- host-side lowering (BN folding + banding) ------------------

def lower_params(raw, *, patch_size):
    ps = patch_size

    def fold(bn):
        g = np.asarray(bn["gamma"], np.float32)
        b = np.asarray(bn["beta"], np.float32)
        m = np.asarray(bn["mean"], np.float32)
        v = np.asarray(bn["var"], np.float32)
        s = g / np.sqrt(v + EPS)
        return s, b - m * s

    def band3x3(w):                    # (3,3,Cin,Cout) -> (3, ps*Cin, ps*Cout)
        _, _, cin, cout = w.shape
        m = np.zeros((3, ps * cin, ps * cout), np.float32)
        for dy in range(3):
            for dx in range(3):
                for x in range(ps):
                    xi = x + dx - 1    # horizontal halo folded into the band
                    if 0 <= xi < ps:
                        m[dy, xi * cin:(xi + 1) * cin,
                          x * cout:(x + 1) * cout] = w[dy, dx]
        return m

    def blockdiag(w):                  # (Cin, Cout) -> (ps*Cin, ps*Cout)
        cin, cout = w.shape
        m = np.zeros((ps * cin, ps * cout), np.float32)
        for x in range(ps):
            m[x * cin:(x + 1) * cin, x * cout:(x + 1) * cout] = w
        return m

    def tile_bias(t):
        return np.tile(np.asarray(t, np.float32), ps)[None, :]

    def lower_block(p):
        s1, t1 = fold(p["bn1"])
        s2, t2 = fold(p["bn2"])
        su, tu = fold(p["bn_up"])
        # PyTorch conv (Cout,Cin,kh,kw) -> (kh,kw,Cin,Cout); BN scale into Cout.
        w1 = np.transpose(np.asarray(p["conv1_w"], np.float32), (2, 3, 1, 0)) * s1
        w2 = np.transpose(np.asarray(p["conv2_w"], np.float32), (2, 3, 1, 0)) * s2
        wu = np.asarray(p["up_w"], np.float32)[:, :, 0, 0] * su
        # SE Linears: tile to row-flat width, fold the 1/ps^2 mean into se1 and
        # zero-pad the bottleneck dim to 8 (ELU(0)=0 and zero rows keep it exact).
        se1_w = np.asarray(p["se1_w"], np.float32)             # (cr, cout)
        se2_w = np.asarray(p["se2_w"], np.float32)             # (cout, cr)
        cr, cout = se1_w.shape
        crp = ((cr + 7) // 8) * 8
        se1t = np.zeros((ps * cout, crp), np.float32)
        se1t[:, :cr] = np.tile(se1_w.T, (ps, 1)) / float(ps * ps)
        se2t = np.zeros((crp, ps * cout), np.float32)
        se2t[:cr, :] = np.tile(se2_w.T, (1, ps))
        return dict(
            c1m=jnp.asarray(band3x3(w1)), c1b=jnp.asarray(tile_bias(t1)),
            c2m=jnp.asarray(band3x3(w2)), c2b=jnp.asarray(tile_bias(t2)),
            se1=jnp.asarray(se1t), se2=jnp.asarray(se2t),
            upm=jnp.asarray(blockdiag(wu)), upb=jnp.asarray(tile_bias(tu)))

    ch3 = raw["l1"]["conv1_w"].shape[1]
    # fc2 (Dout, Din) -> (Din, Dout); permute output columns from the (c,h,w)
    # Unflatten order to (h,w,c) row-flat order (absorbs the NCHW->NHWC transpose).
    wt = np.asarray(raw["fc_w"], np.float32).T
    perm = np.arange(wt.shape[1]).reshape(ch3, ps, ps).transpose(1, 2, 0).reshape(-1)
    return dict(
        fc_w=jnp.asarray(wt[:, perm]),
        fc_b=jnp.asarray(np.asarray(raw["fc_b"], np.float32)[perm]),
        layer1=lower_block(raw["l1"]),
        layer2=lower_block(raw["l2"]),
        layer3=lower_block(raw["l3"]))


# --------------------- pure-JAX reference (for validation) --------------------

def _ref_bn(x, bn):
    s = bn["gamma"] / jnp.sqrt(bn["var"] + EPS)
    return (x - bn["mean"]) * s + bn["beta"]


def _ref_se_block(x, p):
    dn = ("NHWC", "HWIO", "NHWC")
    hi = jax.lax.Precision.HIGHEST
    w1 = jnp.transpose(p["conv1_w"], (2, 3, 1, 0))
    h = jax.lax.conv_general_dilated(x, w1, (1, 1), ((1, 1), (1, 1)),
                                     dimension_numbers=dn, precision=hi)
    h = jax.nn.elu(_ref_bn(h, p["bn1"]))
    w2 = jnp.transpose(p["conv2_w"], (2, 3, 1, 0))
    h = jax.lax.conv_general_dilated(h, w2, (1, 1), ((1, 1), (1, 1)),
                                     dimension_numbers=dn, precision=hi)
    h = _ref_bn(h, p["bn2"])
    y = jnp.mean(h, axis=(1, 2))
    z = jax.nn.elu(y @ p["se1_w"].T)
    s = jax.nn.sigmoid(z @ p["se2_w"].T)
    h = h * s[:, None, None, :]
    ident = jnp.einsum("bhwc,co->bhwo", x, p["up_w"][:, :, 0, 0], precision=hi)
    ident = _ref_bn(ident, p["bn_up"])
    return jax.nn.elu(h + ident)


def reference_forward(x, raw, *, patch_size):
    B = x.shape[0]
    ps = patch_size
    ch3 = raw["l1"]["conv1_w"].shape[1]
    h = jnp.dot(x, raw["fc_w"].T, precision=jax.lax.Precision.HIGHEST) + raw["fc_b"]
    h = h.reshape(B, ch3, ps, ps)                 # Unflatten -> NCHW
    h = jnp.transpose(h, (0, 2, 3, 1))            # -> NHWC
    for name in ("l1", "l2", "l3"):
        h = _ref_se_block(h, raw[name])
    return jnp.transpose(h, (0, 3, 1, 2))         # -> NCHW


# ------------------------------------ main ------------------------------------

if __name__ == "__main__":
    B = 32                     # 2 grid steps of TB=16 -> both v7x TCs get a full block
    ch1, ch2, ch3 = 32, 16, 4
    in_channels = 16           # >= r=16 so every SE block has c//r >= 1
    out_ch = 64
    patch_size = 8

    key = jax.random.PRNGKey(0)
    kx, kp = jax.random.split(key)
    raw = init_raw_params(kp, ch1=ch1, ch2=ch2, ch3=ch3, out_ch=out_ch,
                          in_channels=in_channels, patch_size=patch_size)
    params = lower_params(raw, patch_size=patch_size)

    x = jax.random.normal(
        kx, (B, ch3 * patch_size * patch_size + out_ch), jnp.float32)

    fwd = jax.jit(functools.partial(decoder_se_forward,
                                    patch_size=patch_size, batch_block=16))
    out = jax.block_until_ready(fwd(x, params))

    assert out.shape == (B, in_channels, patch_size, patch_size), out.shape
    assert bool(jnp.all(jnp.isfinite(out)))

    ref = jax.block_until_ready(reference_forward(x, raw, patch_size=patch_size))
    # Tolerance tightened 50x vs the previous version (all-f32 path; the residual
    # slack only covers MXU f32 pass / EUP transcendental differences vs XLA).
    np.testing.assert_allclose(np.asarray(out), np.asarray(ref),
                               rtol=1e-3, atol=1e-3)
    print("KERNEL_OK")
</pallas_src>

<mosaic_0001>
module attributes {stable_mosaic.version = 11 : i64} {
  func.func @_decoder_kernel(%arg0: i32, %arg1: memref<128x32xf32, #tpu.memory_space<vmem>>, %arg2: memref<16x128xf32, #tpu.memory_space<vmem>>, %arg3: memref<128x16xf32, #tpu.memory_space<vmem>>, %arg4: memref<128x1xf32, #tpu.memory_space<vmem>>, %arg5: memref<128x1xf32, #tpu.memory_space<vmem>>, %arg6: memref<3x32x32xf32, #tpu.memory_space<vmem>>, %arg7: memref<1x32xf32, #tpu.memory_space<vmem>>, %arg8: memref<3x32x128xf32, #tpu.memory_space<vmem>>, %arg9: memref<1x128xf32, #tpu.memory_space<vmem>>, %arg10: memref<128x8xf32, #tpu.memory_space<vmem>>, %arg11: memref<8x128xf32, #tpu.memory_space<vmem>>, %arg12: memref<32x128xf32, #tpu.memory_space<vmem>>, %arg13: memref<1x128xf32, #tpu.memory_space<vmem>>, %arg14: memref<3x128x128xf32, #tpu.memory_space<vmem>>, %arg15: memref<1x128xf32, #tpu.memory_space<vmem>>, %arg16: memref<3x128x256xf32, #tpu.memory_space<vmem>>, %arg17: memref<1x256xf32, #tpu.memory_space<vmem>>, %arg18: memref<256x8xf32, #tpu.memory_space<vmem>>, %arg19: memref<8x256xf32, #tpu.memory_space<vmem>>, %arg20: memref<128x256xf32, #tpu.memory_space<vmem>>, %arg21: memref<1x256xf32, #tpu.memory_space<vmem>>, %arg22: memref<3x256x256xf32, #tpu.memory_space<vmem>>, %arg23: memref<1x256xf32, #tpu.memory_space<vmem>>, %arg24: memref<3x256x128xf32, #tpu.memory_space<vmem>>, %arg25: memref<1x128xf32, #tpu.memory_space<vmem>>, %arg26: memref<128x8xf32, #tpu.memory_space<vmem>>, %arg27: memref<8x128xf32, #tpu.memory_space<vmem>>, %arg28: memref<256x128xf32, #tpu.memory_space<vmem>>, %arg29: memref<1x128xf32, #tpu.memory_space<vmem>>, %arg30: memref<128x128xf32, #tpu.memory_space<vmem>>, %arg31: memref<130x32xf32, #tpu.memory_space<vmem>>, %arg32: memref<130x128xf32, #tpu.memory_space<vmem>>, %arg33: memref<130x256xf32, #tpu.memory_space<vmem>>) attributes {dimension_semantics = [#tpu.dimension_semantics<parallel>], iteration_bounds = array<i64: 2>, scalar_prefetch = 0 : i64, scratch_operands = 3 : i64, tpu.core_type = #tpu.core_type<tc>, window_params = [{transform_indices = @transform_0, window_bounds = array<i64: 128, 32>}, {pipeline_mode = #tpu.pipeline_mode<synchronous>, transform_indices = @transform_1, window_bounds = array<i64: 16, 128>}, {pipeline_mode = #tpu.pipeline_mode<synchronous>, transform_indices = @transform_2, window_bounds = array<i64: 128, 16>}, {pipeline_mode = #tpu.pipeline_mode<synchronous>, transform_indices = @transform_3, window_bounds = array<i64: 128, 1>}, {pipeline_mode = #tpu.pipeline_mode<synchronous>, transform_indices = @transform_4, window_bounds = array<i64: 128, 1>}, {pipeline_mode = #tpu.pipeline_mode<synchronous>, transform_indices = @transform_5, window_bounds = array<i64: 3, 32, 32>}, {pipeline_mode = #tpu.pipeline_mode<synchronous>, transform_indices = @transform_6, window_bounds = array<i64: 1, 32>}, {pipeline_mode = #tpu.pipeline_mode<synchronous>, transform_indices = @transform_7, window_bounds = array<i64: 3, 32, 128>}, {pipeline_mode = #tpu.pipeline_mode<synchronous>, transform_indices = @transform_8, window_bounds = array<i64: 1, 128>}, {pipeline_mode = #tpu.pipeline_mode<synchronous>, transform_indices = @transform_9, window_bounds = array<i64: 128, 8>}, {pipeline_mode = #tpu.pipeline_mode<synchronous>, transform_indices = @transform_10, window_bounds = array<i64: 8, 128>}, {pipeline_mode = #tpu.pipeline_mode<synchronous>, transform_indices = @transform_11, window_bounds = array<i64: 32, 128>}, {pipeline_mode = #tpu.pipeline_mode<synchronous>, transform_indices = @transform_12, window_bounds = array<i64: 1, 128>}, {pipeline_mode = #tpu.pipeline_mode<synchronous>, transform_indices = @transform_13, window_bounds = array<i64: 3, 128, 128>}, {pipeline_mode = #tpu.pipeline_mode<synchronous>, transform_indices = @transform_14, window_bounds = array<i64: 1, 128>}, {pipeline_mode = #tpu.pipeline_mode<synchronous>, transform_indices = @transform_15, window_bounds = array<i64: 3, 128, 256>}, {pipeline_mode = #tpu.pipeline_mode<synchronous>, transform_indices = @transform_16, window_bounds = array<i64: 1, 256>}, {pipeline_mode = #tpu.pipeline_mode<synchronous>, transform_indices = @transform_17, window_bounds = array<i64: 256, 8>}, {pipeline_mode = #tpu.pipeline_mode<synchronous>, transform_indices = @transform_18, window_bounds = array<i64: 8, 256>}, {pipeline_mode = #tpu.pipeline_mode<synchronous>, transform_indices = @transform_19, window_bounds = array<i64: 128, 256>}, {pipeline_mode = #tpu.pipeline_mode<synchronous>, transform_indices = @transform_20, window_bounds = array<i64: 1, 256>}, {pipeline_mode = #tpu.pipeline_mode<synchronous>, transform_indices = @transform_21, window_bounds = array<i64: 3, 256, 256>}, {pipeline_mode = #tpu.pipeline_mode<synchronous>, transform_indices = @transform_22, window_bounds = array<i64: 1, 256>}, {pipeline_mode = #tpu.pipeline_mode<synchronous>, transform_indices = @transform_23, window_bounds = array<i64: 3, 256, 128>}, {pipeline_mode = #tpu.pipeline_mode<synchronous>, transform_indices = @transform_24, window_bounds = array<i64: 1, 128>}, {pipeline_mode = #tpu.pipeline_mode<synchronous>, transform_indices = @transform_25, window_bounds = array<i64: 128, 8>}, {pipeline_mode = #tpu.pipeline_mode<synchronous>, transform_indices = @transform_26, window_bounds = array<i64: 8, 128>}, {pipeline_mode = #tpu.pipeline_mode<synchronous>, transform_indices = @transform_27, window_bounds = array<i64: 256, 128>}, {pipeline_mode = #tpu.pipeline_mode<synchronous>, transform_indices = @transform_28, window_bounds = array<i64: 1, 128>}, {transform_indices = @transform_29, window_bounds = array<i64: 128, 128>}]} {
    %c0 = arith.constant 0 : index
    %c0_0 = arith.constant 0 : index
    %0 = vector.load %arg4[%c0, %c0_0] : memref<128x1xf32, #tpu.memory_space<vmem>>, vector<128x1xf32>
    %cst = arith.constant 5.000000e-01 : f32
    %1 = vector.broadcast %cst : f32 to vector<128x1xf32>
    %2 = arith.cmpf ogt, %0, %1 : vector<128x1xf32>
    %c0_1 = arith.constant 0 : index
    %c0_2 = arith.constant 0 : index
    %3 = vector.load %arg5[%c0_1, %c0_2] : memref<128x1xf32, #tpu.memory_space<vmem>>, vector<128x1xf32>
    %cst_3 = arith.constant 5.000000e-01 : f32
    %4 = vector.broadcast %cst_3 : f32 to vector<128x1xf32>
    %5 = arith.cmpf ogt, %3, %4 : vector<128x1xf32>
    %c0_4 = arith.constant 0 : index
    %c0_5 = arith.constant 0 : index
    %6 = vector.load %arg2[%c0_4, %c0_5] : memref<16x128xf32, #tpu.memory_space<vmem>>, vector<16x128xf32>
    %c0_6 = arith.constant 0 : index
    %c0_7 = arith.constant 0 : index
    %7 = vector.load %arg3[%c0_6, %c0_7] : memref<128x16xf32, #tpu.memory_space<vmem>>, vector<128x16xf32>
    %c0_8 = arith.constant 0 : index
    %c0_9 = arith.constant 0 : index
    %8 = vector.load %arg1[%c0_8, %c0_9] : memref<128x32xf32, #tpu.memory_space<vmem>>, vector<128x32xf32>
    %c1 = arith.constant 1 : index
    %c0_10 = arith.constant 0 : index
    %9 = vector.load %arg31[%c1, %c0_10] : memref<130x32xf32, #tpu.memory_space<vmem>>, vector<128x32xf32>
    tpu.vector_store %arg31[%c1, %c0_10], %8 {strides = array<i32>} : memref<130x32xf32, #tpu.memory_space<vmem>>, vector<128x32xf32>,
    %c0_11 = arith.constant 0 : index
    %c0_12 = arith.constant 0 : index
    %10 = vector.load %arg31[%c0_11, %c0_12] : memref<130x32xf32, #tpu.memory_space<vmem>>, vector<128x32xf32>
    %cst_13 = arith.constant 0.000000e+00 : f32
    %11 = vector.shape_cast %2 : vector<128x1xi1> to vector<128x1xi1>
    %12 = vector.broadcast %11 : vector<128x1xi1> to vector<128x32xi1>
    %13 = vector.broadcast %cst_13 : f32 to vector<128x32xf32>
    %14 = arith.select %12, %10, %13 : vector<128x32xi1>, vector<128x32xf32>
    %c2 = arith.constant 2 : index
    %c0_14 = arith.constant 0 : index
    %15 = vector.load %arg31[%c2, %c0_14] : memref<130x32xf32, #tpu.memory_space<vmem>>, vector<128x32xf32>
    %cst_15 = arith.constant 0.000000e+00 : f32
    %16 = vector.shape_cast %5 : vector<128x1xi1> to vector<128x1xi1>
    %17 = vector.broadcast %16 : vector<128x1xi1> to vector<128x32xi1>
    %18 = vector.broadcast %cst_15 : f32 to vector<128x32xf32>
    %19 = arith.select %17, %15, %18 : vector<128x32xi1>, vector<128x32xf32>
    %c0_16 = arith.constant 0 : index
    %c0_17 = arith.constant 0 : index
    %c0_18 = arith.constant 0 : index
    %20 = vector.load %arg6[%c0_16, %c0_17, %c0_18] : memref<3x32x32xf32, #tpu.memory_space<vmem>>, vector<1x32x32xf32>
    %21 = vector.shape_cast %20 : vector<1x32x32xf32> to vector<32x32xf32>
    %cst_19 = arith.constant dense<0.000000e+00> : vector<128x32xf32>
    %22 = tpu.matmul %14, %21, %cst_19 {dimension_numbers = #tpu.dot_dimension_numbers<[1], [0], [0], [1], [0, 0, 1, 1], [], []>} : vector<128x32xf32>, vector<32x32xf32>, vector<128x32xf32> -> vector<128x32xf32>
    %c1_20 = arith.constant 1 : index
    %c0_21 = arith.constant 0 : index
    %c0_22 = arith.constant 0 : index
    %23 = vector.load %arg6[%c1_20, %c0_21, %c0_22] : memref<3x32x32xf32, #tpu.memory_space<vmem>>, vector<1x32x32xf32>
    %24 = vector.shape_cast %23 : vector<1x32x32xf32> to vector<32x32xf32>
    %cst_23 = arith.constant dense<0.000000e+00> : vector<128x32xf32>
    %25 = tpu.matmul %8, %24, %cst_23 {dimension_numbers = #tpu.dot_dimension_numbers<[1], [0], [0], [1], [0, 0, 1, 1], [], []>} : vector<128x32xf32>, vector<32x32xf32>, vector<128x32xf32> -> vector<128x32xf32>
    %26 = arith.addf %22, %25 : vector<128x32xf32>
    %c2_24 = arith.constant 2 : index
    %c0_25 = arith.constant 0 : index
    %c0_26 = arith.constant 0 : index
    %27 = vector.load %arg6[%c2_24, %c0_25, %c0_26] : memref<3x32x32xf32, #tpu.memory_space<vmem>>, vector<1x32x32xf32>
    %28 = vector.shape_cast %27 : vector<1x32x32xf32> to vector<32x32xf32>
    %cst_27 = arith.constant dense<0.000000e+00> : vector<128x32xf32>
    %29 = tpu.matmul %19, %28, %cst_27 {dimension_numbers = #tpu.dot_dimension_numbers<[1], [0], [0], [1], [0, 0, 1, 1], [], []>} : vector<128x32xf32>, vector<32x32xf32>, vector<128x32xf32> -> vector<128x32xf32>
    %30 = arith.addf %26, %29 : vector<128x32xf32>
    %c0_28 = arith.constant 0 : index
    %c0_29 = arith.constant 0 : index
    %31 = vector.load %arg7[%c0_28, %c0_29] : memref<1x32xf32, #tpu.memory_space<vmem>>, vector<1x32xf32>
    %32 = vector.broadcast %31 : vector<1x32xf32> to vector<128x32xf32>
    %33 = arith.addf %30, %32 : vector<128x32xf32>
    %cst_30 = arith.constant 0.000000e+00 : f32
    %34 = vector.broadcast %cst_30 : f32 to vector<128x32xf32>
    %35 = arith.cmpf ogt, %33, %34 : vector<128x32xf32>
    %cst_31 = arith.constant 0.000000e+00 : f32
    %36 = vector.broadcast %cst_31 : f32 to vector<128x32xf32>
    %37 = arith.minimumf %33, %36 : vector<128x32xf32>
    %38 = math.exp %37 : vector<128x32xf32>
    %cst_32 = arith.constant 1.000000e+00 : f32
    %39 = vector.broadcast %cst_32 : f32 to vector<128x32xf32>
    %40 = arith.subf %38, %39 : vector<128x32xf32>
    %41 = arith.select %35, %33, %40 : vector<128x32xi1>, vector<128x32xf32>
    %c1_33 = arith.constant 1 : index
    %c0_34 = arith.constant 0 : index
    %42 = vector.load %arg31[%c1_33, %c0_34] : memref<130x32xf32, #tpu.memory_space<vmem>>, vector<128x32xf32>
    tpu.vector_store %arg31[%c1_33, %c0_34], %41 {strides = array<i32>} : memref<130x32xf32, #tpu.memory_space<vmem>>, vector<128x32xf32>,
    %c0_35 = arith.constant 0 : index
    %c0_36 = arith.constant 0 : index
    %43 = vector.load %arg31[%c0_35, %c0_36] : memref<130x32xf32, #tpu.memory_space<vmem>>, vector<128x32xf32>
    %cst_37 = arith.constant 0.000000e+00 : f32
    %44 = vector.shape_cast %2 : vector<128x1xi1> to vector<128x1xi1>
    %45 = vector.broadcast %44 : vector<128x1xi1> to vector<128x32xi1>
    %46 = vector.broadcast %cst_37 : f32 to vector<128x32xf32>
    %47 = arith.select %45, %43, %46 : vector<128x32xi1>, vector<128x32xf32>
    %c2_38 = arith.constant 2 : index
    %c0_39 = arith.constant 0 : index
    %48 = vector.load %arg31[%c2_38, %c0_39] : memref<130x32xf32, #tpu.memory_space<vmem>>, vector<128x32xf32>
    %cst_40 = arith.constant 0.000000e+00 : f32
    %49 = vector.shape_cast %5 : vector<128x1xi1> to vector<128x1xi1>
    %50 = vector.broadcast %49 : vector<128x1xi1> to vector<128x32xi1>
    %51 = vector.broadcast %cst_40 : f32 to vector<128x32xf32>
    %52 = arith.select %50, %48, %51 : vector<128x32xi1>, vector<128x32xf32>
    %c0_41 = arith.constant 0 : index
    %c0_42 = arith.constant 0 : index
    %c0_43 = arith.constant 0 : index
    %53 = vector.load %arg8[%c0_41, %c0_42, %c0_43] : memref<3x32x128xf32, #tpu.memory_space<vmem>>, vector<1x32x128xf32>
    %54 = vector.shape_cast %53 : vector<1x32x128xf32> to vector<32x128xf32>
    %cst_44 = arith.constant dense<0.000000e+00> : vector<128x128xf32>
    %55 = tpu.matmul %47, %54, %cst_44 {dimension_numbers = #tpu.dot_dimension_numbers<[1], [0], [0], [1], [0, 0, 1, 1], [], []>} : vector<128x32xf32>, vector<32x128xf32>, vector<128x128xf32> -> vector<128x128xf32>
    %c1_45 = arith.constant 1 : index
    %c0_46 = arith.constant 0 : index
    %c0_47 = arith.constant 0 : index
    %56 = vector.load %arg8[%c1_45, %c0_46, %c0_47] : memref<3x32x128xf32, #tpu.memory_space<vmem>>, vector<1x32x128xf32>
    %57 = vector.shape_cast %56 : vector<1x32x128xf32> to vector<32x128xf32>
    %cst_48 = arith.constant dense<0.000000e+00> : vector<128x128xf32>
    %58 = tpu.matmul %41, %57, %cst_48 {dimension_numbers = #tpu.dot_dimension_numbers<[1], [0], [0], [1], [0, 0, 1, 1], [], []>} : vector<128x32xf32>, vector<32x128xf32>, vector<128x128xf32> -> vector<128x128xf32>
    %59 = arith.addf %55, %58 : vector<128x128xf32>
    %c2_49 = arith.constant 2 : index
    %c0_50 = arith.constant 0 : index
    %c0_51 = arith.constant 0 : index
    %60 = vector.load %arg8[%c2_49, %c0_50, %c0_51] : memref<3x32x128xf32, #tpu.memory_space<vmem>>, vector<1x32x128xf32>
    %61 = vector.shape_cast %60 : vector<1x32x128xf32> to vector<32x128xf32>
    %cst_52 = arith.constant dense<0.000000e+00> : vector<128x128xf32>
    %62 = tpu.matmul %52, %61, %cst_52 {dimension_numbers = #tpu.dot_dimension_numbers<[1], [0], [0], [1], [0, 0, 1, 1], [], []>} : vector<128x32xf32>, vector<32x128xf32>, vector<128x128xf32> -> vector<128x128xf32>
    %63 = arith.addf %59, %62 : vector<128x128xf32>
    %c0_53 = arith.constant 0 : index
    %c0_54 = arith.constant 0 : index
    %64 = vector.load %arg9[%c0_53, %c0_54] : memref<1x128xf32, #tpu.memory_space<vmem>>, vector<1x128xf32>
    %65 = vector.broadcast %64 : vector<1x128xf32> to vector<128x128xf32>
    %66 = arith.addf %63, %65 : vector<128x128xf32>
    %cst_55 = arith.constant dense<0.000000e+00> : vector<16x128xf32>
    %67 = tpu.matmul %6, %66, %cst_55 {dimension_numbers = #tpu.dot_dimension_numbers<[1], [0], [0], [1], [0, 0, 1, 1], [], []>} : vector<16x128xf32>, vector<128x128xf32>, vector<16x128xf32> -> vector<16x128xf32>
    %c0_56 = arith.constant 0 : index
    %c0_57 = arith.constant 0 : index
    %68 = vector.load %arg10[%c0_56, %c0_57] : memref<128x8xf32, #tpu.memory_space<vmem>>, vector<128x8xf32>
    %cst_58 = arith.constant dense<0.000000e+00> : vector<16x8xf32>
    %69 = tpu.matmul %67, %68, %cst_58 {dimension_numbers = #tpu.dot_dimension_numbers<[1], [0], [0], [1], [0, 0, 1, 1], [], []>} : vector<16x128xf32>, vector<128x8xf32>, vector<16x8xf32> -> vector<16x8xf32>
    %cst_59 = arith.constant 0.000000e+00 : f32
    %70 = vector.broadcast %cst_59 : f32 to vector<16x8xf32>
    %71 = arith.cmpf ogt, %69, %70 : vector<16x8xf32>
    %cst_60 = arith.constant 0.000000e+00 : f32
    %72 = vector.broadcast %cst_60 : f32 to vector<16x8xf32>
    %73 = arith.minimumf %69, %72 : vector<16x8xf32>
    %74 = math.exp %73 : vector<16x8xf32>
    %cst_61 = arith.constant 1.000000e+00 : f32
    %75 = vector.broadcast %cst_61 : f32 to vector<16x8xf32>
    %76 = arith.subf %74, %75 : vector<16x8xf32>
    %77 = arith.select %71, %69, %76 : vector<16x8xi1>, vector<16x8xf32>
    %c0_62 = arith.constant 0 : index
    %c0_63 = arith.constant 0 : index
    %78 = vector.load %arg11[%c0_62, %c0_63] : memref<8x128xf32, #tpu.memory_space<vmem>>, vector<8x128xf32>
    %cst_64 = arith.constant dense<0.000000e+00> : vector<16x128xf32>
    %79 = tpu.matmul %77, %78, %cst_64 {dimension_numbers = #tpu.dot_dimension_numbers<[1], [0], [0], [1], [0, 0, 1, 1], [], []>} : vector<16x8xf32>, vector<8x128xf32>, vector<16x128xf32> -> vector<16x128xf32>
    %cst_65 = arith.constant 0.000000e+00 : f32
    %80 = vector.broadcast %cst_65 : f32 to vector<16x128xf32>
    %81 = arith.subf %80, %79 : vector<16x128xf32>
    %82 = math.exp %81 : vector<16x128xf32>
    %cst_66 = arith.constant 1.000000e+00 : f32
    %83 = vector.broadcast %cst_66 : f32 to vector<16x128xf32>
    %84 = arith.addf %83, %82 : vector<16x128xf32>
    %cst_67 = arith.constant 1.000000e+00 : f32
    %85 = vector.broadcast %cst_67 : f32 to vector<16x128xf32>
    %86 = arith.divf %85, %84 : vector<16x128xf32>
    %cst_68 = arith.constant dense<0.000000e+00> : vector<128x128xf32>
    %87 = tpu.matmul %7, %86, %cst_68 {dimension_numbers = #tpu.dot_dimension_numbers<[1], [0], [0], [1], [0, 0, 1, 1], [], []>} : vector<128x16xf32>, vector<16x128xf32>, vector<128x128xf32> -> vector<128x128xf32>
    %c0_69 = arith.constant 0 : index
    %c0_70 = arith.constant 0 : index
    %88 = vector.load %arg12[%c0_69, %c0_70] : memref<32x128xf32, #tpu.memory_space<vmem>>, vector<32x128xf32>
    %cst_71 = arith.constant dense<0.000000e+00> : vector<128x128xf32>
    %89 = tpu.matmul %8, %88, %cst_71 {dimension_numbers = #tpu.dot_dimension_numbers<[1], [0], [0], [1], [0, 0, 1, 1], [], []>} : vector<128x32xf32>, vector<32x128xf32>, vector<128x128xf32> -> vector<128x128xf32>
    %c0_72 = arith.constant 0 : index
    %c0_73 = arith.constant 0 : index
    %90 = vector.load %arg13[%c0_72, %c0_73] : memref<1x128xf32, #tpu.memory_space<vmem>>, vector<1x128xf32>
    %91 = vector.broadcast %90 : vector<1x128xf32> to vector<128x128xf32>
    %92 = arith.addf %89, %91 : vector<128x128xf32>
    %93 = arith.mulf %66, %87 : vector<128x128xf32>
    %94 = arith.addf %93, %92 : vector<128x128xf32>
    %cst_74 = arith.constant 0.000000e+00 : f32
    %95 = vector.broadcast %cst_74 : f32 to vector<128x128xf32>
    %96 = arith.cmpf ogt, %94, %95 : vector<128x128xf32>
    %cst_75 = arith.constant 0.000000e+00 : f32
    %97 = vector.broadcast %cst_75 : f32 to vector<128x128xf32>
    %98 = arith.minimumf %94, %97 : vector<128x128xf32>
    %99 = math.exp %98 : vector<128x128xf32>
    %cst_76 = arith.constant 1.000000e+00 : f32
    %100 = vector.broadcast %cst_76 : f32 to vector<128x128xf32>
    %101 = arith.subf %99, %100 : vector<128x128xf32>
    %102 = arith.select %96, %94, %101 : vector<128x128xi1>, vector<128x128xf32>
    %c1_77 = arith.constant 1 : index
    %c0_78 = arith.constant 0 : index
    %103 = vector.load %arg32[%c1_77, %c0_78] : memref<130x128xf32, #tpu.memory_space<vmem>>, vector<128x128xf32>
    tpu.vector_store %arg32[%c1_77, %c0_78], %102 {strides = array<i32>} : memref<130x128xf32, #tpu.memory_space<vmem>>, vector<128x128xf32>,
    %c0_79 = arith.constant 0 : index
    %c0_80 = arith.constant 0 : index
    %104 = vector.load %arg32[%c0_79, %c0_80] : memref<130x128xf32, #tpu.memory_space<vmem>>, vector<128x128xf32>
    %cst_81 = arith.constant 0.000000e+00 : f32
    %105 = vector.shape_cast %2 : vector<128x1xi1> to vector<128x1xi1>
    %106 = vector.broadcast %105 : vector<128x1xi1> to vector<128x128xi1>
    %107 = vector.broadcast %cst_81 : f32 to vector<128x128xf32>
    %108 = arith.select %106, %104, %107 : vector<128x128xi1>, vector<128x128xf32>
    %c2_82 = arith.constant 2 : index
    %c0_83 = arith.constant 0 : index
    %109 = vector.load %arg32[%c2_82, %c0_83] : memref<130x128xf32, #tpu.memory_space<vmem>>, vector<128x128xf32>
    %cst_84 = arith.constant 0.000000e+00 : f32
    %110 = vector.shape_cast %5 : vector<128x1xi1> to vector<128x1xi1>
    %111 = vector.broadcast %110 : vector<128x1xi1> to vector<128x128xi1>
    %112 = vector.broadcast %cst_84 : f32 to vector<128x128xf32>
    %113 = arith.select %111, %109, %112 : vector<128x128xi1>, vector<128x128xf32>
    %c0_85 = arith.constant 0 : index
    %c0_86 = arith.constant 0 : index
    %c0_87 = arith.constant 0 : index
    %114 = vector.load %arg14[%c0_85, %c0_86, %c0_87] : memref<3x128x128xf32, #tpu.memory_space<vmem>>, vector<1x128x128xf32>
    %115 = vector.shape_cast %114 : vector<1x128x128xf32> to vector<128x128xf32>
    %cst_88 = arith.constant dense<0.000000e+00> : vector<128x128xf32>
    %116 = tpu.matmul %108, %115, %cst_88 {dimension_numbers = #tpu.dot_dimension_numbers<[1], [0], [0], [1], [0, 0, 1, 1], [], []>} : vector<128x128xf32>, vector<128x128xf32>, vector<128x128xf32> -> vector<128x128xf32>
    %c1_89 = arith.constant 1 : index
    %c0_90 = arith.constant 0 : index
    %c0_91 = arith.constant 0 : index
    %117 = vector.load %arg14[%c1_89, %c0_90, %c0_91] : memref<3x128x128xf32, #tpu.memory_space<vmem>>, vector<1x128x128xf32>
    %118 = vector.shape_cast %117 : vector<1x128x128xf32> to vector<128x128xf32>
    %cst_92 = arith.constant dense<0.000000e+00> : vector<128x128xf32>
    %119 = tpu.matmul %102, %118, %cst_92 {dimension_numbers = #tpu.dot_dimension_numbers<[1], [0], [0], [1], [0, 0, 1, 1], [], []>} : vector<128x128xf32>, vector<128x128xf32>, vector<128x128xf32> -> vector<128x128xf32>
    %120 = arith.addf %116, %119 : vector<128x128xf32>
    %c2_93 = arith.constant 2 : index
    %c0_94 = arith.constant 0 : index
    %c0_95 = arith.constant 0 : index
    %121 = vector.load %arg14[%c2_93, %c0_94, %c0_95] : memref<3x128x128xf32, #tpu.memory_space<vmem>>, vector<1x128x128xf32>
    %122 = vector.shape_cast %121 : vector<1x128x128xf32> to vector<128x128xf32>
    %cst_96 = arith.constant dense<0.000000e+00> : vector<128x128xf32>
    %123 = tpu.matmul %113, %122, %cst_96 {dimension_numbers = #tpu.dot_dimension_numbers<[1], [0], [0], [1], [0, 0, 1, 1], [], []>} : vector<128x128xf32>, vector<128x128xf32>, vector<128x128xf32> -> vector<128x128xf32>
    %124 = arith.addf %120, %123 : vector<128x128xf32>
    %c0_97 = arith.constant 0 : index
    %c0_98 = arith.constant 0 : index
    %125 = vector.load %arg15[%c0_97, %c0_98] : memref<1x128xf32, #tpu.memory_space<vmem>>, vector<1x128xf32>
    %126 = vector.broadcast %125 : vector<1x128xf32> to vector<128x128xf32>
    %127 = arith.addf %124, %126 : vector<128x128xf32>
    %cst_99 = arith.constant 0.000000e+00 : f32
    %128 = vector.broadcast %cst_99 : f32 to vector<128x128xf32>
    %129 = arith.cmpf ogt, %127, %128 : vector<128x128xf32>
    %cst_100 = arith.constant 0.000000e+00 : f32
    %130 = vector.broadcast %cst_100 : f32 to vector<128x128xf32>
    %131 = arith.minimumf %127, %130 : vector<128x128xf32>
    %132 = math.exp %131 : vector<128x128xf32>
    %cst_101 = arith.constant 1.000000e+00 : f32
    %133 = vector.broadcast %cst_101 : f32 to vector<128x128xf32>
    %134 = arith.subf %132, %133 : vector<128x128xf32>
    %135 = arith.select %129, %127, %134 : vector<128x128xi1>, vector<128x128xf32>
    %c1_102 = arith.constant 1 : index
    %c0_103 = arith.constant 0 : index
    %136 = vector.load %arg32[%c1_102, %c0_103] : memref<130x128xf32, #tpu.memory_space<vmem>>, vector<128x128xf32>
    tpu.vector_store %arg32[%c1_102, %c0_103], %135 {strides = array<i32>} : memref<130x128xf32, #tpu.memory_space<vmem>>, vector<128x128xf32>,
    %c0_104 = arith.constant 0 : index
    %c0_105 = arith.constant 0 : index
    %137 = vector.load %arg32[%c0_104, %c0_105] : memref<130x128xf32, #tpu.memory_space<vmem>>, vector<128x128xf32>
    %cst_106 = arith.constant 0.000000e+00 : f32
    %138 = vector.shape_cast %2 : vector<128x1xi1> to vector<128x1xi1>
    %139 = vector.broadcast %138 : vector<128x1xi1> to vector<128x128xi1>
    %140 = vector.broadcast %cst_106 : f32 to vector<128x128xf32>
    %141 = arith.select %139, %137, %140 : vector<128x128xi1>, vector<128x128xf32>
    %c2_107 = arith.constant 2 : index
    %c0_108 = arith.constant 0 : index
    %142 = vector.load %arg32[%c2_107, %c0_108] : memref<130x128xf32, #tpu.memory_space<vmem>>, vector<128x128xf32>
    %cst_109 = arith.constant 0.000000e+00 : f32
    %143 = vector.shape_cast %5 : vector<128x1xi1> to vector<128x1xi1>
    %144 = vector.broadcast %143 : vector<128x1xi1> to vector<128x128xi1>
    %145 = vector.broadcast %cst_109 : f32 to vector<128x128xf32>
    %146 = arith.select %144, %142, %145 : vector<128x128xi1>, vector<128x128xf32>
    %c0_110 = arith.constant 0 : index
    %c0_111 = arith.constant 0 : index
    %c0_112 = arith.constant 0 : index
    %147 = vector.load %arg16[%c0_110, %c0_111, %c0_112] : memref<3x128x256xf32, #tpu.memory_space<vmem>>, vector<1x128x256xf32>
    %148 = vector.shape_cast %147 : vector<1x128x256xf32> to vector<128x256xf32>
    %cst_113 = arith.constant dense<0.000000e+00> : vector<128x256xf32>
    %149 = tpu.matmul %141, %148, %cst_113 {dimension_numbers = #tpu.dot_dimension_numbers<[1], [0], [0], [1], [0, 0, 1, 1], [], []>} : vector<128x128xf32>, vector<128x256xf32>, vector<128x256xf32> -> vector<128x256xf32>
    %c1_114 = arith.constant 1 : index
    %c0_115 = arith.constant 0 : index
    %c0_116 = arith.constant 0 : index
    %150 = vector.load %arg16[%c1_114, %c0_115, %c0_116] : memref<3x128x256xf32, #tpu.memory_space<vmem>>, vector<1x128x256xf32>
    %151 = vector.shape_cast %150 : vector<1x128x256xf32> to vector<128x256xf32>
    %cst_117 = arith.constant dense<0.000000e+00> : vector<128x256xf32>
    %152 = tpu.matmul %135, %151, %cst_117 {dimension_numbers = #tpu.dot_dimension_numbers<[1], [0], [0], [1], [0, 0, 1, 1], [], []>} : vector<128x128xf32>, vector<128x256xf32>, vector<128x256xf32> -> vector<128x256xf32>
    %153 = arith.addf %149, %152 : vector<128x256xf32>
    %c2_118 = arith.constant 2 : index
    %c0_119 = arith.constant 0 : index
    %c0_120 = arith.constant 0 : index
    %154 = vector.load %arg16[%c2_118, %c0_119, %c0_120] : memref<3x128x256xf32, #tpu.memory_space<vmem>>, vector<1x128x256xf32>
    %155 = vector.shape_cast %154 : vector<1x128x256xf32> to vector<128x256xf32>
    %cst_121 = arith.constant dense<0.000000e+00> : vector<128x256xf32>
    %156 = tpu.matmul %146, %155, %cst_121 {dimension_numbers = #tpu.dot_dimension_numbers<[1], [0], [0], [1], [0, 0, 1, 1], [], []>} : vector<128x128xf32>, vector<128x256xf32>, vector<128x256xf32> -> vector<128x256xf32>
    %157 = arith.addf %153, %156 : vector<128x256xf32>
    %c0_122 = arith.constant 0 : index
    %c0_123 = arith.constant 0 : index
    %158 = vector.load %arg17[%c0_122, %c0_123] : memref<1x256xf32, #tpu.memory_space<vmem>>, vector<1x256xf32>
    %159 = vector.broadcast %158 : vector<1x256xf32> to vector<128x256xf32>
    %160 = arith.addf %157, %159 : vector<128x256xf32>
    %cst_124 = arith.constant dense<0.000000e+00> : vector<16x256xf32>
    %161 = tpu.matmul %6, %160, %cst_124 {dimension_numbers = #tpu.dot_dimension_numbers<[1], [0], [0], [1], [0, 0, 1, 1], [], []>} : vector<16x128xf32>, vector<128x256xf32>, vector<16x256xf32> -> vector<16x256xf32>
    %c0_125 = arith.constant 0 : index
    %c0_126 = arith.constant 0 : index
    %162 = vector.load %arg18[%c0_125, %c0_126] : memref<256x8xf32, #tpu.memory_space<vmem>>, vector<256x8xf32>
    %cst_127 = arith.constant dense<0.000000e+00> : vector<16x8xf32>
    %163 = tpu.matmul %161, %162, %cst_127 {dimension_numbers = #tpu.dot_dimension_numbers<[1], [0], [0], [1], [0, 0, 1, 1], [], []>} : vector<16x256xf32>, vector<256x8xf32>, vector<16x8xf32> -> vector<16x8xf32>
    %cst_128 = arith.constant 0.000000e+00 : f32
    %164 = vector.broadcast %cst_128 : f32 to vector<16x8xf32>
    %165 = arith.cmpf ogt, %163, %164 : vector<16x8xf32>
    %cst_129 = arith.constant 0.000000e+00 : f32
    %166 = vector.broadcast %cst_129 : f32 to vector<16x8xf32>
    %167 = arith.minimumf %163, %166 : vector<16x8xf32>
    %168 = math.exp %167 : vector<16x8xf32>
    %cst_130 = arith.constant 1.000000e+00 : f32
    %169 = vector.broadcast %cst_130 : f32 to vector<16x8xf32>
    %170 = arith.subf %168, %169 : vector<16x8xf32>
    %171 = arith.select %165, %163, %170 : vector<16x8xi1>, vector<16x8xf32>
    %c0_131 = arith.constant 0 : index
    %c0_132 = arith.constant 0 : index
    %172 = vector.load %arg19[%c0_131, %c0_132] : memref<8x256xf32, #tpu.memory_space<vmem>>, vector<8x256xf32>
    %cst_133 = arith.constant dense<0.000000e+00> : vector<16x256xf32>
    %173 = tpu.matmul %171, %172, %cst_133 {dimension_numbers = #tpu.dot_dimension_numbers<[1], [0], [0], [1], [0, 0, 1, 1], [], []>} : vector<16x8xf32>, vector<8x256xf32>, vector<16x256xf32> -> vector<16x256xf32>
    %cst_134 = arith.constant 0.000000e+00 : f32
    %174 = vector.broadcast %cst_134 : f32 to vector<16x256xf32>
    %175 = arith.subf %174, %173 : vector<16x256xf32>
    %176 = math.exp %175 : vector<16x256xf32>
    %cst_135 = arith.constant 1.000000e+00 : f32
    %177 = vector.broadcast %cst_135 : f32 to vector<16x256xf32>
    %178 = arith.addf %177, %176 : vector<16x256xf32>
    %cst_136 = arith.constant 1.000000e+00 : f32
    %179 = vector.broadcast %cst_136 : f32 to vector<16x256xf32>
    %180 = arith.divf %179, %178 : vector<16x256xf32>
    %cst_137 = arith.constant dense<0.000000e+00> : vector<128x256xf32>
    %181 = tpu.matmul %7, %180, %cst_137 {dimension_numbers = #tpu.dot_dimension_numbers<[1], [0], [0], [1], [0, 0, 1, 1], [], []>} : vector<128x16xf32>, vector<16x256xf32>, vector<128x256xf32> -> vector<128x256xf32>
    %c0_138 = arith.constant 0 : index
    %c0_139 = arith.constant 0 : index
    %182 = vector.load %arg20[%c0_138, %c0_139] : memref<128x256xf32, #tpu.memory_space<vmem>>, vector<128x256xf32>
    %cst_140 = arith.constant dense<0.000000e+00> : vector<128x256xf32>
    %183 = tpu.matmul %102, %182, %cst_140 {dimension_numbers = #tpu.dot_dimension_numbers<[1], [0], [0], [1], [0, 0, 1, 1], [], []>} : vector<128x128xf32>, vector<128x256xf32>, vector<128x256xf32> -> vector<128x256xf32>
    %c0_141 = arith.constant 0 : index
    %c0_142 = arith.constant 0 : index
    %184 = vector.load %arg21[%c0_141, %c0_142] : memref<1x256xf32, #tpu.memory_space<vmem>>, vector<1x256xf32>
    %185 = vector.broadcast %184 : vector<1x256xf32> to vector<128x256xf32>
    %186 = arith.addf %183, %185 : vector<128x256xf32>
    %187 = arith.mulf %160, %181 : vector<128x256xf32>
    %188 = arith.addf %187, %186 : vector<128x256xf32>
    %cst_143 = arith.constant 0.000000e+00 : f32
    %189 = vector.broadcast %cst_143 : f32 to vector<128x256xf32>
    %190 = arith.cmpf ogt, %188, %189 : vector<128x256xf32>
    %cst_144 = arith.constant 0.000000e+00 : f32
    %191 = vector.broadcast %cst_144 : f32 to vector<128x256xf32>
    %192 = arith.minimumf %188, %191 : vector<128x256xf32>
    %193 = math.exp %192 : vector<128x256xf32>
    %cst_145 = arith.constant 1.000000e+00 : f32
    %194 = vector.broadcast %cst_145 : f32 to vector<128x256xf32>
    %195 = arith.subf %193, %194 : vector<128x256xf32>
    %196 = arith.select %190, %188, %195 : vector<128x256xi1>, vector<128x256xf32>
    %c1_146 = arith.constant 1 : index
    %c0_147 = arith.constant 0 : index
    %197 = vector.load %arg33[%c1_146, %c0_147] : memref<130x256xf32, #tpu.memory_space<vmem>>, vector<128x256xf32>
    tpu.vector_store %arg33[%c1_146, %c0_147], %196 {strides = array<i32>} : memref<130x256xf32, #tpu.memory_space<vmem>>, vector<128x256xf32>,
    %c0_148 = arith.constant 0 : index
    %c0_149 = arith.constant 0 : index
    %198 = vector.load %arg33[%c0_148, %c0_149] : memref<130x256xf32, #tpu.memory_space<vmem>>, vector<128x256xf32>
    %cst_150 = arith.constant 0.000000e+00 : f32
    %199 = vector.shape_cast %2 : vector<128x1xi1> to vector<128x1xi1>
    %200 = vector.broadcast %199 : vector<128x1xi1> to vector<128x256xi1>
    %201 = vector.broadcast %cst_150 : f32 to vector<128x256xf32>
    %202 = arith.select %200, %198, %201 : vector<128x256xi1>, vector<128x256xf32>
    %c2_151 = arith.constant 2 : index
    %c0_152 = arith.constant 0 : index
    %203 = vector.load %arg33[%c2_151, %c0_152] : memref<130x256xf32, #tpu.memory_space<vmem>>, vector<128x256xf32>
    %cst_153 = arith.constant 0.000000e+00 : f32
    %204 = vector.shape_cast %5 : vector<128x1xi1> to vector<128x1xi1>
    %205 = vector.broadcast %204 : vector<128x1xi1> to vector<128x256xi1>
    %206 = vector.broadcast %cst_153 : f32 to vector<128x256xf32>
    %207 = arith.select %205, %203, %206 : vector<128x256xi1>, vector<128x256xf32>
    %c0_154 = arith.constant 0 : index
    %c0_155 = arith.constant 0 : index
    %c0_156 = arith.constant 0 : index
    %208 = vector.load %arg22[%c0_154, %c0_155, %c0_156] : memref<3x256x256xf32, #tpu.memory_space<vmem>>, vector<1x256x256xf32>
    %209 = vector.shape_cast %208 : vector<1x256x256xf32> to vector<256x256xf32>
    %cst_157 = arith.constant dense<0.000000e+00> : vector<128x256xf32>
    %210 = tpu.matmul %202, %209, %cst_157 {dimension_numbers = #tpu.dot_dimension_numbers<[1], [0], [0], [1], [0, 0, 1, 1], [], []>} : vector<128x256xf32>, vector<256x256xf32>, vector<128x256xf32> -> vector<128x256xf32>
    %c1_158 = arith.constant 1 : index
    %c0_159 = arith.constant 0 : index
    %c0_160 = arith.constant 0 : index
    %211 = vector.load %arg22[%c1_158, %c0_159, %c0_160] : memref<3x256x256xf32, #tpu.memory_space<vmem>>, vector<1x256x256xf32>
    %212 = vector.shape_cast %211 : vector<1x256x256xf32> to vector<256x256xf32>
    %cst_161 = arith.constant dense<0.000000e+00> : vector<128x256xf32>
    %213 = tpu.matmul %196, %212, %cst_161 {dimension_numbers = #tpu.dot_dimension_numbers<[1], [0], [0], [1], [0, 0, 1, 1], [], []>} : vector<128x256xf32>, vector<256x256xf32>, vector<128x256xf32> -> vector<128x256xf32>
    %214 = arith.addf %210, %213 : vector<128x256xf32>
    %c2_162 = arith.constant 2 : index
    %c0_163 = arith.constant 0 : index
    %c0_164 = arith.constant 0 : index
    %215 = vector.load %arg22[%c2_162, %c0_163, %c0_164] : memref<3x256x256xf32, #tpu.memory_space<vmem>>, vector<1x256x256xf32>
    %216 = vector.shape_cast %215 : vector<1x256x256xf32> to vector<256x256xf32>
    %cst_165 = arith.constant dense<0.000000e+00> : vector<128x256xf32>
    %217 = tpu.matmul %207, %216, %cst_165 {dimension_numbers = #tpu.dot_dimension_numbers<[1], [0], [0], [1], [0, 0, 1, 1], [], []>} : vector<128x256xf32>, vector<256x256xf32>, vector<128x256xf32> -> vector<128x256xf32>
    %218 = arith.addf %214, %217 : vector<128x256xf32>
    %c0_166 = arith.constant 0 : index
    %c0_167 = arith.constant 0 : index
    %219 = vector.load %arg23[%c0_166, %c0_167] : memref<1x256xf32, #tpu.memory_space<vmem>>, vector<1x256xf32>
    %220 = vector.broadcast %219 : vector<1x256xf32> to vector<128x256xf32>
    %221 = arith.addf %218, %220 : vector<128x256xf32>
    %cst_168 = arith.constant 0.000000e+00 : f32
    %222 = vector.broadcast %cst_168 : f32 to vector<128x256xf32>
    %223 = arith.cmpf ogt, %221, %222 : vector<128x256xf32>
    %cst_169 = arith.constant 0.000000e+00 : f32
    %224 = vector.broadcast %cst_169 : f32 to vector<128x256xf32>
    %225 = arith.minimumf %221, %224 : vector<128x256xf32>
    %226 = math.exp %225 : vector<128x256xf32>
    %cst_170 = arith.constant 1.000000e+00 : f32
    %227 = vector.broadcast %cst_170 : f32 to vector<128x256xf32>
    %228 = arith.subf %226, %227 : vector<128x256xf32>
    %229 = arith.select %223, %221, %228 : vector<128x256xi1>, vector<128x256xf32>
    %c1_171 = arith.constant 1 : index
    %c0_172 = arith.constant 0 : index
    %230 = vector.load %arg33[%c1_171, %c0_172] : memref<130x256xf32, #tpu.memory_space<vmem>>, vector<128x256xf32>
    tpu.vector_store %arg33[%c1_171, %c0_172], %229 {strides = array<i32>} : memref<130x256xf32, #tpu.memory_space<vmem>>, vector<128x256xf32>,
    %c0_173 = arith.constant 0 : index
    %c0_174 = arith.constant 0 : index
    %231 = vector.load %arg33[%c0_173, %c0_174] : memref<130x256xf32, #tpu.memory_space<vmem>>, vector<128x256xf32>
    %cst_175 = arith.constant 0.000000e+00 : f32
    %232 = vector.shape_cast %2 : vector<128x1xi1> to vector<128x1xi1>
    %233 = vector.broadcast %232 : vector<128x1xi1> to vector<128x256xi1>
    %234 = vector.broadcast %cst_175 : f32 to vector<128x256xf32>
    %235 = arith.select %233, %231, %234 : vector<128x256xi1>, vector<128x256xf32>
    %c2_176 = arith.constant 2 : index
    %c0_177 = arith.constant 0 : index
    %236 = vector.load %arg33[%c2_176, %c0_177] : memref<130x256xf32, #tpu.memory_space<vmem>>, vector<128x256xf32>
    %cst_178 = arith.constant 0.000000e+00 : f32
    %237 = vector.shape_cast %5 : vector<128x1xi1> to vector<128x1xi1>
    %238 = vector.broadcast %237 : vector<128x1xi1> to vector<128x256xi1>
    %239 = vector.broadcast %cst_178 : f32 to vector<128x256xf32>
    %240 = arith.select %238, %236, %239 : vector<128x256xi1>, vector<128x256xf32>
    %c0_179 = arith.constant 0 : index
    %c0_180 = arith.constant 0 : index
    %c0_181 = arith.constant 0 : index
    %241 = vector.load %arg24[%c0_179, %c0_180, %c0_181] : memref<3x256x128xf32, #tpu.memory_space<vmem>>, vector<1x256x128xf32>
    %242 = vector.shape_cast %241 : vector<1x256x128xf32> to vector<256x128xf32>
    %cst_182 = arith.constant dense<0.000000e+00> : vector<128x128xf32>
    %243 = tpu.matmul %235, %242, %cst_182 {dimension_numbers = #tpu.dot_dimension_numbers<[1], [0], [0], [1], [0, 0, 1, 1], [], []>} : vector<128x256xf32>, vector<256x128xf32>, vector<128x128xf32> -> vector<128x128xf32>
    %c1_183 = arith.constant 1 : index
    %c0_184 = arith.constant 0 : index
    %c0_185 = arith.constant 0 : index
    %244 = vector.load %arg24[%c1_183, %c0_184, %c0_185] : memref<3x256x128xf32, #tpu.memory_space<vmem>>, vector<1x256x128xf32>
    %245 = vector.shape_cast %244 : vector<1x256x128xf32> to vector<256x128xf32>
    %cst_186 = arith.constant dense<0.000000e+00> : vector<128x128xf32>
    %246 = tpu.matmul %229, %245, %cst_186 {dimension_numbers = #tpu.dot_dimension_numbers<[1], [0], [0], [1], [0, 0, 1, 1], [], []>} : vector<128x256xf32>, vector<256x128xf32>, vector<128x128xf32> -> vector<128x128xf32>
    %247 = arith.addf %243, %246 : vector<128x128xf32>
    %c2_187 = arith.constant 2 : index
    %c0_188 = arith.constant 0 : index
    %c0_189 = arith.constant 0 : index
    %248 = vector.load %arg24[%c2_187, %c0_188, %c0_189] : memref<3x256x128xf32, #tpu.memory_space<vmem>>, vector<1x256x128xf32>
    %249 = vector.shape_cast %248 : vector<1x256x128xf32> to vector<256x128xf32>
    %cst_190 = arith.constant dense<0.000000e+00> : vector<128x128xf32>
    %250 = tpu.matmul %240, %249, %cst_190 {dimension_numbers = #tpu.dot_dimension_numbers<[1], [0], [0], [1], [0, 0, 1, 1], [], []>} : vector<128x256xf32>, vector<256x128xf32>, vector<128x128xf32> -> vector<128x128xf32>
    %251 = arith.addf %247, %250 : vector<128x128xf32>
    %c0_191 = arith.constant 0 : index
    %c0_192 = arith.constant 0 : index
    %252 = vector.load %arg25[%c0_191, %c0_192] : memref<1x128xf32, #tpu.memory_space<vmem>>, vector<1x128xf32>
    %253 = vector.broadcast %252 : vector<1x128xf32> to vector<128x128xf32>
    %254 = arith.addf %251, %253 : vector<128x128xf32>
    %cst_193 = arith.constant dense<0.000000e+00> : vector<16x128xf32>
    %255 = tpu.matmul %6, %254, %cst_193 {dimension_numbers = #tpu.dot_dimension_numbers<[1], [0], [0], [1], [0, 0, 1, 1], [], []>} : vector<16x128xf32>, vector<128x128xf32>, vector<16x128xf32> -> vector<16x128xf32>
    %c0_194 = arith.constant 0 : index
    %c0_195 = arith.constant 0 : index
    %256 = vector.load %arg26[%c0_194, %c0_195] : memref<128x8xf32, #tpu.memory_space<vmem>>, vector<128x8xf32>
    %cst_196 = arith.constant dense<0.000000e+00> : vector<16x8xf32>
    %257 = tpu.matmul %255, %256, %cst_196 {dimension_numbers = #tpu.dot_dimension_numbers<[1], [0], [0], [1], [0, 0, 1, 1], [], []>} : vector<16x128xf32>, vector<128x8xf32>, vector<16x8xf32> -> vector<16x8xf32>
    %cst_197 = arith.constant 0.000000e+00 : f32
    %258 = vector.broadcast %cst_197 : f32 to vector<16x8xf32>
    %259 = arith.cmpf ogt, %257, %258 : vector<16x8xf32>
    %cst_198 = arith.constant 0.000000e+00 : f32
    %260 = vector.broadcast %cst_198 : f32 to vector<16x8xf32>
    %261 = arith.minimumf %257, %260 : vector<16x8xf32>
    %262 = math.exp %261 : vector<16x8xf32>
    %cst_199 = arith.constant 1.000000e+00 : f32
    %263 = vector.broadcast %cst_199 : f32 to vector<16x8xf32>
    %264 = arith.subf %262, %263 : vector<16x8xf32>
    %265 = arith.select %259, %257, %264 : vector<16x8xi1>, vector<16x8xf32>
    %c0_200 = arith.constant 0 : index
    %c0_201 = arith.constant 0 : index
    %266 = vector.load %arg27[%c0_200, %c0_201] : memref<8x128xf32, #tpu.memory_space<vmem>>, vector<8x128xf32>
    %cst_202 = arith.constant dense<0.000000e+00> : vector<16x128xf32>
    %267 = tpu.matmul %265, %266, %cst_202 {dimension_numbers = #tpu.dot_dimension_numbers<[1], [0], [0], [1], [0, 0, 1, 1], [], []>} : vector<16x8xf32>, vector<8x128xf32>, vector<16x128xf32> -> vector<16x128xf32>
    %cst_203 = arith.constant 0.000000e+00 : f32
    %268 = vector.broadcast %cst_203 : f32 to vector<16x128xf32>
    %269 = arith.subf %268, %267 : vector<16x128xf32>
    %270 = math.exp %269 : vector<16x128xf32>
    %cst_204 = arith.constant 1.000000e+00 : f32
    %271 = vector.broadcast %cst_204 : f32 to vector<16x128xf32>
    %272 = arith.addf %271, %270 : vector<16x128xf32>
    %cst_205 = arith.constant 1.000000e+00 : f32
    %273 = vector.broadcast %cst_205 : f32 to vector<16x128xf32>
    %274 = arith.divf %273, %272 : vector<16x128xf32>
    %cst_206 = arith.constant dense<0.000000e+00> : vector<128x128xf32>
    %275 = tpu.matmul %7, %274, %cst_206 {dimension_numbers = #tpu.dot_dimension_numbers<[1], [0], [0], [1], [0, 0, 1, 1], [], []>} : vector<128x16xf32>, vector<16x128xf32>, vector<128x128xf32> -> vector<128x128xf32>
    %c0_207 = arith.constant 0 : index
    %c0_208 = arith.constant 0 : index
    %276 = vector.load %arg28[%c0_207, %c0_208] : memref<256x128xf32, #tpu.memory_space<vmem>>, vector<256x128xf32>
    %cst_209 = arith.constant dense<0.000000e+00> : vector<128x128xf32>
    %277 = tpu.matmul %196, %276, %cst_209 {dimension_numbers = #tpu.dot_dimension_numbers<[1], [0], [0], [1], [0, 0, 1, 1], [], []>} : vector<128x256xf32>, vector<256x128xf32>, vector<128x128xf32> -> vector<128x128xf32>
    %c0_210 = arith.constant 0 : index
    %c0_211 = arith.constant 0 : index
    %278 = vector.load %arg29[%c0_210, %c0_211] : memref<1x128xf32, #tpu.memory_space<vmem>>, vector<1x128xf32>
    %279 = vector.broadcast %278 : vector<1x128xf32> to vector<128x128xf32>
    %280 = arith.addf %277, %279 : vector<128x128xf32>
    %281 = arith.mulf %254, %275 : vector<128x128xf32>
    %282 = arith.addf %281, %280 : vector<128x128xf32>
    %cst_212 = arith.constant 0.000000e+00 : f32
    %283 = vector.broadcast %cst_212 : f32 to vector<128x128xf32>
    %284 = arith.cmpf ogt, %282, %283 : vector<128x128xf32>
    %cst_213 = arith.constant 0.000000e+00 : f32
    %285 = vector.broadcast %cst_213 : f32 to vector<128x128xf32>
    %286 = arith.minimumf %282, %285 : vector<128x128xf32>
    %287 = math.exp %286 : vector<128x128xf32>
    %cst_214 = arith.constant 1.000000e+00 : f32
    %288 = vector.broadcast %cst_214 : f32 to vector<128x128xf32>
    %289 = arith.subf %287, %288 : vector<128x128xf32>
    %290 = arith.select %284, %282, %289 : vector<128x128xi1>, vector<128x128xf32>
    %c0_215 = arith.constant 0 : index
    %c0_216 = arith.constant 0 : index
    %291 = vector.load %arg30[%c0_215, %c0_216] : memref<128x128xf32, #tpu.memory_space<vmem>>, vector<128x128xf32>
    tpu.vector_store %arg30[%c0_215, %c0_216], %290 {strides = array<i32>} : memref<128x128xf32, #tpu.memory_space<vmem>>, vector<128x128xf32>,
    return
  }
  func.func @transform_0(%arg0: i32) -> (i32, i32) {
    %c0_i32 = arith.constant 0 : i32
    %c0_i32_0 = arith.constant 0 : i32
    return %arg0, %c0_i32 : i32, i32
  }
  func.func @transform_1(%arg0: i32) -> (i32, i32) {
    %c0_i32 = arith.constant 0 : i32
    %c0_i32_0 = arith.constant 0 : i32
    %c0_i32_1 = arith.constant 0 : i32
    return %c0_i32, %c0_i32_0 : i32, i32
  }
  func.func @transform_2(%arg0: i32) -> (i32, i32) {
    %c0_i32 = arith.constant 0 : i32
    %c0_i32_0 = arith.constant 0 : i32
    %c0_i32_1 = arith.constant 0 : i32
    return %c0_i32, %c0_i32_0 : i32, i32
  }
  func.func @transform_3(%arg0: i32) -> (i32, i32) {
    %c0_i32 = arith.constant 0 : i32
    %c0_i32_0 = arith.constant 0 : i32
    %c0_i32_1 = arith.constant 0 : i32
    return %c0_i32, %c0_i32_0 : i32, i32
  }
  func.func @transform_4(%arg0: i32) -> (i32, i32) {
    %c0_i32 = arith.constant 0 : i32
    %c0_i32_0 = arith.constant 0 : i32
    %c0_i32_1 = arith.constant 0 : i32
    return %c0_i32, %c0_i32_0 : i32, i32
  }
  func.func @transform_5(%arg0: i32) -> (i32, i32, i32) {
    %c0_i32 = arith.constant 0 : i32
    %c0_i32_0 = arith.constant 0 : i32
    %c0_i32_1 = arith.constant 0 : i32
    %c0_i32_2 = arith.constant 0 : i32
    return %c0_i32, %c0_i32_0, %c0_i32_1 : i32, i32, i32
  }
  func.func @transform_6(%arg0: i32) -> (i32, i32) {
    %c0_i32 = arith.constant 0 : i32
    %c0_i32_0 = arith.constant 0 : i32
    %c0_i32_1 = arith.constant 0 : i32
    return %c0_i32, %c0_i32_0 : i32, i32
  }
  func.func @transform_7(%arg0: i32) -> (i32, i32, i32) {
    %c0_i32 = arith.constant 0 : i32
    %c0_i32_0 = arith.constant 0 : i32
    %c0_i32_1 = arith.constant 0 : i32
    %c0_i32_2 = arith.constant 0 : i32
    return %c0_i32, %c0_i32_0, %c0_i32_1 : i32, i32, i32
  }
  func.func @transform_8(%arg0: i32) -> (i32, i32) {
    %c0_i32 = arith.constant 0 : i32
    %c0_i32_0 = arith.constant 0 : i32
    %c0_i32_1 = arith.constant 0 : i32
    return %c0_i32, %c0_i32_0 : i32, i32
  }
  func.func @transform_9(%arg0: i32) -> (i32, i32) {
    %c0_i32 = arith.constant 0 : i32
    %c0_i32_0 = arith.constant 0 : i32
    %c0_i32_1 = arith.constant 0 : i32
    return %c0_i32, %c0_i32_0 : i32, i32
  }
  func.func @transform_10(%arg0: i32) -> (i32, i32) {
    %c0_i32 = arith.constant 0 : i32
    %c0_i32_0 = arith.constant 0 : i32
    %c0_i32_1 = arith.constant 0 : i32
    return %c0_i32, %c0_i32_0 : i32, i32
  }
  func.func @transform_11(%arg0: i32) -> (i32, i32) {
    %c0_i32 = arith.constant 0 : i32
    %c0_i32_0 = arith.constant 0 : i32
    %c0_i32_1 = arith.constant 0 : i32
    return %c0_i32, %c0_i32_0 : i32, i32
  }
  func.func @transform_12(%arg0: i32) -> (i32, i32) {
    %c0_i32 = arith.constant 0 : i32
    %c0_i32_0 = arith.constant 0 : i32
    %c0_i32_1 = arith.constant 0 : i32
    return %c0_i32, %c0_i32_0 : i32, i32
  }
  func.func @transform_13(%arg0: i32) -> (i32, i32, i32) {
    %c0_i32 = arith.constant 0 : i32
    %c0_i32_0 = arith.constant 0 : i32
    %c0_i32_1 = arith.constant 0 : i32
    %c0_i32_2 = arith.constant 0 : i32
    return %c0_i32, %c0_i32_0, %c0_i32_1 : i32, i32, i32
  }
  func.func @transform_14(%arg0: i32) -> (i32, i32) {
    %c0_i32 = arith.constant 0 : i32
    %c0_i32_0 = arith.constant 0 : i32
    %c0_i32_1 = arith.constant 0 : i32
    return %c0_i32, %c0_i32_0 : i32, i32
  }
  func.func @transform_15(%arg0: i32) -> (i32, i32, i32) {
    %c0_i32 = arith.constant 0 : i32
    %c0_i32_0 = arith.constant 0 : i32
    %c0_i32_1 = arith.constant 0 : i32
    %c0_i32_2 = arith.constant 0 : i32
    return %c0_i32, %c0_i32_0, %c0_i32_1 : i32, i32, i32
  }
  func.func @transform_16(%arg0: i32) -> (i32, i32) {
    %c0_i32 = arith.constant 0 : i32
    %c0_i32_0 = arith.constant 0 : i32
    %c0_i32_1 = arith.constant 0 : i32
    return %c0_i32, %c0_i32_0 : i32, i32
  }
  func.func @transform_17(%arg0: i32) -> (i32, i32) {
    %c0_i32 = arith.constant 0 : i32
    %c0_i32_0 = arith.constant 0 : i32
    %c0_i32_1 = arith.constant 0 : i32
    return %c0_i32, %c0_i32_0 : i32, i32
  }
  func.func @transform_18(%arg0: i32) -> (i32, i32) {
    %c0_i32 = arith.constant 0 : i32
    %c0_i32_0 = arith.constant 0 : i32
    %c0_i32_1 = arith.constant 0 : i32
    return %c0_i32, %c0_i32_0 : i32, i32
  }
  func.func @transform_19(%arg0: i32) -> (i32, i32) {
    %c0_i32 = arith.constant 0 : i32
    %c0_i32_0 = arith.constant 0 : i32
    %c0_i32_1 = arith.constant 0 : i32
    return %c0_i32, %c0_i32_0 : i32, i32
  }
  func.func @transform_20(%arg0: i32) -> (i32, i32) {
    %c0_i32 = arith.constant 0 : i32
    %c0_i32_0 = arith.constant 0 : i32
    %c0_i32_1 = arith.constant 0 : i32
    return %c0_i32, %c0_i32_0 : i32, i32
  }
  func.func @transform_21(%arg0: i32) -> (i32, i32, i32) {
    %c0_i32 = arith.constant 0 : i32
    %c0_i32_0 = arith.constant 0 : i32
    %c0_i32_1 = arith.constant 0 : i32
    %c0_i32_2 = arith.constant 0 : i32
    return %c0_i32, %c0_i32_0, %c0_i32_1 : i32, i32, i32
  }
  func.func @transform_22(%arg0: i32) -> (i32, i32) {
    %c0_i32 = arith.constant 0 : i32
    %c0_i32_0 = arith.constant 0 : i32
    %c0_i32_1 = arith.constant 0 : i32
    return %c0_i32, %c0_i32_0 : i32, i32
  }
  func.func @transform_23(%arg0: i32) -> (i32, i32, i32) {
    %c0_i32 = arith.constant 0 : i32
    %c0_i32_0 = arith.constant 0 : i32
    %c0_i32_1 = arith.constant 0 : i32
    %c0_i32_2 = arith.constant 0 : i32
    return %c0_i32, %c0_i32_0, %c0_i32_1 : i32, i32, i32
  }
  func.func @transform_24(%arg0: i32) -> (i32, i32) {
    %c0_i32 = arith.constant 0 : i32
    %c0_i32_0 = arith.constant 0 : i32
    %c0_i32_1 = arith.constant 0 : i32
    return %c0_i32, %c0_i32_0 : i32, i32
  }
  func.func @transform_25(%arg0: i32) -> (i32, i32) {
    %c0_i32 = arith.constant 0 : i32
    %c0_i32_0 = arith.constant 0 : i32
    %c0_i32_1 = arith.constant 0 : i32
    return %c0_i32, %c0_i32_0 : i32, i32
  }
  func.func @transform_26(%arg0: i32) -> (i32, i32) {
    %c0_i32 = arith.constant 0 : i32
    %c0_i32_0 = arith.constant 0 : i32
    %c0_i32_1 = arith.constant 0 : i32
    return %c0_i32, %c0_i32_0 : i32, i32
  }
  func.func @transform_27(%arg0: i32) -> (i32, i32) {
    %c0_i32 = arith.constant 0 : i32
    %c0_i32_0 = arith.constant 0 : i32
    %c0_i32_1 = arith.constant 0 : i32
    return %c0_i32, %c0_i32_0 : i32, i32
  }
  func.func @transform_28(%arg0: i32) -> (i32, i32) {
    %c0_i32 = arith.constant 0 : i32
    %c0_i32_0 = arith.constant 0 : i32
    %c0_i32_1 = arith.constant 0 : i32
    return %c0_i32, %c0_i32_0 : i32, i32
  }
  func.func @transform_29(%arg0: i32) -> (i32, i32) {
    %c0_i32 = arith.constant 0 : i32
    %c0_i32_0 = arith.constant 0 : i32
    return %arg0, %c0_i32 : i32, i32
  }
}

</mosaic_0001>

<bundles_post_ra>
// kernel: decoder_se_forward.1
= control target key start
LH: loop header
LB: loop body
LE: loop exit
PB: predicated region body
PF: predicated region fallthrough
CT: control target
= control target key end

     0   :  { %s12473_s6 = smov 1   ;;  %s12474_s10 = smov 2   ;;  %s16908_s0 = inlined_call_operand.smem [shape: u32[30], index: -1, kind: input, shape index: {}] }
   0x1   :  { %s12535_s5 = sld [smem:[%s16908_s0]]   ;;  %s12475_s14 = smov 3  }
   0x2   :  { %s12540_s9 = sld [smem:[%s16908_s0 + %s12473_s6]]   ;;  %s12476_s18 = smov 4  }
   0x3   :  { %s12545_s13 = sld [smem:[%s16908_s0 + %s12474_s10]]   ;;  %s12477_s22 = smov 5  }
   0x4   :  { %s12550_s17 = sld [smem:[%s16908_s0 + %s12475_s14]]   ;;  %s12478_s26 = smov 6  }
   0x5   :  { %s12555_s21 = sld [smem:[%s16908_s0 + %s12476_s18]]   ;;  %s12479_s30 = smov 7  }
   0x6   :  { %s12560_s25 = sld [smem:[%s16908_s0 + %s12477_s22]]   ;;  %s12480_s4 = smov 8  }
   0x7   :  { %17139 = sst [smem:[#allocation44_spill]] %s12535_s5  ;;  %s12481_s10 = smov 9  }
   0x8   :  { %s12565_s29 = sld [smem:[%s16908_s0 + %s12478_s26]]   ;;  %s12482_s15 = smov 10  }
   0x9   :  { %s12570_s3 = sld [smem:[%s16908_s0 + %s12479_s30]]   ;;  %s12483_s20 = smov 11  }
   0xa   :  { %s12575_s8 = sld [smem:[%s16908_s0 + %s12480_s4]]   ;;  %s12484_s26 = smov 12  }
   0xb   :  { %17140 = sst [smem:[#allocation45_spill]] %s12555_s21  ;;  %s12485_s1 = smov 13  }
   0xc   :  { %s12580_s14 = sld [smem:[%s16908_s0 + %s12481_s10]]   ;;  %s12486_s7 = smov 14  }
   0xd   :  { %s12585_s19 = sld [smem:[%s16908_s0 + %s12482_s15]]   ;;  %s12487_s15 = smov 15  }
   0xe   :  { %s12590_s24 = sld [smem:[%s16908_s0 + %s12483_s20]]   ;;  %s12488_s22 = smov 16  }
   0xf   :  { %17141 = sst [smem:[#allocation46_spill]] %s12570_s3  ;;  %s12489_s28 = smov 17  }
  0x10   :  { %s12595_s30 = sld [smem:[%s16908_s0 + %s12484_s26]]  }
  0x11   :  { %s12600_s6 = sld [smem:[%s16908_s0 + %s12485_s1]]  }
  0x12   :  { %17142 = sst [smem:[#allocation47_spill]] %s12580_s14 }
  0x13   :  { %s12605_s12 = sld [smem:[%s16908_s0 + %s12486_s7]]   ;;  %s12490_s7 = smov 18  }
  0x14   :  { %17143 = sst [smem:[#allocation48_spill]] %s12590_s24 }
  0x15   :  { %s12610_s20 = sld [smem:[%s16908_s0 + %s12487_s15]]   ;;  %s12491_s15 = smov 19  }
  0x16   :  { %s12615_s27 = sld [smem:[%s16908_s0 + %s12488_s22]]   ;;  %s12492_s22 = smov 20  }
  0x17   :  { %17144 = sst [smem:[#allocation49_spill]] %s12600_s6 }
  0x18   :  { %s12620_s4 = sld [smem:[%s16908_s0 + %s12489_s28]]   ;;  %s12493_s28 = smov 21  }
  0x19   :  { %s12625_s24 = sld [smem:[%s16908_s0 + %s12490_s7]]   ;;  %s12494_s7 = smov 22  }
  0x1a   :  { %s12630_s14 = sld [smem:[%s16908_s0 + %s12491_s15]]   ;;  %s12495_s15 = smov 23  }
  0x1b   :  { %s12645_s21 = sld [smem:[%s16908_s0 + %s12494_s7]]   ;;  %s12498_s7 = smov 26  }
  0x1c   :  { %17145 = sst [smem:[#allocation50_spill]] %s12615_s27 }
  0x1d   :  { %s12635_s27 = sld [smem:[%s16908_s0 + %s12492_s22]]   ;;  %s12496_s22 = smov 24  }
  0x1e   :  { %17146 = sst [smem:[#allocation51_spill]] %s12620_s4 }
  0x1f   :  { %17147 = sst [smem:[#allocation52_spill]] %s12625_s24 }
  0x20   :  { %s12640_s4 = sld [smem:[%s16908_s0 + %s12493_s28]]   ;;  %s12497_s28 = smov 25  }
  0x21   :  { %17150 = sst [smem:[#allocation55_spill]] %s12645_s21 }
  0x22   :  { %s12650_s5 = sld [smem:[%s16908_s0 + %s12495_s15]]   ;;  %s12499_s15 = smov 27  }
  0x23   :  { %17148 = sst [smem:[#allocation53_spill]] %s12635_s27 }
  0x24   :  { %s12655_s27 = sld [smem:[%s16908_s0 + %s12496_s22]]   ;;  %s12500_s22 = smov 28  }
  0x25   :  { %s12665_s21 = sld [smem:[%s16908_s0 + %s12498_s7]]  }
  0x26   :  { %17149 = sst [smem:[#allocation54_spill]] %s12640_s4 }
  0x27   :  { %s12660_s4 = sld [smem:[%s16908_s0 + %s12497_s28]]   ;;  %s12501_s28 = smov 29  }
  0x28   :  { %17151 = sst [smem:[#allocation56_spill]] %s12650_s5 }
  0x29   :  { %s12670_s5 = sld [smem:[%s16908_s0 + %s12499_s15]]  }
  0x2a   :  { %s12675_s24 = sld [smem:[%s16908_s0 + %s12500_s22]]  }
  0x2d   :  { %17152 = sst [smem:[#allocation57_spill]] %s12660_s4 }
  0x2e   :  { %s12680_s4 = sld [smem:[%s16908_s0 + %s12501_s28]]  }
  0x2f   :  { %17153 = sst [smem:[#allocation58_spill]] %s12670_s5 }
  0x30   :  { %64 = vsyncpa [#allocation6], 0 }
  0x31   :  { %65 = vsyncpa [#allocation8], 0 }
  0x32   :  { %66 = vsyncpa [#allocation11], 0 }
  0x33   :  { %67 = vsyncpa [#allocation14], 0 }
  0x34   :  { %68 = vsyncpa [#allocation17], 0 }
  0x35   :  { %69 = vsyncpa [#allocation20], 0 }
  0x36   :  { %70 = vsyncpa [#allocation23], 0 }
  0x37   :  { %71 = vsyncpa [#allocation26], 0 }
  0x38   :  { %72 = vsyncpa [#allocation29], 0 }
  0x39   :  { %73 = vsyncpa [#allocation32], 0  ;;  %s12682_s7 = smov 0  }
  0x3a LB: > { %s16915_s0 = sadd.s32 4294967295, %s12471_s7   ;;  %p9380_p0 = scmp.ge.s32.totalorder %s12471_s7, 1  ;;  %s12471_s7 = sphi %s12682_s7, %s79_s7  }
  0x3b   : > { %p724_p1 = scmp.lt.s32.totalorder %s12471_s7, 3  ;;  %p12692_p2 = scmp.eq.s32.totalorder %s16915_s0, 0 }
  0x3c   : > { %s12502_s15 = smov [#allocation7]   ;;  %s12503_s18 = smov [#allocation10]  }
  0x3d   : > { %s17154_s10 = scalar_select %p12692_p2, 1, 0 }
  0x3e   : > { %p12696_p3 = pnand %p9380_p0, %p724_p1  ;;  %s749_s16 = sshll.u32 %s12502_s15, 4  ;;  %s750_s16 = int_to_ptr.vmem [resolvable:$true] %s749_s16 }
  0x3f   : > { %s778_s22 = sshll.u32 %s12503_s18, 4  ;;  %s12504_s26 = smov [#allocation13]   ;;  %s12702_s22 = int_to_ptr.vmem [resolvable:$true] %s778_s22 }
  0x40   : > { %s17155_s11 = scalar_select %p12696_p3, 1, 0 }
  0x41   : > { %p11435_p4 = pneg %p12696_p3  ;;  %s802_s28 = sshll.u32 %s12504_s26, 4  ;;  %s12710_s28 = int_to_ptr.vmem [resolvable:$true] %s802_s28 }
  0x42   : > { %s12505_s1 = smov [#allocation16]   ;;  %s11942_s18 = scalar_lea.vmem %s750_s16, 2048 }
  0x43   : > { %p12706_p5 = pnand %p12692_p2, %p11435_p4  ;;  %s12712_s2 = sshll.u32 %s12505_s1, 4  ;;  %s831_s2 = int_to_ptr.vmem [resolvable:$true] %s12712_s2 }
  0x44   : > { %p11943_p7 = scmp.ne.s32.totalorder %s750_s16, %s11942_s18  ;;  %p11950_p10 = scmp.lt.s32.totalorder %s750_s16, %s750_s16 }
  0x45   : > { %p12716_p6 = pneg %p12706_p5  ;;  %p11951_p11 = scmp.lt.s32.totalorder %s11942_s18, %s11942_s18 }
  0x47   : > { %p11945_p8 = pnand %p11943_p7, %p12716_p6  ;;  %p11952_p12 = por %p11951_p11, %p11950_p10 }
  0x49   : > { %p11946_p9 = pneg %p11945_p8 }
  0x4b   : > { %p11953_p13 = pnand %p11952_p12, %p11946_p9 }
  0x4d   : > { %11956 = shalt.err (!%p11953_p13)
}
  0x4e   : > { %s16916_s26 = smov 128   ;;  %s16920_s1 = smov 8  }
  0x4f   : > { %11441 = dma.hbm_to_vmem [thread:$0]  (!%p12706_p5), %s12545_s13, 2048, %s750_s16, [#allocation8], %s16916_s26, %s16916_s26, %s16920_s1  }
  0x50   : > { %s11968_s0 = scalar_lea.vmem %s12702_s22, 1536  ;;  %p11976_p7 = scmp.lt.s32.totalorder %s12702_s22, %s12702_s22 }
  0x51   : > { %p11969_p0 = scmp.ne.s32.totalorder %s12702_s22, %s11968_s0  ;;  %p11977_p8 = scmp.lt.s32.totalorder %s11968_s0, %s11968_s0 }
  0x53   : > { %p11971_p1 = pnand %p11969_p0, %p12716_p6  ;;  %p11978_p9 = por %p11977_p8, %p11976_p7 }
  0x55   : > { %p11972_p4 = pneg %p11971_p1 }
  0x57   : > { %p11979_p10 = pnand %p11978_p9, %p11972_p4 }
  0x59   : > { %11982 = shalt.err (!%p11979_p10)
}
  0x5a   : > { %11447 = dma.hbm_to_vmem [thread:$0]  (!%p12706_p5), %s12560_s25, 1536, %s12702_s22, [#allocation11], %s16916_s26, %s16916_s26, %s16920_s1  }
  0x5b   : > { %s11994_s16 = scalar_lea.vmem %s12710_s28, 1536  ;;  %p12002_p0 = scmp.lt.s32.totalorder %s12710_s28, %s12710_s28 }
  0x5c   : > { %p11995_p11 = scmp.ne.s32.totalorder %s12710_s28, %s11994_s16  ;;  %p12003_p1 = scmp.lt.s32.totalorder %s11994_s16, %s11994_s16 }
  0x5e   : > { %p11997_p12 = pnand %p11995_p11, %p12716_p6  ;;  %p12004_p4 = por %p12003_p1, %p12002_p0 }
  0x60   : > { %p11998_p13 = pneg %p11997_p12 }
  0x62   : > { %p12005_p7 = pnand %p12004_p4, %p11998_p13 }
  0x64   : > { %12008 = shalt.err (!%p12005_p7)
}
  0x65   : > { %s17158_s3 = sld [smem:[#allocation46_spill]]  ;;  %s12020_s0 = scalar_lea.vmem %s831_s2, 128 }
  0x66   : > { %p12021_p8 = scmp.ne.s32.totalorder %s831_s2, %s12020_s0  ;;  %p12028_p11 = scmp.lt.s32.totalorder %s831_s2, %s831_s2 }
  0x67   : > { %p12029_p12 = scmp.lt.s32.totalorder %s12020_s0, %s12020_s0 }
  0x68   : > { %p12023_p9 = pnand %p12021_p8, %p12716_p6 }
  0x69   : > { %p12030_p13 = por %p12029_p12, %p12028_p11 }
  0x6a   : > { %p12024_p10 = pneg %p12023_p9 }
  0x6b   : > { %11453 = dma.hbm_to_vmem [thread:$0]  (!%p12706_p5), %s17158_s3, 1536, %s12710_s28, [#allocation14], %s16916_s26, %s16916_s26, %s16920_s1  }
  0x6c   : > { %p12031_p0 = pnand %p12030_p13, %p12024_p10 }
  0x6e   : > { %12034 = shalt.err (!%p12031_p0)
}
  0x6f   : > { %11459 = dma.hbm_to_vmem [thread:$0]  (!%p12706_p5), %s12585_s19, 128, %s831_s2, [#allocation17]  }
  0x70   : > { %s12508_s22 = smov [#allocation19]   ;;  %s12509_s28 = smov [#allocation22]  }
  0x71   : > { %s854_s18 = sshll.u32 %s12508_s22, 4  ;;  %s878_s16 = sshll.u32 %s12509_s28, 4  ;;  %s855_s18 = int_to_ptr.vmem [resolvable:$true] %s854_s18  ;;  %s879_s16 = int_to_ptr.vmem [resolvable:$true] %s878_s16 }
  0x72   : > { %s12046_s26 = scalar_lea.vmem %s855_s18, 6144  ;;  %p12054_p8 = scmp.lt.s32.totalorder %s855_s18, %s855_s18 }
  0x73   : > { %p12047_p1 = scmp.ne.s32.totalorder %s855_s18, %s12046_s26  ;;  %p12055_p9 = scmp.lt.s32.totalorder %s12046_s26, %s12046_s26 }
  0x75   : > { %p12049_p4 = pnand %p12047_p1, %p12716_p6  ;;  %p12056_p11 = por %p12055_p9, %p12054_p8 }
  0x77   : > { %p12050_p7 = pneg %p12049_p4 }
  0x79   : > { %p12057_p10 = pnand %p12056_p11, %p12050_p7 }
  0x7b   : > { %12060 = shalt.err (!%p12057_p10)
}
  0x7c   : > { %s17159_s0 = smov 128   ;;  %s17160_s6 = sld [smem:[#allocation49_spill]] }
  0x7d   : > { %s12072_s2 = scalar_lea.vmem %s879_s16, 12288  ;;  %p12080_p1 = scmp.lt.s32.totalorder %s879_s16, %s879_s16 }
  0x7e   : > { %p12073_p12 = scmp.ne.s32.totalorder %s879_s16, %s12072_s2  ;;  %p12081_p4 = scmp.lt.s32.totalorder %s12072_s2, %s12072_s2 }
  0x80   : > { %p12075_p13 = pnand %p12073_p12, %p12716_p6  ;;  %p12082_p2 = por %p12081_p4, %p12080_p1 }
  0x82   : > { %11465 = dma.hbm_to_vmem [thread:$0]  (!%p12706_p5), %s17160_s6, 6144, %s855_s18, [#allocation20], %s17159_s0, %s17159_s0, %s16920_s1  }
  0x83   : > { %p12076_p0 = pneg %p12075_p13 }
  0x85   : > { %p12083_p8 = pnand %p12082_p2, %p12076_p0 }
  0x87   : > { %12086 = shalt.err (!%p12083_p8)
}
  0x88   : > { %s12510_s26 = smov 256   ;;  %s12511_s22 = smov 16  }
  0x89   : > { %11471 = dma.hbm_to_vmem [thread:$0]  (!%p12706_p5), %s12610_s20, 12288, %s879_s16, [#allocation23], %s12510_s26, %s12510_s26, %s12511_s22  }
  0x8a   : > { %s12512_s28 = smov [#allocation25]   ;;  %s12513_s1 = smov [#allocation28]  }
  0x8b   : > { %s908_s18 = sshll.u32 %s12512_s28, 4  ;;  %s944_s3 = sshll.u32 %s12513_s1, 4  ;;  %s909_s18 = int_to_ptr.vmem [resolvable:$true] %s908_s18  ;;  %s945_s3 = int_to_ptr.vmem [resolvable:$true] %s944_s3 }
  0x8c   : > { %s12098_s6 = scalar_lea.vmem %s909_s18, 4096  ;;  %p12106_p10 = scmp.lt.s32.totalorder %s909_s18, %s909_s18 }
  0x8d   : > { %p12099_p7 = scmp.ne.s32.totalorder %s909_s18, %s12098_s6  ;;  %p12107_p2 = scmp.lt.s32.totalorder %s12098_s6, %s12098_s6 }
  0x8f   : > { %p12101_p9 = pnand %p12099_p7, %p12716_p6  ;;  %p12108_p12 = por %p12107_p2, %p12106_p10 }
  0x91   : > { %p12102_p11 = pneg %p12101_p9 }
  0x93   : > { %p12109_p13 = pnand %p12108_p12, %p12102_p11 }
  0x95   : > { %12112 = shalt.err (!%p12109_p13)
}
  0x96   : > { %11477 = dma.hbm_to_vmem [thread:$0]  (!%p12706_p5), %s12630_s14, 4096, %s909_s18, [#allocation26], %s12510_s26, %s12510_s26, %s12511_s22  }
  0x97   : > { %s12124_s16 = scalar_lea.vmem %s945_s3, 16  ;;  %s12131_s1 = scalar_lea.vmem %s945_s3, 32 }
  0x98   : > { %p12125_p0 = scmp.ne.s32.totalorder %s945_s3, %s12124_s16  ;;  %p12132_p8 = scmp.lt.s32.totalorder %s945_s3, %s945_s3 }
  0x99   : > { %p12133_p7 = scmp.lt.s32.totalorder %s12131_s1, %s12124_s16 }
  0x9a   : > { %p12127_p1 = pnand %p12125_p0, %p12716_p6 }
  0x9b   : > { %p12134_p9 = por %p12133_p7, %p12132_p8 }
  0x9c   : > { %p12128_p4 = pneg %p12127_p1 }
  0x9e   : > { %p12135_p3 = pnand %p12134_p9, %p12128_p4 }
  0xa0   : > { %12138 = shalt.err (!%p12135_p3)
}
  0xa1   : > { %11483 = dma.hbm_to_vmem [thread:$0]  (!%p12706_p5), %s12655_s27, 16, %s945_s3, [#allocation29]  }
  0xa2   : > { %s12514_s6 = smov [#allocation31]   ;;  %s12515_s26 = smov [#allocation5]  }
  0xa3   : > { %s968_s2 = sshll.u32 %s12514_s6, 4  ;;  %s736_s22 = sshll.u32 %s12515_s26, 4  ;;  %s969_s2 = int_to_ptr.vmem [resolvable:$true] %s968_s2  ;;  %s737_s22 = int_to_ptr.vmem [resolvable:$true] %s736_s22 }
  0xa4   : > { %s12150_s28 = scalar_lea.vmem %s969_s2, 4096  ;;  %p12158_p12 = scmp.lt.s32.totalorder %s969_s2, %s969_s2 }
  0xa5   : > { %p12151_p11 = scmp.ne.s32.totalorder %s969_s2, %s12150_s28  ;;  %p12159_p13 = scmp.lt.s32.totalorder %s12150_s28, %s12150_s28 }
  0xa7   : > { %p12153_p10 = pnand %p12151_p11, %p12716_p6  ;;  %p12160_p0 = por %p12159_p13, %p12158_p12 }
  0xa9   : > { %p12154_p2 = pneg %p12153_p10 }
  0xab   : > { %p12161_p1 = pnand %p12160_p0, %p12154_p2 }
  0xad   : > { %12164 = shalt.err (!%p12161_p1)
}
  0xae   : > { %s17161_s18 = smov 8   ;;  %s17162_s5 = sld [smem:[#allocation58_spill]] }
  0xaf   : > { %s12176_s3 = scalar_lea.vmem %s737_s22, 256  ;;  %p12184_p7 = scmp.lt.s32.totalorder %s737_s22, %s737_s22 }
  0xb0   : > { %p12177_p3 = scmp.ne.s32.totalorder %s737_s22, %s12176_s3  ;;  %p12185_p9 = scmp.lt.s32.totalorder %s12176_s3, %s12176_s3 }
  0xb2   : > { %p12179_p4 = pnand %p12177_p3, %p12716_p6  ;;  %p12186_p11 = por %p12185_p9, %p12184_p7 }
  0xb4   : > { %11489 = dma.hbm_to_vmem [thread:$0]  (!%p12706_p5), %s17162_s5, 4096, %s969_s2, [#allocation32], %s17159_s0, %s17159_s0, %s17161_s18  }
  0xb5   : > { %p12180_p8 = pneg %p12179_p4 }
  0xb7   : > { %p12187_p10 = pnand %p12186_p11, %p12180_p8 }
  0xb9   : > { %12190 = shalt.err (!%p12187_p10)
}
  0xba   : > { %11438 = dma.hbm_to_vmem [thread:$0]  (!%p12706_p5), %s12540_s9, 256, %s737_s22, [#allocation6], %s17159_s0, %s17159_s0, %s17161_s18  }
  0xbb   : > { %s12516_s16 = smov [#allocation9]   ;;  %s12517_s6 = smov [#allocation12]  }
  0xbc   : > { %s762_s1 = sshll.u32 %s12516_s16, 4  ;;  %s792_s2 = sshll.u32 %s12517_s6, 4  ;;  %s763_s1 = int_to_ptr.vmem [resolvable:$true] %s762_s1  ;;  %s793_s2 = int_to_ptr.vmem [resolvable:$true] %s792_s2 }
  0xbd   : > { %s12202_s26 = scalar_lea.vmem %s763_s1, 2048  ;;  %p12210_p0 = scmp.lt.s32.totalorder %s763_s1, %s763_s1 }
  0xbe   : > { %p12203_p2 = scmp.ne.s32.totalorder %s763_s1, %s12202_s26  ;;  %p12211_p1 = scmp.lt.s32.totalorder %s12202_s26, %s12202_s26 }
  0xc0   : > { %p12205_p12 = pnand %p12203_p2, %p12716_p6  ;;  %p12212_p3 = por %p12211_p1, %p12210_p0 }
  0xc2   : > { %p12206_p13 = pneg %p12205_p12 }
  0xc4   : > { %p12213_p4 = pnand %p12212_p3, %p12206_p13 }
  0xc6   : > { %12216 = shalt.err (!%p12213_p4)
}
  0xc7   : > { %11444 = dma.hbm_to_vmem [thread:$0]  (!%p12706_p5), %s12550_s17, 2048, %s763_s1, [#allocation8], %s17159_s0, %s17159_s0, %s17161_s18  }
  0xc8   : > { %s12228_s22 = scalar_lea.vmem %s793_s2, 16  ;;  %s12235_s28 = scalar_lea.vmem %s793_s2, 32 }
  0xc9   : > { %p12229_p8 = scmp.ne.s32.totalorder %s793_s2, %s12228_s22  ;;  %p12236_p11 = scmp.lt.s32.totalorder %s793_s2, %s793_s2 }
  0xca   : > { %p12237_p10 = scmp.lt.s32.totalorder %s12235_s28, %s12228_s22 }
  0xcb   : > { %p12231_p7 = pnand %p12229_p8, %p12716_p6 }
  0xcc   : > { %p12238_p2 = por %p12237_p10, %p12236_p11 }
  0xcd   : > { %p12232_p9 = pneg %p12231_p7 }
  0xcf   : > { %p12239_p12 = pnand %p12238_p2, %p12232_p9 }
  0xd1   : > { %12242 = shalt.err (!%p12239_p12)
}
  0xd2   : > { %11450 = dma.hbm_to_vmem [thread:$0]  (!%p12706_p5), %s12565_s29, 16, %s793_s2, [#allocation11]  }
  0xd3   : > { %s12518_s3 = smov [#allocation15]   ;;  %s12519_s1 = smov [#allocation18]  }
  0xd4   : > { %s816_s16 = sshll.u32 %s12518_s3, 4  ;;  %s844_s6 = sshll.u32 %s12519_s1, 4  ;;  %s817_s16 = int_to_ptr.vmem [resolvable:$true] %s816_s16  ;;  %s845_s6 = int_to_ptr.vmem [resolvable:$true] %s844_s6 }
  0xd5   : > { %s12254_s26 = scalar_lea.vmem %s817_s16, 16  ;;  %s12261_s5 = scalar_lea.vmem %s817_s16, 32 }
  0xd6   : > { %p12255_p13 = scmp.ne.s32.totalorder %s817_s16, %s12254_s26  ;;  %p12262_p3 = scmp.lt.s32.totalorder %s817_s16, %s817_s16 }
  0xd7   : > { %p12263_p4 = scmp.lt.s32.totalorder %s12261_s5, %s12254_s26 }
  0xd8   : > { %p12257_p0 = pnand %p12255_p13, %p12716_p6 }
  0xd9   : > { %p12264_p8 = por %p12263_p4, %p12262_p3 }
  0xda   : > { %p12258_p1 = pneg %p12257_p0 }
  0xdc   : > { %p12265_p7 = pnand %p12264_p8, %p12258_p1 }
  0xde   : > { %12268 = shalt.err (!%p12265_p7)
}
  0xdf   : > { %11456 = dma.hbm_to_vmem [thread:$0]  (!%p12706_p5), %s12575_s8, 16, %s817_s16, [#allocation14]  }
  0xe0   : > { %s12280_s2 = scalar_lea.vmem %s845_s6, 16  ;;  %s12287_s22 = scalar_lea.vmem %s845_s6, 32 }
  0xe1   : > { %p12281_p9 = scmp.ne.s32.totalorder %s845_s6, %s12280_s2  ;;  %p12288_p2 = scmp.lt.s32.totalorder %s845_s6, %s845_s6 }
  0xe2   : > { %p12289_p12 = scmp.lt.s32.totalorder %s12287_s22, %s12280_s2 }
  0xe3   : > { %p12283_p11 = pnand %p12281_p9, %p12716_p6 }
  0xe4   : > { %p12290_p13 = por %p12289_p12, %p12288_p2 }
  0xe5   : > { %p12284_p10 = pneg %p12283_p11 }
  0xe7   : > { %p12291_p0 = pnand %p12290_p13, %p12284_p10 }
  0xe9   : > { %12294 = shalt.err (!%p12291_p0)
}
  0xea   : > { %11462 = dma.hbm_to_vmem [thread:$0]  (!%p12706_p5), %s12595_s30, 16, %s845_s6, [#allocation17]  }
  0xeb   : > { %s12520_s5 = smov [#allocation21]   ;;  %s12521_s3 = smov [#allocation24]  }
  0xec   : > { %s868_s28 = sshll.u32 %s12520_s5, 4  ;;  %s898_s16 = sshll.u32 %s12521_s3, 4  ;;  %s869_s28 = int_to_ptr.vmem [resolvable:$true] %s868_s28  ;;  %s899_s16 = int_to_ptr.vmem [resolvable:$true] %s898_s16 }
  0xed   : > { %s12306_s1 = scalar_lea.vmem %s869_s28, 16  ;;  %s12313_s26 = scalar_lea.vmem %s869_s28, 32 }
  0xee   : > { %p12307_p1 = scmp.ne.s32.totalorder %s869_s28, %s12306_s1  ;;  %p12314_p8 = scmp.lt.s32.totalorder %s869_s28, %s869_s28 }
  0xef   : > { %p12315_p7 = scmp.lt.s32.totalorder %s12313_s26, %s12306_s1 }
  0xf0   : > { %p12309_p3 = pnand %p12307_p1, %p12716_p6 }
  0xf1   : > { %p12316_p9 = por %p12315_p7, %p12314_p8 }
  0xf2   : > { %p12310_p4 = pneg %p12309_p3 }
  0xf4   : > { %p12317_p11 = pnand %p12316_p9, %p12310_p4 }
  0xf6   : > { %12320 = shalt.err (!%p12317_p11)
}
  0xf7   : > { %11468 = dma.hbm_to_vmem [thread:$0]  (!%p12706_p5), %s12605_s12, 16, %s869_s28, [#allocation20]  }
  0xf8   : > { %s12332_s6 = scalar_lea.vmem %s899_s16, 256  ;;  %p12340_p13 = scmp.lt.s32.totalorder %s899_s16, %s899_s16 }
  0xf9   : > { %p12333_p10 = scmp.ne.s32.totalorder %s899_s16, %s12332_s6  ;;  %p12341_p0 = scmp.lt.s32.totalorder %s12332_s6, %s12332_s6 }
  0xfb   : > { %p12335_p2 = pnand %p12333_p10, %p12716_p6  ;;  %p12342_p1 = por %p12341_p0, %p12340_p13 }
  0xfd   : > { %p12336_p12 = pneg %p12335_p2 }
  0xff   : > { %p12343_p3 = pnand %p12342_p1, %p12336_p12 }
 0x101   : > { %12346 = shalt.err (!%p12343_p3)
}
 0x102   : > { %s17163_s2 = sld [smem:[#allocation52_spill]]  ;;  %s12522_s22 = smov [#allocation27]  }
 0x103   : > { %s930_s5 = sshll.u32 %s12522_s22, 4  ;;  %s12523_s28 = smov [#allocation30]   ;;  %s931_s5 = int_to_ptr.vmem [resolvable:$true] %s930_s5 }
 0x104   : > { %s958_s3 = sshll.u32 %s12523_s28, 4  ;;  %s12358_s1 = scalar_lea.vmem %s931_s5, 12288  ;;  %s959_s3 = int_to_ptr.vmem [resolvable:$true] %s958_s3 }
 0x105   : > { %p12359_p4 = scmp.ne.s32.totalorder %s931_s5, %s12358_s1  ;;  %p12366_p9 = scmp.lt.s32.totalorder %s931_s5, %s931_s5 }
 0x106   : > { %p12367_p11 = scmp.lt.s32.totalorder %s12358_s1, %s12358_s1 }
 0x107   : > { %p12361_p8 = pnand %p12359_p4, %p12716_p6 }
 0x108   : > { %11474 = dma.hbm_to_vmem [thread:$0]  (!%p12706_p5), %s17163_s2, 256, %s899_s16, [#allocation23]  }
 0x109   : > { %p12362_p7 = pneg %p12361_p8  ;;  %p12368_p10 = por %p12367_p11, %p12366_p9 }
 0x10b   : > { %p12369_p2 = pnand %p12368_p10, %p12362_p7 }
 0x10d   : > { %12372 = shalt.err (!%p12369_p2)
}
 0x10e   : > { %s17164_s16 = sld [smem:[#allocation56_spill]]  ;;  %s12384_s26 = scalar_lea.vmem %s959_s3, 128 }
 0x10f   : > { %p12385_p12 = scmp.ne.s32.totalorder %s959_s3, %s12384_s26  ;;  %p12392_p1 = scmp.lt.s32.totalorder %s959_s3, %s959_s3 }
 0x110   : > { %p12393_p3 = scmp.lt.s32.totalorder %s12384_s26, %s12384_s26 }
 0x111   : > { %p12387_p13 = pnand %p12385_p12, %p12716_p6 }
 0x112   : > { %p12394_p4 = por %p12393_p3, %p12392_p1 }
 0x113   : > { %p12388_p0 = pneg %p12387_p13 }
 0x114   : > { %11480 = dma.hbm_to_vmem [thread:$0]  (!%p12706_p5), %s17164_s16, 12288, %s931_s5, [#allocation26], %s17159_s0, %s17159_s0, %s17161_s18  }
 0x115   : > { %p12395_p8 = pnand %p12394_p4, %p12388_p0 }
 0x117   : > { %12398 = shalt.err (!%p12395_p8)
}
 0x118   : > { %11486 = dma.hbm_to_vmem [thread:$0]  (!%p12706_p5), %s12665_s21, 128, %s959_s3, [#allocation29]  }
 0x119   : > { %s12524_s6 = smov [#allocation33]  }
 0x11a   : > { %s982_s2 = sshll.u32 %s12524_s6, 4  ;;  %s983_s2 = int_to_ptr.vmem [resolvable:$true] %s982_s2 }
 0x11b   : > { %s12410_s0 = scalar_lea.vmem %s983_s2, 16  ;;  %s12417_s18 = scalar_lea.vmem %s983_s2, 32 }
 0x11c   : > { %p12411_p7 = scmp.ne.s32.totalorder %s983_s2, %s12410_s0  ;;  %p12418_p10 = scmp.lt.s32.totalorder %s983_s2, %s983_s2 }
 0x11d   : > { %p12419_p2 = scmp.lt.s32.totalorder %s12417_s18, %s12410_s0 }
 0x11e   : > { %p12413_p9 = pnand %p12411_p7, %p12716_p6 }
 0x11f   : > { %p12420_p12 = por %p12419_p2, %p12418_p10 }
 0x120   : > { %p12414_p11 = pneg %p12413_p9 }
 0x122   : > { %p12421_p13 = pnand %p12420_p12, %p12414_p11 }
 0x124   : > { %12424 = shalt.err (!%p12421_p13)
}
 0x125   : > { %11492 = dma.hbm_to_vmem [thread:$0]  (!%p12706_p5), %s12675_s24, 16, %s983_s2, [#allocation32]  }
 0x126   : > { %p17165_p0 = scmp.ne.s32.totalorder %s17155_s11, 0 }
 0x128   : > { %1004 = sbr.rel (%p17165_p0) target bundleno = 4972 (0x136c), region = 136 }
 0x12d   : > { %p17166_p1 = scmp.ne.s32.totalorder %s17154_s10, 0 }
 0x12f   : > { %12430 = dma.done.wait (%p17166_p1), [#allocation6], 256  }
 0x130   : > { %12432 = vsyncadd (%p17166_p1), [#allocation6], 4294967040 }
 0x131   : > { %12434 = dma.done.wait (%p17166_p1), [#allocation8], 4096  }
 0x132   : > { %12436 = vsyncadd (%p17166_p1), [#allocation8], 4294963200 }
 0x133   : > { %12438 = dma.done.wait (%p17166_p1), [#allocation11], 1552  }
 0x134   : > { %12440 = vsyncadd (%p17166_p1), [#allocation11], 4294965744 }
 0x135   : > { %12442 = dma.done.wait (%p17166_p1), [#allocation14], 1552  }
 0x136   : > { %12444 = vsyncadd (%p17166_p1), [#allocation14], 4294965744 }
 0x137   : > { %12446 = dma.done.wait (%p17166_p1), [#allocation17], 144  }
 0x138   : > { %12448 = vsyncadd (%p17166_p1), [#allocation17], 4294967152 }
 0x139   : > { %12450 = dma.done.wait (%p17166_p1), [#allocation20], 6160  }
 0x13a   : > { %12452 = vsyncadd (%p17166_p1), [#allocation20], 4294961136 }
 0x13b   : > { %12454 = dma.done.wait (%p17166_p1), [#allocation23], 12544  }
 0x13c   : > { %12456 = vsyncadd (%p17166_p1), [#allocation23], 4294954752 }
 0x13d   : > { %12458 = dma.done.wait (%p17166_p1), [#allocation26], 16384  }
 0x13e   : > { %12460 = vsyncadd (%p17166_p1), [#allocation26], 4294950912 }
 0x13f   : > { %12462 = dma.done.wait (%p17166_p1), [#allocation29], 144  }
 0x140   : > { %12464 = vsyncadd (%p17166_p1), [#allocation29], 4294967152 }
 0x141   : > { %12466 = dma.done.wait (%p17166_p1), [#allocation32], 4112  }
 0x142   : > { %12468 = vsyncadd (%p17166_p1), [#allocation32], 4294963184  ;;  %v12525_v0 = vmov 0   ;;  %v1166_v1 = vld [vmem:[#allocation9 + $0x10] sm:$0xff]  ;;  %v1164_v2 = vld [vmem:[#allocation9] sm:$0xff]  ;;  %s17167_s11 = sadd.s32 4294967295, %s12471_s7  }
 0x143   : > { %11594 = vset.pattern.permute.xlu1 %v12525_v0  ;;  %11593 = vset.pattern.permute.xlu0 %v12525_v0  ;;  %v1167_v3 = vld [vmem:[#allocation9 + $0x18] sm:$0xff]  ;;  %s9421_s23 = sshll.u32 %s17167_s11, 4  ;;  %vm1182_vm0 = vcmp.gt.f32.partialorder %v1166_v1, 0.5  ;;  %vm1180_vm1 = vcmp.gt.f32.partialorder %v1164_v2, 0.5  ;;  %v1165_v4 = vld [vmem:[#allocation9 + $0x8] sm:$0xff]  ;;  %v1168_v8 = vld [vmem:[#allocation9 + $0x20] sm:$0xff] }
 0x144   : > { %vm1183_vm2 = vcmp.gt.f32.partialorder %v1167_v3, 0.5  ;;  %v1297_v5 = vsel %vm1182_vm0, 1, %v12525_v0  ;;  %v1295_v6 = vsel %vm1180_vm1, 1, %v12525_v0  ;;  %vm1181_vm3 = vcmp.gt.f32.partialorder %v1165_v4, 0.5  ;;  %v1169_v7 = vld [vmem:[#allocation9 + $0x28] sm:$0xff]  ;;  %p1153_p5 = scmp.lt.s32.totalorder %s9421_s23, 31 }
 0x145   : > { %1318 = vperm.xlu1 %11594, %v1297_v5   ;;  %1312 = vperm.xlu0 %11593, %v1295_v6   ;;  %v1298_v9 = vsel %vm1183_vm2, 1, %v12525_v0  ;;  %v1296_v10 = vsel %vm1181_vm3, 1, %v12525_v0  ;;  %vm1185_vm4 = vcmp.gt.f32.partialorder %v1169_v7, 0.5  ;;  %vm1184_vm5 = vcmp.gt.f32.partialorder %v1168_v8, 0.5  ;;  %v1171_v11 = vld [vmem:[#allocation9 + $0x38] sm:$0xff]  ;;  %v1170_v12 = vld [vmem:[#allocation9 + $0x30] sm:$0xff] }
 0x146   : > { %s17771_s23 = smov (!%p1153_p5, %s9421_s23), 31  ;;  %s17168_s10 = sld [smem:[#allocation44_spill]]  ;;  %v1300_v13 = vsel %vm1185_vm4, 1, %v12525_v0  ;;  %v1299_v14 = vsel %vm1184_vm5, 1, %v12525_v0  ;;  %vm1187_vm6 = vcmp.gt.f32.partialorder %v1171_v11, 0.5  ;;  %vm1186_vm7 = vcmp.gt.f32.partialorder %v1170_v12, 0.5 }
 0x147   : > { %v1173_v15 = vld [vmem:[#allocation9 + $0x48] sm:$0xff]  ;;  %v1172_v16 = vld [vmem:[#allocation9 + $0x40] sm:$0xff]  ;;  %s9422_s15 = sshll.u32 %s17771_s23, 3  ;;  %v1302_v17 = vsel %vm1187_vm6, 1, %v12525_v0  ;;  %v1301_v18 = vsel %vm1186_vm7, 1, %v12525_v0  ;;  %v1175_v19 = vld [vmem:[#allocation9 + $0x58] sm:$0xff] }
 0x148   : > { %vm1189_vm8 = vcmp.gt.f32.partialorder %v1173_v15, 0.5  ;;  %vm1188_vm9 = vcmp.gt.f32.partialorder %v1172_v16, 0.5  ;;  %v1174_v20 = vld [vmem:[#allocation9 + $0x50] sm:$0xff]  ;;  %v1511_v21 = vld [vmem:[#allocation10 + $0x38] sm:$0xff]  ;;  %vm1262_vm10 = vcmask 261120   ;;  %v1177_v25 = vld [vmem:[#allocation9 + $0x68] sm:$0xff]  ;;  %s16816_s18 = scalar_lea.vmem %s12680_s4, %s9422_s15 }
 0x149   : > { %1321 = vperm.xlu1 %11594, %v1298_v9   ;;  %1315 = vperm.xlu0 %11593, %v1296_v10   ;;  %v1510_v22 = vld [vmem:[#allocation10 + $0x30] sm:$0xff]  ;;  %v1304_v23 = vsel %vm1189_vm8, 1, %v12525_v0  ;;  %v1303_v24 = vsel %vm1188_vm9, 1, %v12525_v0  ;;  %v1176_v26 = vld [vmem:[#allocation9 + $0x60] sm:$0xff]  ;;  %v1509_v27 = vld [vmem:[#allocation10 + $0x28] sm:$0xff]  ;;  %vm1191_vm11 = vcmp.gt.f32.partialorder %v1175_v19, 0.5 }
 0x14a   : > { %10761 = vmatprep.subr.mxu0 %v1511_v21  ;;  %vm1190_vm12 = vcmp.gt.f32.partialorder %v1174_v20, 0.5  ;;  %v1306_v37 = vsel %vm1191_vm11, 1, %v12525_v0  ;;  %v1179_v39 = vld [vmem:[#allocation9 + $0x78] sm:$0xff]  ;;  %vm1193_vm13 = vcmp.gt.f32.partialorder %v1177_v25, 0.5  ;;  %vm1192_vm14 = vcmp.gt.f32.partialorder %v1176_v26, 0.5  ;;  %v1508_v43 = vld [vmem:[#allocation10 + $0x20] sm:$0xff] }
 0x14b   : > { %10762 = vmatpush3.msra.mxu0 %v1511_v21  ;;  %v1305_v38 = vsel %vm1190_vm12, 1, %v12525_v0  ;;  %v1178_v46 = vld [vmem:[#allocation9 + $0x70] sm:$0xff]  ;;  %s17183_s5 = sld [smem:[#allocation45_spill]]  ;;  %v1506_v49 = vld [vmem:[#allocation10 + $0x18] sm:$0xff]  ;;  %v1308_v50 = vsel %vm1193_vm13, 1, %v12525_v0  ;;  %v1307_v51 = vsel %vm1192_vm14, 1, %v12525_v0 }
 0x14c   : > { %s12910_s22 = scalar_lea.vmem %s17168_s10, %s9422_s15  ;;  %10763 = vmatprep.subr.mxu0 %v1510_v22  ;;  %vm1195_vm15 = vcmp.gt.f32.partialorder %v1179_v39, 0.5  ;;  %vm1194_vm0 = vcmp.gt.f32.partialorder %v1178_v46, 0.5  ;;  %v1505_v54 = vld [vmem:[#allocation10 + $0x10] sm:$0xff]  ;;  %v1504_v59 = vld [vmem:[#allocation10 + $0x8] sm:$0xff]  ;;  %v1503_v1 = vld [vmem:[#allocation10] sm:$0xff]  ;;  %s17246_s28 = sld [smem:[#allocation47_spill]] }
 0x14d   : > { %1327 = vperm.xlu1 %11594, %v1300_v13   ;;  %1324 = vperm.xlu0 %11593, %v1299_v14   ;;  %v12915_v28 = vld [vmem:[%s12910_s22] sm:$0xff]  ;;  %v12918_v29 = vld [vmem:[%s12910_s22 + $0x8] sm:$0xff]  ;;  %v12921_v30 = vld [vmem:[%s12910_s22 + $0x10] sm:$0xff]  ;;  %v1310_v55 = vsel %vm1195_vm15, 1, %v12525_v0  ;;  %v1309_v56 = vsel %vm1194_vm0, 1, %v12525_v0  ;;  %s17255_s3 = sld [smem:[#allocation48_spill]] }
 0x14e   : > { %17169 = vst [vmem:[#allocation59_spill] sm:$0xff] %v12915_v28  ;;  %17170 = vst [vmem:[#allocation60_spill] sm:$0xff] %v12918_v29  ;;  %10769 = vmatprep.mubr.msk.f32.mxu0 %vm1262_vm10, %v12915_v28  ;;  %v12932_v31 = vld [vmem:[%s12910_s22 + $0x18] sm:$0xff]  ;;  %v12935_v32 = vld [vmem:[%s12910_s22 + $0x20] sm:$0xff]  ;;  %10764 = vmatpush3.msra.mxu0 %v1510_v22  ;;  %s17406_s1 = sld [smem:[#allocation50_spill]] }
 0x14f   : > { %17171 = vst [vmem:[#allocation61_spill] sm:$0xff] %v12921_v30  ;;  %1263 = vst.msk [vmem:[#allocation2 + $0x1] sm:$0xff] %vm1262_vm10, %v12915_v28  ;;  %v12938_v33 = vld [vmem:[%s12910_s22 + $0x28] sm:$0xff]  ;;  %v12947_v34 = vld [vmem:[%s12910_s22 + $0x30] sm:$0xff]  ;;  %10765 = vmatprep.subr.mxu0 %v1509_v27  ;;  %s17447_s16 = sld [smem:[#allocation51_spill]] }
 0x150   : > { %1264 = vst.msk [vmem:[#allocation2 + $0x9] sm:$0xff] %vm1262_vm10, %v12918_v29  ;;  %1265 = vst.msk [vmem:[#allocation2 + $0x11] sm:$0xff] %vm1262_vm10, %v12921_v30  ;;  %v12950_v35 = vld [vmem:[%s12910_s22 + $0x38] sm:$0xff]  ;;  %v12953_v36 = vld [vmem:[%s12910_s22 + $0x40] sm:$0xff]  ;;  %10766 = vmatpush3.msra.mxu0 %v1509_v27  ;;  %s17464_s26 = sld [smem:[#allocation54_spill]] }
 0x151   : > { %1333 = vperm.xlu1 %11594, %v1302_v17   ;;  %1330 = vperm.xlu0 %11593, %v1301_v18   ;;  %17172 = vst [vmem:[#allocation62_spill] sm:$0xff] %v12932_v31  ;;  %17173 = vst [vmem:[#allocation63_spill] sm:$0xff] %v12935_v32  ;;  %v12966_v40 = vld [vmem:[%s12910_s22 + $0x48] sm:$0xff]  ;;  %v12969_v41 = vld [vmem:[%s12910_s22 + $0x50] sm:$0xff]  ;;  %s17486_s6 = sld [smem:[#allocation53_spill]] }
 0x152   : > { %17174 = vst [vmem:[#allocation64_spill] sm:$0xff] %v12938_v33  ;;  %1266 = vst.msk [vmem:[#allocation2 + $0x19] sm:$0xff] %vm1262_vm10, %v12932_v31  ;;  %v12972_v42 = vld [vmem:[%s12910_s22 + $0x58] sm:$0xff]  ;;  %v12981_v44 = vld [vmem:[%s12910_s22 + $0x60] sm:$0xff]  ;;  %10767 = vmatprep.subr.mxu0 %v1508_v43  ;;  %s17608_s2 = sld [smem:[#allocation55_spill]] }
 0x153   : > { %1267 = vst.msk [vmem:[#allocation2 + $0x21] sm:$0xff] %vm1262_vm10, %v12935_v32  ;;  %1268 = vst.msk [vmem:[#allocation2 + $0x29] sm:$0xff] %vm1262_vm10, %v12938_v33  ;;  %v12984_v45 = vld [vmem:[%s12910_s22 + $0x68] sm:$0xff]  ;;  %v12991_v47 = vld [vmem:[%s12910_s22 + $0x70] sm:$0xff]  ;;  %10768 = vmatpush3.msra.mxu0 %v1508_v43  ;;  %s17697_s0 = sld [smem:[#allocation57_spill]] }
 0x154   : > { %17175 = vst [vmem:[#allocation65_spill] sm:$0xff] %v12947_v34  ;;  %17176 = vst [vmem:[#allocation66_spill] sm:$0xff] %v12950_v35  ;;  %v12994_v48 = vld [vmem:[%s12910_s22 + $0x78] sm:$0xff]  ;;  %v1197_v52 = vld [vmem:[%s17183_s5 + $0x8] sm:$0xff]  ;;  %10770 = vmatmul.mubr.msk.f32.vlgmr.msra.gmra.mxu0 %vm1262_vm10, %v12918_v29  ;;  %10793 = vmatprep.subr.mxu0 %v1506_v49 }
 0x155   : > { %1339 = vperm.xlu1 %11594, %v1304_v23   ;;  %1336 = vperm.xlu0 %11593, %v1303_v24   ;;  %17177 = vst [vmem:[#allocation67_spill] sm:$0xff] %v12953_v36  ;;  %1269 = vst.msk [vmem:[#allocation2 + $0x31] sm:$0xff] %vm1262_vm10, %v12947_v34  ;;  %v1196_v53 = vld [vmem:[%s17183_s5] sm:$0xff]  ;;  %vm1213_vm1 = vcmp.gt.f32.partialorder %v1197_v52, 0.5  ;;  %v1199_v57 = vld [vmem:[%s17183_s5 + $0x18] sm:$0xff] }
 0x156   : > { %1270 = vst.msk [vmem:[#allocation2 + $0x39] sm:$0xff] %vm1262_vm10, %v12950_v35  ;;  %1271 = vst.msk [vmem:[#allocation2 + $0x41] sm:$0xff] %vm1262_vm10, %v12953_v36  ;;  %10772 = vmatprep.mubr.msk.f32.mxu0 %vm1262_vm10, %v12921_v30  ;;  %10794 = vmatpush3.msra.mxu0 %v1506_v49  ;;  %vm1212_vm2 = vcmp.gt.f32.partialorder %v1196_v53, 0.5  ;;  %v1198_v58 = vld [vmem:[%s17183_s5 + $0x10] sm:$0xff]  ;;  %v1408_v60 = vsel %vm1213_vm1, 1, %v12525_v0  ;;  %vm1215_vm3 = vcmp.gt.f32.partialorder %v1199_v57, 0.5 }
 0x157   : > { %17178 = vst [vmem:[#allocation68_spill] sm:$0xff] %v12966_v40  ;;  %17179 = vst [vmem:[#allocation69_spill] sm:$0xff] %v12969_v41  ;;  %10795 = vmatprep.subr.mxu0 %v1505_v54  ;;  %v1407_v61 = vsel %vm1212_vm2, 1, %v12525_v0  ;;  %vm1214_vm4 = vcmp.gt.f32.partialorder %v1198_v58, 0.5  ;;  %v1201_v62 = vld [vmem:[%s17183_s5 + $0x28] sm:$0xff]  ;;  %v1200_v63 = vld [vmem:[%s17183_s5 + $0x20] sm:$0xff] }
 0x158   : > { %17180 = vst [vmem:[#allocation70_spill] sm:$0xff] %v12972_v42  ;;  %1272 = vst.msk [vmem:[#allocation2 + $0x49] sm:$0xff] %vm1262_vm10, %v12966_v40  ;;  %10773 = vmatmul.mubr.msk.f32.gmra.mxu0 %vm1262_vm10, %v12932_v31  ;;  %v1410_v2 = vsel %vm1215_vm3, 1, %v12525_v0  ;;  %v1409_v3 = vsel %vm1214_vm4, 1, %v12525_v0  ;;  %vm1217_vm5 = vcmp.gt.f32.partialorder %v1201_v62, 0.5  ;;  %vm1216_vm6 = vcmp.gt.f32.partialorder %v1200_v63, 0.5 }
 0x159   : > { %1273 = vst.msk [vmem:[#allocation2 + $0x51] sm:$0xff] %vm1262_vm10, %v12969_v41  ;;  %1274 = vst.msk [vmem:[#allocation2 + $0x59] sm:$0xff] %vm1262_vm10, %v12972_v42  ;;  %1345 = vperm.xlu1 %11594, %v1306_v37   ;;  %1342 = vperm.xlu0 %11593, %v1305_v38   ;;  %v1203_v4 = vld [vmem:[%s17183_s5 + $0x38] sm:$0xff]  ;;  %v1202_v5 = vld [vmem:[%s17183_s5 + $0x30] sm:$0xff]  ;;  %v1412_v7 = vsel %vm1217_vm5, 1, %v12525_v0  ;;  %v1411_v8 = vsel %vm1216_vm6, 1, %v12525_v0 }
 0x15a   : > { %17181 = vst [vmem:[#allocation71_spill] sm:$0xff] %v12981_v44  ;;  %17182 = vst [vmem:[#allocation72_spill] sm:$0xff] %v12984_v45  ;;  %10775 = vmatprep.mubr.msk.f32.mxu0 %vm1262_vm10, %v12935_v32  ;;  %10796 = vmatpush3.msra.mxu0 %v1505_v54  ;;  %v13032_v6 = vld [vmem:[#allocation10 + $0x58] sm:$0xff]  ;;  %vm1219_vm7 = vcmp.gt.f32.partialorder %v1203_v4, 0.5  ;;  %vm1218_vm8 = vcmp.gt.f32.partialorder %v1202_v5, 0.5  ;;  %v1204_v10 = vld [vmem:[%s17183_s5 + $0x40] sm:$0xff] }
 0x15b   : > { %1275 = vst.msk [vmem:[#allocation2 + $0x61] sm:$0xff] %vm1262_vm10, %v12981_v44  ;;  %1276 = vst.msk [vmem:[#allocation2 + $0x69] sm:$0xff] %vm1262_vm10, %v12984_v45  ;;  %10797 = vmatprep.subr.mxu0 %v1504_v59  ;;  %v1205_v9 = vld [vmem:[%s17183_s5 + $0x48] sm:$0xff]  ;;  %v1414_v11 = vsel %vm1219_vm7, 1, %v12525_v0  ;;  %v1413_v12 = vsel %vm1218_vm8, 1, %v12525_v0  ;;  %vm1220_vm11 = vcmp.gt.f32.partialorder %v1204_v10, 0.5 }
 0x15c   : > { %17184 = vst [vmem:[#allocation73_spill] sm:$0xff] %v12991_v47  ;;  %17185 = vst [vmem:[#allocation74_spill] sm:$0xff] %v12994_v48  ;;  %10776 = vmatmul.mubr.msk.f32.gmra.mxu0 %vm1262_vm10, %v12938_v33  ;;  %vm1221_vm9 = vcmp.gt.f32.partialorder %v1205_v9, 0.5  ;;  %v1207_v13 = vld [vmem:[%s17183_s5 + $0x58] sm:$0xff]  ;;  %v1206_v14 = vld [vmem:[%s17183_s5 + $0x50] sm:$0xff]  ;;  %v1415_v16 = vsel %vm1220_vm11, 1, %v12525_v0 }
 0x15d   : > { %1277 = vst.msk [vmem:[#allocation2 + $0x71] sm:$0xff] %vm1262_vm10, %v12991_v47  ;;  %1278 = vst.msk [vmem:[#allocation2 + $0x79] sm:$0xff] %vm1262_vm10, %v12994_v48  ;;  %1351 = vperm.xlu1 %11594, %v1308_v50   ;;  %1348 = vperm.xlu0 %11593, %v1307_v51   ;;  %v1416_v15 = vsel %vm1221_vm9, 1, %v12525_v0  ;;  %vm1223_vm12 = vcmp.gt.f32.partialorder %v1207_v13, 0.5  ;;  %vm1222_vm13 = vcmp.gt.f32.partialorder %v1206_v14, 0.5  ;;  %v1209_v17 = vld [vmem:[%s17183_s5 + $0x68] sm:$0xff] }
 0x15e   : > { %10778 = vmatprep.mubr.msk.f32.mxu0 %vm1262_vm10, %v12947_v34  ;;  %10798 = vmatpush3.msra.mxu0 %v1504_v59  ;;  %v1208_v18 = vld [vmem:[%s17183_s5 + $0x60] sm:$0xff]  ;;  %v1418_v19 = vsel %vm1223_vm12, 1, %v12525_v0  ;;  %v1417_v20 = vsel %vm1222_vm13, 1, %v12525_v0  ;;  %vm1225_vm14 = vcmp.gt.f32.partialorder %v1209_v17, 0.5  ;;  %v1211_v21 = vld [vmem:[%s17183_s5 + $0x78] sm:$0xff]  ;;  %v1210_v22 = vld [vmem:[%s17183_s5 + $0x70] sm:$0xff] }
 0x15f   : > { %10799 = vmatprep.subr.mxu0 %v1503_v1  ;;  %vm1224_vm15 = vcmp.gt.f32.partialorder %v1208_v18, 0.5  ;;  %v1420_v23 = vsel %vm1225_vm14, 1, %v12525_v0  ;;  %vm1227_vm0 = vcmp.gt.f32.partialorder %v1211_v21, 0.5  ;;  %vm1226_vm1 = vcmp.gt.f32.partialorder %v1210_v22, 0.5  ;;  %v1279_v27 = vld [vmem:[#allocation2] sm:$0xff]  ;;  %v1281_v43 = vld [vmem:[#allocation2 + $0x10] sm:$0xff] }
 0x160   : > { %10779 = vmatmul.mubr.msk.f32.gmra.mxu0 %vm1262_vm10, %v12950_v35  ;;  %v1419_v24 = vsel %vm1224_vm15, 1, %v12525_v0  ;;  %v1422_v25 = vsel %vm1227_vm0, 1, %v12525_v0  ;;  %v1421_v26 = vsel %vm1226_vm1, 1, %v12525_v0  ;;  %v1280_v46 = vld [vmem:[#allocation2 + $0x8] sm:$0xff]  ;;  %v1901_v52 = vld [vmem:[#allocation10 + $0x50] sm:$0xff]  ;;  %v1282_v53 = vld [vmem:[#allocation2 + $0x18] sm:$0xff] }
 0x161   : > { %1357 = vperm.xlu1 %11594, %v1310_v55   ;;  %1354 = vperm.xlu0 %11593, %v1309_v56   ;;  %v1283_v54 = vld [vmem:[#allocation2 + $0x20] sm:$0xff]  ;;  %v1900_v57 = vld [vmem:[#allocation10 + $0x48] sm:$0xff]  ;;  %v1285_v62 = vld [vmem:[#allocation2 + $0x30] sm:$0xff] }
 0x162   : > { %10781 = vmatprep.mubr.msk.f32.mxu0 %vm1262_vm10, %v12953_v36  ;;  %10800 = vmatpush3.msra.mxu0 %v1503_v1  ;;  %v1286_v4 = vld [vmem:[#allocation2 + $0x38] sm:$0xff]  ;;  %v1287_v5 = vld [vmem:[#allocation2 + $0x40] sm:$0xff]  ;;  %v1288_v10 = vld [vmem:[#allocation2 + $0x48] sm:$0xff] }
 0x163   : > { %10825 = vmatprep.subr.mxu0 %v13032_v6  ;;  %v1291_v17 = vld [vmem:[#allocation2 + $0x60] sm:$0xff]  ;;  %v1292_v22 = vld [vmem:[#allocation2 + $0x68] sm:$0xff] }
 0x164   : > { %10782 = vmatmul.mubr.msk.f32.gmra.mxu0 %vm1262_vm10, %v12966_v40 }
 0x165   : > { %1427 = vperm.xlu1 %11594, %v1408_v60   ;;  %1424 = vperm.xlu0 %11593, %v1407_v61   ;;  %v1899_v60 = vld [vmem:[#allocation10 + $0x40] sm:$0xff]  ;;  %v1284_v61 = vld [vmem:[#allocation2 + $0x28] sm:$0xff] }
 0x166   : > { %10784 = vmatprep.mubr.msk.f32.mxu0 %vm1262_vm10, %v12969_v41 }
 0x168   : > { %10785 = vmatmul.mubr.msk.f32.gmra.mxu0 %vm1262_vm10, %v12972_v42 }
 0x169   : > { %1433 = vperm.xlu1 %11594, %v1410_v2   ;;  %1430 = vperm.xlu0 %11593, %v1409_v3  }
 0x16a   : > { %10787 = vmatprep.mubr.msk.f32.mxu0 %vm1262_vm10, %v12981_v44 }
 0x16c   : > { %10788 = vmatmul.mubr.msk.f32.gmra.mxu0 %vm1262_vm10, %v12984_v45 }
 0x16d   : > { %1439 = vperm.xlu1 %11594, %v1412_v7   ;;  %1436 = vperm.xlu0 %11593, %v1411_v8  }
 0x16e   : > { %10790 = vmatprep.mubr.msk.f32.mxu0 %vm1262_vm10, %v12991_v47 }
 0x170   : > { %10791 = vmatmul.mubr.msk.f32.gmra.mxu0 %vm1262_vm10, %v12994_v48 }
 0x171   : > { %1445 = vperm.xlu1 %11594, %v1414_v11   ;;  %1442 = vperm.xlu0 %11593, %v1413_v12   ;;  %v1289_v11 = vld [vmem:[#allocation2 + $0x50] sm:$0xff] }
 0x175   : > { %1451 = vperm.xlu1 %11594, %v1416_v15   ;;  %1448 = vperm.xlu0 %11593, %v1415_v16   ;;  %v1290_v16 = vld [vmem:[#allocation2 + $0x58] sm:$0xff] }
 0x179   : > { %1457 = vperm.xlu1 %11594, %v1418_v19   ;;  %1454 = vperm.xlu0 %11593, %v1417_v20  }
 0x17d   : > { %1463 = vperm.xlu1 %11594, %v1420_v23   ;;  %1460 = vperm.xlu0 %11593, %v1419_v24   ;;  %v1293_v23 = vld [vmem:[#allocation2 + $0x70] sm:$0xff] }
 0x181   : > { %1469 = vperm.xlu1 %11594, %v1422_v25   ;;  %1466 = vperm.xlu0 %11593, %v1421_v26  }
 0x1c0   : > { %v13071_v37 = vpop.permute.xlu1 %1318  ;;  %v13073_v38 = vpop.permute.xlu0 %1312 }
 0x1c1   : > { %17186 = vst [vmem:[#allocation75_spill] sm:$0xff] %v13071_v37  ;;  %17187 = vst [vmem:[#allocation76_spill] sm:$0xff] %v13073_v38  ;;  %vm1359_vm2 = vcmp.eq.s32.totalorder %v13073_v38, 1  ;;  %vm1361_vm3 = vcmp.eq.s32.totalorder %v13071_v37, 1 }
 0x1c2   : > { %v1375_v39 = vsel %vm1359_vm2, %v1279_v27, 0.0  ;;  %v1377_v50 = vsel %vm1361_vm3, %v1281_v43, 0.0  ;;  %v1391_v43 = vld [vmem:[#allocation2 + $0x2] sm:$0xff] }
 0x1c3   : > { %10801 = vmatprep.mubr.msk.f32.mxu0 %vm1262_vm10, %v1375_v39  ;;  %v1294_v39 = vld [vmem:[#allocation2 + $0x78] sm:$0xff] }
 0x1c4   : > { %v13080_v49 = vpop.permute.xlu1 %1321  ;;  %v13082_v0 = vpop.permute.xlu0 %1315 }
 0x1c5   : > { %17188 = vst [vmem:[#allocation77_spill] sm:$0xff] %v13080_v49  ;;  %17189 = vst [vmem:[#allocation78_spill] sm:$0xff] %v13082_v0  ;;  %vm1360_vm4 = vcmp.eq.s32.totalorder %v13082_v0, 1  ;;  %vm1362_vm5 = vcmp.eq.s32.totalorder %v13080_v49, 1 }
 0x1c6   : > { %v1376_v51 = vsel %vm1360_vm4, %v1280_v46, 0.0  ;;  %v1378_v58 = vsel %vm1362_vm5, %v1282_v53, 0.0  ;;  %v1392_v53 = vld [vmem:[#allocation2 + $0xa] sm:$0xff] }
 0x1c7   : > { %10802 = vmatmul.mubr.msk.f32.vlgmr.msra.gmra.mxu0 %vm1262_vm10, %v1376_v51 }
 0x1c8   : > { %v13091_v55 = vpop.permute.xlu1 %1327  ;;  %10804 = vmatprep.mubr.msk.f32.mxu0 %vm1262_vm10, %v1377_v50  ;;  %v13094_v56 = vpop.permute.xlu0 %1324  ;;  %10826 = vmatpush3.msra.mxu0 %v13032_v6 }
 0x1c9   : > { %17190 = vst [vmem:[#allocation79_spill] sm:$0xff] %v13091_v55  ;;  %17191 = vst [vmem:[#allocation80_spill] sm:$0xff] %v13094_v56  ;;  %vm1363_vm6 = vcmp.eq.s32.totalorder %v13094_v56, 1  ;;  %10827 = vmatprep.subr.mxu0 %v1901_v52  ;;  %vm1364_vm7 = vcmp.eq.s32.totalorder %v13091_v55, 1 }
 0x1ca   : > { %v1379_v59 = vsel %vm1363_vm6, %v1283_v54, 0.0  ;;  %10828 = vmatpush3.msra.mxu0 %v1901_v52  ;;  %v1380_v2 = vsel %vm1364_vm7, %v1284_v61, 0.0  ;;  %v1393_v54 = vld [vmem:[#allocation2 + $0x12] sm:$0xff]  ;;  %v1394_v61 = vld [vmem:[#allocation2 + $0x1a] sm:$0xff] }
 0x1cb   : > { %10805 = vmatmul.mubr.msk.f32.gmra.mxu0 %vm1262_vm10, %v1378_v58  ;;  %10829 = vmatprep.subr.mxu0 %v1900_v57 }
 0x1cc   : > { %v13104_v63 = vpop.permute.xlu1 %1333  ;;  %10807 = vmatprep.mubr.msk.f32.mxu0 %vm1262_vm10, %v1379_v59  ;;  %v13107_v1 = vpop.permute.xlu0 %1330  ;;  %10830 = vmatpush3.msra.mxu0 %v1900_v57 }
 0x1cd   : > { %17192 = vst [vmem:[#allocation81_spill] sm:$0xff] %v13104_v63  ;;  %17193 = vst [vmem:[#allocation82_spill] sm:$0xff] %v13107_v1  ;;  %vm1365_vm8 = vcmp.eq.s32.totalorder %v13107_v1, 1  ;;  %10831 = vmatprep.subr.mxu0 %v1899_v60  ;;  %vm1366_vm9 = vcmp.eq.s32.totalorder %v13104_v63, 1 }
 0x1ce   : > { %v1381_v3 = vsel %vm1365_vm8, %v1285_v62, 0.0  ;;  %10832 = vmatpush3.msra.mxu0 %v1899_v60  ;;  %v1382_v8 = vsel %vm1366_vm9, %v1286_v4, 0.0  ;;  %v1395_v62 = vld [vmem:[#allocation2 + $0x22] sm:$0xff] }
 0x1cf   : > { %10808 = vmatmul.mubr.msk.f32.gmra.mxu0 %vm1262_vm10, %v1380_v2 }
 0x1d0   : > { %v13116_v6 = vpop.permute.xlu1 %1339  ;;  %10810 = vmatprep.mubr.msk.f32.mxu0 %vm1262_vm10, %v1381_v3  ;;  %v13119_v7 = vpop.permute.xlu0 %1336 }
 0x1d1   : > { %17194 = vst [vmem:[#allocation83_spill] sm:$0xff] %v13116_v6  ;;  %17195 = vst [vmem:[#allocation84_spill] sm:$0xff] %v13119_v7  ;;  %vm1367_vm11 = vcmp.eq.s32.totalorder %v13119_v7, 1  ;;  %vm17018_vm12 = vcmp.eq.s32.totalorder %v13116_v6, 1 }
 0x1d2   : > { %v1383_v9 = vsel %vm1367_vm11, %v1287_v5, 0.0  ;;  %v1384_v14 = vsel %vm17018_vm12, %v1288_v10, 0.0 }
 0x1d3   : > { %10811 = vmatmul.mubr.msk.f32.gmra.mxu0 %vm1262_vm10, %v1382_v8  ;;  %v1396_v8 = vld [vmem:[#allocation2 + $0x2a] sm:$0xff] }
 0x1d4   : > { %v13128_v12 = vpop.permute.xlu1 %1345  ;;  %10813 = vmatprep.mubr.msk.f32.mxu0 %vm1262_vm10, %v1383_v9  ;;  %v13131_v13 = vpop.permute.xlu0 %1342  ;;  %v1397_v9 = vld [vmem:[#allocation2 + $0x32] sm:$0xff] }
 0x1d5   : > { %17196 = vst [vmem:[#allocation85_spill] sm:$0xff] %v13128_v12  ;;  %17197 = vst [vmem:[#allocation86_spill] sm:$0xff] %v13131_v13  ;;  %vm16991_vm13 = vcmp.eq.s32.totalorder %v13131_v13, 1  ;;  %vm16924_vm14 = vcmp.eq.s32.totalorder %v13128_v12, 1 }
 0x1d6   : > { %v1385_v15 = vsel %vm16991_vm13, %v1289_v11, 0.0  ;;  %v1386_v20 = vsel %vm16924_vm14, %v1290_v16, 0.0  ;;  %v1398_v16 = vld [vmem:[#allocation2 + $0x3a] sm:$0xff] }
 0x1d7   : > { %10814 = vmatmul.mubr.msk.f32.gmra.mxu0 %vm1262_vm10, %v1384_v14 }
 0x1d8   : > { %v13140_v18 = vpop.permute.xlu1 %1351  ;;  %10816 = vmatprep.mubr.msk.f32.mxu0 %vm1262_vm10, %v1385_v15  ;;  %v13143_v19 = vpop.permute.xlu0 %1348 }
 0x1d9   : > { %17198 = vst [vmem:[#allocation87_spill] sm:$0xff] %v13140_v18  ;;  %17199 = vst [vmem:[#allocation88_spill] sm:$0xff] %v13143_v19  ;;  %vm16923_vm15 = vcmp.eq.s32.totalorder %v13143_v19, 1  ;;  %vm16926_vm0 = vcmp.eq.s32.totalorder %v13140_v18, 1 }
 0x1da   : > { %v1387_v21 = vsel %vm16923_vm15, %v1291_v17, 0.0  ;;  %v1388_v26 = vsel %vm16926_vm0, %v1292_v22, 0.0  ;;  %v1399_v17 = vld [vmem:[#allocation2 + $0x42] sm:$0xff] }
 0x1db   : > { %10817 = vmatmul.mubr.msk.f32.gmra.mxu0 %vm1262_vm10, %v1386_v20 }
 0x1dc   : > { %v13152_v24 = vpop.permute.xlu1 %1357  ;;  %10819 = vmatprep.mubr.msk.f32.mxu0 %vm1262_vm10, %v1387_v21  ;;  %v13155_v25 = vpop.permute.xlu0 %1354 }
 0x1dd   : > { %17200 = vst [vmem:[#allocation89_spill] sm:$0xff] %v13152_v24  ;;  %17201 = vst [vmem:[#allocation90_spill] sm:$0xff] %v13155_v25  ;;  %vm16925_vm1 = vcmp.eq.s32.totalorder %v13155_v25, 1  ;;  %vm16927_vm15 = vcmp.eq.s32.totalorder %v13152_v24, 1 }
 0x1de   : > { %v1389_v27 = vsel %vm16925_vm1, %v1293_v23, 0.0  ;;  %v1390_v51 = vsel %vm16927_vm15, %v1294_v39, 0.0 }
 0x1df   : > { %10820 = vmatmul.mubr.msk.f32.gmra.mxu0 %vm1262_vm10, %v1388_v26  ;;  %v1400_v26 = vld [vmem:[#allocation2 + $0x4a] sm:$0xff] }
 0x1e0   : > { %v13164_v46 = vpop.permute.xlu1 %1427  ;;  %10822 = vmatprep.mubr.msk.f32.mxu0 %vm1262_vm10, %v1389_v27  ;;  %v13167_v50 = vpop.permute.xlu0 %1424  ;;  %v1401_v27 = vld [vmem:[#allocation2 + $0x52] sm:$0xff] }
 0x1e1   : > { %17202 = vst [vmem:[#allocation91_spill] sm:$0xff] %v13164_v46  ;;  %17203 = vst [vmem:[#allocation92_spill] sm:$0xff] %v13167_v50  ;;  %vm16928_vm14 = vcmp.eq.s32.totalorder %v13167_v50, 1  ;;  %vm16930_vm1 = vcmp.eq.s32.totalorder %v13164_v46, 1 }
 0x1e2   : > { %v1487_v52 = vsel %vm16928_vm14, %v1391_v43, 0.0  ;;  %v1488_v59 = vsel %vm16930_vm1, %v1392_v53, 0.0  ;;  %v1402_v53 = vld [vmem:[#allocation2 + $0x5a] sm:$0xff] }
 0x1e3   : > { %10823 = vmatmul.mubr.msk.f32.gmra.mxu0 %vm1262_vm10, %v1390_v51 }
 0x1e4   : > { %v13176_v57 = vpop.permute.xlu1 %1433  ;;  %10833 = vmatprep.mubr.msk.f32.mxu0 %vm1262_vm10, %v1487_v52  ;;  %v13179_v58 = vpop.permute.xlu0 %1430 }
 0x1e5   : > { %17204 = vst [vmem:[#allocation93_spill] sm:$0xff] %v13176_v57  ;;  %17205 = vst [vmem:[#allocation94_spill] sm:$0xff] %v13179_v58  ;;  %vm16929_vm0 = vcmp.eq.s32.totalorder %v13179_v58, 1  ;;  %vm16932_vm15 = vcmp.eq.s32.totalorder %v13176_v57, 1 }
 0x1e6   : > { %v1489_v60 = vsel %vm16929_vm0, %v1393_v54, 0.0  ;;  %v1490_v4 = vsel %vm16932_vm15, %v1394_v61, 0.0  ;;  %v1403_v54 = vld [vmem:[#allocation2 + $0x62] sm:$0xff] }
 0x1e7   : > { %10834 = vmatmul.mubr.msk.f32.vlgmr.msra.gmra.mxu0 %vm1262_vm10, %v1488_v59 }
 0x1e8   : > { %v13188_v2 = vpop.permute.xlu1 %1439  ;;  %10836 = vmatprep.mubr.msk.f32.mxu0 %vm1262_vm10, %v1489_v60  ;;  %v13191_v3 = vpop.permute.xlu0 %1436 }
 0x1e9   : > { %17206 = vst [vmem:[#allocation95_spill] sm:$0xff] %v13188_v2  ;;  %17207 = vst [vmem:[#allocation96_spill] sm:$0xff] %v13191_v3  ;;  %vm16931_vm14 = vcmp.eq.s32.totalorder %v13191_v3, 1  ;;  %vm16934_vm0 = vcmp.eq.s32.totalorder %v13188_v2, 1 }
 0x1ea   : > { %v1491_v5 = vsel %vm16931_vm14, %v1395_v62, 0.0  ;;  %v1492_v14 = vsel %vm16934_vm0, %v1396_v8, 0.0 }
 0x1eb   : > { %10837 = vmatmul.mubr.msk.f32.gmra.mxu0 %vm1262_vm10, %v1490_v4  ;;  %v1404_v4 = vld [vmem:[#allocation2 + $0x6a] sm:$0xff] }
 0x1ec   : > { %v13200_v10 = vpop.permute.xlu1 %1445  ;;  %10839 = vmatprep.mubr.msk.f32.mxu0 %vm1262_vm10, %v1491_v5  ;;  %v13203_v11 = vpop.permute.xlu0 %1442  ;;  %v1405_v5 = vld [vmem:[#allocation2 + $0x72] sm:$0xff] }
 0x1ed   : > { %17208 = vst [vmem:[#allocation97_spill] sm:$0xff] %v13200_v10  ;;  %17209 = vst [vmem:[#allocation98_spill] sm:$0xff] %v13203_v11  ;;  %vm16933_vm1 = vcmp.eq.s32.totalorder %v13203_v11, 1  ;;  %vm16936_vm14 = vcmp.eq.s32.totalorder %v13200_v10, 1 }
 0x1ee   : > { %v1493_v15 = vsel %vm16933_vm1, %v1397_v9, 0.0  ;;  %v1494_v22 = vsel %vm16936_vm14, %v1398_v16, 0.0  ;;  %v1406_v16 = vld [vmem:[#allocation2 + $0x7a] sm:$0xff] }
 0x1ef   : > { %10840 = vmatmul.mubr.msk.f32.gmra.mxu0 %vm1262_vm10, %v1492_v14 }
 0x1f0   : > { %v13212_v20 = vpop.permute.xlu1 %1451  ;;  %10842 = vmatprep.mubr.msk.f32.mxu0 %vm1262_vm10, %v1493_v15  ;;  %v13215_v21 = vpop.permute.xlu0 %1448 }
 0x1f1   : > { %17210 = vst [vmem:[#allocation99_spill] sm:$0xff] %v13212_v20  ;;  %17211 = vst [vmem:[#allocation100_spill] sm:$0xff] %v13215_v21  ;;  %vm16935_vm15 = vcmp.eq.s32.totalorder %v13215_v21, 1  ;;  %vm16938_vm1 = vcmp.eq.s32.totalorder %v13212_v20, 1 }
 0x1f2   : > { %v1495_v23 = vsel %vm16935_vm15, %v1399_v17, 0.0  ;;  %v1496_v51 = vsel %vm16938_vm1, %v1400_v26, 0.0  ;;  %v2317_v26 = vld [vmem:[#allocation13 + $0x28] sm:$0xff] }
 0x1f3   : > { %10843 = vmatmul.mubr.msk.f32.gmra.mxu0 %vm1262_vm10, %v1494_v22  ;;  %v2319_v22 = vld [vmem:[#allocation13 + $0x38] sm:$0xff] }
 0x1f4   : > { %v13224_v39 = vpop.permute.xlu1 %1457  ;;  %10845 = vmatprep.mubr.msk.f32.mxu0 %vm1262_vm10, %v1495_v23  ;;  %v13227_v43 = vpop.permute.xlu0 %1454  ;;  %10857 = vmatprep.subr.mxu1 %v2319_v22  ;;  %v2318_v23 = vld [vmem:[#allocation13 + $0x30] sm:$0xff] }
 0x1f5   : > { %17212 = vst [vmem:[#allocation101_spill] sm:$0xff] %v13224_v39  ;;  %17213 = vst [vmem:[#allocation102_spill] sm:$0xff] %v13227_v43  ;;  %vm16937_vm0 = vcmp.eq.s32.totalorder %v13227_v43, 1  ;;  %vm1482_vm15 = vcmp.eq.s32.totalorder %v13224_v39, 1  ;;  %10858 = vmatpush3.msra.mxu1 %v2319_v22 }
 0x1f6   : > { %v1497_v52 = vsel %vm16937_vm0, %v1401_v27, 0.0  ;;  %v1498_v61 = vsel %vm1482_vm15, %v1402_v53, 0.0  ;;  %10859 = vmatprep.subr.mxu1 %v2318_v23  ;;  %v2316_v27 = vld [vmem:[#allocation13 + $0x20] sm:$0xff] }
 0x1f7   : > { %10846 = vmatmul.mubr.msk.f32.gmra.mxu0 %vm1262_vm10, %v1496_v51  ;;  %10860 = vmatpush3.msra.mxu1 %v2318_v23  ;;  %v2314_v51 = vld [vmem:[#allocation13 + $0x18] sm:$0xff] }
 0x1f8   : > { %v13236_v59 = vpop.permute.xlu1 %1463  ;;  %10848 = vmatprep.mubr.msk.f32.mxu0 %vm1262_vm10, %v1497_v52  ;;  %v13239_v60 = vpop.permute.xlu0 %1460  ;;  %10861 = vmatprep.subr.mxu1 %v2317_v26  ;;  %v2313_v52 = vld [vmem:[#allocation13 + $0x10] sm:$0xff] }
 0x1f9   : > { %17214 = vst [vmem:[#allocation103_spill] sm:$0xff] %v13236_v59  ;;  %17215 = vst [vmem:[#allocation104_spill] sm:$0xff] %v13239_v60  ;;  %vm16939_vm14 = vcmp.eq.s32.totalorder %v13239_v60, 1  ;;  %vm16990_vm0 = vcmp.eq.s32.totalorder %v13236_v59, 1  ;;  %10862 = vmatpush3.msra.mxu1 %v2317_v26  ;;  %10889 = vmatprep.subr.mxu0 %v2314_v51  ;;  %v13293_v60 = vld [vmem:[#allocation12] ss:$0 sm:$0xff] }
 0x1fa   : > { %v1499_v62 = vsel %vm16939_vm14, %v1403_v54, 0.0  ;;  %v1500_v14 = vsel %vm16990_vm0, %v1404_v4, 0.0  ;;  %10863 = vmatprep.subr.mxu1 %v2316_v27  ;;  %10890 = vmatpush3.msra.mxu0 %v2314_v51  ;;  %v2312_v54 = vld [vmem:[#allocation13 + $0x8] sm:$0xff] }
 0x1fb   : > { %10849 = vmatmul.mubr.msk.f32.gmra.mxu0 %vm1262_vm10, %v1498_v61  ;;  %10864 = vmatpush3.msra.mxu1 %v2316_v27  ;;  %v2311_v61 = vld [vmem:[#allocation13] sm:$0xff] }
 0x1fc   : > { %v13248_v8 = vpop.permute.xlu1 %1469  ;;  %10851 = vmatprep.mubr.msk.f32.mxu0 %vm1262_vm10, %v1499_v62  ;;  %v13251_v9 = vpop.permute.xlu0 %1466  ;;  %10891 = vmatprep.subr.mxu0 %v2313_v52 }
 0x1fd   : > { %17216 = vst [vmem:[#allocation105_spill] sm:$0xff] %v13248_v8  ;;  %17217 = vst [vmem:[#allocation106_spill] sm:$0xff] %v13251_v9  ;;  %vm16989_vm1 = vcmp.eq.s32.totalorder %v13251_v9, 1  ;;  %vm16988_vm14 = vcmp.eq.s32.totalorder %v13248_v8, 1  ;;  %10892 = vmatpush3.msra.mxu0 %v2313_v52 }
 0x1fe   : > { %v1501_v15 = vsel %vm16989_vm1, %v1405_v5, 0.0  ;;  %v1502_v17 = vsel %vm16988_vm14, %v1406_v16, 0.0  ;;  %10893 = vmatprep.subr.mxu0 %v2312_v54 }
 0x1ff   : > { %10852 = vmatmul.mubr.msk.f32.gmra.mxu0 %vm1262_vm10, %v1500_v14 }
 0x200   : > { %10854 = vmatprep.mubr.msk.f32.mxu0 %vm1262_vm10, %v1501_v15  ;;  %10894 = vmatpush3.msra.mxu0 %v2312_v54  ;;  %v13264_v15 = vld [vmem:[#allocation13 + $0x58] sm:$0xff] }
 0x201   : > { %10895 = vmatprep.subr.mxu0 %v2311_v61  ;;  %10921 = vmatprep.subr.mxu1 %v13264_v15 }
 0x202   : > { %10896 = vmatpush3.msra.mxu0 %v2311_v61 }
 0x203   : > { %10855 = vmatmul.mubr.msk.f32.gmra.mxu0 %vm1262_vm10, %v1502_v17 }
 0x214   : > { %v10771_v53 = vpop.f32.mrf.mxu0 }
 0x216   : > { %v1626_v62 = vpop.f32.mrf.mxu0 }
 0x218   : > { %v10774_v4 = vpop.f32.mrf.mxu0 }
 0x21a   : > { %v1636_v5 = vpop.f32.mrf.mxu0 }
 0x21c   : > { %v10777_v14 = vpop.f32.mrf.mxu0 }
 0x21e   : > { %v1646_v16 = vpop.f32.mrf.mxu0 }
 0x220   : > { %v10780_v17 = vpop.f32.mrf.mxu0 }
 0x222   : > { %v1656_v22 = vpop.f32.mrf.mxu0 }
 0x224   : > { %v13267_v23 = vpop.f32.mrf.mxu0 }
 0x226   : > { %v13269_v26 = vpop.f32.mrf.mxu0 }
 0x228   : > { %v13271_v27 = vpop.f32.mrf.mxu0 }
 0x22a   : > { %v13273_v51 = vpop.f32.mrf.mxu0 }
 0x22c   : > { %v13275_v52 = vpop.f32.mrf.mxu0 }
 0x22e   : > { %v13277_v54 = vpop.f32.mrf.mxu0 }
 0x230   : > { %v13279_v61 = vpop.f32.mrf.mxu0 }
 0x232   : > { %v13281_v48 = vpop.f32.mrf.mxu0 }
 0x287   : > { %v10803_v47 = vpop.f32.mrf.mxu0 }
 0x288   : > { %v1825_v9 = vadd.f32 %v10803_v47, %v10771_v53 }
 0x289   : > { %v1819_v45 = vpop.f32.mrf.mxu0 }
 0x28a   : > { %v1820_v39 = vadd.f32 %v1819_v45, %v1626_v62 }
 0x28b   : > { %v10806_v44 = vpop.f32.mrf.mxu0 }
 0x28c   : > { %v1835_v21 = vadd.f32 %v10806_v44, %v10774_v4 }
 0x28d   : > { %v1829_v42 = vpop.f32.mrf.mxu0 }
 0x28e   : > { %v1830_v3 = vadd.f32 %v1829_v42, %v1636_v5 }
 0x28f   : > { %v10809_v41 = vpop.f32.mrf.mxu0 }
 0x291   : > { %v1839_v40 = vpop.f32.mrf.mxu0 }
 0x293   : > { %v10812_v36 = vpop.f32.mrf.mxu0 }
 0x295   : > { %v1849_v35 = vpop.f32.mrf.mxu0 }
 0x297   : > { %v10815_v34 = vpop.f32.mrf.mxu0 }
 0x299   : > { %v1859_v33 = vpop.f32.mrf.mxu0 }
 0x29b   : > { %v10818_v32 = vpop.f32.mrf.mxu0 }
 0x29d   : > { %v13283_v31 = vpop.f32.mrf.mxu0 }
 0x29f   : > { %v13285_v30 = vpop.f32.mrf.mxu0 }
 0x2a1   : > { %v13287_v29 = vpop.f32.mrf.mxu0 }
 0x2a3   : > { %v13289_v28 = vpop.f32.mrf.mxu0 }
 0x2a5   : > { %v13291_v8 = vpop.f32.mrf.mxu0 }
 0x2a7   : > { %v10835_v59 = vpop.f32.mrf.mxu0 }
 0x2a8   : > { %v2097_v43 = vadd.f32 %v10835_v59, %v1825_v9  ;;  %v1845_v59 = vadd.f32 %v10809_v41, %v10777_v14 }
 0x2a9   : > { %v2017_v20 = vpop.f32.mrf.mxu0 }
 0x2aa   : > { %v13296_v10 = vadd.f32 %v13293_v60, %v2097_v43  ;;  %v2096_v11 = vadd.f32 %v2017_v20, %v1820_v39  ;;  %v1840_v43 = vadd.f32 %v1839_v40, %v1646_v16 }
 0x2ab   : > { %v10838_v2 = vpop.f32.mrf.mxu0 }
 0x2ac   : > { %v2152_v57 = vmin.f32 %v13296_v10, 0.0  ;;  %v13300_v24 = vadd.f32 %v13293_v60, %v2096_v11  ;;  %v2099_v25 = vadd.f32 %v10838_v2, %v1835_v21  ;;  %v1855_v11 = vadd.f32 %v10812_v36, %v10780_v17 }
 0x2ad   : > { %v2027_v47 = vpop.f32.mrf.mxu0  ;;  %v1865_v36 = vadd.f32 %v10815_v34, %v13267_v23  ;;  %v1860_v34 = vadd.f32 %v1859_v33, %v13269_v26  ;;  %v1875_v23 = vadd.f32 %v10818_v32, %v13271_v27  ;;  %v1885_v27 = vadd.f32 %v13285_v30, %v13275_v52 }
 0x2ae   : > { %v2169_v53 = vmul.f32 1.442695, %v2152_v57  ;;  %v2151_v58 = vmin.f32 %v13300_v24, 0.0  ;;  %v13304_v45 = vadd.f32 %v13293_v60, %v2099_v25  ;;  %v2098_v44 = vadd.f32 %v2027_v47, %v1830_v3 }
 0x2af   : > { %v10841_v9 = vpop.f32.mrf.mxu0  ;;  %v1850_v25 = vadd.f32 %v1849_v35, %v1656_v22  ;;  %v1890_v30 = vadd.f32 %v13291_v8, %v13281_v48  ;;  %vm2136_vm14 = vcmp.gt.f32.partialorder %v13296_v10, 0.0  ;;  %vm2135_vm1 = vcmp.gt.f32.partialorder %v13300_v24, 0.0 }
 0x2b0   : > { %11595 = vpow2.f32 %v2169_v53  ;;  %v2167_v20 = vmul.f32 1.442695, %v2151_v58  ;;  %v2154_v42 = vmin.f32 %v13304_v45, 0.0  ;;  %v13308_v39 = vadd.f32 %v13293_v60, %v2098_v44 }
 0x2b1   : > { %v2101_v2 = vadd.f32 %v10841_v9, %v1845_v59  ;;  %v2037_v21 = vpop.f32.mrf.mxu0  ;;  %vm2138_vm0 = vcmp.gt.f32.partialorder %v13304_v45, 0.0 }
 0x2b2   : > { %v2173_v57 = vmul.f32 1.442695, %v2154_v42  ;;  %v2153_v62 = vmin.f32 %v13308_v39, 0.0  ;;  %v2100_v4 = vadd.f32 %v2037_v21, %v1840_v43  ;;  %11597 = vpow2.f32 %v2167_v20 }
 0x2b3   : > { %v13312_v41 = vadd.f32 %v13293_v60, %v2101_v2  ;;  %v10844_v40 = vpop.f32.mrf.mxu0  ;;  %v1870_v21 = vadd.f32 %v13283_v31, %v13273_v51 }
 0x2b4   : > { %11599 = vpow2.f32 %v2173_v57  ;;  %v2171_v58 = vmul.f32 1.442695, %v2153_v62  ;;  %v13315_v3 = vadd.f32 %v13293_v60, %v2100_v4  ;;  %v2103_v5 = vadd.f32 %v10844_v40, %v1855_v11 }
 0x2b5   : > { %v2156_v14 = vmin.f32 %v13312_v41, 0.0  ;;  %v2047_v16 = vpop.f32.mrf.mxu0  ;;  %v1895_v40 = vadd.f32 %v13289_v28, %v13279_v61 }
 0x2b6   : > { %11601 = vpow2.f32 %v2171_v58  ;;  %v2155_v17 = vmin.f32 %v13315_v3, 0.0  ;;  %v13321_v35 = vadd.f32 %v13293_v60, %v2103_v5  ;;  %v2102_v22 = vadd.f32 %v2047_v16, %v1850_v25 }
 0x2b7   : > { %v2177_v47 = vmul.f32 1.442695, %v2156_v14  ;;  %v10847_v53 = vpop.f32.mrf.mxu0  ;;  %v1880_v25 = vadd.f32 %v13287_v29, %v13277_v54 }
 0x2b8   : > { %v2175_v44 = vmul.f32 1.442695, %v2155_v17  ;;  %v2158_v59 = vmin.f32 %v13321_v35, 0.0  ;;  %v13325_v43 = vadd.f32 %v13293_v60, %v2102_v22  ;;  %v2105_v9 = vadd.f32 %v10847_v53, %v1865_v36 }
 0x2b9   : > { %11603 = vpow2.f32 %v2177_v47  ;;  %v2057_v20 = vpop.f32.mrf.mxu0 }
 0x2ba   : > { %11605 = vpow2.f32 %v2175_v44  ;;  %v2181_v42 = vmul.f32 1.442695, %v2158_v59  ;;  %v2157_v11 = vmin.f32 %v13325_v43, 0.0  ;;  %v13331_v2 = vadd.f32 %v13293_v60, %v2105_v9 }
 0x2bb   : > { %v2104_v57 = vadd.f32 %v2057_v20, %v1860_v34  ;;  %v10850_v62 = vpop.f32.mrf.mxu0 }
 0x2bc   : > { %11607 = vpow2.f32 %v2181_v42  ;;  %v2179_v4 = vmul.f32 1.442695, %v2157_v11  ;;  %v2160_v33 = vmin.f32 %v13331_v2, 0.0  ;;  %v2107_v26 = vadd.f32 %v10850_v62, %v1875_v23 }
 0x2bd   : > { %v11596_v32 = vpop.eup %11595  ;;  %v13343_v58 = vadd.f32 %v13293_v60, %v2104_v57  ;;  %v2067_v31 = vpop.f32.mrf.mxu0  ;;  %v2709_v57 = vld [vmem:[#allocation13 + $0x50] sm:$0xff] }
 0x2be   : > { %11609 = vpow2.f32 %v2179_v4  ;;  %v2185_v51 = vmul.f32 1.442695, %v2160_v33  ;;  %v13346_v5 = vadd.f32 %v13293_v60, %v2107_v26  ;;  %v2106_v36 = vadd.f32 %v2067_v31, %v1870_v21  ;;  %v2708_v31 = vld [vmem:[#allocation13 + $0x48] sm:$0xff] }
 0x2bf   : > { %v11598_v14 = vpop.eup %11597  ;;  %v2159_v52 = vmin.f32 %v13343_v58, 0.0  ;;  %v10853_v29 = vpop.f32.mrf.mxu0  ;;  %v9475_v28 = vadd.f32 -1.0, %v11596_v32 }
 0x2c0   : > { %11611 = vpow2.f32 %v2185_v51  ;;  %v2162_v54 = vmin.f32 %v13346_v5, 0.0  ;;  %v13354_v61 = vadd.f32 %v13293_v60, %v2106_v36  ;;  %v2109_v16 = vadd.f32 %v10853_v29, %v1885_v27 }
 0x2c1   : > { %v11600_v17 = vpop.eup %11599  ;;  %v2183_v22 = vmul.f32 1.442695, %v2159_v52  ;;  %v2077_v47 = vpop.f32.mrf.mxu0  ;;  %v9474_v53 = vadd.f32 -1.0, %v11598_v14  ;;  %v2216_v48 = vsel %vm2136_vm14, %v13296_v10, %v9475_v28  ;;  %vm2137_vm14 = vcmp.gt.f32.partialorder %v13308_v39, 0.0 }
 0x2c2   : > { %v2189_v8 = vmul.f32 1.442695, %v2162_v54  ;;  %v2161_v44 = vmin.f32 %v13354_v61, 0.0  ;;  %v13360_v59 = vadd.f32 %v13293_v60, %v2109_v16  ;;  %v2108_v9 = vadd.f32 %v2077_v47, %v1880_v25  ;;  %2232 = vst.msk [vmem:[#allocation2 + $0x9] sm:$0xff] %vm1262_vm10, %v2216_v48 }
 0x2c3   : > { %v11602_v34 = vpop.eup %11601  ;;  %11613 = vpow2.f32 %v2183_v22  ;;  %v10856_v23 = vpop.f32.mrf.mxu0  ;;  %v2215_v20 = vsel %vm2135_vm1, %v13300_v24, %v9474_v53  ;;  %v9477_v42 = vadd.f32 -1.0, %v11600_v17  ;;  %vm2140_vm1 = vcmp.gt.f32.partialorder %v13312_v41, 0.0 }
 0x2c4   : > { %11615 = vpow2.f32 %v2189_v8  ;;  %v2187_v11 = vmul.f32 1.442695, %v2161_v44  ;;  %v2164_v10 = vmin.f32 %v13360_v59, 0.0  ;;  %v13367_v21 = vadd.f32 %v13293_v60, %v2108_v9  ;;  %2231 = vst.msk [vmem:[#allocation2 + $0x1] sm:$0xff] %vm1262_vm10, %v2215_v20  ;;  %10865 = vmatprep.mubr.msk.f32.mxu1 %vm1262_vm10, %v2215_v20 }
 0x2c5   : > { %v2111_v62 = vadd.f32 %v10856_v23, %v1895_v40  ;;  %10866 = vmatmul.mubr.msk.f32.vlgmr.msra.gmra.mxu1 %vm1262_vm10, %v2216_v48  ;;  %v2087_v4 = vpop.f32.mrf.mxu0  ;;  %v9476_v24 = vadd.f32 -1.0, %v11602_v34  ;;  %v2218_v33 = vsel %vm2138_vm0, %v13304_v45, %v9477_v42  ;;  %vm2139_vm0 = vcmp.gt.f32.partialorder %v13315_v3, 0.0 }
 0x2c6   : > { %v11604_v26 = vpop.eup %11603  ;;  %11617 = vpow2.f32 %v2187_v11  ;;  %v2193_v32 = vmul.f32 1.442695, %v2164_v10  ;;  %v2163_v27 = vmin.f32 %v13367_v21, 0.0  ;;  %v2110_v25 = vadd.f32 %v2087_v4, %v1890_v30  ;;  %2234 = vst.msk [vmem:[#allocation2 + $0x19] sm:$0xff] %vm1262_vm10, %v2218_v33  ;;  %10922 = vmatpush3.msra.mxu1 %v13264_v15  ;;  %v2707_v30 = vld [vmem:[#allocation13 + $0x40] sm:$0xff] }
 0x2c7   : > { %v11606_v40 = vpop.eup %11605  ;;  %v13378_v51 = vadd.f32 %v13293_v60, %v2111_v62  ;;  %v2217_v36 = vsel %vm2137_vm14, %v13308_v39, %v9476_v24  ;;  %v9479_v45 = vadd.f32 -1.0, %v11604_v26  ;;  %10923 = vmatprep.subr.mxu1 %v2709_v57  ;;  %vm2142_vm14 = vcmp.gt.f32.partialorder %v13321_v35, 0.0 }
 0x2c8   : > { %11619 = vpow2.f32 %v2193_v32  ;;  %v2191_v14 = vmul.f32 1.442695, %v2163_v27  ;;  %v13383_v52 = vadd.f32 %v13293_v60, %v2110_v25  ;;  %2233 = vst.msk [vmem:[#allocation2 + $0x11] sm:$0xff] %vm1262_vm10, %v2217_v36  ;;  %10868 = vmatprep.mubr.msk.f32.mxu1 %vm1262_vm10, %v2217_v36  ;;  %v9478_v15 = vadd.f32 -1.0, %v11606_v40  ;;  %10924 = vmatpush3.msra.mxu1 %v2709_v57 }
 0x2c9   : > { %v11608_v29 = vpop.eup %11607  ;;  %v2166_v28 = vmin.f32 %v13378_v51, 0.0  ;;  %10869 = vmatmul.mubr.msk.f32.gmra.mxu1 %vm1262_vm10, %v2218_v33  ;;  %v2220_v39 = vsel %vm2140_vm1, %v13312_v41, %v9479_v45  ;;  %10925 = vmatprep.subr.mxu1 %v2708_v31  ;;  %vm2141_vm1 = vcmp.gt.f32.partialorder %v13325_v43, 0.0 }
 0x2ca   : > { %11621 = vpow2.f32 %v2191_v14  ;;  %v2165_v60 = vmin.f32 %v13383_v52, 0.0  ;;  %v2219_v54 = vsel %vm2139_vm0, %v13315_v3, %v9478_v15  ;;  %2236 = vst.msk [vmem:[#allocation2 + $0x29] sm:$0xff] %vm1262_vm10, %v2220_v39  ;;  %v9481_v16 = vadd.f32 -1.0, %v11608_v29  ;;  %10926 = vmatpush3.msra.mxu1 %v2708_v31 }
 0x2cb   : > { %v11610_v17 = vpop.eup %11609  ;;  %v2197_v22 = vmul.f32 1.442695, %v2166_v28  ;;  %2235 = vst.msk [vmem:[#allocation2 + $0x21] sm:$0xff] %vm1262_vm10, %v2219_v54  ;;  %10871 = vmatprep.mubr.msk.f32.mxu1 %vm1262_vm10, %v2219_v54  ;;  %v2247_v47 = vld [vmem:[#allocation2] sm:$0xff]  ;;  %v2248_v53 = vld [vmem:[#allocation2 + $0x8] sm:$0xff]  ;;  %10927 = vmatprep.subr.mxu1 %v2707_v30  ;;  %vm2144_vm0 = vcmp.gt.f32.partialorder %v13331_v2, 0.0 }
 0x2cc   : > { %v2195_v41 = vmul.f32 1.442695, %v2165_v60  ;;  %v2263_v48 = vsel %vm1359_vm2, %v2247_v47, 0.0  ;;  %v2264_v3 = vsel %vm1360_vm4, %v2248_v53, 0.0  ;;  %v9480_v8 = vadd.f32 -1.0, %v11610_v17  ;;  %10928 = vmatpush3.msra.mxu1 %v2707_v30 }
 0x2cd   : > { %v11612_v44 = vpop.eup %11611  ;;  %11623 = vpow2.f32 %v2197_v22  ;;  %10872 = vmatmul.mubr.msk.f32.gmra.mxu1 %vm1262_vm10, %v2220_v39  ;;  %10897 = vmatprep.mubr.msk.f32.mxu0 %vm1262_vm10, %v2263_v48  ;;  %v2222_v9 = vsel %vm2142_vm14, %v13321_v35, %v9481_v16  ;;  %vm2143_vm14 = vcmp.gt.f32.partialorder %v13343_v58, 0.0 }
 0x2ce   : > { %11625 = vpow2.f32 %v2195_v41  ;;  %10898 = vmatmul.mubr.msk.f32.vlgmr.msra.gmra.mxu0 %vm1262_vm10, %v2264_v3  ;;  %v2221_v34 = vsel %vm2141_vm1, %v13325_v43, %v9480_v8  ;;  %2238 = vst.msk [vmem:[#allocation2 + $0x39] sm:$0xff] %vm1262_vm10, %v2222_v9  ;;  %v9483_v23 = vadd.f32 -1.0, %v11612_v44  ;;  %vm2146_vm1 = vcmp.gt.f32.partialorder %v13346_v5, 0.0  ;;  %v2279_v3 = vld [vmem:[#allocation2 + $0x2] sm:$0xff] }
 0x2cf   : > { %2237 = vst.msk [vmem:[#allocation2 + $0x31] sm:$0xff] %vm1262_vm10, %v2221_v34  ;;  %10874 = vmatprep.mubr.msk.f32.mxu1 %vm1262_vm10, %v2221_v34  ;;  %v2249_v20 = vld [vmem:[#allocation2 + $0x10] sm:$0xff]  ;;  %v2250_v42 = vld [vmem:[#allocation2 + $0x18] sm:$0xff] }
 0x2d0   : > { %v11614_v11 = vpop.eup %11613  ;;  %v2265_v35 = vsel %vm1361_vm3, %v2249_v20, 0.0  ;;  %v2266_v10 = vsel %vm1362_vm5, %v2250_v42, 0.0  ;;  %v2224_v43 = vsel %vm2144_vm0, %v13331_v2, %v9483_v23  ;;  %vm2145_vm0 = vcmp.gt.f32.partialorder %v13354_v61, 0.0  ;;  %v2281_v23 = vld [vmem:[#allocation2 + $0x12] sm:$0xff] }
 0x2d1   : > { %v11616_v57 = vpop.eup %11615  ;;  %10875 = vmatmul.mubr.msk.f32.gmra.mxu1 %vm1262_vm10, %v2222_v9  ;;  %10900 = vmatprep.mubr.msk.f32.mxu0 %vm1262_vm10, %v2265_v35  ;;  %v9482_v62 = vadd.f32 -1.0, %v11614_v11  ;;  %2240 = vst.msk [vmem:[#allocation2 + $0x49] sm:$0xff] %vm1262_vm10, %v2224_v43  ;;  %v17223_v35 = vld [vmem:[#allocation94_spill] sm:$0xff] }
 0x2d2   : > { %10901 = vmatmul.mubr.msk.f32.gmra.mxu0 %vm1262_vm10, %v2266_v10  ;;  %v2251_v4 = vld [vmem:[#allocation2 + $0x20] sm:$0xff]  ;;  %v2252_v24 = vld [vmem:[#allocation2 + $0x28] sm:$0xff]  ;;  %v9485_v33 = vadd.f32 -1.0, %v11616_v57 }
 0x2d3   : > { %v11618_v26 = vpop.eup %11617  ;;  %v2223_v32 = vsel %vm2143_vm14, %v13343_v58, %v9482_v62  ;;  %v2267_v2 = vsel %vm1363_vm6, %v2251_v4, 0.0  ;;  %v2268_v27 = vsel %vm1364_vm7, %v2252_v24, 0.0  ;;  %vm2148_vm14 = vcmp.gt.f32.partialorder %v13360_v59, 0.0  ;;  %v2283_v4 = vld [vmem:[#allocation2 + $0x22] sm:$0xff]  ;;  %v17225_v24 = vld [vmem:[#allocation90_spill] sm:$0xff] }
 0x2d4   : > { %2239 = vst.msk [vmem:[#allocation2 + $0x41] sm:$0xff] %vm1262_vm10, %v2223_v32  ;;  %10877 = vmatprep.mubr.msk.f32.mxu1 %vm1262_vm10, %v2223_v32  ;;  %10903 = vmatprep.mubr.msk.f32.mxu0 %vm1262_vm10, %v2267_v2  ;;  %v9484_v25 = vadd.f32 -1.0, %v11618_v26  ;;  %v2226_v31 = vsel %vm2146_vm1, %v13346_v5, %v9485_v33  ;;  %vm2147_vm1 = vcmp.gt.f32.partialorder %v13367_v21, 0.0  ;;  %v17227_v26 = vld [vmem:[#allocation89_spill] sm:$0xff] }
 0x2d5   : > { %v11620_v40 = vpop.eup %11619  ;;  %10878 = vmatmul.mubr.msk.f32.gmra.mxu1 %vm1262_vm10, %v2224_v43  ;;  %2242 = vst.msk [vmem:[#allocation2 + $0x59] sm:$0xff] %vm1262_vm10, %v2226_v31  ;;  %v2282_v43 = vld [vmem:[#allocation2 + $0x1a] sm:$0xff]  ;;  %v17229_v2 = vld [vmem:[#allocation93_spill] sm:$0xff] }
 0x2d6   : > { %10904 = vmatmul.mubr.msk.f32.gmra.mxu0 %vm1262_vm10, %v2268_v27  ;;  %v2225_v58 = vsel %vm2145_vm0, %v13354_v61, %v9484_v25  ;;  %v2253_v36 = vld [vmem:[#allocation2 + $0x30] sm:$0xff]  ;;  %v2254_v45 = vld [vmem:[#allocation2 + $0x38] sm:$0xff]  ;;  %v9487_v14 = vadd.f32 -1.0, %v11620_v40  ;;  %vm2150_vm0 = vcmp.gt.f32.partialorder %v13378_v51, 0.0  ;;  %v17231_v25 = vld [vmem:[#allocation96_spill] sm:$0xff] }
 0x2d7   : > { %v11622_v15 = vpop.eup %11621  ;;  %2241 = vst.msk [vmem:[#allocation2 + $0x51] sm:$0xff] %vm1262_vm10, %v2225_v58  ;;  %10880 = vmatprep.mubr.msk.f32.mxu1 %vm1262_vm10, %v2225_v58  ;;  %v2269_v5 = vsel %vm1365_vm8, %v2253_v36, 0.0  ;;  %v2270_v30 = vsel %vm1366_vm9, %v2254_v45, 0.0  ;;  %v2284_v40 = vld [vmem:[#allocation2 + $0x2a] sm:$0xff]  ;;  %v2285_v58 = vld [vmem:[#allocation2 + $0x32] sm:$0xff]  ;;  %v17233_v36 = vld [vmem:[#allocation95_spill] sm:$0xff] }
 0x2d8   : > { %10906 = vmatprep.mubr.msk.f32.mxu0 %vm1262_vm10, %v2269_v5  ;;  %v9486_v29 = vadd.f32 -1.0, %v11622_v15  ;;  %v2228_v61 = vsel %vm2148_vm14, %v13360_v59, %v9487_v14  ;;  %vm2149_vm14 = vcmp.gt.f32.partialorder %v13383_v52, 0.0  ;;  %v17235_v14 = vld [vmem:[#allocation98_spill] sm:$0xff] }
 0x2d9   : > { %10881 = vmatmul.mubr.msk.f32.gmra.mxu1 %vm1262_vm10, %v2226_v31  ;;  %2244 = vst.msk [vmem:[#allocation2 + $0x69] sm:$0xff] %vm1262_vm10, %v2228_v61 }
 0x2da   : > { %v11624_v28 = vpop.eup %11623  ;;  %10907 = vmatmul.mubr.msk.f32.gmra.mxu0 %vm1262_vm10, %v2270_v30  ;;  %v2227_v39 = vsel %vm2147_vm1, %v13367_v21, %v9486_v29  ;;  %vm17218_vm1 = vcmp.eq.s32.totalorder %v13128_v12, 1  ;;  %v17237_v29 = vld [vmem:[#allocation97_spill] sm:$0xff] }
 0x2db   : > { %v11626_v60 = vpop.eup %11625  ;;  %2243 = vst.msk [vmem:[#allocation2 + $0x61] sm:$0xff] %vm1262_vm10, %v2227_v39  ;;  %10883 = vmatprep.mubr.msk.f32.mxu1 %vm1262_vm10, %v2227_v39  ;;  %v2255_v54 = vld [vmem:[#allocation2 + $0x40] sm:$0xff]  ;;  %v2256_v16 = vld [vmem:[#allocation2 + $0x48] sm:$0xff]  ;;  %v9489_v17 = vadd.f32 -1.0, %v11624_v28 }
 0x2dc   : > { %v2271_v59 = vsel %vm1367_vm11, %v2255_v54, 0.0  ;;  %v2272_v22 = vsel %vm17018_vm12, %v2256_v16, 0.0  ;;  %v9488_v47 = vadd.f32 -1.0, %v11626_v60  ;;  %v2286_v5 = vld [vmem:[#allocation2 + $0x3a] sm:$0xff]  ;;  %v2287_v30 = vld [vmem:[#allocation2 + $0x42] sm:$0xff] }
 0x2dd   : > { %10884 = vmatmul.mubr.msk.f32.gmra.mxu1 %vm1262_vm10, %v2228_v61  ;;  %10909 = vmatprep.mubr.msk.f32.mxu0 %vm1262_vm10, %v2271_v59  ;;  %v2230_v21 = vsel %vm2150_vm0, %v13378_v51, %v9489_v17  ;;  %vm17219_vm0 = vcmp.eq.s32.totalorder %v13167_v50, 1  ;;  %v17239_v28 = vld [vmem:[#allocation100_spill] sm:$0xff]  ;;  %v17241_v16 = vld [vmem:[#allocation99_spill] sm:$0xff]  ;;  %v17243_v59 = vld [vmem:[#allocation102_spill] sm:$0xff] }
 0x2de   : > { %10910 = vmatmul.mubr.msk.f32.gmra.mxu0 %vm1262_vm10, %v2272_v22  ;;  %v2229_v53 = vsel %vm2149_vm14, %v13383_v52, %v9488_v47  ;;  %2246 = vst.msk [vmem:[#allocation2 + $0x79] sm:$0xff] %vm1262_vm10, %v2230_v21  ;;  %v2257_v41 = vld [vmem:[#allocation2 + $0x50] sm:$0xff]  ;;  %v2258_v48 = vld [vmem:[#allocation2 + $0x58] sm:$0xff]  ;;  %v2295_v51 = vsel %vm17219_vm0, %v2279_v3, 0.0  ;;  %vm17220_vm14 = vcmp.eq.s32.totalorder %v13143_v19, 1  ;;  %vm17224_vm0 = vcmp.eq.s32.totalorder %v17223_v35, 1 }
 0x2df   : > { %2245 = vst.msk [vmem:[#allocation2 + $0x71] sm:$0xff] %vm1262_vm10, %v2229_v53  ;;  %10886 = vmatprep.mubr.msk.f32.mxu1 %vm1262_vm10, %v2229_v53  ;;  %v2273_v8 = vsel %vm16991_vm13, %v2257_v41, 0.0  ;;  %v2274_v44 = vsel %vm17218_vm1, %v2258_v48, 0.0  ;;  %v2280_v52 = vld [vmem:[#allocation2 + $0xa] sm:$0xff]  ;;  %vm17221_vm1 = vcmp.eq.s32.totalorder %v13140_v18, 1  ;;  %vm17222_vm13 = vcmp.eq.s32.totalorder %v13164_v46, 1 }
 0x2e0   : > { %10912 = vmatprep.mubr.msk.f32.mxu0 %vm1262_vm10, %v2273_v8  ;;  %v2296_v11 = vsel %vm17222_vm13, %v2280_v52, 0.0  ;;  %v2297_v10 = vsel %vm17224_vm0, %v2281_v23, 0.0  ;;  %vm17230_vm13 = vcmp.eq.s32.totalorder %v17229_v2, 1  ;;  %vm17232_vm0 = vcmp.eq.s32.totalorder %v17231_v25, 1  ;;  %v2288_v60 = vld [vmem:[#allocation2 + $0x4a] sm:$0xff]  ;;  %v2289_v54 = vld [vmem:[#allocation2 + $0x52] sm:$0xff] }
 0x2e1   : > { %10887 = vmatmul.mubr.msk.f32.gmra.mxu1 %vm1262_vm10, %v2230_v21  ;;  %v2298_v27 = vsel %vm17230_vm13, %v2282_v43, 0.0  ;;  %v2299_v31 = vsel %vm17232_vm0, %v2283_v4, 0.0  ;;  %vm17238_vm13 = vcmp.eq.s32.totalorder %v17237_v29, 1  ;;  %vm17240_vm0 = vcmp.eq.s32.totalorder %v17239_v28, 1  ;;  %v17247_v48 = vld [vmem:[#allocation104_spill] sm:$0xff]  ;;  %v3032_v43 = vld [vmem:[%s17246_s28 + $0x70] sm:$0xff] }
 0x2e2   : > { %10913 = vmatmul.mubr.msk.f32.gmra.mxu0 %vm1262_vm10, %v2274_v44  ;;  %10929 = vmatprep.mubr.msk.f32.mxu1 %vm1262_vm10, %v2295_v51  ;;  %v2259_v9 = vld [vmem:[#allocation2 + $0x60] sm:$0xff]  ;;  %v2260_v34 = vld [vmem:[#allocation2 + $0x68] sm:$0xff]  ;;  %v2302_v61 = vsel %vm17238_vm13, %v2286_v5, 0.0  ;;  %v2303_v39 = vsel %vm17240_vm0, %v2287_v30, 0.0  ;;  %vm17248_vm13 = vcmp.eq.s32.totalorder %v17247_v48, 1  ;;  %v3029_v4 = vld [vmem:[%s17246_s28 + $0x58] sm:$0xff] }
 0x2e3   : > { %v2275_v20 = vsel %vm17220_vm14, %v2259_v9, 0.0  ;;  %v2276_v42 = vsel %vm17221_vm1, %v2260_v34, 0.0  ;;  %vm17226_vm14 = vcmp.eq.s32.totalorder %v17225_v24, 1  ;;  %vm17228_vm1 = vcmp.eq.s32.totalorder %v17227_v26, 1  ;;  %v2290_v47 = vld [vmem:[#allocation2 + $0x5a] sm:$0xff]  ;;  %v2291_v21 = vld [vmem:[#allocation2 + $0x62] sm:$0xff] }
 0x2e4   : > { %10915 = vmatprep.mubr.msk.f32.mxu0 %vm1262_vm10, %v2275_v20  ;;  %v2306_v41 = vsel %vm1482_vm15, %v2290_v47, 0.0  ;;  %v2307_v3 = vsel %vm17248_vm13, %v2291_v21, 0.0  ;;  %v17249_v51 = vld [vmem:[#allocation103_spill] sm:$0xff]  ;;  %v17251_v9 = vld [vmem:[#allocation106_spill] sm:$0xff]  ;;  %v17253_v20 = vld [vmem:[#allocation105_spill] sm:$0xff]  ;;  %vm17017_vm13 = vcmask 64512  }
 0x2e5   : > { %10930 = vmatmul.mubr.msk.f32.vlgmr.msra.gmra.mxu1 %vm1262_vm10, %v2296_v11  ;;  %vm17250_vm0 = vcmp.eq.s32.totalorder %v17249_v51, 1  ;;  %v2294_v23 = vld [vmem:[#allocation2 + $0x7a] sm:$0xff]  ;;  %v3020_v5 = vld [vmem:[%s17246_s28 + $0x10] sm:$0xff] }
 0x2e6   : > { %10916 = vmatmul.mubr.msk.f32.gmra.mxu0 %vm1262_vm10, %v2276_v42  ;;  %10932 = vmatprep.mubr.msk.f32.mxu1 %vm1262_vm10, %v2297_v10  ;;  %v2261_v57 = vld [vmem:[#allocation2 + $0x70] sm:$0xff]  ;;  %v2262_v62 = vld [vmem:[#allocation2 + $0x78] sm:$0xff]  ;;  %v1228_v11 = vld [vmem:[#allocation5] sm:$0xff] }
 0x2e7   : > { %v2277_v33 = vsel %vm17226_vm14, %v2261_v57, 0.0  ;;  %v2278_v32 = vsel %vm17228_vm1, %v2262_v62, 0.0  ;;  %vm17234_vm14 = vcmp.eq.s32.totalorder %v17233_v36, 1  ;;  %vm17236_vm1 = vcmp.eq.s32.totalorder %v17235_v14, 1  ;;  %v2292_v8 = vld [vmem:[#allocation2 + $0x6a] sm:$0xff]  ;;  %v2293_v44 = vld [vmem:[#allocation2 + $0x72] sm:$0xff] }
 0x2e8   : > { %10918 = vmatprep.mubr.msk.f32.mxu0 %vm1262_vm10, %v2277_v33  ;;  %v2300_v45 = vsel %vm17234_vm14, %v2284_v40, 0.0  ;;  %v2301_v15 = vsel %vm17236_vm1, %v2285_v58, 0.0  ;;  %vm17242_vm14 = vcmp.eq.s32.totalorder %v17241_v16, 1  ;;  %vm17244_vm1 = vcmp.eq.s32.totalorder %v17243_v59, 1  ;;  %v3033_v10 = vld [vmem:[%s17246_s28 + $0x78] sm:$0xff]  ;;  %v3031_v57 = vld [vmem:[%s17246_s28 + $0x68] sm:$0xff] }
 0x2e9   : > { %10933 = vmatmul.mubr.msk.f32.gmra.mxu1 %vm1262_vm10, %v2298_v27  ;;  %v2304_v17 = vsel %vm17242_vm14, %v2288_v60, 0.0  ;;  %v2305_v22 = vsel %vm17244_vm1, %v2289_v54, 0.0  ;;  %v2308_v52 = vsel %vm17250_vm0, %v2292_v8, 0.0  ;;  %vm17252_vm14 = vcmp.eq.s32.totalorder %v17251_v9, 1  ;;  %10988 = vmatprep.subr.mxu1 %v3033_v10  ;;  %v3030_v62 = vld [vmem:[%s17246_s28 + $0x60] sm:$0xff]  ;;  %v3028_v33 = vld [vmem:[%s17246_s28 + $0x50] sm:$0xff] }
 0x2ea   : > { %10919 = vmatmul.mubr.msk.f32.gmra.mxu0 %vm1262_vm10, %v2278_v32  ;;  %10935 = vmatprep.mubr.msk.f32.mxu1 %vm1262_vm10, %v2299_v31  ;;  %v2309_v34 = vsel %vm17252_vm14, %v2293_v44, 0.0  ;;  %vm17254_vm1 = vcmp.eq.s32.totalorder %v17253_v20, 1  ;;  %v3027_v32 = vld [vmem:[%s17246_s28 + $0x48] sm:$0xff]  ;;  %v3026_v27 = vld [vmem:[%s17246_s28 + $0x40] sm:$0xff]  ;;  %v3025_v31 = vld [vmem:[%s17246_s28 + $0x38] sm:$0xff] }
 0x2eb   : > { %v2310_v42 = vsel %vm17254_vm1, %v2294_v23, 0.0  ;;  %10985 = vmatprep.mubr.f32.mxu0 %v1228_v11  ;;  %10989 = vmatpush3.msra.mxu1 %v3033_v10  ;;  %v3024_v40 = vld [vmem:[%s17246_s28 + $0x30] sm:$0xff]  ;;  %v3023_v58 = vld [vmem:[%s17246_s28 + $0x28] sm:$0xff]  ;;  %vm17016_vm1 = vcmask 130048  }
 0x2ec   : > { %10990 = vmatprep.subr.mxu1 %v3032_v43  ;;  %v13585_v50 = vld [vmem:[#allocation15] ss:$0 sm:$0xff] }
 0x2ed   : > { %10936 = vmatmul.mubr.msk.f32.gmra.mxu1 %vm1262_vm10, %v2300_v45  ;;  %v3022_v45 = vld [vmem:[%s17246_s28 + $0x20] sm:$0xff] }
 0x2ee   : > { %10938 = vmatprep.mubr.msk.f32.mxu1 %vm1262_vm10, %v2301_v15  ;;  %10991 = vmatpush3.msra.mxu1 %v3032_v43  ;;  %v3021_v15 = vld [vmem:[%s17246_s28 + $0x18] sm:$0xff] }
 0x2ef   : > { %10992 = vmatprep.subr.mxu1 %v3031_v57 }
 0x2f0   : > { %10993 = vmatpush3.msra.mxu1 %v3031_v57 }
 0x2f1   : > { %10939 = vmatmul.mubr.msk.f32.gmra.mxu1 %vm1262_vm10, %v2302_v61  ;;  %10994 = vmatprep.subr.mxu1 %v3030_v62 }
 0x2f2   : > { %10941 = vmatprep.mubr.msk.f32.mxu1 %vm1262_vm10, %v2303_v39  ;;  %10995 = vmatpush3.msra.mxu1 %v3030_v62 }
 0x2f3   : > { %10996 = vmatprep.subr.mxu1 %v3029_v4 }
 0x2f4   : > { %10997 = vmatpush3.msra.mxu1 %v3029_v4 }
 0x2f5   : > { %10942 = vmatmul.mubr.msk.f32.gmra.mxu1 %vm1262_vm10, %v2304_v17  ;;  %10998 = vmatprep.subr.mxu1 %v3028_v33 }
 0x2f6   : > { %10944 = vmatprep.mubr.msk.f32.mxu1 %vm1262_vm10, %v2305_v22  ;;  %10999 = vmatpush3.msra.mxu1 %v3028_v33 }
 0x2f7   : > { %11000 = vmatprep.subr.mxu1 %v3027_v32 }
 0x2f8   : > { %11001 = vmatpush3.msra.mxu1 %v3027_v32 }
 0x2f9   : > { %10945 = vmatmul.mubr.msk.f32.gmra.mxu1 %vm1262_vm10, %v2306_v41  ;;  %11002 = vmatprep.subr.mxu1 %v3026_v27 }
 0x2fa   : > { %10947 = vmatprep.mubr.msk.f32.mxu1 %vm1262_vm10, %v2307_v3  ;;  %11003 = vmatpush3.msra.mxu1 %v3026_v27 }
 0x2fb   : > { %11004 = vmatprep.subr.mxu1 %v3025_v31 }
 0x2fc   : > { %11005 = vmatpush3.msra.mxu1 %v3025_v31 }
 0x2fd   : > { %10948 = vmatmul.mubr.msk.f32.gmra.mxu1 %vm1262_vm10, %v2308_v52  ;;  %11006 = vmatprep.subr.mxu1 %v3024_v40 }
 0x2fe   : > { %10950 = vmatprep.mubr.msk.f32.mxu1 %vm1262_vm10, %v2309_v34  ;;  %11007 = vmatpush3.msra.mxu1 %v3024_v40 }
 0x2ff   : > { %11008 = vmatprep.subr.mxu1 %v3023_v58 }
 0x300   : > { %11009 = vmatpush3.msra.mxu1 %v3023_v58 }
 0x301   : > { %10951 = vmatmul.mubr.msk.f32.gmra.mxu1 %vm1262_vm10, %v2310_v42  ;;  %11010 = vmatprep.subr.mxu1 %v3022_v45 }
 0x302   : > { %11011 = vmatpush3.msra.mxu1 %v3022_v45 }
 0x303   : > { %11012 = vmatprep.subr.mxu1 %v3021_v15 }
 0x304   : > { %11013 = vmatpush3.msra.mxu1 %v3021_v15 }
 0x305   : > { %11014 = vmatprep.subr.mxu1 %v3020_v5 }
 0x306   : > { %11015 = vmatpush3.msra.mxu1 %v3020_v5 }
 0x385   : > { %v13547_v30 = vpop.f32.mrf.mxu1 }
 0x387   : > { %v13549_v61 = vpop.f32.mrf.mxu1 }
 0x389   : > { %v13551_v39 = vpop.f32.mrf.mxu1 }
 0x38b   : > { %v13553_v60 = vpop.f32.mrf.mxu1 }
 0x38d   : > { %v13555_v54 = vpop.f32.mrf.mxu1 }
 0x38e   : > { %v13557_v17 = vpop.f32.mrf.mxu0 }
 0x38f   : > { %v13559_v22 = vpop.f32.mrf.mxu1 }
 0x390   : > { %v13561_v47 = vpop.f32.mrf.mxu0 }
 0x391   : > { %v13563_v21 = vpop.f32.mrf.mxu1 }
 0x392   : > { %v13565_v41 = vpop.f32.mrf.mxu0 }
 0x393   : > { %v13567_v3 = vpop.f32.mrf.mxu1 }
 0x394   : > { %v13569_v8 = vpop.f32.mrf.mxu0 }
 0x395   : > { %v10879_v44 = vpop.f32.mrf.mxu1 }
 0x396   : > { %v13571_v52 = vpop.f32.mrf.mxu0 }
 0x397   : > { %v2474_v34 = vpop.f32.mrf.mxu1 }
 0x398   : > { %v13573_v23 = vpop.f32.mrf.mxu0 }
 0x399   : > { %v10882_v42 = vpop.f32.mrf.mxu1 }
 0x39a   : > { %v10908_v11 = vpop.f32.mrf.mxu0 }
 0x39b   : > { %v2484_v10 = vpop.f32.mrf.mxu1 }
 0x39c   : > { %v2657_v57 = vpop.f32.mrf.mxu0 }
 0x39d   : > { %v10885_v43 = vpop.f32.mrf.mxu1 }
 0x39e   : > { %v10911_v33 = vpop.f32.mrf.mxu0 }
 0x39f   : > { %v2494_v62 = vpop.f32.mrf.mxu1 }
 0x3a0   : > { %v2667_v31 = vpop.f32.mrf.mxu0 }
 0x3a1   : > { %v10888_v4 = vpop.f32.mrf.mxu1 }
 0x3a2   : > { %v10914_v45 = vpop.f32.mrf.mxu0 }
 0x3a3   : > { %v2504_v32 = vpop.f32.mrf.mxu1  ;;  %v2683_v1 = vadd.f32 %v10914_v45, %v10882_v42  ;;  %v17256_v45 = vld [vmem:[#allocation59_spill] sm:$0xff] }
 0x3a4   : > { %v2677_v20 = vpop.f32.mrf.mxu0 }
 0x3a5   : > { %v13575_v27 = vpop.f32.mrf.mxu1 }
 0x3a6   : > { %v10917_v48 = vpop.f32.mrf.mxu0 }
 0x3a7   : > { %v13577_v40 = vpop.f32.mrf.mxu1  ;;  %v2693_v46 = vadd.f32 %v10917_v48, %v10885_v43 }
 0x3a8   : > { %v2687_v16 = vpop.f32.mrf.mxu0 }
 0x3a9   : > { %v13579_v58 = vpop.f32.mrf.mxu1  ;;  %v2688_v13 = vadd.f32 %v2687_v16, %v2494_v62  ;;  %v2648_v16 = vadd.f32 %v13573_v23, %v13559_v22 }
 0x3aa   : > { %v10920_v14 = vpop.f32.mrf.mxu0 }
 0x3ab   : > { %v13581_v15 = vpop.f32.mrf.mxu1  ;;  %v2703_v24 = vadd.f32 %v10920_v14, %v10888_v4  ;;  %v2653_v14 = vadd.f32 %v13571_v52, %v13555_v54  ;;  %v2638_v54 = vadd.f32 %v13569_v8, %v13553_v60  ;;  %v2628_v60 = vadd.f32 %v13561_v47, %v13549_v61  ;;  %v3019_v52 = vld [vmem:[%s17246_s28 + $0x8] sm:$0xff] }
 0x3ac   : > { %v2697_v2 = vpop.f32.mrf.mxu0  ;;  %11016 = vmatprep.subr.mxu1 %v3019_v52 }
 0x3ad   : > { %v10937_v5 = vpop.f32.mrf.mxu1  ;;  %v2698_v18 = vadd.f32 %v2697_v2, %v2504_v32  ;;  %v2678_v2 = vadd.f32 %v2677_v20, %v2484_v10  ;;  %11017 = vmatpush3.msra.mxu1 %v3019_v52 }
 0x3af   : > { %v13583_v9 = vpop.f32.mrf.mxu1 }
 0x3b1   : > { %v10940_v51 = vpop.f32.mrf.mxu1 }
 0x3b3   : > { %v2855_v53 = vpop.f32.mrf.mxu1 }
 0x3b5   : > { %v10943_v59 = vpop.f32.mrf.mxu1 }
 0x3b7   : > { %v2865_v28 = vpop.f32.mrf.mxu1 }
 0x3b9   : > { %v10946_v29 = vpop.f32.mrf.mxu1 }
 0x3bb   : > { %v2875_v36 = vpop.f32.mrf.mxu1 }
 0x3bd   : > { %v10949_v25 = vpop.f32.mrf.mxu1 }
 0x3be   : > { %v2917_v6 = vadd.f32 %v10949_v25, %v2693_v46 }
 0x3bf   : > { %v2885_v26 = vpop.f32.mrf.mxu1 }
 0x3c0   : > { %v2916_v55 = vadd.f32 %v2885_v26, %v2688_v13 }
 0x3c1   : > { %v10952_v35 = vpop.f32.mrf.mxu1 }
 0x3c2   : > { %v2919_v19 = vadd.f32 %v10952_v35, %v2703_v24  ;;  %v2915_v35 = vadd.f32 %v10946_v29, %v2683_v1  ;;  %v13596_v24 = vadd.f32 %v13585_v50, %v2917_v6  ;;  %v13601_v13 = vadd.f32 %v13585_v50, %v2916_v55 }
 0x3c3   : > { %v2895_v12 = vpop.f32.mrf.mxu1  ;;  %v2663_v6 = vadd.f32 %v10908_v11, %v13563_v21  ;;  %v2658_v55 = vadd.f32 %v2657_v57, %v13567_v3 }
 0x3c4   : > { %v13588_v7 = vadd.f32 %v13585_v50, %v2919_v19  ;;  %v2918_v63 = vadd.f32 %v2895_v12, %v2698_v18  ;;  %v2673_v19 = vadd.f32 %v10911_v33, %v10879_v44  ;;  %v2914_v12 = vadd.f32 %v2875_v36, %v2678_v2  ;;  %v1229_v44 = vld [vmem:[#allocation5 + $0x8] sm:$0xff] }
 0x3c5   : > { %v13606_v1 = vadd.f32 %v13585_v50, %v2915_v35  ;;  %v2911_v25 = vadd.f32 %v10940_v51, %v2663_v6  ;;  %v2910_v29 = vadd.f32 %v2855_v53, %v2658_v55  ;;  %v2643_v53 = vadd.f32 %v13565_v41, %v13551_v39  ;;  %v3411_v2 = vld [vmem:[%s17255_s3 + $0x8] sm:$0xff]  ;;  %v3410_v35 = vld [vmem:[%s17255_s3] sm:$0xff] }
 0x3c6   : > { %v13591_v56 = vadd.f32 %v13585_v50, %v2918_v63  ;;  %10953 = vmatprep.subr.mxu0 %v13588_v7  ;;  %v2668_v63 = vadd.f32 %v2667_v31, %v2474_v34  ;;  %v2913_v18 = vadd.f32 %v10943_v59, %v2673_v19  ;;  %v13612_v26 = vadd.f32 %v13585_v50, %v2914_v12  ;;  %v3018_v34 = vld [vmem:[%s17246_s28] sm:$0xff]  ;;  %v1230_v12 = vld [vmem:[#allocation7] sm:$0xff] }
 0x3c7   : > { %10954 = vmatpush3.msra.mxu0 %v13588_v7  ;;  %v2909_v59 = vadd.f32 %v10937_v5, %v2653_v14  ;;  %v13632_v48 = vadd.f32 %v13585_v50, %v2911_v25  ;;  %v2908_v51 = vadd.f32 %v13583_v9, %v2648_v16  ;;  %v13640_v20 = vadd.f32 %v13585_v50, %v2910_v29  ;;  %v3412_v5 = vld [vmem:[%s17255_s3 + $0x10] sm:$0xff]  ;;  %v17257_v19 = vld [vmem:[#allocation60_spill] sm:$0xff]  ;;  %v17260_v6 = vld [vmem:[#allocation63_spill] sm:$0xff] }
 0x3c8   : > { %10955 = vmatprep.subr.mxu0 %v13591_v56  ;;  %v2912_v46 = vadd.f32 %v2865_v28, %v2668_v63  ;;  %v13618_v36 = vadd.f32 %v13585_v50, %v2913_v18  ;;  %v2907_v22 = vadd.f32 %v13579_v58, %v2643_v53  ;;  %v2633_v9 = vadd.f32 %v13557_v17, %v13547_v30  ;;  %v17258_v63 = vld [vmem:[#allocation61_spill] sm:$0xff]  ;;  %v17259_v18 = vld [vmem:[#allocation62_spill] sm:$0xff]  ;;  %v17264_v14 = vld [vmem:[#allocation67_spill] sm:$0xff] }
 0x3c9   : > { %10956 = vmatpush3.msra.mxu0 %v13591_v56  ;;  %v13648_v21 = vadd.f32 %v13585_v50, %v2909_v59  ;;  %v2906_v39 = vadd.f32 %v13581_v15, %v2638_v54  ;;  %v13656_v41 = vadd.f32 %v13585_v50, %v2908_v51  ;;  %v2904_v30 = vadd.f32 %v13577_v40, %v2628_v60  ;;  %v3413_v15 = vld [vmem:[%s17255_s3 + $0x18] sm:$0xff]  ;;  %v17262_v55 = vld [vmem:[#allocation65_spill] sm:$0xff]  ;;  %v17265_v29 = vld [vmem:[#allocation68_spill] sm:$0xff] }
 0x3ca   : > { %10957 = vmatprep.subr.mxu0 %v13596_v24  ;;  %v13625_v28 = vadd.f32 %v13585_v50, %v2912_v46  ;;  %v2905_v3 = vadd.f32 %v13575_v27, %v2633_v9  ;;  %v13664_v8 = vadd.f32 %v13585_v50, %v2907_v22  ;;  %11018 = vmatprep.subr.mxu1 %v3018_v34  ;;  %v17261_v46 = vld [vmem:[#allocation64_spill] sm:$0xff]  ;;  %v17263_v25 = vld [vmem:[#allocation66_spill] sm:$0xff]  ;;  %v17266_v16 = vld [vmem:[#allocation69_spill] sm:$0xff] }
 0x3cb   : > { %10958 = vmatpush3.msra.mxu0 %v13596_v24  ;;  %v13670_v17 = vadd.f32 %v13585_v50, %v2906_v39  ;;  %v13680_v47 = vadd.f32 %v13585_v50, %v2904_v30  ;;  %11019 = vmatpush3.msra.mxu1 %v3018_v34  ;;  %v17267_v59 = vld [vmem:[#allocation70_spill] sm:$0xff]  ;;  %v17268_v53 = vld [vmem:[#allocation71_spill] sm:$0xff]  ;;  %v17269_v51 = vld [vmem:[#allocation72_spill] sm:$0xff] }
 0x3cc   : > { %10959 = vmatprep.subr.mxu0 %v13601_v13  ;;  %v13675_v61 = vadd.f32 %v13585_v50, %v2905_v3  ;;  %v3121_v50 = vld [vmem:[#allocation16] sm:$0xff]  ;;  %v17270_v54 = vld [vmem:[#allocation73_spill] sm:$0xff] }
 0x3cd   : > { %10960 = vmatpush3.msra.mxu0 %v13601_v13  ;;  %v17271_v22 = vld [vmem:[#allocation74_spill] sm:$0xff] }
 0x3ce   : > { %10961 = vmatprep.subr.mxu0 %v13606_v1 }
 0x3cf   : > { %10962 = vmatpush3.msra.mxu0 %v13606_v1 }
 0x3d0   : > { %10963 = vmatprep.subr.mxu0 %v13612_v26 }
 0x3d1   : > { %10964 = vmatpush3.msra.mxu0 %v13612_v26 }
 0x3d2   : > { %10965 = vmatprep.subr.mxu0 %v13618_v36 }
 0x3d3   : > { %10966 = vmatpush3.msra.mxu0 %v13618_v36 }
 0x3d4   : > { %10967 = vmatprep.subr.mxu0 %v13625_v28 }
 0x3d5   : > { %10968 = vmatpush3.msra.mxu0 %v13625_v28 }
 0x3d6   : > { %10969 = vmatprep.subr.mxu0 %v13632_v48 }
 0x3d7   : > { %10970 = vmatpush3.msra.mxu0 %v13632_v48 }
 0x3d8   : > { %10971 = vmatprep.subr.mxu0 %v13640_v20 }
 0x3d9   : > { %10972 = vmatpush3.msra.mxu0 %v13640_v20 }
 0x3da   : > { %10973 = vmatprep.subr.mxu0 %v13648_v21 }
 0x3db   : > { %10974 = vmatpush3.msra.mxu0 %v13648_v21 }
 0x3dc   : > { %10975 = vmatprep.subr.mxu0 %v13656_v41 }
 0x3dd   : > { %10976 = vmatpush3.msra.mxu0 %v13656_v41 }
 0x3de   : > { %10977 = vmatprep.subr.mxu0 %v13664_v8 }
 0x3df   : > { %10978 = vmatpush3.msra.mxu0 %v13664_v8 }
 0x3e0   : > { %10979 = vmatprep.subr.mxu0 %v13670_v17 }
 0x3e1   : > { %10980 = vmatpush3.msra.mxu0 %v13670_v17 }
 0x3e2   : > { %10981 = vmatprep.subr.mxu0 %v13675_v61 }
 0x3e3   : > { %10982 = vmatpush3.msra.mxu0 %v13675_v61 }
 0x3e4   : > { %10983 = vmatprep.subr.mxu0 %v13680_v47 }
 0x3e5   : > { %10984 = vmatpush3.msra.mxu0 %v13680_v47 }
 0x3e6   : > { %10986 = vmatmul.mubr.f32.vlgmr.msra.gmra.mxu0 %v1229_v44  ;;  %11023 = vmatprep.subr.mxu0 %v3121_v50 }
 0x3e7   : > { %11024 = vmatpush3.msra.mxu0 %v3121_v50 }
 0x3e8   : > { %11056 = vmatprep.subr.mxu0 %v3413_v15 }
 0x4a6   : > { %v10987_v23 = vpop.f32.mrf.mxu0 }
 0x4a8   : > { %v3009_v42 = vpop.f32.mrf.mxu0 }
 0x4a9   : > { %11020 = vmatprep.mubr.f32.mxu1 %v3009_v42 }
 0x4aa   : > { %11021 = vmatmul.mubr.f32.vlgmr.msra.gmra.mxu1 %v10987_v23 }
 0x4ab   : > { %11032 = vmatprep.mubr.msk.f32.mxu1 %vm17016_vm1, %v1230_v12  ;;  %v3804_v12 = vld [vmem:[#allocation19 + $0xe8] sm:$0xff] }
 0x56a   : > { %v11022_v11 = vpop.f32.mrf.mxu1 }
 0x56b   : > { %v3112_v10 = vmin.f32 %v11022_v11, 0.0  ;;  %vm3110_vm14 = vcmp.gt.f32.partialorder %v11022_v11, 0.0 }
 0x56c   : > { %v3100_v43 = vpop.f32.mrf.mxu1 }
 0x56d   : > { %v3115_v57 = vmul.f32 1.442695, %v3112_v10  ;;  %v3111_v62 = vmin.f32 %v3100_v43, 0.0  ;;  %vm3109_vm0 = vcmp.gt.f32.partialorder %v3100_v43, 0.0  ;;  %v1231_v10 = vld [vmem:[#allocation7 + $0x8] sm:$0xff] }
 0x56f   : > { %11627 = vpow2.f32 %v3115_v57  ;;  %v3113_v4 = vmul.f32 1.442695, %v3111_v62  ;;  %v1232_v57 = vld [vmem:[#allocation7 + $0x10] sm:$0xff]  ;;  %v3805_v62 = vld [vmem:[#allocation19 + $0xf0] sm:$0xff] }
 0x571   : > { %11629 = vpow2.f32 %v3113_v4  ;;  %v1233_v4 = vld [vmem:[#allocation7 + $0x18] sm:$0xff] }
 0x57c   : > { %v11628_v33 = vpop.eup %11627 }
 0x57d   : > { %v9540_v27 = vadd.f32 -1.0, %v11628_v33  ;;  %v1234_v33 = vld [vmem:[#allocation7 + $0x20] sm:$0xff] }
 0x57e   : > { %v11630_v32 = vpop.eup %11629 }
 0x57f   : > { %v9539_v31 = vadd.f32 -1.0, %v11630_v32  ;;  %v3120_v58 = vsel %vm3110_vm14, %v11022_v11, %v9540_v27  ;;  %v1235_v32 = vld [vmem:[#allocation7 + $0x28] sm:$0xff]  ;;  %v1236_v27 = vld [vmem:[#allocation7 + $0x30] sm:$0xff] }
 0x581   : > { %v3119_v40 = vsel %vm3109_vm0, %v3100_v43, %v9539_v31  ;;  %v3806_v43 = vld [vmem:[#allocation19 + $0xf8] sm:$0xff]  ;;  %v1237_v31 = vld [vmem:[#allocation7 + $0x38] sm:$0xff] }
 0x582   : > { %11025 = vmatprep.mubr.msk.f32.mxu0 %vm17017_vm13, %v3119_v40  ;;  %v1238_v40 = vld [vmem:[#allocation7 + $0x40] sm:$0xff] }
 0x583   : > { %11026 = vmatmul.mubr.msk.f32.vlgmr.msra.gmra.mxu0 %vm17017_vm13, %v3120_v58  ;;  %v1239_v58 = vld [vmem:[#allocation7 + $0x48] sm:$0xff] }
 0x584   : > { %11064 = vmatprep.mubr.msk.f32.mxu0 %vm1262_vm10, %v17256_v45  ;;  %11057 = vmatpush3.msra.mxu0 %v3413_v15  ;;  %v1240_v45 = vld [vmem:[#allocation7 + $0x50] sm:$0xff]  ;;  %v1241_v15 = vld [vmem:[#allocation7 + $0x58] sm:$0xff] }
 0x585   : > { %11058 = vmatprep.subr.mxu0 %v3412_v5 }
 0x586   : > { %11059 = vmatpush3.msra.mxu0 %v3412_v5  ;;  %v1242_v5 = vld [vmem:[#allocation7 + $0x60] sm:$0xff] }
 0x587   : > { %11060 = vmatprep.subr.mxu0 %v3411_v2 }
 0x588   : > { %11061 = vmatpush3.msra.mxu0 %v3411_v2  ;;  %v1243_v2 = vld [vmem:[#allocation7 + $0x68] sm:$0xff] }
 0x589   : > { %11062 = vmatprep.subr.mxu0 %v3410_v35 }
 0x58a   : > { %11063 = vmatpush3.msra.mxu0 %v3410_v35  ;;  %v1244_v35 = vld [vmem:[#allocation7 + $0x70] sm:$0xff] }
 0x58b   : > { %11065 = vmatmul.mubr.msk.f32.vlgmr.msra.gmra.mxu0 %vm1262_vm10, %v17257_v19  ;;  %v1245_v19 = vld [vmem:[#allocation7 + $0x78] sm:$0xff] }
 0x58c   : > { %11067 = vmatprep.mubr.msk.f32.mxu0 %vm1262_vm10, %v17258_v63  ;;  %v3803_v63 = vld [vmem:[#allocation19 + $0xe0] sm:$0xff] }
 0x58f   : > { %11068 = vmatmul.mubr.msk.f32.gmra.mxu0 %vm1262_vm10, %v17259_v18  ;;  %v3802_v18 = vld [vmem:[#allocation19 + $0xd8] sm:$0xff] }
 0x590   : > { %11070 = vmatprep.mubr.msk.f32.mxu0 %vm1262_vm10, %v17260_v6  ;;  %v3789_v6 = vld [vmem:[#allocation19 + $0x78] sm:$0xff] }
 0x591   : > { %11144 = vmatprep.subr.mxu0 %v3789_v6 }
 0x592   : > { %11145 = vmatpush3.msra.mxu0 %v3789_v6 }
 0x593   : > { %11071 = vmatmul.mubr.msk.f32.gmra.mxu0 %vm1262_vm10, %v17261_v46  ;;  %v3801_v46 = vld [vmem:[#allocation19 + $0xd0] sm:$0xff] }
 0x594   : > { %11073 = vmatprep.mubr.msk.f32.mxu0 %vm1262_vm10, %v17262_v55  ;;  %v3788_v55 = vld [vmem:[#allocation19 + $0x70] sm:$0xff] }
 0x595   : > { %11146 = vmatprep.subr.mxu0 %v3788_v55 }
 0x596   : > { %11147 = vmatpush3.msra.mxu0 %v3788_v55 }
 0x597   : > { %11074 = vmatmul.mubr.msk.f32.gmra.mxu0 %vm1262_vm10, %v17263_v25  ;;  %v3800_v25 = vld [vmem:[#allocation19 + $0xc8] sm:$0xff] }
 0x598   : > { %11076 = vmatprep.mubr.msk.f32.mxu0 %vm1262_vm10, %v17264_v14  ;;  %v3787_v14 = vld [vmem:[#allocation19 + $0x68] sm:$0xff] }
 0x599   : > { %11148 = vmatprep.subr.mxu0 %v3787_v14 }
 0x59a   : > { %11149 = vmatpush3.msra.mxu0 %v3787_v14 }
 0x59b   : > { %11077 = vmatmul.mubr.msk.f32.gmra.mxu0 %vm1262_vm10, %v17265_v29  ;;  %v3799_v29 = vld [vmem:[#allocation19 + $0xc0] sm:$0xff] }
 0x59c   : > { %11079 = vmatprep.mubr.msk.f32.mxu0 %vm1262_vm10, %v17266_v16  ;;  %v3786_v16 = vld [vmem:[#allocation19 + $0x60] sm:$0xff] }
 0x59d   : > { %11150 = vmatprep.subr.mxu0 %v3786_v16 }
 0x59e   : > { %11151 = vmatpush3.msra.mxu0 %v3786_v16 }
 0x59f   : > { %11080 = vmatmul.mubr.msk.f32.gmra.mxu0 %vm1262_vm10, %v17267_v59  ;;  %v3798_v59 = vld [vmem:[#allocation19 + $0xb8] sm:$0xff] }
 0x5a0   : > { %11082 = vmatprep.mubr.msk.f32.mxu0 %vm1262_vm10, %v17268_v53  ;;  %v3785_v53 = vld [vmem:[#allocation19 + $0x58] sm:$0xff] }
 0x5a1   : > { %11152 = vmatprep.subr.mxu0 %v3785_v53 }
 0x5a2   : > { %11153 = vmatpush3.msra.mxu0 %v3785_v53 }
 0x5a3   : > { %11083 = vmatmul.mubr.msk.f32.gmra.mxu0 %vm1262_vm10, %v17269_v51  ;;  %v3797_v51 = vld [vmem:[#allocation19 + $0xb0] sm:$0xff] }
 0x5a4   : > { %11085 = vmatprep.mubr.msk.f32.mxu0 %vm1262_vm10, %v17270_v54  ;;  %v3784_v54 = vld [vmem:[#allocation19 + $0x50] sm:$0xff] }
 0x5a5   : > { %11154 = vmatprep.subr.mxu0 %v3784_v54 }
 0x5a6   : > { %11155 = vmatpush3.msra.mxu0 %v3784_v54 }
 0x5a7   : > { %11086 = vmatmul.mubr.msk.f32.gmra.mxu0 %vm1262_vm10, %v17271_v22  ;;  %v3796_v22 = vld [vmem:[#allocation19 + $0xa8] sm:$0xff] }
 0x643   : > { %v11027_v9 = vpop.f32.mrf.mxu0 }
 0x644   : > { %v3205_v39 = vsub.f32 0.0, %v11027_v9  ;;  %v3783_v9 = vld [vmem:[#allocation19 + $0x48] sm:$0xff] }
 0x645   : > { %v3195_v60 = vpop.f32.mrf.mxu0  ;;  %11156 = vmatprep.subr.mxu0 %v3783_v9 }
 0x646   : > { %v3208_v3 = vmul.f32 1.442695, %v3205_v39  ;;  %v3204_v30 = vsub.f32 0.0, %v3195_v60  ;;  %11157 = vmatpush3.msra.mxu0 %v3783_v9  ;;  %v3795_v39 = vld [vmem:[#allocation19 + $0xa0] sm:$0xff] }
 0x647   : > { %v3782_v60 = vld [vmem:[#allocation19 + $0x40] sm:$0xff] }
 0x648   : > { %11631 = vpow2.f32 %v3208_v3  ;;  %v3206_v44 = vmul.f32 1.442695, %v3204_v30  ;;  %11158 = vmatprep.subr.mxu0 %v3782_v60  ;;  %v3794_v3 = vld [vmem:[#allocation19 + $0x98] sm:$0xff] }
 0x649   : > { %11159 = vmatpush3.msra.mxu0 %v3782_v60  ;;  %v3781_v30 = vld [vmem:[#allocation19 + $0x38] sm:$0xff] }
 0x64a   : > { %11633 = vpow2.f32 %v3206_v44  ;;  %11160 = vmatprep.subr.mxu0 %v3781_v30  ;;  %v3793_v44 = vld [vmem:[#allocation19 + $0x90] sm:$0xff] }
 0x64b   : > { %11161 = vmatpush3.msra.mxu0 %v3781_v30 }
 0x655   : > { %v11632_v52 = vpop.eup %11631 }
 0x656   : > { %v3211_v34 = vadd.f32 1.0, %v11632_v52  ;;  %v3780_v52 = vld [vmem:[#allocation19 + $0x30] sm:$0xff] }
 0x657   : > { %v11634_v23 = vpop.eup %11633  ;;  %11162 = vmatprep.subr.mxu0 %v3780_v52 }
 0x658   : > { %11635 = vrcp.f32 %v3211_v34  ;;  %v3210_v42 = vadd.f32 1.0, %v11634_v23  ;;  %11163 = vmatpush3.msra.mxu0 %v3780_v52  ;;  %v3792_v34 = vld [vmem:[#allocation19 + $0x88] sm:$0xff] }
 0x659   : > { %v3779_v23 = vld [vmem:[#allocation19 + $0x28] sm:$0xff] }
 0x65a   : > { %11637 = vrcp.f32 %v3210_v42  ;;  %11164 = vmatprep.subr.mxu0 %v3779_v23  ;;  %v3791_v42 = vld [vmem:[#allocation19 + $0x80] sm:$0xff] }
 0x65b   : > { %11165 = vmatpush3.msra.mxu0 %v3779_v23 }
 0x665   : > { %v11636_v50 = vpop.eup %11635 }
 0x666   : > { %11028 = vmatprep.subr.mxu1 %v11636_v50 }
 0x667   : > { %v11638_v11 = vpop.eup %11637  ;;  %11029 = vmatpush3.msra.mxu1 %v11636_v50  ;;  %v3778_v50 = vld [vmem:[#allocation19 + $0x20] sm:$0xff] }
 0x668   : > { %11030 = vmatprep.subr.mxu1 %v11638_v11  ;;  %11166 = vmatprep.subr.mxu0 %v3778_v50 }
 0x669   : > { %11031 = vmatpush3.msra.mxu1 %v11638_v11  ;;  %11167 = vmatpush3.msra.mxu0 %v3778_v50  ;;  %v3777_v11 = vld [vmem:[#allocation19 + $0x18] sm:$0xff] }
 0x66a   : > { %11033 = vmatmul.mubr.msk.f32.vlgmr.msra.gmra.mxu1 %vm17016_vm1, %v1231_v10  ;;  %11088 = vmatprep.subr.mxu1 %v3806_v43  ;;  %v13742_v10 = vld [vmem:[#allocation19 + $0x178] sm:$0xff] }
 0x66b   : > { %11035 = vmatprep.mubr.msk.f32.mxu1 %vm17016_vm1, %v1232_v57  ;;  %11089 = vmatpush3.msra.mxu1 %v3806_v43  ;;  %v3776_v43 = vld [vmem:[#allocation19 + $0x10] sm:$0xff]  ;;  %v3775_v57 = vld [vmem:[#allocation19 + $0x8] sm:$0xff] }
 0x66c   : > { %11090 = vmatprep.subr.mxu1 %v3805_v62  ;;  %11168 = vmatprep.subr.mxu0 %v3777_v11 }
 0x66d   : > { %11091 = vmatpush3.msra.mxu1 %v3805_v62  ;;  %11169 = vmatpush3.msra.mxu0 %v3777_v11  ;;  %v3774_v62 = vld [vmem:[#allocation19] sm:$0xff] }
 0x66e   : > { %11036 = vmatmul.mubr.msk.f32.gmra.mxu1 %vm17016_vm1, %v1233_v4  ;;  %11092 = vmatprep.subr.mxu1 %v3804_v12  ;;  %v11066_v4 = vpop.f32.mrf.mxu0 }
 0x66f   : > { %11038 = vmatprep.mubr.msk.f32.mxu1 %vm17016_vm1, %v1234_v33  ;;  %11093 = vmatpush3.msra.mxu1 %v3804_v12 }
 0x670   : > { %11094 = vmatprep.subr.mxu1 %v3803_v63  ;;  %11170 = vmatprep.subr.mxu0 %v3776_v43  ;;  %v3487_v33 = vpop.f32.mrf.mxu0 }
 0x671   : > { %11095 = vmatpush3.msra.mxu1 %v3803_v63  ;;  %11171 = vmatpush3.msra.mxu0 %v3776_v43 }
 0x672   : > { %11039 = vmatmul.mubr.msk.f32.gmra.mxu1 %vm17016_vm1, %v1235_v32  ;;  %11096 = vmatprep.subr.mxu1 %v3802_v18  ;;  %v11069_v32 = vpop.f32.mrf.mxu0 }
 0x673   : > { %11041 = vmatprep.mubr.msk.f32.mxu1 %vm17016_vm1, %v1236_v27  ;;  %11097 = vmatpush3.msra.mxu1 %v3802_v18 }
 0x674   : > { %11098 = vmatprep.subr.mxu1 %v3801_v46  ;;  %11172 = vmatprep.subr.mxu0 %v3775_v57  ;;  %v3497_v27 = vpop.f32.mrf.mxu0 }
 0x675   : > { %11099 = vmatpush3.msra.mxu1 %v3801_v46  ;;  %11173 = vmatpush3.msra.mxu0 %v3775_v57 }
 0x676   : > { %11042 = vmatmul.mubr.msk.f32.gmra.mxu1 %vm17016_vm1, %v1237_v31  ;;  %11100 = vmatprep.subr.mxu1 %v3800_v25  ;;  %v11072_v31 = vpop.f32.mrf.mxu0 }
 0x677   : > { %11044 = vmatprep.mubr.msk.f32.mxu1 %vm17016_vm1, %v1238_v40  ;;  %11101 = vmatpush3.msra.mxu1 %v3800_v25 }
 0x678   : > { %11102 = vmatprep.subr.mxu1 %v3799_v29  ;;  %11174 = vmatprep.subr.mxu0 %v3774_v62  ;;  %v3507_v40 = vpop.f32.mrf.mxu0 }
 0x679   : > { %11103 = vmatpush3.msra.mxu1 %v3799_v29  ;;  %11175 = vmatpush3.msra.mxu0 %v3774_v62 }
 0x67a   : > { %11045 = vmatmul.mubr.msk.f32.gmra.mxu1 %vm17016_vm1, %v1239_v58  ;;  %11104 = vmatprep.subr.mxu1 %v3798_v59  ;;  %v11075_v58 = vpop.f32.mrf.mxu0 }
 0x67b   : > { %11047 = vmatprep.mubr.msk.f32.mxu1 %vm17016_vm1, %v1240_v45  ;;  %11105 = vmatpush3.msra.mxu1 %v3798_v59 }
 0x67c   : > { %11106 = vmatprep.subr.mxu1 %v3797_v51  ;;  %v3517_v45 = vpop.f32.mrf.mxu0 }
 0x67d   : > { %11107 = vmatpush3.msra.mxu1 %v3797_v51 }
 0x67e   : > { %11048 = vmatmul.mubr.msk.f32.gmra.mxu1 %vm17016_vm1, %v1241_v15  ;;  %11108 = vmatprep.subr.mxu1 %v3796_v22  ;;  %v11078_v15 = vpop.f32.mrf.mxu0 }
 0x67f   : > { %11050 = vmatprep.mubr.msk.f32.mxu1 %vm17016_vm1, %v1242_v5  ;;  %11109 = vmatpush3.msra.mxu1 %v3796_v22  ;;  %v13745_v5 = vld [vmem:[#allocation18] ss:$0 sm:$0xff] }
 0x680   : > { %11110 = vmatprep.subr.mxu1 %v3795_v39  ;;  %v3488_v46 = vadd.f32 %v13745_v5, %v3487_v33  ;;  %v3503_v25 = vadd.f32 %v11069_v32, %v13745_v5 }
 0x681   : > { %11111 = vmatpush3.msra.mxu1 %v3795_v39  ;;  %v3513_v39 = vadd.f32 %v11072_v31, %v13745_v5 }
 0x682   : > { %11051 = vmatmul.mubr.msk.f32.gmra.mxu1 %vm17016_vm1, %v1243_v2  ;;  %11112 = vmatprep.subr.mxu1 %v3794_v3  ;;  %v13747_v2 = vpop.f32.mrf.mxu0 }
 0x683   : > { %11053 = vmatprep.mubr.msk.f32.mxu1 %vm17016_vm1, %v1244_v35  ;;  %11113 = vmatpush3.msra.mxu1 %v3794_v3  ;;  %v3493_v35 = vadd.f32 %v11066_v4, %v13745_v5 }
 0x684   : > { %11114 = vmatprep.subr.mxu1 %v3793_v44  ;;  %v11081_v63 = vpop.f32.mrf.mxu0 }
 0x685   : > { %11115 = vmatpush3.msra.mxu1 %v3793_v44 }
 0x686   : > { %11054 = vmatmul.mubr.msk.f32.gmra.mxu1 %vm17016_vm1, %v1245_v19  ;;  %11116 = vmatprep.subr.mxu1 %v3792_v34  ;;  %v3537_v53 = vpop.f32.mrf.mxu0 }
 0x687   : > { %11117 = vmatpush3.msra.mxu1 %v3792_v34  ;;  %v3508_v34 = vadd.f32 %v13745_v5, %v3507_v40  ;;  %v3533_v40 = vadd.f32 %v11078_v15, %v13745_v5  ;;  %v3543_v15 = vadd.f32 %v11081_v63, %v13745_v5 }
 0x688   : > { %11118 = vmatprep.subr.mxu1 %v3791_v42 }
 0x689   : > { %11119 = vmatpush3.msra.mxu1 %v3791_v42  ;;  %v3523_v42 = vadd.f32 %v11075_v58, %v13745_v5 }
 0x68a   : > { %11200 = vmatprep.subr.mxu1 %v13742_v10 }
 0x72a   : > { %v11034_v19 = vpop.f32.mrf.mxu1 }
 0x72b   : > { %v3567_v12 = vmul.f32 %v11034_v19, %v13675_v61  ;;  %v3498_v61 = vadd.f32 %v13745_v5, %v3497_v27  ;;  %v3518_v27 = vadd.f32 %v13745_v5, %v3517_v45 }
 0x72c   : > { %v3331_v18 = vpop.f32.mrf.mxu1 }
 0x72d   : > { %v13751_v6 = vadd.f32 %v3567_v12, %v3493_v35  ;;  %v3566_v55 = vmul.f32 %v3331_v18, %v13680_v47 }
 0x72e   : > { %v11037_v14 = vpop.f32.mrf.mxu1 }
 0x72f   : > { %v3615_v29 = vmin.f32 %v13751_v6, 0.0  ;;  %v13757_v16 = vadd.f32 %v3566_v55, %v3488_v46  ;;  %v3569_v59 = vmul.f32 %v11037_v14, %v13664_v8  ;;  %v11084_v8 = vpop.f32.mrf.mxu0  ;;  %vm3599_vm10 = vcmp.gt.f32.partialorder %v13751_v6, 0.0 }
 0x730   : > { %v3341_v51 = vpop.f32.mrf.mxu1 }
 0x731   : > { %v3632_v54 = vmul.f32 1.442695, %v3615_v29  ;;  %v3614_v22 = vmin.f32 %v13757_v16, 0.0  ;;  %v13762_v9 = vadd.f32 %v3569_v59, %v3503_v25  ;;  %v3568_v47 = vmul.f32 %v3341_v51, %v13670_v17  ;;  %v3547_v33 = vpop.f32.mrf.mxu0 }
 0x732   : > { %v11040_v60 = vpop.f32.mrf.mxu1  ;;  %vm3598_vm0 = vcmp.gt.f32.partialorder %v13757_v16, 0.0 }
 0x733   : > { %11639 = vpow2.f32 %v3632_v54  ;;  %v3630_v3 = vmul.f32 1.442695, %v3614_v22  ;;  %v3617_v30 = vmin.f32 %v13762_v9, 0.0  ;;  %v13767_v44 = vadd.f32 %v3568_v47, %v3498_v61  ;;  %v11087_v45 = vpop.f32.mrf.mxu0 }
 0x734   : > { %v3571_v52 = vmul.f32 %v11040_v60, %v13648_v21  ;;  %v3351_v23 = vpop.f32.mrf.mxu1  ;;  %v3538_v54 = vadd.f32 %v13745_v5, %v3537_v53  ;;  %vm3601_vm14 = vcmp.gt.f32.partialorder %v13762_v9, 0.0 }
 0x735   : > { %11641 = vpow2.f32 %v3630_v3  ;;  %v3636_v50 = vmul.f32 1.442695, %v3617_v30  ;;  %v3616_v17 = vmin.f32 %v13767_v44, 0.0  ;;  %v3570_v11 = vmul.f32 %v3351_v23, %v13656_v41  ;;  %v3557_v47 = vpop.f32.mrf.mxu0 }
 0x736   : > { %v13774_v43 = vadd.f32 %v3571_v52, %v3513_v39  ;;  %v11043_v57 = vpop.f32.mrf.mxu1  ;;  %v3553_v30 = vadd.f32 %v11084_v8, %v13745_v5 }
 0x737   : > { %11643 = vpow2.f32 %v3636_v50  ;;  %v3634_v62 = vmul.f32 1.442695, %v3616_v17  ;;  %v13776_v4 = vadd.f32 %v3570_v11, %v3508_v34  ;;  %v3573_v21 = vmul.f32 %v11043_v57, %v13632_v48 }
 0x738   : > { %v3619_v32 = vmin.f32 %v13774_v43, 0.0  ;;  %v3361_v31 = vpop.f32.mrf.mxu1  ;;  %v3558_v50 = vadd.f32 %v13745_v5, %v3557_v47 }
 0x739   : > { %11645 = vpow2.f32 %v3634_v62  ;;  %v3618_v41 = vmin.f32 %v13776_v4, 0.0  ;;  %v13783_v58 = vadd.f32 %v3573_v21, %v3523_v42  ;;  %v3572_v35 = vmul.f32 %v3361_v31, %v13640_v20 }
 0x73a   : > { %v3640_v19 = vmul.f32 1.442695, %v3619_v32  ;;  %v11046_v12 = vpop.f32.mrf.mxu1  ;;  %v3528_v20 = vadd.f32 %v13745_v5, %v13747_v2  ;;  %v3548_v2 = vadd.f32 %v13745_v5, %v3547_v33 }
 0x73b   : > { %v3638_v18 = vmul.f32 1.442695, %v3618_v41  ;;  %v3621_v48 = vmin.f32 %v13783_v58, 0.0  ;;  %v13787_v46 = vadd.f32 %v3572_v35, %v3518_v27  ;;  %v3575_v55 = vmul.f32 %v11046_v12, %v13618_v36 }
 0x73c   : > { %11647 = vpow2.f32 %v3640_v19  ;;  %v3371_v25 = vpop.f32.mrf.mxu1 }
 0x73d   : > { %11649 = vpow2.f32 %v3638_v18  ;;  %v3644_v14 = vmul.f32 1.442695, %v3621_v48  ;;  %v3620_v29 = vmin.f32 %v13787_v46, 0.0  ;;  %v13792_v59 = vadd.f32 %v3575_v55, %v3533_v40 }
 0x73e   : > { %v3574_v61 = vmul.f32 %v3371_v25, %v13625_v28  ;;  %v11049_v51 = vpop.f32.mrf.mxu1  ;;  %v3563_v28 = vadd.f32 %v11087_v45, %v13745_v5 }
 0x73f   : > { %11651 = vpow2.f32 %v3644_v14  ;;  %v3642_v36 = vmul.f32 1.442695, %v3620_v29  ;;  %v3623_v22 = vmin.f32 %v13792_v59, 0.0  ;;  %v3577_v63 = vmul.f32 %v11049_v51, %v13606_v1 }
 0x740   : > { %v11640_v39 = vpop.eup %11639  ;;  %v13800_v60 = vadd.f32 %v3574_v61, %v3528_v20  ;;  %v3381_v3 = vpop.f32.mrf.mxu1 }
 0x741   : > { %11653 = vpow2.f32 %v3642_v36  ;;  %v3648_v52 = vmul.f32 1.442695, %v3623_v22  ;;  %v13805_v53 = vadd.f32 %v3577_v63, %v3543_v15  ;;  %v3576_v34 = vmul.f32 %v3381_v3, %v13612_v26 }
 0x742   : > { %v11642_v23 = vpop.eup %11641  ;;  %v3622_v1 = vmin.f32 %v13800_v60, 0.0  ;;  %v11052_v42 = vpop.f32.mrf.mxu1  ;;  %v9577_v17 = vadd.f32 -1.0, %v11640_v39 }
 0x743   : > { %11655 = vpow2.f32 %v3648_v52  ;;  %v3625_v8 = vmin.f32 %v13805_v53, 0.0  ;;  %v13812_v11 = vadd.f32 %v3576_v34, %v3538_v54  ;;  %v3579_v57 = vmul.f32 %v11052_v42, %v13596_v24  ;;  %v4109_v52 = vld [vmem:[#allocation19 + $0x158] sm:$0xff]  ;;  %v4108_v42 = vld [vmem:[#allocation19 + $0x150] sm:$0xff] }
 0x744   : > { %v11644_v62 = vpop.eup %11643  ;;  %v3646_v21 = vmul.f32 1.442695, %v3622_v1  ;;  %v3391_v33 = vpop.f32.mrf.mxu1  ;;  %v9576_v26 = vadd.f32 -1.0, %v11642_v23  ;;  %v13817_v32 = vsel %vm3599_vm10, %v13751_v6, %v9577_v17  ;;  %vm3600_vm10 = vcmp.gt.f32.partialorder %v13767_v44, 0.0 }
 0x745   : > { %17272 = vst [vmem:[#allocation59_spill] sm:$0xff] %v13817_v32  ;;  %v3652_v27 = vmul.f32 1.442695, %v3625_v8  ;;  %v3624_v5 = vmin.f32 %v13812_v11, 0.0  ;;  %v13820_v31 = vadd.f32 %v3579_v57, %v3553_v30  ;;  %v3578_v40 = vmul.f32 %v3391_v33, %v13601_v13  ;;  %3695 = vst [vmem:[#allocation3 + $0x9] sm:$0xff] %v13817_v32  ;;  %v4112_v13 = vld [vmem:[#allocation19 + $0x170] sm:$0xff] }
 0x746   : > { %v11646_v41 = vpop.eup %11645  ;;  %11657 = vpow2.f32 %v3646_v21  ;;  %v11055_v24 = vpop.f32.mrf.mxu1  ;;  %v13825_v35 = vsel %vm3598_vm0, %v13757_v16, %v9576_v26  ;;  %v9579_v19 = vadd.f32 -1.0, %v11644_v62  ;;  %vm3603_vm0 = vcmp.gt.f32.partialorder %v13774_v43, 0.0  ;;  %v4107_v57 = vld [vmem:[#allocation19 + $0x148] sm:$0xff]  ;;  %v4106_v33 = vld [vmem:[#allocation19 + $0x140] sm:$0xff] }
 0x747   : > { %17273 = vst [vmem:[#allocation60_spill] sm:$0xff] %v13825_v35  ;;  %11659 = vpow2.f32 %v3652_v27  ;;  %v3650_v6 = vmul.f32 1.442695, %v3624_v5  ;;  %v3627_v12 = vmin.f32 %v13820_v31, 0.0  ;;  %v13829_v18 = vadd.f32 %v3578_v40, %v3548_v2  ;;  %3694 = vst [vmem:[#allocation3 + $0x1] sm:$0xff] %v13825_v35  ;;  %11120 = vmatprep.mubr.f32.mxu1 %v13825_v35 }
 0x748   : > { %v3581_v48 = vmul.f32 %v11055_v24, %v13588_v7  ;;  %11121 = vmatmul.mubr.f32.vlgmr.msra.gmra.mxu1 %v13817_v32  ;;  %v3401_v16 = vpop.f32.mrf.mxu1  ;;  %v9578_v55 = vadd.f32 -1.0, %v11646_v41  ;;  %v13837_v45 = vsel %vm3601_vm14, %v13762_v9, %v9579_v19  ;;  %v4111_v7 = vld [vmem:[#allocation19 + $0x168] sm:$0xff]  ;;  %vm3602_vm14 = vcmp.gt.f32.partialorder %v13776_v4, 0.0  ;;  %v4105_v19 = vld [vmem:[#allocation19 + $0x138] sm:$0xff] }
 0x749   : > { %17274 = vst [vmem:[#allocation61_spill] sm:$0xff] %v13837_v45  ;;  %v11648_v25 = vpop.eup %11647  ;;  %11661 = vpow2.f32 %v3650_v6  ;;  %v3656_v15 = vmul.f32 1.442695, %v3627_v12  ;;  %v3626_v14 = vmin.f32 %v13829_v18, 0.0  ;;  %v3580_v29 = vmul.f32 %v3401_v16, %v13591_v56  ;;  %11201 = vmatpush3.msra.mxu1 %v13742_v10  ;;  %3697 = vst [vmem:[#allocation3 + $0x19] sm:$0xff] %v13837_v45  ;;  %v4110_v56 = vld [vmem:[#allocation19 + $0x160] sm:$0xff] }
 0x74a   : > { %v11650_v20 = vpop.eup %11649  ;;  %v13843_v61 = vadd.f32 %v3581_v48, %v3563_v28  ;;  %11202 = vmatprep.subr.mxu1 %v4112_v13  ;;  %v13846_v51 = vsel %vm3600_vm10, %v13767_v44, %v9578_v55  ;;  %v9581_v9 = vadd.f32 -1.0, %v11648_v25  ;;  %vm3605_vm10 = vcmp.gt.f32.partialorder %v13783_v58, 0.0 }
 0x74b   : > { %17275 = vst [vmem:[#allocation62_spill] sm:$0xff] %v13846_v51  ;;  %11663 = vpow2.f32 %v3656_v15  ;;  %v3654_v54 = vmul.f32 1.442695, %v3626_v14  ;;  %v13849_v36 = vadd.f32 %v3580_v29, %v3558_v50  ;;  %3696 = vst [vmem:[#allocation3 + $0x11] sm:$0xff] %v13846_v51  ;;  %11123 = vmatprep.mubr.f32.mxu1 %v13846_v51  ;;  %11203 = vmatpush3.msra.mxu1 %v4112_v13  ;;  %v9580_v10 = vadd.f32 -1.0, %v11650_v20  ;;  %v4103_v14 = vld [vmem:[#allocation19 + $0x128] sm:$0xff] }
 0x74c   : > { %v11652_v22 = vpop.eup %11651  ;;  %v3629_v63 = vmin.f32 %v13843_v61, 0.0  ;;  %11124 = vmatmul.mubr.f32.gmra.mxu1 %v13837_v45  ;;  %11204 = vmatprep.subr.mxu1 %v4111_v7  ;;  %v13857_v44 = vsel %vm3603_vm0, %v13774_v43, %v9581_v9  ;;  %vm3604_vm0 = vcmp.gt.f32.partialorder %v13787_v46, 0.0  ;;  %v4102_v9 = vld [vmem:[#allocation19 + $0x120] sm:$0xff] }
 0x74d   : > { %17276 = vst [vmem:[#allocation63_spill] sm:$0xff] %v13857_v44  ;;  %11665 = vpow2.f32 %v3654_v54  ;;  %v3628_v47 = vmin.f32 %v13849_v36, 0.0  ;;  %11205 = vmatpush3.msra.mxu1 %v4111_v7  ;;  %v13861_v39 = vsel %vm3602_vm14, %v13776_v4, %v9580_v10  ;;  %3699 = vst [vmem:[#allocation3 + $0x29] sm:$0xff] %v13857_v44  ;;  %v9583_v3 = vadd.f32 -1.0, %v11652_v22  ;;  %v14007_v45 = vld [vmem:[#allocation21] ss:$0 sm:$0xff] }
 0x74e   : > { %17277 = vst [vmem:[#allocation64_spill] sm:$0xff] %v13861_v39  ;;  %v11654_v30 = vpop.eup %11653  ;;  %v3660_v2 = vmul.f32 1.442695, %v3629_v63  ;;  %11206 = vmatprep.subr.mxu1 %v4110_v56  ;;  %3698 = vst [vmem:[#allocation3 + $0x21] sm:$0xff] %v13861_v39  ;;  %11126 = vmatprep.mubr.f32.mxu1 %v13861_v39  ;;  %v3710_v28 = vld [vmem:[#allocation3] sm:$0xff]  ;;  %v3711_v43 = vld [vmem:[#allocation3 + $0x8] sm:$0xff] }
 0x74f   : > { %v3658_v34 = vmul.f32 1.442695, %v3628_v47  ;;  %11176 = vmatprep.mubr.msk.f32.mxu0 %vm1359_vm2, %v3710_v28  ;;  %11207 = vmatpush3.msra.mxu1 %v4110_v56  ;;  %v9582_v4 = vadd.f32 -1.0, %v11654_v30  ;;  %v13870_v23 = vsel %vm3605_vm10, %v13783_v58, %v9583_v3  ;;  %vm3607_vm14 = vcmp.gt.f32.partialorder %v13792_v59, 0.0  ;;  %v4101_v63 = vld [vmem:[#allocation19 + $0x118] sm:$0xff] }
 0x750   : > { %17278 = vst [vmem:[#allocation65_spill] sm:$0xff] %v13870_v23  ;;  %v11656_v1 = vpop.eup %11655  ;;  %11667 = vpow2.f32 %v3660_v2  ;;  %11127 = vmatmul.mubr.f32.gmra.mxu1 %v13857_v44  ;;  %11177 = vmatmul.mubr.msk.f32.vlgmr.msra.gmra.mxu0 %vm1360_vm4, %v3711_v43  ;;  %3701 = vst [vmem:[#allocation3 + $0x39] sm:$0xff] %v13870_v23  ;;  %vm3606_vm10 = vcmp.gt.f32.partialorder %v13800_v60, 0.0  ;;  %v4100_v2 = vld [vmem:[#allocation19 + $0x110] sm:$0xff] }
 0x751   : > { %11669 = vpow2.f32 %v3658_v34  ;;  %11208 = vmatprep.subr.mxu1 %v4109_v52  ;;  %v13878_v50 = vsel %vm3604_vm0, %v13787_v46, %v9582_v4  ;;  %v9585_v17 = vadd.f32 -1.0, %v11656_v1  ;;  %vm3609_vm0 = vcmp.gt.f32.partialorder %v13805_v53, 0.0  ;;  %v4099_v4 = vld [vmem:[#allocation19 + $0x108] sm:$0xff]  ;;  %v17294_v1 = vld [vmem:[#allocation86_spill] sm:$0xff] }
 0x752   : > { %17279 = vst [vmem:[#allocation66_spill] sm:$0xff] %v13878_v50  ;;  %11209 = vmatpush3.msra.mxu1 %v4109_v52  ;;  %3700 = vst [vmem:[#allocation3 + $0x31] sm:$0xff] %v13878_v50  ;;  %11129 = vmatprep.mubr.f32.mxu1 %v13878_v50  ;;  %v3712_v58 = vld [vmem:[#allocation3 + $0x10] sm:$0xff]  ;;  %v3713_v8 = vld [vmem:[#allocation3 + $0x18] sm:$0xff] }
 0x753   : > { %v11658_v62 = vpop.eup %11657  ;;  %11210 = vmatprep.subr.mxu1 %v4108_v42  ;;  %11179 = vmatprep.mubr.msk.f32.mxu0 %vm1361_vm3, %v3712_v58  ;;  %v13886_v21 = vsel %vm3607_vm14, %v13792_v59, %v9585_v17  ;;  %vm3608_vm14 = vcmp.gt.f32.partialorder %v13812_v11, 0.0 }
 0x754   : > { %17280 = vst [vmem:[#allocation67_spill] sm:$0xff] %v13886_v21  ;;  %v11660_v46 = vpop.eup %11659  ;;  %11211 = vmatpush3.msra.mxu1 %v4108_v42  ;;  %11180 = vmatmul.mubr.msk.f32.gmra.mxu0 %vm1362_vm5, %v3713_v8  ;;  %v9584_v26 = vadd.f32 -1.0, %v11658_v62  ;;  %3703 = vst [vmem:[#allocation3 + $0x49] sm:$0xff] %v13886_v21  ;;  %v3742_v42 = vld [vmem:[#allocation3 + $0x2] sm:$0xff]  ;;  %v17302_v62 = vld [vmem:[#allocation87_spill] sm:$0xff] }
 0x755   : > { %11130 = vmatmul.mubr.f32.gmra.mxu1 %v13870_v23  ;;  %11212 = vmatprep.subr.mxu1 %v4107_v57  ;;  %v3714_v27 = vld [vmem:[#allocation3 + $0x20] sm:$0xff]  ;;  %v3715_v5 = vld [vmem:[#allocation3 + $0x28] sm:$0xff]  ;;  %v9587_v40 = vadd.f32 -1.0, %v11660_v46 }
 0x756   : > { %v11662_v41 = vpop.eup %11661  ;;  %11213 = vmatpush3.msra.mxu1 %v4107_v57  ;;  %v13894_v59 = vsel %vm3606_vm10, %v13800_v60, %v9584_v26  ;;  %11182 = vmatprep.mubr.msk.f32.mxu0 %vm1363_vm6, %v3714_v27  ;;  %v4104_v60 = vld [vmem:[#allocation19 + $0x130] sm:$0xff]  ;;  %vm3611_vm10 = vcmp.gt.f32.partialorder %v13820_v31, 0.0  ;;  %v17298_v8 = vld [vmem:[#allocation92_spill] sm:$0xff]  ;;  %v3744_v26 = vld [vmem:[#allocation3 + $0x12] sm:$0xff] }
 0x757   : > { %17281 = vst [vmem:[#allocation68_spill] sm:$0xff] %v13894_v59  ;;  %11214 = vmatprep.subr.mxu1 %v4106_v33  ;;  %3702 = vst [vmem:[#allocation3 + $0x41] sm:$0xff] %v13894_v59  ;;  %11132 = vmatprep.mubr.f32.mxu1 %v13894_v59  ;;  %v9586_v6 = vadd.f32 -1.0, %v11662_v41  ;;  %v13902_v12 = vsel %vm3609_vm0, %v13805_v53, %v9587_v40  ;;  %vm3610_vm0 = vcmp.gt.f32.partialorder %v13829_v18, 0.0  ;;  %v17300_v57 = vld [vmem:[#allocation88_spill] sm:$0xff]  ;;  %v3743_v46 = vld [vmem:[#allocation3 + $0xa] sm:$0xff] }
 0x758   : > { %17283 = vst [vmem:[#allocation69_spill] sm:$0xff] %v13902_v12  ;;  %v11664_v13 = vpop.eup %11663  ;;  %11215 = vmatpush3.msra.mxu1 %v4106_v33  ;;  %11183 = vmatmul.mubr.msk.f32.gmra.mxu0 %vm1364_vm7, %v3715_v5  ;;  %3705 = vst [vmem:[#allocation3 + $0x59] sm:$0xff] %v13902_v12  ;;  %vm17301_vm1 = vcmp.eq.s32.totalorder %v17300_v57, 1  ;;  %v17304_v33 = vld [vmem:[#allocation91_spill] sm:$0xff]  ;;  %v17306_v40 = vld [vmem:[#allocation94_spill] sm:$0xff] }
 0x759   : > { %11133 = vmatmul.mubr.f32.gmra.mxu1 %v13886_v21  ;;  %11216 = vmatprep.subr.mxu1 %v4105_v19  ;;  %v13910_v16 = vsel %vm3608_vm14, %v13812_v11, %v9586_v6  ;;  %v3716_v55 = vld [vmem:[#allocation3 + $0x30] sm:$0xff]  ;;  %v3717_v25 = vld [vmem:[#allocation3 + $0x38] sm:$0xff]  ;;  %v9589_v53 = vadd.f32 -1.0, %v11664_v13  ;;  %vm3613_vm14 = vcmp.gt.f32.partialorder %v13843_v61, 0.0  ;;  %vm17307_vm13 = vcmp.eq.s32.totalorder %v17306_v40, 1  ;;  %v17312_v13 = vld [vmem:[#allocation93_spill] sm:$0xff] }
 0x75a   : > { %17285 = vst [vmem:[#allocation70_spill] sm:$0xff] %v13910_v16  ;;  %v11666_v15 = vpop.eup %11665  ;;  %11217 = vmatpush3.msra.mxu1 %v4105_v19  ;;  %3704 = vst [vmem:[#allocation3 + $0x51] sm:$0xff] %v13910_v16  ;;  %11135 = vmatprep.mubr.f32.mxu1 %v13910_v16  ;;  %v17308_v41 = vld [vmem:[#allocation90_spill] sm:$0xff]  ;;  %v17310_v19 = vld [vmem:[#allocation89_spill] sm:$0xff] }
 0x75b   : > { %11218 = vmatprep.subr.mxu1 %v4104_v60  ;;  %11185 = vmatprep.mubr.msk.f32.mxu0 %vm1365_vm8, %v3716_v55  ;;  %v9588_v7 = vadd.f32 -1.0, %v11666_v15  ;;  %v13918_v11 = vsel %vm3611_vm10, %v13820_v31, %v9589_v53  ;;  %vm3612_vm10 = vcmp.gt.f32.partialorder %v13849_v36, 0.0  ;;  %v3745_v6 = vld [vmem:[#allocation3 + $0x1a] sm:$0xff]  ;;  %v3748_v15 = vld [vmem:[#allocation3 + $0x32] sm:$0xff] }
 0x75c   : > { %17287 = vst [vmem:[#allocation71_spill] sm:$0xff] %v13918_v11  ;;  %11219 = vmatpush3.msra.mxu1 %v4104_v60  ;;  %11186 = vmatmul.mubr.msk.f32.gmra.mxu0 %vm1366_vm9, %v3717_v25  ;;  %3707 = vst [vmem:[#allocation3 + $0x69] sm:$0xff] %v13918_v11  ;;  %v3746_v60 = vld [vmem:[#allocation3 + $0x22] sm:$0xff]  ;;  %v3747_v25 = vld [vmem:[#allocation3 + $0x2a] sm:$0xff] }
 0x75d   : > { %v11668_v54 = vpop.eup %11667  ;;  %11136 = vmatmul.mubr.f32.gmra.mxu1 %v13902_v12  ;;  %11220 = vmatprep.subr.mxu1 %v4103_v14  ;;  %v13926_v56 = vsel %vm3610_vm0, %v13829_v18, %v9588_v7  ;;  %v17291_v18 = vld [vmem:[#allocation83_spill] sm:$0xff]  ;;  %vm17295_vm0 = vcmp.eq.s32.totalorder %v17294_v1, 1  ;;  %v17314_v55 = vld [vmem:[#allocation96_spill] sm:$0xff] }
 0x75e   : > { %17289 = vst [vmem:[#allocation72_spill] sm:$0xff] %v13926_v56  ;;  %v11670_v10 = vpop.eup %11669  ;;  %11221 = vmatpush3.msra.mxu1 %v4103_v14  ;;  %3706 = vst [vmem:[#allocation3 + $0x61] sm:$0xff] %v13926_v56  ;;  %11138 = vmatprep.mubr.f32.mxu1 %v13926_v56  ;;  %v3718_v31 = vld [vmem:[#allocation3 + $0x40] sm:$0xff]  ;;  %v3719_v22 = vld [vmem:[#allocation3 + $0x48] sm:$0xff]  ;;  %v9591_v47 = vadd.f32 -1.0, %v11668_v54 }
 0x75f   : > { %11222 = vmatprep.subr.mxu1 %v4102_v9  ;;  %11188 = vmatprep.mubr.msk.f32.mxu0 %vm1367_vm11, %v3718_v31  ;;  %v9590_v30 = vadd.f32 -1.0, %v11670_v10  ;;  %v17316_v53 = vld [vmem:[#allocation95_spill] sm:$0xff]  ;;  %v17318_v14 = vld [vmem:[#allocation98_spill] sm:$0xff]  ;;  %v3750_v54 = vld [vmem:[#allocation3 + $0x42] sm:$0xff] }
 0x760   : > { %11223 = vmatpush3.msra.mxu1 %v4102_v9  ;;  %11189 = vmatmul.mubr.msk.f32.gmra.mxu0 %vm17018_vm12, %v3719_v22  ;;  %v13937_v28 = vsel %vm3613_vm14, %v13843_v61, %v9591_v47  ;;  %v17296_v61 = vld [vmem:[#allocation85_spill] sm:$0xff]  ;;  %vm17311_vm12 = vcmp.eq.s32.totalorder %v17310_v19, 1  ;;  %v3749_v7 = vld [vmem:[#allocation3 + $0x3a] sm:$0xff]  ;;  %v17326_v47 = vld [vmem:[#allocation102_spill] sm:$0xff] }
 0x761   : > { %17292 = vst [vmem:[#allocation73_spill] sm:$0xff] %v13937_v28  ;;  %11139 = vmatmul.mubr.f32.gmra.mxu1 %v13918_v11  ;;  %11224 = vmatprep.subr.mxu1 %v4101_v63  ;;  %v13941_v43 = vsel %vm3612_vm10, %v13849_v36, %v9590_v30  ;;  %v3720_v52 = vld [vmem:[#allocation3 + $0x50] sm:$0xff]  ;;  %3709 = vst [vmem:[#allocation3 + $0x79] sm:$0xff] %v13937_v28  ;;  %v3721_v34 = vld [vmem:[#allocation3 + $0x58] sm:$0xff]  ;;  %vm17297_vm14 = vcmp.eq.s32.totalorder %v17296_v61, 1  ;;  %vm17299_vm10 = vcmp.eq.s32.totalorder %v17298_v8, 1 }
 0x762   : > { %17293 = vst [vmem:[#allocation74_spill] sm:$0xff] %v13941_v43  ;;  %11225 = vmatpush3.msra.mxu1 %v4101_v63  ;;  %3708 = vst [vmem:[#allocation3 + $0x71] sm:$0xff] %v13941_v43  ;;  %11141 = vmatprep.mubr.f32.mxu1 %v13941_v43  ;;  %v4098_v36 = vld [vmem:[#allocation19 + $0x100] sm:$0xff]  ;;  %v17320_v9 = vld [vmem:[#allocation97_spill] sm:$0xff] }
 0x763   : > { %11226 = vmatprep.subr.mxu1 %v4100_v2  ;;  %11191 = vmatprep.mubr.msk.f32.mxu0 %vm17295_vm0, %v3720_v52  ;;  %vm17303_vm0 = vcmp.eq.s32.totalorder %v17302_v62, 1  ;;  %v17322_v10 = vld [vmem:[#allocation100_spill] sm:$0xff]  ;;  %v3751_v31 = vld [vmem:[#allocation3 + $0x4a] sm:$0xff]  ;;  %v17324_v22 = vld [vmem:[#allocation99_spill] sm:$0xff] }
 0x764   : > { %11227 = vmatpush3.msra.mxu1 %v4100_v2  ;;  %11192 = vmatmul.mubr.msk.f32.gmra.mxu0 %vm17297_vm14, %v3721_v34  ;;  %vm17305_vm14 = vcmp.eq.s32.totalorder %v17304_v33, 1  ;;  %v3752_v63 = vld [vmem:[#allocation3 + $0x52] sm:$0xff]  ;;  %v17329_v34 = vld [vmem:[#allocation104_spill] sm:$0xff] }
 0x765   : > { %11142 = vmatmul.mubr.f32.gmra.mxu1 %v13937_v28  ;;  %11228 = vmatprep.subr.mxu1 %v4099_v4  ;;  %v3722_v17 = vld [vmem:[#allocation3 + $0x60] sm:$0xff]  ;;  %v3723_v58 = vld [vmem:[#allocation3 + $0x68] sm:$0xff] }
 0x766   : > { %11229 = vmatpush3.msra.mxu1 %v4099_v4  ;;  %11232 = vmatprep.mubr.msk.f32.mxu1 %vm17299_vm10, %v3742_v42  ;;  %vm17309_vm10 = vcmp.eq.s32.totalorder %v17308_v41, 1  ;;  %v3753_v30 = vld [vmem:[#allocation3 + $0x5a] sm:$0xff]  ;;  %v3754_v52 = vld [vmem:[#allocation3 + $0x62] sm:$0xff] }
 0x767   : > { %11230 = vmatprep.subr.mxu1 %v4098_v36  ;;  %11194 = vmatprep.mubr.msk.f32.mxu0 %vm17301_vm1, %v3722_v17  ;;  %vm17313_vm1 = vcmp.eq.s32.totalorder %v17312_v13, 1  ;;  %v17333_v17 = vld [vmem:[#allocation106_spill] sm:$0xff] }
 0x768   : > { %11231 = vmatpush3.msra.mxu1 %v4098_v36  ;;  %11195 = vmatmul.mubr.msk.f32.gmra.mxu0 %vm17303_vm0, %v3723_v58  ;;  %vm17315_vm0 = vcmp.eq.s32.totalorder %v17314_v55, 1  ;;  %v17331_v36 = vld [vmem:[#allocation103_spill] sm:$0xff] }
 0x769   : > { %11233 = vmatmul.mubr.msk.f32.vlgmr.msra.gmra.mxu1 %vm17305_vm14, %v3743_v46  ;;  %v3724_v27 = vld [vmem:[#allocation3 + $0x70] sm:$0xff]  ;;  %v3725_v5 = vld [vmem:[#allocation3 + $0x78] sm:$0xff]  ;;  %vm17317_vm14 = vcmp.eq.s32.totalorder %v17316_v53, 1  ;;  %v17335_v46 = vld [vmem:[#allocation105_spill] sm:$0xff] }
 0x76a   : > { %11235 = vmatprep.mubr.msk.f32.mxu1 %vm17307_vm13, %v3744_v26  ;;  %11197 = vmatprep.mubr.msk.f32.mxu0 %vm17309_vm10, %v3724_v27  ;;  %vm17319_vm13 = vcmp.eq.s32.totalorder %v17318_v14, 1  ;;  %vm17321_vm10 = vcmp.eq.s32.totalorder %v17320_v9, 1  ;;  %v3755_v4 = vld [vmem:[#allocation3 + $0x6a] sm:$0xff]  ;;  %v3756_v42 = vld [vmem:[#allocation3 + $0x72] sm:$0xff]  ;;  %v3757_v58 = vld [vmem:[#allocation3 + $0x7a] sm:$0xff] }
 0x76b   : > { %v4538_v26 = vld [vmem:[#allocation22 + $0x1f8] sm:$0xff]  ;;  %v4537_v27 = vld [vmem:[#allocation22 + $0x1f0] sm:$0xff] }
 0x76c   : > { %11198 = vmatmul.mubr.msk.f32.gmra.mxu0 %vm17311_vm12, %v3725_v5  ;;  %vm17323_vm12 = vcmp.eq.s32.totalorder %v17322_v10, 1  ;;  %4539 = vmatprep.subr.mxu0 %v4538_v26  ;;  %v4536_v5 = vld [vmem:[#allocation22 + $0x1e8] sm:$0xff]  ;;  %v4526_v26 = vld [vmem:[#allocation22 + $0x198] sm:$0xff] }
 0x76d   : > { %11236 = vmatmul.mubr.msk.f32.gmra.mxu1 %vm17313_vm1, %v3745_v6  ;;  %vm17325_vm1 = vcmp.eq.s32.totalorder %v17324_v22, 1  ;;  %4540 = vmatpush1.msra.mxu0 %v4537_v27  ;;  %v4535_v6 = vld [vmem:[#allocation22 + $0x1e0] sm:$0xff]  ;;  %v4501_v27 = vld [vmem:[#allocation22 + $0xd8] sm:$0xff] }
 0x76e   : > { %11238 = vmatprep.mubr.msk.f32.mxu1 %vm17315_vm0, %v3746_v60  ;;  %vm17327_vm0 = vcmp.eq.s32.totalorder %v17326_v47, 1  ;;  %4541 = vmatprep.subr.mxu0 %v4536_v5  ;;  %v4534_v60 = vld [vmem:[#allocation22 + $0x1d8] sm:$0xff]  ;;  %v4525_v5 = vld [vmem:[#allocation22 + $0x190] sm:$0xff] }
 0x76f   : > { %4542 = vmatpush1.msra.mxu0 %v4535_v6  ;;  %v4500_v6 = vld [vmem:[#allocation22 + $0xd0] sm:$0xff] }
 0x770   : > { %4543 = vmatprep.subr.mxu0 %v4534_v60  ;;  %v4524_v60 = vld [vmem:[#allocation22 + $0x188] sm:$0xff] }
 0x771   : > { %11239 = vmatmul.mubr.msk.f32.gmra.mxu1 %vm17317_vm14, %v3747_v25  ;;  %vm17330_vm14 = vcmp.eq.s32.totalorder %v17329_v34, 1  ;;  %v4533_v25 = vld [vmem:[#allocation22 + $0x1d0] sm:$0xff] }
 0x772   : > { %11241 = vmatprep.mubr.msk.f32.mxu1 %vm17319_vm13, %v3748_v15  ;;  %vm17332_vm13 = vcmp.eq.s32.totalorder %v17331_v36, 1  ;;  %4544 = vmatpush1.msra.mxu0 %v4533_v25  ;;  %v4532_v15 = vld [vmem:[#allocation22 + $0x1c8] sm:$0xff] }
 0x773   : > { %4545 = vmatprep.subr.mxu0 %v4532_v15  ;;  %v4499_v25 = vld [vmem:[#allocation22 + $0xc8] sm:$0xff]  ;;  %v4523_v15 = vld [vmem:[#allocation22 + $0x180] sm:$0xff] }
 0x775   : > { %11242 = vmatmul.mubr.msk.f32.gmra.mxu1 %vm17321_vm10, %v3749_v7  ;;  %vm17334_vm10 = vcmp.eq.s32.totalorder %v17333_v17, 1  ;;  %v4531_v7 = vld [vmem:[#allocation22 + $0x1c0] sm:$0xff] }
 0x776   : > { %11244 = vmatprep.mubr.msk.f32.mxu1 %vm17323_vm12, %v3750_v54  ;;  %vm17336_vm12 = vcmp.eq.s32.totalorder %v17335_v46, 1  ;;  %4546 = vmatpush1.msra.mxu0 %v4531_v7  ;;  %v4530_v54 = vld [vmem:[#allocation22 + $0x1b8] sm:$0xff]  ;;  %v4498_v7 = vld [vmem:[#allocation22 + $0xc0] sm:$0xff] }
 0x777   : > { %4547 = vmatprep.subr.mxu0 %v4530_v54  ;;  %v4522_v54 = vld [vmem:[#allocation22 + $0x178] sm:$0xff] }
 0x779   : > { %11245 = vmatmul.mubr.msk.f32.gmra.mxu1 %vm17325_vm1, %v3751_v31  ;;  %v4505_v31 = vld [vmem:[#allocation22 + $0xf8] sm:$0xff] }
 0x77a   : > { %11247 = vmatprep.mubr.msk.f32.mxu1 %vm17327_vm0, %v3752_v63  ;;  %4700 = vmatprep.subr.mxu1 %v4505_v31  ;;  %v4529_v63 = vld [vmem:[#allocation22 + $0x1b0] sm:$0xff]  ;;  %v4497_v31 = vld [vmem:[#allocation22 + $0xb8] sm:$0xff] }
 0x77b   : > { %4548 = vmatpush1.msra.mxu0 %v4529_v63  ;;  %v4521_v63 = vld [vmem:[#allocation22 + $0x170] sm:$0xff] }
 0x77d   : > { %11248 = vmatmul.mubr.msk.f32.gmra.mxu1 %vm1482_vm15, %v3753_v30  ;;  %v4504_v30 = vld [vmem:[#allocation22 + $0xf0] sm:$0xff] }
 0x77e   : > { %11250 = vmatprep.mubr.msk.f32.mxu1 %vm17330_vm14, %v3754_v52  ;;  %4701 = vmatpush1.msra.mxu1 %v4504_v30  ;;  %v4528_v52 = vld [vmem:[#allocation22 + $0x1a8] sm:$0xff]  ;;  %v4496_v30 = vld [vmem:[#allocation22 + $0xb0] sm:$0xff] }
 0x77f   : > { %4549 = vmatprep.subr.mxu0 %v4528_v52  ;;  %v4520_v52 = vld [vmem:[#allocation22 + $0x168] sm:$0xff] }
 0x781   : > { %11251 = vmatmul.mubr.msk.f32.gmra.mxu1 %vm17332_vm13, %v3755_v4  ;;  %v4503_v4 = vld [vmem:[#allocation22 + $0xe8] sm:$0xff] }
 0x782   : > { %11253 = vmatprep.mubr.msk.f32.mxu1 %vm17334_vm10, %v3756_v42  ;;  %4702 = vmatprep.subr.mxu1 %v4503_v4  ;;  %v4527_v42 = vld [vmem:[#allocation22 + $0x1a0] sm:$0xff]  ;;  %v4495_v4 = vld [vmem:[#allocation22 + $0xa8] sm:$0xff] }
 0x783   : > { %4550 = vmatpush1.msra.mxu0 %v4527_v42  ;;  %v4519_v42 = vld [vmem:[#allocation22 + $0x160] sm:$0xff] }
 0x784   : > { %4551 = vmatprep.subr.mxu0 %v4526_v26  ;;  %v4518_v26 = vld [vmem:[#allocation22 + $0x158] sm:$0xff] }
 0x785   : > { %11254 = vmatmul.mubr.msk.f32.gmra.mxu1 %vm17336_vm12, %v3757_v58  ;;  %v4502_v58 = vld [vmem:[#allocation22 + $0xe0] sm:$0xff]  ;;  %4552 = vmatpush1.msra.mxu0 %v4525_v5  ;;  %v4517_v5 = vld [vmem:[#allocation22 + $0x150] sm:$0xff] }
 0x786   : > { %4703 = vmatpush1.msra.mxu1 %v4502_v58  ;;  %4553 = vmatprep.subr.mxu0 %v4524_v60  ;;  %v4494_v58 = vld [vmem:[#allocation22 + $0xa0] sm:$0xff]  ;;  %v4516_v60 = vld [vmem:[#allocation22 + $0x148] sm:$0xff] }
 0x787   : > { %4704 = vmatprep.subr.mxu1 %v4501_v27  ;;  %4554 = vmatpush1.msra.mxu0 %v4523_v15  ;;  %v4493_v27 = vld [vmem:[#allocation22 + $0x98] sm:$0xff]  ;;  %v4515_v15 = vld [vmem:[#allocation22 + $0x140] sm:$0xff] }
 0x788   : > { %4705 = vmatpush1.msra.mxu1 %v4500_v6  ;;  %4555 = vmatprep.subr.mxu0 %v4522_v54  ;;  %v4492_v6 = vld [vmem:[#allocation22 + $0x90] sm:$0xff]  ;;  %v4514_v54 = vld [vmem:[#allocation22 + $0x138] sm:$0xff] }
 0x789   : > { %4706 = vmatprep.subr.mxu1 %v4499_v25  ;;  %4556 = vmatpush1.msra.mxu0 %v4521_v63  ;;  %v4491_v25 = vld [vmem:[#allocation22 + $0x88] sm:$0xff]  ;;  %v4513_v63 = vld [vmem:[#allocation22 + $0x130] sm:$0xff] }
 0x78a   : > { %4707 = vmatpush1.msra.mxu1 %v4498_v7  ;;  %4557 = vmatprep.subr.mxu0 %v4520_v52  ;;  %v4490_v7 = vld [vmem:[#allocation22 + $0x80] sm:$0xff]  ;;  %v4512_v52 = vld [vmem:[#allocation22 + $0x128] sm:$0xff] }
 0x78b   : > { %4708 = vmatprep.subr.mxu1 %v4497_v31  ;;  %4558 = vmatpush1.msra.mxu0 %v4519_v42  ;;  %v4489_v31 = vld [vmem:[#allocation22 + $0x78] sm:$0xff]  ;;  %v4511_v42 = vld [vmem:[#allocation22 + $0x120] sm:$0xff] }
 0x78c   : > { %4709 = vmatpush1.msra.mxu1 %v4496_v30  ;;  %4559 = vmatprep.subr.mxu0 %v4518_v26  ;;  %v4488_v30 = vld [vmem:[#allocation22 + $0x70] sm:$0xff]  ;;  %v4510_v26 = vld [vmem:[#allocation22 + $0x118] sm:$0xff] }
 0x78d   : > { %4710 = vmatprep.subr.mxu1 %v4495_v4  ;;  %4560 = vmatpush1.msra.mxu0 %v4517_v5  ;;  %v4487_v4 = vld [vmem:[#allocation22 + $0x68] sm:$0xff]  ;;  %v4509_v5 = vld [vmem:[#allocation22 + $0x110] sm:$0xff] }
 0x78e   : > { %4711 = vmatpush1.msra.mxu1 %v4494_v58  ;;  %4561 = vmatprep.subr.mxu0 %v4516_v60  ;;  %v4486_v58 = vld [vmem:[#allocation22 + $0x60] sm:$0xff]  ;;  %v4508_v60 = vld [vmem:[#allocation22 + $0x108] sm:$0xff] }
 0x78f   : > { %4712 = vmatprep.subr.mxu1 %v4493_v27  ;;  %4562 = vmatpush1.msra.mxu0 %v4515_v15  ;;  %v4485_v27 = vld [vmem:[#allocation22 + $0x58] sm:$0xff]  ;;  %v4507_v15 = vld [vmem:[#allocation22 + $0x100] sm:$0xff] }
 0x790   : > { %4713 = vmatpush1.msra.mxu1 %v4492_v6  ;;  %4563 = vmatprep.subr.mxu0 %v4514_v54  ;;  %v4484_v6 = vld [vmem:[#allocation22 + $0x50] sm:$0xff]  ;;  %v17019_v54 = vmov 0.0  }
 0x791   : > { %4714 = vmatprep.subr.mxu1 %v4491_v25  ;;  %4564 = vmatpush1.msra.mxu0 %v4513_v63  ;;  %v4483_v25 = vld [vmem:[#allocation22 + $0x48] sm:$0xff]  ;;  %v4480_v63 = vld [vmem:[#allocation22 + $0x30] sm:$0xff] }
 0x792   : > { %4715 = vmatpush1.msra.mxu1 %v4490_v7  ;;  %4565 = vmatprep.subr.mxu0 %v4512_v52  ;;  %v4482_v7 = vld [vmem:[#allocation22 + $0x40] sm:$0xff] }
 0x793   : > { %4716 = vmatprep.subr.mxu1 %v4489_v31  ;;  %4566 = vmatpush1.msra.mxu0 %v4511_v42  ;;  %v4481_v31 = vld [vmem:[#allocation22 + $0x38] sm:$0xff]  ;;  %v4478_v52 = vld [vmem:[#allocation22 + $0x20] sm:$0xff]  ;;  %v4476_v42 = vld [vmem:[#allocation22 + $0x10] sm:$0xff] }
 0x794   : > { %4717 = vmatpush1.msra.mxu1 %v4488_v30  ;;  %4567 = vmatprep.subr.mxu0 %v4510_v26  ;;  %v4479_v30 = vld [vmem:[#allocation22 + $0x28] sm:$0xff]  ;;  %v4474_v26 = vld [vmem:[#allocation22] sm:$0xff] }
 0x795   : > { %4718 = vmatprep.subr.mxu1 %v4487_v4  ;;  %4568 = vmatpush1.msra.mxu0 %v4509_v5  ;;  %v4477_v4 = vld [vmem:[#allocation22 + $0x18] sm:$0xff] }
 0x796   : > { %4719 = vmatpush1.msra.mxu1 %v4486_v58  ;;  %4569 = vmatprep.subr.mxu0 %v4508_v60  ;;  %v4475_v58 = vld [vmem:[#allocation22 + $0x8] sm:$0xff] }
 0x797   : > { %4720 = vmatprep.subr.mxu1 %v4485_v27  ;;  %4570 = vmatpush1.msra.mxu0 %v4507_v15  ;;  %v4893_v27 = vld [vmem:[#allocation22 + $0x2f8] sm:$0xff] }
 0x798   : > { %4721 = vmatpush1.msra.mxu1 %v4484_v6  ;;  %4603 = vmatprep.mubr.f32.mxu0 %v17019_v54 }
 0x799   : > { %4722 = vmatprep.subr.mxu1 %v4483_v25  ;;  %4764 = vmatprep.mubr.f32.mxu1 %v17019_v54 }
 0x79a   : > { %4723 = vmatpush1.msra.mxu1 %v4482_v7  ;;  %4894 = vmatprep.subr.mxu0 %v4893_v27 }
 0x79b   : > { %4724 = vmatprep.subr.mxu1 %v4481_v31 }
 0x79c   : > { %4725 = vmatpush1.msra.mxu1 %v4480_v63 }
 0x79d   : > { %4726 = vmatprep.subr.mxu1 %v4479_v30 }
 0x79e   : > { %4727 = vmatpush1.msra.mxu1 %v4478_v52 }
 0x79f   : > { %4728 = vmatprep.subr.mxu1 %v4477_v4 }
 0x7a0   : > { %4729 = vmatpush1.msra.mxu1 %v4476_v42 }
 0x7a1   : > { %4730 = vmatprep.subr.mxu1 %v4475_v58 }
 0x7a2   : > { %4731 = vmatpush1.msra.mxu1 %v4474_v26 }
 0x808   : > { %v11122_v5 = vpop.f32.mrf.mxu1 }
 0x80a   : > { %v3873_v6 = vpop.f32.mrf.mxu1 }
 0x80c   : > { %v11125_v60 = vpop.f32.mrf.mxu1 }
 0x80e   : > { %v3883_v25 = vpop.f32.mrf.mxu1 }
 0x810   : > { %v11128_v15 = vpop.f32.mrf.mxu1  ;;  %v11178_v7 = vpop.f32.mrf.mxu0 }
 0x811   : > { %v4024_v44 = vadd.f32 %v11178_v7, %v11122_v5 }
 0x812   : > { %v3893_v31 = vpop.f32.mrf.mxu1  ;;  %v4018_v63 = vpop.f32.mrf.mxu0 }
 0x813   : > { %v4019_v51 = vadd.f32 %v4018_v63, %v3873_v6 }
 0x814   : > { %v11181_v30 = vpop.f32.mrf.mxu0 }
 0x815   : > { %v11131_v54 = vpop.f32.mrf.mxu1  ;;  %v4034_v17 = vadd.f32 %v11181_v30, %v11125_v60 }
 0x816   : > { %v4028_v52 = vpop.f32.mrf.mxu0 }
 0x817   : > { %v3903_v28 = vpop.f32.mrf.mxu1  ;;  %v4029_v47 = vadd.f32 %v4028_v52, %v3883_v25 }
 0x818   : > { %v11184_v4 = vpop.f32.mrf.mxu0 }
 0x819   : > { %v11134_v43 = vpop.f32.mrf.mxu1 }
 0x81a   : > { %v4038_v42 = vpop.f32.mrf.mxu0 }
 0x81b   : > { %v13993_v11 = vpop.f32.mrf.mxu1  ;;  %v4039_v60 = vadd.f32 %v4038_v42, %v3893_v31 }
 0x81c   : > { %v11187_v58 = vpop.f32.mrf.mxu0 }
 0x81d   : > { %v13995_v26 = vpop.f32.mrf.mxu1 }
 0x81e   : > { %v4048_v27 = vpop.f32.mrf.mxu0 }
 0x81f   : > { %v13997_v56 = vpop.f32.mrf.mxu1 }
 0x820   : > { %v11190_v16 = vpop.f32.mrf.mxu0 }
 0x821   : > { %v13999_v12 = vpop.f32.mrf.mxu1 }
 0x822   : > { %v4058_v23 = vpop.f32.mrf.mxu0 }
 0x823   : > { %v14001_v21 = vpop.f32.mrf.mxu1 }
 0x824   : > { %v11193_v32 = vpop.f32.mrf.mxu0 }
 0x825   : > { %v14003_v59 = vpop.f32.mrf.mxu1 }
 0x826   : > { %v4068_v22 = vpop.f32.mrf.mxu0 }
 0x827   : > { %v14005_v50 = vpop.f32.mrf.mxu1 }
 0x829   : > { %v11234_v39 = vpop.f32.mrf.mxu1 }
 0x82a   : > { %v4260_v35 = vadd.f32 %v11234_v39, %v4024_v44 }
 0x82b   : > { %v4180_v46 = vpop.f32.mrf.mxu1 }
 0x82c   : > { %v14010_v36 = vadd.f32 %v14007_v45, %v4260_v35  ;;  %v4259_v34 = vadd.f32 %v4180_v46, %v4019_v51  ;;  %v4044_v35 = vadd.f32 %v11184_v4, %v11128_v15  ;;  %v11196_v46 = vpop.f32.mrf.mxu0 }
 0x82d   : > { %v11237_v2 = vpop.f32.mrf.mxu1 }
 0x82e   : > { %v4315_v10 = vmin.f32 %v14010_v36, 0.0  ;;  %v14014_v9 = vadd.f32 %v14007_v45, %v4259_v34  ;;  %v4262_v5 = vadd.f32 %v11237_v2, %v4034_v17  ;;  %v4054_v2 = vadd.f32 %v11187_v58, %v11131_v54 }
 0x82f   : > { %v4190_v7 = vpop.f32.mrf.mxu1  ;;  %v4064_v54 = vadd.f32 %v11190_v16, %v11134_v43  ;;  %v4059_v43 = vadd.f32 %v4058_v23, %v13993_v11  ;;  %vm4299_vm1 = vcmp.gt.f32.partialorder %v14010_v36, 0.0 }
 0x830   : > { %v4332_v14 = vmul.f32 1.442695, %v4315_v10  ;;  %v4314_v6 = vmin.f32 %v14014_v9, 0.0  ;;  %v14018_v44 = vadd.f32 %v14007_v45, %v4262_v5  ;;  %v4261_v39 = vadd.f32 %v4190_v7, %v4029_v47 }
 0x831   : > { %v11240_v51 = vpop.f32.mrf.mxu1  ;;  %v4049_v47 = vadd.f32 %v4048_v27, %v3903_v28  ;;  %vm4298_vm0 = vcmp.gt.f32.partialorder %v14014_v9, 0.0 }
 0x832   : > { %11671 = vpow2.f32 %v4332_v14  ;;  %v4330_v25 = vmul.f32 1.442695, %v4314_v6  ;;  %v4317_v63 = vmin.f32 %v14018_v44, 0.0  ;;  %v14022_v34 = vadd.f32 %v14007_v45, %v4261_v39  ;;  %v4078_v14 = vpop.f32.mrf.mxu0 }
 0x833   : > { %v4264_v17 = vadd.f32 %v11240_v51, %v4044_v35  ;;  %v4200_v10 = vpop.f32.mrf.mxu1  ;;  %vm4301_vm14 = vcmp.gt.f32.partialorder %v14018_v44, 0.0 }
 0x834   : > { %11673 = vpow2.f32 %v4330_v25  ;;  %v4336_v30 = vmul.f32 1.442695, %v4317_v63  ;;  %v4316_v52 = vmin.f32 %v14022_v34, 0.0  ;;  %v4263_v5 = vadd.f32 %v4200_v10, %v4039_v60  ;;  %v11199_v51 = vpop.f32.mrf.mxu0 }
 0x835   : > { %v14026_v15 = vadd.f32 %v14007_v45, %v4264_v17  ;;  %v11243_v31 = vpop.f32.mrf.mxu1  ;;  %vm4300_vm13 = vcmp.gt.f32.partialorder %v14022_v34, 0.0 }
 0x836   : > { %11675 = vpow2.f32 %v4336_v30  ;;  %v4334_v4 = vmul.f32 1.442695, %v4316_v52  ;;  %v14029_v42 = vadd.f32 %v14007_v45, %v4263_v5  ;;  %v4266_v7 = vadd.f32 %v11243_v31, %v4054_v2 }
 0x837   : > { %v4319_v58 = vmin.f32 %v14026_v15, 0.0  ;;  %v4210_v6 = vpop.f32.mrf.mxu1  ;;  %v4074_v2 = vadd.f32 %v11193_v32, %v13995_v26  ;;  %v4084_v26 = vadd.f32 %v11196_v46, %v13999_v12  ;;  %vm4303_vm10 = vcmp.gt.f32.partialorder %v14026_v15, 0.0 }
 0x838   : > { %11677 = vpow2.f32 %v4334_v4  ;;  %v4318_v39 = vmin.f32 %v14029_v42, 0.0  ;;  %v14034_v28 = vadd.f32 %v14007_v45, %v4266_v7  ;;  %v4265_v27 = vadd.f32 %v4210_v6, %v4049_v47  ;;  %v4088_v7 = vpop.f32.mrf.mxu0 }
 0x839   : > { %v4340_v35 = vmul.f32 1.442695, %v4319_v58  ;;  %v11246_v60 = vpop.f32.mrf.mxu1  ;;  %v4069_v47 = vadd.f32 %v4068_v22, %v13997_v56  ;;  %v4079_v58 = vadd.f32 %v4078_v14, %v14001_v21  ;;  %v4094_v6 = vadd.f32 %v11199_v51, %v14003_v59 }
 0x83a   : > { %v4338_v25 = vmul.f32 1.442695, %v4318_v39  ;;  %v4321_v63 = vmin.f32 %v14034_v28, 0.0  ;;  %v14038_v17 = vadd.f32 %v14007_v45, %v4265_v27  ;;  %v4268_v16 = vadd.f32 %v11246_v60, %v4064_v54 }
 0x83b   : > { %11679 = vpow2.f32 %v4340_v35  ;;  %v4220_v10 = vpop.f32.mrf.mxu1  ;;  %vm4302_vm12 = vcmp.gt.f32.partialorder %v14029_v42, 0.0 }
 0x83c   : > { %11681 = vpow2.f32 %v4338_v25  ;;  %v4344_v30 = vmul.f32 1.442695, %v4321_v63  ;;  %v4320_v52 = vmin.f32 %v14038_v17, 0.0  ;;  %v14044_v5 = vadd.f32 %v14007_v45, %v4268_v16 }
 0x83d   : > { %v4267_v31 = vadd.f32 %v4220_v10, %v4059_v43  ;;  %v11249_v4 = vpop.f32.mrf.mxu1  ;;  %v4089_v25 = vadd.f32 %v4088_v7, %v14005_v50 }
 0x83e   : > { %11683 = vpow2.f32 %v4344_v30  ;;  %v4342_v54 = vmul.f32 1.442695, %v4320_v52  ;;  %v4323_v23 = vmin.f32 %v14044_v5, 0.0  ;;  %v4270_v11 = vadd.f32 %v11249_v4, %v4074_v2 }
 0x83f   : > { %v11672_v32 = vpop.eup %11671  ;;  %v14052_v39 = vadd.f32 %v14007_v45, %v4267_v31  ;;  %v4230_v27 = vpop.f32.mrf.mxu1  ;;  %v4892_v31 = vld [vmem:[#allocation22 + $0x2f0] sm:$0xff] }
 0x840   : > { %11685 = vpow2.f32 %v4342_v54  ;;  %v4348_v56 = vmul.f32 1.442695, %v4323_v23  ;;  %v14055_v22 = vadd.f32 %v14007_v45, %v4270_v11  ;;  %v4269_v35 = vadd.f32 %v4230_v27, %v4069_v47  ;;  %v4891_v11 = vld [vmem:[#allocation22 + $0x2e8] sm:$0xff] }
 0x841   : > { %v11674_v60 = vpop.eup %11673  ;;  %v4322_v63 = vmin.f32 %v14052_v39, 0.0  ;;  %v11252_v12 = vpop.f32.mrf.mxu1  ;;  %v9626_v21 = vadd.f32 -1.0, %v11672_v32 }
 0x842   : > { %11687 = vpow2.f32 %v4348_v56  ;;  %v4325_v59 = vmin.f32 %v14055_v22, 0.0  ;;  %v14062_v46 = vadd.f32 %v14007_v45, %v4269_v35  ;;  %v4272_v14 = vadd.f32 %v11252_v12, %v4084_v26 }
 0x843   : > { %v11676_v51 = vpop.eup %11675  ;;  %v4346_v16 = vmul.f32 1.442695, %v4322_v63  ;;  %v4240_v43 = vpop.f32.mrf.mxu1  ;;  %v9625_v2 = vadd.f32 -1.0, %v11674_v60  ;;  %v4379_v50 = vsel %vm4299_vm1, %v14010_v36, %v9626_v21  ;;  %v17337_v35 = vmov 0.0   ;;  %v4889_v63 = vld [vmem:[#allocation22 + $0x2d8] sm:$0xff] }
 0x844   : > { %v4352_v10 = vmul.f32 1.442695, %v4325_v59  ;;  %v4324_v30 = vmin.f32 %v14062_v46, 0.0  ;;  %v14068_v52 = vadd.f32 %v14007_v45, %v4272_v14  ;;  %v4271_v47 = vadd.f32 %v4240_v43, %v4079_v58  ;;  %4395 = vst [vmem:[#allocation3 + $0x9] sm:$0xff] %v4379_v50  ;;  %v4890_v58 = vld [vmem:[#allocation22 + $0x2e0] sm:$0xff] }
 0x845   : > { %v11678_v4 = vpop.eup %11677  ;;  %11689 = vpow2.f32 %v4346_v16  ;;  %v11255_v7 = vpop.f32.mrf.mxu1  ;;  %v4378_v54 = vsel %vm4298_vm0, %v14014_v9, %v9625_v2  ;;  %v9628_v23 = vadd.f32 -1.0, %v11676_v51  ;;  %v4887_v2 = vld [vmem:[#allocation22 + $0x2c8] sm:$0xff]  ;;  %vm4305_vm1 = vcmp.gt.f32.partialorder %v14034_v28, 0.0 }
 0x846   : > { %11691 = vpow2.f32 %v4352_v10  ;;  %v4350_v36 = vmul.f32 1.442695, %v4324_v30  ;;  %v4327_v32 = vmin.f32 %v14068_v52, 0.0  ;;  %v14074_v26 = vadd.f32 %v14007_v45, %v4271_v47  ;;  %4394 = vst [vmem:[#allocation3 + $0x1] sm:$0xff] %v4378_v54  ;;  %4604 = vmatmul.mubr.f32.vlgmr.msra.gmra.mxu0 %v4378_v54  ;;  %v4886_v47 = vld [vmem:[#allocation22 + $0x2c0] sm:$0xff] }
 0x847   : > { %v4274_v27 = vadd.f32 %v11255_v7, %v4094_v6  ;;  %v4250_v56 = vpop.f32.mrf.mxu1  ;;  %4609 = vmatprep.mubr.f32.mxu0 %v17337_v35  ;;  %v9627_v9 = vadd.f32 -1.0, %v11678_v4  ;;  %v14079_v60 = vsel %vm4301_vm14, %v14018_v44, %v9628_v23  ;;  %4895 = vmatpush1.msra.mxu0 %v4892_v31  ;;  %v4888_v6 = vld [vmem:[#allocation22 + $0x2d0] sm:$0xff]  ;;  %vm4304_vm0 = vcmp.gt.f32.partialorder %v14038_v17, 0.0 }
 0x848   : > { %v11680_v12 = vpop.eup %11679  ;;  %11693 = vpow2.f32 %v4350_v36  ;;  %v4356_v21 = vmul.f32 1.442695, %v4327_v32  ;;  %v4326_v59 = vmin.f32 %v14074_v26, 0.0  ;;  %v4273_v14 = vadd.f32 %v4250_v56, %v4089_v25  ;;  %4397 = vst [vmem:[#allocation3 + $0x19] sm:$0xff] %v14079_v60  ;;  %4896 = vmatprep.subr.mxu0 %v4891_v11  ;;  %v4885_v36 = vld [vmem:[#allocation22 + $0x2b8] sm:$0xff] }
 0x849   : > { %v11682_v51 = vpop.eup %11681  ;;  %v14084_v16 = vadd.f32 %v14007_v45, %v4274_v27  ;;  %v4380_v43 = vsel %vm4300_vm13, %v14022_v34, %v9627_v9  ;;  %v9630_v44 = vadd.f32 -1.0, %v11680_v12  ;;  %4897 = vmatpush1.msra.mxu0 %v4890_v58  ;;  %v4884_v58 = vld [vmem:[#allocation22 + $0x2b0] sm:$0xff]  ;;  %vm4307_vm14 = vcmp.gt.f32.partialorder %v14044_v5, 0.0 }
 0x84a   : > { %11695 = vpow2.f32 %v4356_v21  ;;  %v4354_v10 = vmul.f32 1.442695, %v4326_v59  ;;  %v14089_v30 = vadd.f32 %v14007_v45, %v4273_v14  ;;  %4610 = vmatmul.mubr.f32.gmra.mxu0 %v4379_v50  ;;  %4396 = vst [vmem:[#allocation3 + $0x11] sm:$0xff] %v4380_v43  ;;  %v9629_v25 = vadd.f32 -1.0, %v11682_v51  ;;  %4898 = vmatprep.subr.mxu0 %v4889_v63 }
 0x84b   : > { %v11684_v31 = vpop.eup %11683  ;;  %v4329_v4 = vmin.f32 %v14084_v16, 0.0  ;;  %4615 = vmatprep.mubr.f32.mxu0 %v17337_v35  ;;  %v14097_v34 = vsel %vm4303_vm10, %v14026_v15, %v9630_v44  ;;  %4899 = vmatpush1.msra.mxu0 %v4888_v6  ;;  %vm4306_vm13 = vcmp.gt.f32.partialorder %v14052_v39, 0.0  ;;  %vm4309_vm10 = vcmp.gt.f32.partialorder %v14055_v22, 0.0 }
 0x84c   : > { %11697 = vpow2.f32 %v4354_v10  ;;  %v4328_v45 = vmin.f32 %v14089_v30, 0.0  ;;  %v4382_v50 = vsel %vm4302_vm12, %v14029_v42, %v9629_v25  ;;  %4399 = vst [vmem:[#allocation3 + $0x29] sm:$0xff] %v14097_v34  ;;  %v9632_v7 = vadd.f32 -1.0, %v11684_v31  ;;  %4900 = vmatprep.subr.mxu0 %v4887_v2  ;;  %v4880_v10 = vld [vmem:[#allocation22 + $0x290] sm:$0xff] }
 0x84d   : > { %v11686_v54 = vpop.eup %11685  ;;  %v4360_v23 = vmul.f32 1.442695, %v4329_v4  ;;  %v4410_v11 = vld [vmem:[#allocation3] sm:$0xff]  ;;  %4398 = vst [vmem:[#allocation3 + $0x21] sm:$0xff] %v4382_v50  ;;  %4901 = vmatpush1.msra.mxu0 %v4886_v47  ;;  %v4411_v63 = vld [vmem:[#allocation3 + $0x8] sm:$0xff]  ;;  %vm4308_vm12 = vcmp.gt.f32.partialorder %v14062_v46, 0.0 }
 0x84e   : > { %v4358_v15 = vmul.f32 1.442695, %v4328_v45  ;;  %4616 = vmatmul.mubr.f32.gmra.mxu0 %v4380_v43  ;;  %9641 = vmatmul.mubr.msk.f32.vlgmr.msra.gmra.mxu1 %vm1359_vm2, %v4410_v11  ;;  %v9631_v32 = vadd.f32 -1.0, %v11686_v54  ;;  %v14106_v42 = vsel %vm4305_vm1, %v14034_v28, %v9632_v7  ;;  %v4883_v28 = vld [vmem:[#allocation22 + $0x2a8] sm:$0xff]  ;;  %vm4311_vm1 = vcmp.gt.f32.partialorder %v14068_v52, 0.0  ;;  %v4878_v45 = vld [vmem:[#allocation22 + $0x280] sm:$0xff] }
 0x84f   : > { %v11688_v27 = vpop.eup %11687  ;;  %11699 = vpow2.f32 %v4360_v23  ;;  %4621 = vmatprep.mubr.f32.mxu0 %v17337_v35  ;;  %4770 = vmatprep.mubr.f32.mxu1 %v17337_v35  ;;  %4401 = vst [vmem:[#allocation3 + $0x39] sm:$0xff] %v14106_v42 }
 0x850   : > { %11701 = vpow2.f32 %v4358_v15  ;;  %v14113_v56 = vsel %vm4304_vm0, %v14038_v17, %v9631_v32  ;;  %v9634_v9 = vadd.f32 -1.0, %v11688_v27  ;;  %4902 = vmatprep.subr.mxu0 %v4885_v36  ;;  %v4882_v17 = vld [vmem:[#allocation22 + $0x2a0] sm:$0xff]  ;;  %vm4310_vm0 = vcmp.gt.f32.partialorder %v14074_v26, 0.0  ;;  %v4876_v36 = vld [vmem:[#allocation22 + $0x270] sm:$0xff]  ;;  %v4875_v27 = vld [vmem:[#allocation22 + $0x268] sm:$0xff] }
 0x851   : > { %4400 = vst [vmem:[#allocation3 + $0x31] sm:$0xff] %v14113_v56  ;;  %4903 = vmatpush1.msra.mxu0 %v4884_v58  ;;  %v4412_v51 = vld [vmem:[#allocation3 + $0x10] sm:$0xff]  ;;  %v4413_v4 = vld [vmem:[#allocation3 + $0x18] sm:$0xff] }
 0x852   : > { %v11690_v12 = vpop.eup %11689  ;;  %4622 = vmatmul.mubr.f32.gmra.mxu0 %v14079_v60  ;;  %9642 = vmatmul.mubr.msk.f32.gmra.mxu1 %vm1360_vm4, %v4411_v63  ;;  %v14121_v21 = vsel %vm4307_vm14, %v14044_v5, %v9634_v9  ;;  %v4881_v5 = vld [vmem:[#allocation22 + $0x298] sm:$0xff]  ;;  %vm4313_vm14 = vcmp.gt.f32.partialorder %v14084_v16, 0.0  ;;  %v4872_v9 = vld [vmem:[#allocation22 + $0x250] sm:$0xff]  ;;  %v4871_v63 = vld [vmem:[#allocation22 + $0x248] sm:$0xff] }
 0x853   : > { %v11692_v59 = vpop.eup %11691  ;;  %4627 = vmatprep.mubr.f32.mxu0 %v17337_v35  ;;  %4776 = vmatprep.mubr.f32.mxu1 %v17337_v35  ;;  %v9633_v14 = vadd.f32 -1.0, %v11690_v12  ;;  %4403 = vst [vmem:[#allocation3 + $0x49] sm:$0xff] %v14121_v21 }
 0x854   : > { %4904 = vmatprep.subr.mxu0 %v4883_v28  ;;  %v9636_v6 = vadd.f32 -1.0, %v11692_v59  ;;  %v4414_v23 = vld [vmem:[#allocation3 + $0x20] sm:$0xff]  ;;  %v4415_v58 = vld [vmem:[#allocation3 + $0x28] sm:$0xff]  ;;  %v4870_v28 = vld [vmem:[#allocation22 + $0x240] sm:$0xff] }
 0x855   : > { %v11694_v60 = vpop.eup %11693  ;;  %v14128_v43 = vsel %vm4306_vm13, %v14052_v39, %v9633_v14  ;;  %4905 = vmatpush1.msra.mxu0 %v4882_v17  ;;  %vm4312_vm13 = vcmp.gt.f32.partialorder %v14089_v30, 0.0  ;;  %v4869_v17 = vld [vmem:[#allocation22 + $0x238] sm:$0xff]  ;;  %v4868_v59 = vld [vmem:[#allocation22 + $0x230] sm:$0xff]  ;;  %v4867_v14 = vld [vmem:[#allocation22 + $0x228] sm:$0xff] }
 0x856   : > { %4628 = vmatmul.mubr.f32.gmra.mxu0 %v4382_v50  ;;  %9643 = vmatmul.mubr.msk.f32.gmra.mxu1 %vm1361_vm3, %v4412_v51  ;;  %4402 = vst [vmem:[#allocation3 + $0x41] sm:$0xff] %v14128_v43  ;;  %v9635_v44 = vadd.f32 -1.0, %v11694_v60  ;;  %v14135_v2 = vsel %vm4309_vm10, %v14055_v22, %v9636_v6  ;;  %v4879_v22 = vld [vmem:[#allocation22 + $0x288] sm:$0xff]  ;;  %vm17338_vm10 = vcmp.eq.s32.totalorder %v17291_v18, 1  ;;  %v4866_v6 = vld [vmem:[#allocation22 + $0x220] sm:$0xff]  ;;  %v4865_v51 = vld [vmem:[#allocation22 + $0x218] sm:$0xff] }
 0x857   : > { %v11696_v25 = vpop.eup %11695  ;;  %4633 = vmatprep.mubr.f32.mxu0 %v17337_v35  ;;  %4782 = vmatprep.mubr.f32.mxu1 %v17337_v35  ;;  %4405 = vst [vmem:[#allocation3 + $0x59] sm:$0xff] %v14135_v2 }
 0x858   : > { %v14142_v39 = vsel %vm4308_vm12, %v14062_v46, %v9635_v44  ;;  %4906 = vmatprep.subr.mxu0 %v4881_v5  ;;  %v9638_v47 = vadd.f32 -1.0, %v11696_v25  ;;  %vm17339_vm12 = vcmp.eq.s32.totalorder %v17294_v1, 1  ;;  %v4863_v44 = vld [vmem:[#allocation22 + $0x208] sm:$0xff] }
 0x859   : > { %v11698_v31 = vpop.eup %11697  ;;  %4404 = vst [vmem:[#allocation3 + $0x51] sm:$0xff] %v14142_v39  ;;  %4907 = vmatpush1.msra.mxu0 %v4880_v10 }
 0x85a   : > { %4634 = vmatmul.mubr.f32.gmra.mxu0 %v14097_v34  ;;  %9644 = vmatmul.mubr.msk.f32.gmra.mxu1 %vm1362_vm5, %v4413_v4  ;;  %v9637_v50 = vadd.f32 -1.0, %v11698_v31  ;;  %v14150_v46 = vsel %vm4311_vm1, %v14068_v52, %v9638_v47  ;;  %v4877_v52 = vld [vmem:[#allocation22 + $0x278] sm:$0xff]  ;;  %vm17340_vm1 = vcmp.eq.s32.totalorder %v17296_v61, 1  ;;  %v4442_v47 = vld [vmem:[#allocation3 + $0x2] sm:$0xff] }
 0x85b   : > { %4639 = vmatprep.mubr.f32.mxu0 %v17337_v35  ;;  %4788 = vmatprep.mubr.f32.mxu1 %v17337_v35  ;;  %4407 = vst [vmem:[#allocation3 + $0x69] sm:$0xff] %v14150_v46  ;;  %v4443_v4 = vld [vmem:[#allocation3 + $0xa] sm:$0xff] }
 0x85c   : > { %v11700_v7 = vpop.eup %11699  ;;  %4908 = vmatprep.subr.mxu0 %v4879_v22  ;;  %v14157_v34 = vsel %vm4310_vm0, %v14074_v26, %v9637_v50  ;;  %vm17341_vm0 = vcmp.eq.s32.totalorder %v17300_v57, 1  ;;  %v4444_v22 = vld [vmem:[#allocation3 + $0x12] sm:$0xff]  ;;  %v4446_v50 = vld [vmem:[#allocation3 + $0x22] sm:$0xff] }
 0x85d   : > { %v11702_v54 = vpop.eup %11701  ;;  %4909 = vmatpush1.msra.mxu0 %v4878_v45  ;;  %4406 = vst [vmem:[#allocation3 + $0x61] sm:$0xff] %v14157_v34  ;;  %v9640_v11 = vadd.f32 -1.0, %v11700_v7  ;;  %v4418_v12 = vld [vmem:[#allocation3 + $0x40] sm:$0xff]  ;;  %v4448_v7 = vld [vmem:[#allocation3 + $0x32] sm:$0xff] }
 0x85e   : > { %4640 = vmatmul.mubr.f32.gmra.mxu0 %v14113_v56  ;;  %9645 = vmatmul.mubr.msk.f32.gmra.mxu1 %vm1363_vm6, %v4414_v23  ;;  %v9639_v15 = vadd.f32 -1.0, %v11702_v54  ;;  %v4874_v56 = vld [vmem:[#allocation22 + $0x260] sm:$0xff]  ;;  %v17353_v23 = vld [vmem:[#allocation97_spill] sm:$0xff] }
 0x85f   : > { %4645 = vmatprep.mubr.f32.mxu0 %v17337_v35  ;;  %4794 = vmatprep.mubr.f32.mxu1 %v17337_v35  ;;  %v14168_v26 = vsel %vm4313_vm14, %v14084_v16, %v9640_v11  ;;  %v4416_v16 = vld [vmem:[#allocation3 + $0x30] sm:$0xff]  ;;  %vm17342_vm14 = vcmp.eq.s32.totalorder %v17302_v62, 1  ;;  %v4445_v45 = vld [vmem:[#allocation3 + $0x1a] sm:$0xff] }
 0x860   : > { %4910 = vmatprep.subr.mxu0 %v4877_v52  ;;  %v14171_v32 = vsel %vm4312_vm13, %v14089_v30, %v9639_v15  ;;  %4409 = vst [vmem:[#allocation3 + $0x79] sm:$0xff] %v14168_v26  ;;  %v4873_v30 = vld [vmem:[#allocation22 + $0x258] sm:$0xff]  ;;  %v4421_v5 = vld [vmem:[#allocation3 + $0x58] sm:$0xff]  ;;  %vm17343_vm13 = vcmp.eq.s32.totalorder %v17308_v41, 1  ;;  %v4450_v52 = vld [vmem:[#allocation3 + $0x42] sm:$0xff] }
 0x861   : > { %4911 = vmatpush1.msra.mxu0 %v4876_v36  ;;  %4408 = vst [vmem:[#allocation3 + $0x71] sm:$0xff] %v14171_v32  ;;  %v4420_v60 = vld [vmem:[#allocation3 + $0x50] sm:$0xff]  ;;  %v4449_v54 = vld [vmem:[#allocation3 + $0x3a] sm:$0xff] }
 0x862   : > { %4646 = vmatmul.mubr.f32.gmra.mxu0 %v14106_v42  ;;  %9646 = vmatmul.mubr.msk.f32.gmra.mxu1 %vm1364_vm7, %v4415_v58  ;;  %v4417_v42 = vld [vmem:[#allocation3 + $0x38] sm:$0xff]  ;;  %v4451_v36 = vld [vmem:[#allocation3 + $0x4a] sm:$0xff] }
 0x863   : > { %4651 = vmatprep.mubr.f32.mxu0 %v17337_v35  ;;  %4800 = vmatprep.mubr.f32.mxu1 %v17337_v35  ;;  %v17355_v11 = vld [vmem:[#allocation100_spill] sm:$0xff]  ;;  %v17357_v15 = vld [vmem:[#allocation99_spill] sm:$0xff] }
 0x864   : > { %4912 = vmatprep.subr.mxu0 %v4875_v27  ;;  %v4422_v10 = vld [vmem:[#allocation3 + $0x60] sm:$0xff]  ;;  %v4423_v25 = vld [vmem:[#allocation3 + $0x68] sm:$0xff] }
 0x865   : > { %4913 = vmatpush1.msra.mxu0 %v4874_v56  ;;  %v4453_v58 = vld [vmem:[#allocation3 + $0x5a] sm:$0xff]  ;;  %v4454_v56 = vld [vmem:[#allocation3 + $0x62] sm:$0xff] }
 0x866   : > { %4652 = vmatmul.mubr.f32.gmra.mxu0 %v14128_v43  ;;  %9647 = vmatmul.mubr.msk.f32.gmra.mxu1 %vm1365_vm8, %v4416_v16  ;;  %v4864_v43 = vld [vmem:[#allocation22 + $0x210] sm:$0xff]  ;;  %v17362_v16 = vld [vmem:[#allocation104_spill] sm:$0xff] }
 0x867   : > { %4657 = vmatprep.mubr.f32.mxu0 %v17337_v35  ;;  %4806 = vmatprep.mubr.f32.mxu1 %v17337_v35 }
 0x868   : > { %4914 = vmatprep.subr.mxu0 %v4873_v30  ;;  %v4425_v31 = vld [vmem:[#allocation3 + $0x78] sm:$0xff]  ;;  %v4455_v30 = vld [vmem:[#allocation3 + $0x6a] sm:$0xff] }
 0x869   : > { %4915 = vmatpush1.msra.mxu0 %v4872_v9  ;;  %v17364_v9 = vld [vmem:[#allocation103_spill] sm:$0xff] }
 0x86a   : > { %4658 = vmatmul.mubr.f32.gmra.mxu0 %v14121_v21  ;;  %9648 = vmatmul.mubr.msk.f32.gmra.mxu1 %vm1366_vm9, %v4417_v42  ;;  %v4419_v21 = vld [vmem:[#allocation3 + $0x48] sm:$0xff]  ;;  %v4456_v42 = vld [vmem:[#allocation3 + $0x72] sm:$0xff] }
 0x86b   : > { %4663 = vmatprep.mubr.f32.mxu0 %v17337_v35  ;;  %4812 = vmatprep.mubr.f32.mxu1 %v17337_v35 }
 0x86c   : > { %4916 = vmatprep.subr.mxu0 %v4871_v63  ;;  %v17366_v63 = vld [vmem:[#allocation106_spill] sm:$0xff] }
 0x86d   : > { %4917 = vmatpush1.msra.mxu0 %v4870_v28  ;;  %v4457_v28 = vld [vmem:[#allocation3 + $0x7a] sm:$0xff] }
 0x86e   : > { %4664 = vmatmul.mubr.f32.gmra.mxu0 %v14142_v39  ;;  %9649 = vmatmul.mubr.msk.f32.gmra.mxu1 %vm1367_vm11, %v4418_v12  ;;  %v4424_v39 = vld [vmem:[#allocation3 + $0x70] sm:$0xff]  ;;  %v17368_v12 = vld [vmem:[#allocation105_spill] sm:$0xff] }
 0x86f   : > { %4669 = vmatprep.mubr.f32.mxu0 %v17337_v35  ;;  %4818 = vmatprep.mubr.f32.mxu1 %v17337_v35 }
 0x870   : > { %4918 = vmatprep.subr.mxu0 %v4869_v17 }
 0x871   : > { %4919 = vmatpush1.msra.mxu0 %v4868_v59 }
 0x872   : > { %4670 = vmatmul.mubr.f32.gmra.mxu0 %v14135_v2  ;;  %9650 = vmatmul.mubr.msk.f32.gmra.mxu1 %vm17338_vm10, %v4419_v21  ;;  %v4862_v2 = vld [vmem:[#allocation22 + $0x200] sm:$0xff]  ;;  %vm17344_vm10 = vcmp.eq.s32.totalorder %v17298_v8, 1 }
 0x873   : > { %4675 = vmatprep.mubr.f32.mxu0 %v17337_v35  ;;  %4824 = vmatprep.mubr.f32.mxu1 %v17337_v35 }
 0x874   : > { %4920 = vmatprep.subr.mxu0 %v4867_v14 }
 0x875   : > { %4921 = vmatpush1.msra.mxu0 %v4866_v6 }
 0x876   : > { %4676 = vmatmul.mubr.f32.gmra.mxu0 %v14157_v34  ;;  %9651 = vmatmul.mubr.msk.f32.gmra.mxu1 %vm17339_vm12, %v4420_v60  ;;  %vm17345_vm12 = vcmp.eq.s32.totalorder %v17310_v19, 1  ;;  %v17351_v34 = vld [vmem:[#allocation98_spill] sm:$0xff] }
 0x877   : > { %4681 = vmatprep.mubr.f32.mxu0 %v17337_v35  ;;  %4830 = vmatprep.mubr.f32.mxu1 %v17337_v35 }
 0x878   : > { %4922 = vmatprep.subr.mxu0 %v4865_v51 }
 0x879   : > { %4923 = vmatpush1.msra.mxu0 %v4864_v43 }
 0x87a   : > { %4682 = vmatmul.mubr.f32.gmra.mxu0 %v14150_v46  ;;  %9652 = vmatmul.mubr.msk.f32.gmra.mxu1 %vm17340_vm1, %v4421_v5  ;;  %vm17346_vm1 = vcmp.eq.s32.totalorder %v17304_v33, 1  ;;  %v4447_v46 = vld [vmem:[#allocation3 + $0x2a] sm:$0xff] }
 0x87b   : > { %4687 = vmatprep.mubr.f32.mxu0 %v17337_v35  ;;  %4836 = vmatprep.mubr.f32.mxu1 %v17337_v35 }
 0x87c   : > { %4924 = vmatprep.subr.mxu0 %v4863_v44 }
 0x87d   : > { %4925 = vmatpush1.msra.mxu0 %v4862_v2 }
 0x87e   : > { %4688 = vmatmul.mubr.f32.gmra.mxu0 %v14171_v32  ;;  %9653 = vmatmul.mubr.msk.f32.gmra.mxu1 %vm17341_vm0, %v4422_v10  ;;  %vm17347_vm0 = vcmp.eq.s32.totalorder %v17306_v40, 1  ;;  %v17359_v32 = vld [vmem:[#allocation102_spill] sm:$0xff] }
 0x87f   : > { %4693 = vmatprep.mubr.f32.mxu0 %v17337_v35  ;;  %4842 = vmatprep.mubr.f32.mxu1 %v17337_v35 }
 0x882   : > { %4694 = vmatmul.mubr.f32.gmra.mxu0 %v14168_v26  ;;  %9654 = vmatmul.mubr.msk.f32.gmra.mxu1 %vm17342_vm14, %v4423_v25  ;;  %vm17348_vm14 = vcmp.eq.s32.totalorder %v17312_v13, 1  ;;  %v4452_v26 = vld [vmem:[#allocation3 + $0x52] sm:$0xff] }
 0x883   : > { %4848 = vmatprep.mubr.f32.mxu1 %v17337_v35  ;;  %4958 = vmatprep.mubr.f32.mxu0 %v17337_v35 }
 0x886   : > { %9655 = vmatmul.mubr.msk.f32.gmra.mxu1 %vm17343_vm13, %v4424_v39  ;;  %9657 = vmatmul.mubr.msk.f32.vlgmr.msra.gmra.mxu0 %vm17344_vm10, %v4442_v47  ;;  %vm17349_vm13 = vcmp.eq.s32.totalorder %v17314_v55, 1  ;;  %vm17350_vm10 = vcmp.eq.s32.totalorder %v17316_v53, 1 }
 0x887   : > { %4854 = vmatprep.mubr.f32.mxu1 %v17337_v35  ;;  %4964 = vmatprep.mubr.f32.mxu0 %v17337_v35 }
 0x88a   : > { %9656 = vmatmul.mubr.msk.f32.gmra.mxu1 %vm17345_vm12, %v4425_v31  ;;  %9658 = vmatmul.mubr.msk.f32.gmra.mxu0 %vm17346_vm1, %v4443_v4  ;;  %vm17352_vm12 = vcmp.eq.s32.totalorder %v17351_v34, 1  ;;  %vm17354_vm1 = vcmp.eq.s32.totalorder %v17353_v23, 1 }
 0x88b   : > { %4970 = vmatprep.mubr.f32.mxu0 %v17337_v35  ;;  %5195 = vmatprep.mubr.f32.mxu1 %v17337_v35 }
 0x88e   : > { %9659 = vmatmul.mubr.msk.f32.gmra.mxu0 %vm17347_vm0, %v4444_v22  ;;  %vm17356_vm0 = vcmp.eq.s32.totalorder %v17355_v11, 1 }
 0x88f   : > { %4976 = vmatprep.mubr.f32.mxu0 %v17337_v35 }
 0x892   : > { %9660 = vmatmul.mubr.msk.f32.gmra.mxu0 %vm17348_vm14, %v4445_v45  ;;  %vm17358_vm14 = vcmp.eq.s32.totalorder %v17357_v15, 1 }
 0x893   : > { %4982 = vmatprep.mubr.f32.mxu0 %v17337_v35 }
 0x896   : > { %9661 = vmatmul.mubr.msk.f32.gmra.mxu0 %vm17349_vm13, %v4446_v50  ;;  %vm17360_vm13 = vcmp.eq.s32.totalorder %v17359_v32, 1 }
 0x897   : > { %4988 = vmatprep.mubr.f32.mxu0 %v17337_v35 }
 0x89a   : > { %9662 = vmatmul.mubr.msk.f32.gmra.mxu0 %vm17350_vm10, %v4447_v46  ;;  %vm17363_vm10 = vcmp.eq.s32.totalorder %v17362_v16, 1 }
 0x89b   : > { %4994 = vmatprep.mubr.f32.mxu0 %v17337_v35 }
 0x89e   : > { %9663 = vmatmul.mubr.msk.f32.gmra.mxu0 %vm17352_vm12, %v4448_v7  ;;  %vm17365_vm12 = vcmp.eq.s32.totalorder %v17364_v9, 1 }
 0x89f   : > { %5000 = vmatprep.mubr.f32.mxu0 %v17337_v35 }
 0x8a2   : > { %9664 = vmatmul.mubr.msk.f32.gmra.mxu0 %vm17354_vm1, %v4449_v54  ;;  %vm17367_vm1 = vcmp.eq.s32.totalorder %v17366_v63, 1 }
 0x8a3   : > { %5006 = vmatprep.mubr.f32.mxu0 %v17337_v35 }
 0x8a6   : > { %9665 = vmatmul.mubr.msk.f32.gmra.mxu0 %vm17356_vm0, %v4450_v52  ;;  %vm17369_vm0 = vcmp.eq.s32.totalorder %v17368_v12, 1 }
 0x8a7   : > { %5012 = vmatprep.mubr.f32.mxu0 %v17337_v35 }
 0x8aa   : > { %9666 = vmatmul.mubr.msk.f32.gmra.mxu0 %vm17358_vm14, %v4451_v36 }
 0x8ab   : > { %5018 = vmatprep.mubr.f32.mxu0 %v17337_v35 }
 0x8ae   : > { %9667 = vmatmul.mubr.msk.f32.gmra.mxu0 %vm17360_vm13, %v4452_v26  ;;  %vm17453_vm13 = vcmask 64512  }
 0x8af   : > { %5024 = vmatprep.mubr.f32.mxu0 %v17337_v35 }
 0x8b2   : > { %9668 = vmatmul.mubr.msk.f32.gmra.mxu0 %vm1482_vm15, %v4453_v58 }
 0x8b3   : > { %5030 = vmatprep.mubr.f32.mxu0 %v17337_v35 }
 0x8b6   : > { %9669 = vmatmul.mubr.msk.f32.gmra.mxu0 %vm17363_vm10, %v4454_v56 }
 0x8b7   : > { %5036 = vmatprep.mubr.f32.mxu0 %v17337_v35 }
 0x8ba   : > { %9670 = vmatmul.mubr.msk.f32.gmra.mxu0 %vm17365_vm12, %v4455_v30  ;;  %vm17454_vm12 = vmmov %vm17453_vm13 }
 0x8bb   : > { %5042 = vmatprep.mubr.f32.mxu0 %v17337_v35 }
 0x8be   : > { %9671 = vmatmul.mubr.msk.f32.gmra.mxu0 %vm17367_vm1, %v4456_v42  ;;  %vm17472_vm1 = vcmask 130048  }
 0x8bf   : > { %5048 = vmatprep.mubr.f32.mxu0 %v17337_v35 }
 0x8c2   : > { %9672 = vmatmul.mubr.msk.f32.gmra.mxu0 %vm17369_vm0, %v4457_v28  ;;  %vm17473_vm0 = vmmov %vm17472_vm1 }
 0x8c3   : > { %5399 = vmatprep.mubr.f32.mxu0 %v17337_v35 }
 0x906   : > { %v4605_v17 = vpop.f32.mrf.mxu0 }
 0x908   : > { %v14274_v59 = vpop.f32.mrf.mxu0 }
 0x909   : > { %17370 = vst [vmem:[#allocation107_spill] sm:$0xff] %v14274_v59 }
 0x90a   : > { %v4611_v21 = vpop.f32.mrf.mxu0 }
 0x90c   : > { %v14276_v14 = vpop.f32.mrf.mxu0 }
 0x90d   : > { %17371 = vst [vmem:[#allocation108_spill] sm:$0xff] %v14276_v14 }
 0x90e   : > { %v4617_v6 = vpop.f32.mrf.mxu0  ;;  %v4766_v60 = vpop.f32.mrf.mxu1 }
 0x90f   : > { %v4767_v51 = vadd.f32 %v4766_v60, %v4605_v17 }
 0x910   : > { %v14278_v43 = vpop.f32.mrf.mxu0  ;;  %v14280_v5 = vpop.f32.mrf.mxu1 }
 0x911   : > { %17372 = vst [vmem:[#allocation109_spill] sm:$0xff] %v14278_v43  ;;  %17373 = vst [vmem:[#allocation110_spill] sm:$0xff] %v14280_v5  ;;  %v5089_v43 = vlaneseq }
 0x912   : > { %v4623_v44 = vpop.f32.mrf.mxu0  ;;  %v4772_v2 = vpop.f32.mrf.mxu1 }
 0x913   : > { %v4773_v10 = vadd.f32 %v4772_v2, %v4611_v21 }
 0x914   : > { %v14282_v25 = vpop.f32.mrf.mxu0  ;;  %v14284_v39 = vpop.f32.mrf.mxu1 }
 0x915   : > { %17374 = vst [vmem:[#allocation111_spill] sm:$0xff] %v14282_v25  ;;  %17375 = vst [vmem:[#allocation112_spill] sm:$0xff] %v14284_v39 }
 0x916   : > { %v4629_v47 = vpop.f32.mrf.mxu0  ;;  %v4778_v31 = vpop.f32.mrf.mxu1 }
 0x917   : > { %v4779_v4 = vadd.f32 %v4778_v31, %v4617_v6 }
 0x918   : > { %v14286_v22 = vpop.f32.mrf.mxu0  ;;  %v14288_v45 = vpop.f32.mrf.mxu1 }
 0x919   : > { %17376 = vst [vmem:[#allocation113_spill] sm:$0xff] %v14286_v22  ;;  %17377 = vst [vmem:[#allocation114_spill] sm:$0xff] %v14288_v45 }
 0x91a   : > { %v14290_v50 = vpop.f32.mrf.mxu0  ;;  %v4784_v46 = vpop.f32.mrf.mxu1 }
 0x91b   : > { %17378 = vst [vmem:[#allocation115_spill] sm:$0xff] %v14290_v50  ;;  %v4785_v7 = vadd.f32 %v4784_v46, %v4623_v44 }
 0x91c   : > { %v14292_v54 = vpop.f32.mrf.mxu0  ;;  %v14294_v52 = vpop.f32.mrf.mxu1 }
 0x91d   : > { %17379 = vst [vmem:[#allocation116_spill] sm:$0xff] %v14292_v54  ;;  %17380 = vst [vmem:[#allocation117_spill] sm:$0xff] %v14294_v52 }
 0x91e   : > { %v14296_v36 = vpop.f32.mrf.mxu0  ;;  %v4790_v26 = vpop.f32.mrf.mxu1 }
 0x91f   : > { %17381 = vst [vmem:[#allocation118_spill] sm:$0xff] %v14296_v36  ;;  %v4791_v58 = vadd.f32 %v4790_v26, %v4629_v47 }
 0x920   : > { %v14298_v56 = vpop.f32.mrf.mxu0  ;;  %v14306_v17 = vpop.f32.mrf.mxu1 }
 0x921   : > { %17382 = vst [vmem:[#allocation119_spill] sm:$0xff] %v14298_v56  ;;  %17383 = vst [vmem:[#allocation120_spill] sm:$0xff] %v14306_v17 }
 0x922   : > { %v14300_v30 = vpop.f32.mrf.mxu0  ;;  %v14312_v60 = vpop.f32.mrf.mxu1 }
 0x923   : > { %17384 = vst [vmem:[#allocation121_spill] sm:$0xff] %v14312_v60 }
 0x924   : > { %v14302_v42 = vpop.f32.mrf.mxu0  ;;  %v14318_v47 = vpop.f32.mrf.mxu1 }
 0x925   : > { %17385 = vst [vmem:[#allocation122_spill] sm:$0xff] %v14318_v47  ;;  %v5087_v47 = vld [vmem:[%s17406_s1] sm:$0x3] }
 0x926   : > { %v14304_v28 = vpop.f32.mrf.mxu0  ;;  %v14324_v26 = vpop.f32.mrf.mxu1 }
 0x927   : > { %17386 = vst [vmem:[#allocation123_spill] sm:$0xff] %v14324_v26 }
 0x928   : > { %v14308_v21 = vpop.f32.mrf.mxu0  ;;  %v14330_v9 = vpop.f32.mrf.mxu1 }
 0x929   : > { %17387 = vst [vmem:[#allocation124_spill] sm:$0xff] %v14330_v9 }
 0x92a   : > { %v14310_v6 = vpop.f32.mrf.mxu0  ;;  %v14336_v32 = vpop.f32.mrf.mxu1 }
 0x92b   : > { %17388 = vst [vmem:[#allocation125_spill] sm:$0xff] %v14336_v32 }
 0x92c   : > { %v14314_v44 = vpop.f32.mrf.mxu0  ;;  %v14342_v23 = vpop.f32.mrf.mxu1 }
 0x92e   : > { %v14316_v2 = vpop.f32.mrf.mxu0  ;;  %v14344_v55 = vpop.f32.mrf.mxu1 }
 0x930   : > { %v14320_v31 = vpop.f32.mrf.mxu0  ;;  %v14348_v8 = vpop.f32.mrf.mxu1 }
 0x932   : > { %v14322_v46 = vpop.f32.mrf.mxu0  ;;  %v14354_v57 = vpop.f32.mrf.mxu1 }
 0x934   : > { %v14326_v12 = vpop.f32.mrf.mxu0  ;;  %v14360_v3 = vpop.f32.mrf.mxu1 }
 0x936   : > { %v14328_v63 = vpop.f32.mrf.mxu0  ;;  %v14366_v29 = vpop.f32.mrf.mxu1 }
 0x938   : > { %v14332_v16 = vpop.f32.mrf.mxu0  ;;  %v14372_v24 = vpop.f32.mrf.mxu1 }
 0x93a   : > { %v14334_v27 = vpop.f32.mrf.mxu0 }
 0x93c   : > { %v14338_v15 = vpop.f32.mrf.mxu0 }
 0x93e   : > { %v14340_v11 = vpop.f32.mrf.mxu0 }
 0x940   : > { %v4691_v34 = vpop.f32.mrf.mxu0 }
 0x942   : > { %v4695_v53 = vpop.f32.mrf.mxu0 }
 0x944   : > { %v4697_v13 = vpop.f32.mrf.mxu0 }
 0x946   : > { %v4960_v40 = vpop.f32.mrf.mxu0 }
 0x947   : > { %v14346_v33 = vadd.f32 %v4960_v40, %v4767_v51 }
 0x948   : > { %v14350_v19 = vpop.f32.mrf.mxu0 }
 0x949   : > { %17389 = vst [vmem:[#allocation126_spill] sm:$0xff] %v14346_v33  ;;  %17390 = vst [vmem:[#allocation127_spill] sm:$0xff] %v14350_v19 }
 0x94a   : > { %v4966_v41 = vpop.f32.mrf.mxu0 }
 0x94b   : > { %v14352_v62 = vadd.f32 %v4966_v41, %v4773_v10 }
 0x94c   : > { %v14356_v61 = vpop.f32.mrf.mxu0 }
 0x94d   : > { %17391 = vst [vmem:[#allocation128_spill] sm:$0xff] %v14352_v62  ;;  %17392 = vst [vmem:[#allocation129_spill] sm:$0xff] %v14356_v61 }
 0x94e   : > { %v4972_v1 = vpop.f32.mrf.mxu0 }
 0x94f   : > { %v14358_v18 = vadd.f32 %v4972_v1, %v4779_v4  ;;  %v4832_v4 = vpop.f32.mrf.mxu1 }
 0x950   : > { %v14362_v20 = vpop.f32.mrf.mxu0 }
 0x951   : > { %17393 = vst [vmem:[#allocation130_spill] sm:$0xff] %v14358_v18  ;;  %17394 = vst [vmem:[#allocation131_spill] sm:$0xff] %v14362_v20 }
 0x952   : > { %v4978_v40 = vpop.f32.mrf.mxu0 }
 0x953   : > { %v14364_v51 = vadd.f32 %v4978_v40, %v4785_v7  ;;  %v4834_v7 = vpop.f32.mrf.mxu1 }
 0x954   : > { %v14368_v48 = vpop.f32.mrf.mxu0 }
 0x955   : > { %17395 = vst [vmem:[#allocation132_spill] sm:$0xff] %v14364_v51  ;;  %17396 = vst [vmem:[#allocation133_spill] sm:$0xff] %v14368_v48  ;;  %v4838_v35 = vpop.f32.mrf.mxu1 }
 0x956   : > { %v4984_v41 = vpop.f32.mrf.mxu0 }
 0x957   : > { %v14370_v10 = vadd.f32 %v4984_v41, %v4791_v58  ;;  %v4840_v41 = vpop.f32.mrf.mxu1 }
 0x958   : > { %v14374_v49 = vpop.f32.mrf.mxu0 }
 0x959   : > { %17397 = vst [vmem:[#allocation134_spill] sm:$0xff] %v14370_v10  ;;  %17398 = vst [vmem:[#allocation135_spill] sm:$0xff] %v14374_v49  ;;  %v4844_v19 = vpop.f32.mrf.mxu1 }
 0x95a   : > { %v14376_v1 = vpop.f32.mrf.mxu0  ;;  %v4845_v32 = vadd.f32 %v4844_v19, %v14334_v27 }
 0x95b   : > { %17399 = vst [vmem:[#allocation136_spill] sm:$0xff] %v14376_v1  ;;  %v4846_v5 = vpop.f32.mrf.mxu1  ;;  %v5090_v1 = vshrl.u32 %v5089_v43, 7 }
 0x95c   : > { %v14378_v37 = vpop.f32.mrf.mxu0  ;;  %v4847_v9 = vadd.f32 %v4846_v5, %v14338_v15 }
 0x95d   : > { %17400 = vst [vmem:[#allocation137_spill] sm:$0xff] %v14378_v37  ;;  %v4850_v20 = vpop.f32.mrf.mxu1  ;;  %v14398_v60 = vsub.s32 0, %v5090_v1 }
 0x95e   : > { %v14380_v0 = vpop.f32.mrf.mxu0  ;;  %v4851_v26 = vadd.f32 %v4850_v20, %v14340_v11 }
 0x95f   : > { %17401 = vst [vmem:[#allocation138_spill] sm:$0xff] %v14380_v0  ;;  %v4852_v48 = vpop.f32.mrf.mxu1  ;;  %v14396_v0 = vsub.s32 1, %v5090_v1  ;;  %17408 = vst [vmem:[#allocation144_spill] sm:$0xff] %v14398_v60  ;;  %v14408_v1 = vrot.slane %v5087_v47, %v14398_v60 }
 0x960   : > { %v14382_v40 = vpop.f32.mrf.mxu0  ;;  %v4853_v54 = vadd.f32 %v4852_v48, %v4691_v34  ;;  %v4841_v48 = vadd.f32 %v4840_v41, %v14332_v16  ;;  %v4839_v34 = vadd.f32 %v4838_v35, %v14328_v63 }
 0x961   : > { %17402 = vst [vmem:[#allocation139_spill] sm:$0xff] %v14382_v40  ;;  %v4856_v52 = vpop.f32.mrf.mxu1  ;;  %17407 = vst [vmem:[#allocation143_spill] sm:$0xff] %v14396_v0  ;;  %v14404_v43 = vrot.slane %v5087_v47, %v14396_v0 }
 0x962   : > { %v14384_v38 = vpop.f32.mrf.mxu0  ;;  %v4857_v50 = vadd.f32 %v4856_v52, %v4695_v53  ;;  %v17415_v52 = vld [vmem:[#allocation125_spill] sm:$0xff] }
 0x963   : > { %17403 = vst [vmem:[#allocation140_spill] sm:$0xff] %v14384_v38  ;;  %v4858_v17 = vpop.f32.mrf.mxu1 }
 0x964   : > { %v14386_v33 = vpop.f32.mrf.mxu0  ;;  %v4859_v38 = vadd.f32 %v4858_v17, %v4697_v13  ;;  %v17418_v17 = vld [vmem:[#allocation124_spill] sm:$0xff] }
 0x965   : > { %17404 = vst [vmem:[#allocation141_spill] sm:$0xff] %v14386_v33 }
 0x966   : > { %v14388_v58 = vpop.f32.mrf.mxu0 }
 0x967   : > { %17405 = vst [vmem:[#allocation142_spill] sm:$0xff] %v14388_v58 }
 0x968   : > { %v14390_v62 = vpop.f32.mrf.mxu0 }
 0x96a   : > { %v14392_v18 = vpop.f32.mrf.mxu0 }
 0x96c   : > { %v14394_v51 = vpop.f32.mrf.mxu0 }
 0x96e   : > { %v5020_v61 = vpop.f32.mrf.mxu0 }
 0x970   : > { %v5022_v59 = vpop.f32.mrf.mxu0 }
 0x972   : > { %v5026_v10 = vpop.f32.mrf.mxu0 }
 0x974   : > { %v5028_v39 = vpop.f32.mrf.mxu0 }
 0x976   : > { %v5032_v14 = vpop.f32.mrf.mxu0 }
 0x977   : > { %v5079_v27 = vadd.f32 %v5032_v14, %v4839_v34  ;;  %v4823_v14 = vadd.f32 %v14360_v3, %v14314_v44  ;;  %v17421_v44 = vld [vmem:[#allocation123_spill] sm:$0xff]  ;;  %v17429_v34 = vld [vmem:[#allocation113_spill] sm:$0xff] }
 0x978   : > { %v5034_v45 = vpop.f32.mrf.mxu0 }
 0x979   : > { %v5074_v3 = vadd.f32 %v14394_v51, %v4823_v14  ;;  %v17434_v14 = vld [vmem:[#allocation117_spill] sm:$0xff] }
 0x97a   : > { %v5038_v49 = vpop.f32.mrf.mxu0 }
 0x97b   : > { %v5081_v11 = vadd.f32 %v5038_v49, %v4845_v32  ;;  %v4829_v49 = vadd.f32 %v14372_v24, %v14320_v31 }
 0x97c   : > { %v5040_v25 = vpop.f32.mrf.mxu0 }
 0x97d   : > { %v5082_v13 = vadd.f32 %v5040_v25, %v4847_v9  ;;  %v4827_v9 = vadd.f32 %v14366_v29, %v14316_v2  ;;  %v5076_v5 = vadd.f32 %v5022_v59, %v4829_v49  ;;  %v4821_v25 = vadd.f32 %v14354_v57, %v14310_v6  ;;  %v17420_v6 = vld [vmem:[#allocation118_spill] sm:$0xff]  ;;  %v17422_v2 = vld [vmem:[#allocation140_spill] sm:$0xff] }
 0x97e   : > { %v5044_v37 = vpop.f32.mrf.mxu0  ;;  %v14449_v29 = vadd.f32 %v14408_v1, %v5079_v27  ;;  %v17432_v49 = vld [vmem:[#allocation136_spill] sm:$0xff] }
 0x97f   : > { %v5083_v53 = vadd.f32 %v5044_v37, %v4851_v26  ;;  %v4833_v37 = vadd.f32 %v4832_v4, %v14322_v46  ;;  %v14431_v32 = vadd.f32 %v14404_v43, %v5082_v13  ;;  %v17423_v46 = vld [vmem:[#allocation116_spill] sm:$0xff]  ;;  %v17424_v26 = vld [vmem:[#allocation122_spill] sm:$0xff] }
 0x980   : > { %v5046_v22 = vpop.f32.mrf.mxu0  ;;  %v4799_v51 = vadd.f32 %v17424_v26, %v17423_v46  ;;  %v17445_v46 = vld [vmem:[#allocation129_spill] sm:$0xff] }
 0x981   : > { %v5084_v56 = vadd.f32 %v5046_v22, %v4853_v54  ;;  %v14425_v16 = vadd.f32 %v14408_v1, %v5083_v53  ;;  %17413 = vst [vmem:[#allocation149_spill] sm:$0xff] %v14431_v32  ;;  %v5077_v63 = vadd.f32 %v5026_v10, %v4833_v37  ;;  %v4817_v22 = vadd.f32 %v14348_v8, %v14308_v21  ;;  %v17425_v10 = vld [vmem:[#allocation139_spill] sm:$0xff]  ;;  %v17428_v53 = vld [vmem:[#allocation138_spill] sm:$0xff] }
 0x982   : > { %v5050_v40 = vpop.f32.mrf.mxu0  ;;  %v4811_v8 = vadd.f32 %v14342_v23, %v14302_v42  ;;  %v14470_v54 = vadd.f32 %v14404_v43, %v5076_v5  ;;  %v17419_v42 = vld [vmem:[#allocation141_spill] sm:$0xff]  ;;  %v14484_v21 = vadd.f32 %v14404_v43, %v5074_v3 }
 0x983   : > { %v5085_v36 = vadd.f32 %v5050_v40, %v4857_v50  ;;  %v14420_v19 = vadd.f32 %v14404_v43, %v5084_v56  ;;  %17412 = vst [vmem:[#allocation148_spill] sm:$0xff] %v14425_v16  ;;  %v14463_v57 = vadd.f32 %v14408_v1, %v5077_v63  ;;  %v5072_v50 = vadd.f32 %v14390_v62, %v4817_v22  ;;  %v17426_v40 = vld [vmem:[#allocation115_spill] sm:$0xff] }
 0x984   : > { %v5052_v33 = vpop.f32.mrf.mxu0  ;;  %v5070_v62 = vadd.f32 %v17419_v42, %v4811_v8  ;;  %v17433_v63 = vld [vmem:[#allocation111_spill] sm:$0xff] }
 0x985   : > { %v5086_v58 = vadd.f32 %v5052_v33, %v4859_v38  ;;  %v14416_v15 = vadd.f32 %v14408_v1, %v5085_v36  ;;  %v4835_v38 = vadd.f32 %v4834_v7, %v14326_v12  ;;  %v5080_v33 = vadd.f32 %v5034_v45, %v4841_v48  ;;  %17411 = vst [vmem:[#allocation147_spill] sm:$0xff] %v14420_v19  ;;  %v17416_v36 = vld [vmem:[#allocation142_spill] sm:$0xff] }
 0x986   : > { %v14437_v12 = vadd.f32 %v14408_v1, %v5081_v11  ;;  %v4815_v45 = vadd.f32 %v14344_v55, %v14304_v28  ;;  %v4809_v55 = vadd.f32 %v17415_v52, %v14300_v30  ;;  %v17417_v28 = vld [vmem:[#allocation119_spill] sm:$0xff]  ;;  %v4803_v30 = vadd.f32 %v17421_v44, %v17420_v6  ;;  %v17430_v11 = vld [vmem:[#allocation120_spill] sm:$0xff]  ;;  %v17442_v6 = vld [vmem:[#allocation134_spill] sm:$0xff] }
 0x987   : > { %v14412_v20 = vadd.f32 %v14404_v43, %v5086_v58  ;;  %17410 = vst [vmem:[#allocation146_spill] sm:$0xff] %v14416_v15  ;;  %v5078_v35 = vadd.f32 %v5028_v39, %v4835_v38  ;;  %v14443_v24 = vadd.f32 %v14404_v43, %v5080_v33  ;;  %v5075_v39 = vadd.f32 %v5020_v61, %v4827_v9  ;;  %v17427_v58 = vld [vmem:[#allocation121_spill] sm:$0xff] }
 0x988   : > { %17414 = vst [vmem:[#allocation150_spill] sm:$0xff] %v14437_v12  ;;  %v5073_v61 = vadd.f32 %v14392_v18, %v4821_v25  ;;  %v5071_v18 = vadd.f32 %v17416_v36, %v4815_v45  ;;  %v4805_v23 = vadd.f32 %v17418_v17, %v17417_v28  ;;  %v5069_v47 = vadd.f32 %v17422_v2, %v4809_v55  ;;  %v17431_v33 = vld [vmem:[#allocation137_spill] sm:$0xff]  ;;  %v17435_v25 = vld [vmem:[#allocation135_spill] sm:$0xff]  ;;  %v17440_v28 = vld [vmem:[#allocation112_spill] sm:$0xff] }
 0x989   : > { %17409 = vst [vmem:[#allocation145_spill] sm:$0xff] %v14412_v20  ;;  %5131 = vmatprep.subr.mxu1 %v14412_v20  ;;  %v14456_v59 = vadd.f32 %v14404_v43, %v5078_v35  ;;  %v14477_v56 = vadd.f32 %v14408_v1, %v5075_v39  ;;  %v14498_v7 = vadd.f32 %v14404_v43, %v5072_v50  ;;  %v17436_v45 = vld [vmem:[#allocation109_spill] sm:$0xff]  ;;  %v17444_v2 = vld [vmem:[#allocation110_spill] sm:$0xff] }
 0x98a   : > { %5132 = vmatpush1.msra.mxu1 %v14416_v15  ;;  %v14491_v31 = vadd.f32 %v14408_v1, %v5073_v61  ;;  %v5068_v4 = vadd.f32 %v17425_v10, %v4805_v23  ;;  %v4797_v41 = vadd.f32 %v17427_v58, %v17426_v40  ;;  %v5067_v48 = vadd.f32 %v17428_v53, %v4803_v30  ;;  %v17437_v61 = vld [vmem:[#allocation114_spill] sm:$0xff]  ;;  %v17438_v50 = vld [vmem:[#allocation133_spill] sm:$0xff]  ;;  %v17441_v23 = vld [vmem:[#allocation131_spill] sm:$0xff] }
 0x98b   : > { %5133 = vmatprep.subr.mxu1 %v14420_v19  ;;  %v14505_v13 = vadd.f32 %v14408_v1, %v5071_v18  ;;  %v4793_v38 = vadd.f32 %v17430_v11, %v17429_v34  ;;  %v5066_v37 = vadd.f32 %v17431_v33, %v4799_v51  ;;  %v14512_v27 = vadd.f32 %v14404_v43, %v5070_v62  ;;  %v17439_v18 = vld [vmem:[#allocation108_spill] sm:$0xff]  ;;  %v17443_v30 = vld [vmem:[#allocation107_spill] sm:$0xff]  ;;  %v17449_v53 = vld [vmem:[#allocation130_spill] sm:$0xff] }
 0x98c   : > { %5134 = vmatpush1.msra.mxu1 %v14425_v16  ;;  %v5065_v35 = vadd.f32 %v17432_v49, %v4797_v41  ;;  %v14517_v9 = vadd.f32 %v14408_v1, %v5069_v47  ;;  %v4787_v5 = vadd.f32 %v17434_v14, %v17433_v63  ;;  %v14524_v22 = vadd.f32 %v14404_v43, %v5068_v4  ;;  %v17446_v10 = vld [vmem:[#allocation132_spill] sm:$0xff]  ;;  %v17448_v40 = vld [vmem:[#allocation127_spill] sm:$0xff]  ;;  %v5238_v14 = vld [vmem:[%s17447_s16 + $0xf0] sm:$0xff] }
 0x98d   : > { %5135 = vmatprep.subr.mxu1 %v14431_v32  ;;  %v5064_v39 = vadd.f32 %v17435_v25, %v4793_v38  ;;  %v14528_v3 = vadd.f32 %v14408_v1, %v5067_v48  ;;  %v4781_v8 = vadd.f32 %v17437_v61, %v17436_v45  ;;  %v14535_v55 = vadd.f32 %v14404_v43, %v5066_v37  ;;  %v17450_v11 = vld [vmem:[#allocation128_spill] sm:$0xff]  ;;  %v17451_v37 = vld [vmem:[#allocation126_spill] sm:$0xff] }
 0x98e   : > { %5136 = vmatpush1.msra.mxu1 %v14437_v12  ;;  %v5062_v52 = vadd.f32 %v17438_v50, %v4787_v5  ;;  %v14539_v36 = vadd.f32 %v14408_v1, %v5065_v35  ;;  %v4775_v17 = vadd.f32 %v17440_v28, %v17439_v18  ;;  %v14551_v44 = vadd.f32 %v14408_v1, %v17442_v6  ;;  %v5239_v35 = vld [vmem:[%s17447_s16 + $0xf8] sm:$0xff]  ;;  %v5222_v5 = vld [vmem:[%s17447_s16 + $0x70] sm:$0xff]  ;;  %v5236_v45 = vld [vmem:[%s17447_s16 + $0xe0] sm:$0xff] }
 0x98f   : > { %5137 = vmatprep.subr.mxu1 %v14443_v24  ;;  %v5060_v42 = vadd.f32 %v17441_v23, %v4781_v8  ;;  %v14546_v62 = vadd.f32 %v14404_v43, %v5064_v39  ;;  %v4769_v47 = vadd.f32 %v17444_v2, %v17443_v30  ;;  %v14563_v4 = vadd.f32 %v14408_v1, %v17446_v10  ;;  %v5223_v63 = vld [vmem:[%s17447_s16 + $0x78] sm:$0xff]  ;;  %v5221_v39 = vld [vmem:[%s17447_s16 + $0x68] sm:$0xff]  ;;  %v5220_v8 = vld [vmem:[%s17447_s16 + $0x60] sm:$0xff] }
 0x990   : > { %5138 = vmatpush1.msra.mxu1 %v14449_v29  ;;  %v5058_v26 = vadd.f32 %v17445_v46, %v4775_v17  ;;  %v14558_v51 = vadd.f32 %v14404_v43, %v5062_v52  ;;  %v14573_v48 = vadd.f32 %v14408_v1, %v17449_v53  ;;  %v14582_v38 = vadd.f32 %v14408_v1, %v17450_v11  ;;  %v11896_v61 = vld [vmem:[#allocation5 + $0x8] sm:$0xff]  ;;  %v5235_v50 = vld [vmem:[%s17447_s16 + $0xd8] sm:$0xff]  ;;  %v5234_v18 = vld [vmem:[%s17447_s16 + $0xd0] sm:$0xff] }
 0x991   : > { %5139 = vmatprep.subr.mxu1 %v14456_v59  ;;  %v5056_v58 = vadd.f32 %v17448_v40, %v4769_v47  ;;  %v14568_v41 = vadd.f32 %v14404_v43, %v5060_v42  ;;  %v14591_v49 = vadd.f32 %v14408_v1, %v17451_v37  ;;  %v17452_v25 = vmov 0.0   ;;  %v5237_v1 = vld [vmem:[%s17447_s16 + $0xe8] sm:$0xff]  ;;  %v5219_v52 = vld [vmem:[%s17447_s16 + $0x58] sm:$0xff]  ;;  %v5218_v28 = vld [vmem:[%s17447_s16 + $0x50] sm:$0xff] }
 0x992   : > { %5140 = vmatpush1.msra.mxu1 %v14463_v57  ;;  %v14577_v34 = vadd.f32 %v14404_v43, %v5058_v26  ;;  %v5233_v17 = vld [vmem:[%s17447_s16 + $0xc8] sm:$0xff]  ;;  %v5232_v42 = vld [vmem:[%s17447_s16 + $0xc0] sm:$0xff]  ;;  %v5231_v30 = vld [vmem:[%s17447_s16 + $0xb8] sm:$0xff] }
 0x993   : > { %5141 = vmatprep.subr.mxu1 %v14470_v54  ;;  %v14586_v33 = vadd.f32 %v14404_v43, %v5056_v58  ;;  %v11895_v43 = vld [vmem:[#allocation5] sm:$0xff]  ;;  %v5217_v23 = vld [vmem:[%s17447_s16 + $0x48] sm:$0xff]  ;;  %v5215_v2 = vld [vmem:[%s17447_s16 + $0x38] sm:$0xff] }
 0x994   : > { %5142 = vmatpush1.msra.mxu1 %v14477_v56  ;;  %v5216_v6 = vld [vmem:[%s17447_s16 + $0x40] sm:$0xff]  ;;  %v5230_v47 = vld [vmem:[%s17447_s16 + $0xb0] sm:$0xff]  ;;  %v5229_v26 = vld [vmem:[%s17447_s16 + $0xa8] sm:$0xff] }
 0x995   : > { %5143 = vmatprep.subr.mxu1 %v14484_v21  ;;  %v5214_v46 = vld [vmem:[%s17447_s16 + $0x30] sm:$0xff]  ;;  %v5213_v10 = vld [vmem:[%s17447_s16 + $0x28] sm:$0xff]  ;;  %v5228_v40 = vld [vmem:[%s17447_s16 + $0xa0] sm:$0xff] }
 0x996   : > { %5144 = vmatpush1.msra.mxu1 %v14491_v31  ;;  %v5212_v58 = vld [vmem:[%s17447_s16 + $0x20] sm:$0xff]  ;;  %v5227_v53 = vld [vmem:[%s17447_s16 + $0x98] sm:$0xff]  ;;  %v5226_v37 = vld [vmem:[%s17447_s16 + $0x90] sm:$0xff] }
 0x997   : > { %5145 = vmatprep.subr.mxu1 %v14498_v7  ;;  %v5211_v11 = vld [vmem:[%s17447_s16 + $0x18] sm:$0xff] }
 0x998   : > { %5146 = vmatpush1.msra.mxu1 %v14505_v13 }
 0x999   : > { %5147 = vmatprep.subr.mxu1 %v14512_v27 }
 0x99a   : > { %5148 = vmatpush1.msra.mxu1 %v14517_v9 }
 0x99b   : > { %5149 = vmatprep.subr.mxu1 %v14524_v22 }
 0x99c   : > { %5150 = vmatpush1.msra.mxu1 %v14528_v3 }
 0x99d   : > { %5151 = vmatprep.subr.mxu1 %v14535_v55 }
 0x99e   : > { %5152 = vmatpush1.msra.mxu1 %v14539_v36 }
 0x99f   : > { %5153 = vmatprep.subr.mxu1 %v14546_v62 }
 0x9a0   : > { %5154 = vmatpush1.msra.mxu1 %v14551_v44 }
 0x9a1   : > { %5155 = vmatprep.subr.mxu1 %v14558_v51 }
 0x9a2   : > { %5156 = vmatpush1.msra.mxu1 %v14563_v4 }
 0x9a3   : > { %5157 = vmatprep.subr.mxu1 %v14568_v41 }
 0x9a4   : > { %5158 = vmatpush1.msra.mxu1 %v14573_v48 }
 0x9a5   : > { %5159 = vmatprep.subr.mxu1 %v14577_v34 }
 0x9a6   : > { %5160 = vmatpush1.msra.mxu1 %v14582_v38 }
 0x9a7   : > { %5161 = vmatprep.subr.mxu1 %v14586_v33 }
 0x9a8   : > { %5162 = vmatpush1.msra.mxu1 %v14591_v49 }
 0x9a9   : > { %5196 = vmatmul.mubr.f32.vlgmr.msra.gmra.mxu1 %v11895_v43  ;;  %10346 = vmatprep.subr.mxu1 %v5239_v35  ;;  %v5210_v35 = vld [vmem:[%s17447_s16 + $0x10] sm:$0xff]  ;;  %v5224_v43 = vld [vmem:[%s17447_s16 + $0x80] sm:$0xff] }
 0x9aa   : > { %5201 = vmatprep.mubr.f32.mxu1 %v17452_v25  ;;  %10347 = vmatpush3.msra.mxu1 %v5223_v63  ;;  %v5225_v63 = vld [vmem:[%s17447_s16 + $0x88] sm:$0xff] }
 0x9ab   : > { %10348 = vmatprep.subr.mxu1 %v5238_v14  ;;  %v5209_v14 = vld [vmem:[%s17447_s16 + $0x8] sm:$0xff] }
 0x9ac   : > { %10349 = vmatpush3.msra.mxu1 %v5222_v5  ;;  %v5208_v5 = vld [vmem:[%s17447_s16] sm:$0xff] }
 0x9ad   : > { %5202 = vmatmul.mubr.f32.gmra.mxu1 %v11896_v61  ;;  %10350 = vmatprep.subr.mxu1 %v5237_v1  ;;  %v5328_v1 = vld [vmem:[#allocation24 + $0x8] sm:$0xff] }
 0x9ae   : > { %10351 = vmatpush3.msra.mxu1 %v5221_v39  ;;  %v5327_v39 = vld [vmem:[#allocation24] sm:$0xff]  ;;  %5365 = vmatprep.subr.mxu0 %v5328_v1  ;;  %v5621_v1 = vld [vmem:[#allocation25 + $0xc0] sm:$0xff] }
 0x9af   : > { %10352 = vmatprep.subr.mxu1 %v5236_v45  ;;  %5366 = vmatpush1.msra.mxu0 %v5327_v39  ;;  %v5620_v39 = vld [vmem:[#allocation25 + $0xb8] sm:$0xff] }
 0x9b0   : > { %10353 = vmatpush3.msra.mxu1 %v5220_v8 }
 0x9b1   : > { %10354 = vmatprep.subr.mxu1 %v5235_v50 }
 0x9b2   : > { %10355 = vmatpush3.msra.mxu1 %v5219_v52  ;;  %v5628_v52 = vld [vmem:[#allocation25 + $0xf8] sm:$0xff] }
 0x9b3   : > { %10356 = vmatprep.subr.mxu1 %v5234_v18  ;;  %5641 = vmatprep.subr.mxu0 %v5628_v52  ;;  %v5615_v52 = vld [vmem:[#allocation25 + $0x90] sm:$0xff] }
 0x9b4   : > { %10357 = vmatpush3.msra.mxu1 %v5218_v28 }
 0x9b5   : > { %10358 = vmatprep.subr.mxu1 %v5233_v17 }
 0x9b6   : > { %10359 = vmatpush3.msra.mxu1 %v5217_v23 }
 0x9b7   : > { %10360 = vmatprep.subr.mxu1 %v5232_v42 }
 0x9b8   : > { %10361 = vmatpush3.msra.mxu1 %v5216_v6 }
 0x9b9   : > { %10362 = vmatprep.subr.mxu1 %v5231_v30 }
 0x9ba   : > { %10363 = vmatpush3.msra.mxu1 %v5215_v2 }
 0x9bb   : > { %10364 = vmatprep.subr.mxu1 %v5230_v47 }
 0x9bc   : > { %10365 = vmatpush3.msra.mxu1 %v5214_v46 }
 0x9bd   : > { %10366 = vmatprep.subr.mxu1 %v5229_v26 }
 0x9be   : > { %10367 = vmatpush3.msra.mxu1 %v5213_v10 }
 0x9bf   : > { %10368 = vmatprep.subr.mxu1 %v5228_v40  ;;  %v5627_v40 = vld [vmem:[#allocation25 + $0xf0] sm:$0xff] }
 0x9c0   : > { %10369 = vmatpush3.msra.mxu1 %v5212_v58 }
 0x9c1   : > { %10370 = vmatprep.subr.mxu1 %v5227_v53  ;;  %v5626_v53 = vld [vmem:[#allocation25 + $0xe8] sm:$0xff] }
 0x9c2   : > { %10371 = vmatpush3.msra.mxu1 %v5211_v11 }
 0x9c3   : > { %10372 = vmatprep.subr.mxu1 %v5226_v37  ;;  %v5625_v37 = vld [vmem:[#allocation25 + $0xe0] sm:$0xff] }
 0x9c4   : > { %10373 = vmatpush3.msra.mxu1 %v5210_v35  ;;  %v5624_v35 = vld [vmem:[#allocation25 + $0xd8] sm:$0xff] }
 0x9c5   : > { %10374 = vmatprep.subr.mxu1 %v5225_v63 }
 0x9c6   : > { %10375 = vmatpush3.msra.mxu1 %v5209_v14  ;;  %v5623_v14 = vld [vmem:[#allocation25 + $0xd0] sm:$0xff] }
 0x9c7   : > { %10376 = vmatprep.subr.mxu1 %v5224_v43 }
 0x9c8   : > { %10377 = vmatpush3.msra.mxu1 %v5208_v5  ;;  %v5622_v5 = vld [vmem:[#allocation25 + $0xc8] sm:$0xff] }
 0xa69   : > { %v5197_v45 = vpop.f32.mrf.mxu1 }
 0xa6b   : > { %v5199_v61 = vpop.f32.mrf.mxu1 }
 0xa6c   : > { %5304 = vmatprep.mubr.f32.mxu1 %v5199_v61  ;;  %v5618_v61 = vld [vmem:[#allocation25 + $0xa8] sm:$0xff] }
 0xa6d   : > { %v5203_v8 = vpop.f32.mrf.mxu1  ;;  %5305 = vmatmul.mubr.f32.vlgmr.msra.gmra.mxu1 %v5197_v45  ;;  %v5619_v45 = vld [vmem:[#allocation25 + $0xb0] sm:$0xff] }
 0xa6f   : > { %v5205_v50 = vpop.f32.mrf.mxu1 }
 0xa70   : > { %5309 = vmatprep.mubr.f32.mxu1 %v5205_v50  ;;  %v5616_v50 = vld [vmem:[#allocation25 + $0x98] sm:$0xff] }
 0xa71   : > { %5310 = vmatmul.mubr.f32.gmra.mxu1 %v5203_v8  ;;  %v5617_v8 = vld [vmem:[#allocation25 + $0xa0] sm:$0xff] }
 0xa72   : > { %5500 = vmatprep.mubr.f32.mxu1 %v17452_v25 }
 0xb2d   : > { %v10378_v18 = vpop.f32.mrf.mxu1 }
 0xb2f   : > { %v10379_v28 = vpop.f32.mrf.mxu1 }
 0xb30   : > { %v10380_v17 = vadd.f32 %v10379_v28, %v10378_v18  ;;  %v5614_v18 = vld [vmem:[#allocation25 + $0x88] sm:$0xff]  ;;  %v5613_v28 = vld [vmem:[#allocation25 + $0x80] sm:$0xff] }
 0xb31   : > { %v10381_v23 = vpop.f32.mrf.mxu1 }
 0xb32   : > { %v5317_v42 = vmin.f32 %v10380_v17, 0.0  ;;  %vm5315_vm14 = vcmp.gt.f32.partialorder %v10380_v17, 0.0 }
 0xb33   : > { %v10382_v6 = vpop.f32.mrf.mxu1 }
 0xb34   : > { %v5319_v30 = vmul.f32 1.442695, %v5317_v42  ;;  %v10383_v2 = vadd.f32 %v10382_v6, %v10381_v23  ;;  %v5611_v23 = vld [vmem:[#allocation25 + $0x70] sm:$0xff]  ;;  %v5610_v42 = vld [vmem:[#allocation25 + $0x68] sm:$0xff]  ;;  %v5609_v6 = vld [vmem:[#allocation25 + $0x60] sm:$0xff] }
 0xb36   : > { %11703 = vpow2.f32 %v5319_v30  ;;  %v5318_v47 = vmin.f32 %v10383_v2, 0.0  ;;  %vm5316_vm10 = vcmp.gt.f32.partialorder %v10383_v2, 0.0  ;;  %v5608_v30 = vld [vmem:[#allocation25 + $0x58] sm:$0xff] }
 0xb38   : > { %v5321_v46 = vmul.f32 1.442695, %v5318_v47  ;;  %v5606_v47 = vld [vmem:[#allocation25 + $0x48] sm:$0xff] }
 0xb3a   : > { %11705 = vpow2.f32 %v5321_v46  ;;  %v5605_v46 = vld [vmem:[#allocation25 + $0x40] sm:$0xff] }
 0xb43   : > { %v11704_v26 = vpop.eup %11703 }
 0xb44   : > { %v9673_v10 = vadd.f32 -1.0, %v11704_v26  ;;  %v5604_v26 = vld [vmem:[#allocation25 + $0x38] sm:$0xff] }
 0xb46   : > { %v5325_v58 = vsel %vm5315_vm14, %v10380_v17, %v9673_v10  ;;  %v5612_v17 = vld [vmem:[#allocation25 + $0x78] sm:$0xff]  ;;  %v5603_v10 = vld [vmem:[#allocation25 + $0x30] sm:$0xff]  ;;  %vm17474_vm14 = vmmov %vm17473_vm0 }
 0xb47   : > { %v11706_v11 = vpop.eup %11705  ;;  %9675 = vmatmul.mubr.msk.f32.vlgmr.msra.gmra.mxu0 %vm17453_vm13, %v5325_v58  ;;  %v5601_v58 = vld [vmem:[#allocation25 + $0x20] sm:$0xff]  ;;  %vm17475_vm13 = vmmov %vm17473_vm0 }
 0xb48   : > { %5642 = vmatpush1.msra.mxu0 %v5627_v40  ;;  %5405 = vmatprep.mubr.f32.mxu0 %v17452_v25  ;;  %v9674_v63 = vadd.f32 -1.0, %v11706_v11  ;;  %v5602_v40 = vld [vmem:[#allocation25 + $0x28] sm:$0xff]  ;;  %v5599_v11 = vld [vmem:[#allocation25 + $0x10] sm:$0xff] }
 0xb49   : > { %5643 = vmatprep.subr.mxu0 %v5626_v53  ;;  %v5600_v53 = vld [vmem:[#allocation25 + $0x18] sm:$0xff] }
 0xb4a   : > { %5644 = vmatpush1.msra.mxu0 %v5625_v37  ;;  %v5326_v43 = vsel %vm5316_vm10, %v10383_v2, %v9674_v63  ;;  %v5607_v2 = vld [vmem:[#allocation25 + $0x50] sm:$0xff]  ;;  %v5598_v37 = vld [vmem:[#allocation25 + $0x8] sm:$0xff]  ;;  %vm17476_vm10 = vmmov %vm17473_vm0 }
 0xb4b   : > { %5645 = vmatprep.subr.mxu0 %v5624_v35  ;;  %9676 = vmatmul.mubr.msk.f32.gmra.mxu0 %vm17454_vm12, %v5326_v43  ;;  %v5597_v35 = vld [vmem:[#allocation25] sm:$0xff]  ;;  %v17455_v63 = vld [vmem:[#allocation60_spill] sm:$0xff]  ;;  %vm17477_vm12 = vmmov %vm17473_vm0 }
 0xb4c   : > { %5646 = vmatpush1.msra.mxu0 %v5623_v14  ;;  %5705 = vmatprep.mubr.f32.mxu0 %v17452_v25  ;;  %v17456_v14 = vld [vmem:[#allocation59_spill] sm:$0xff]  ;;  %v17457_v43 = vld [vmem:[#allocation62_spill] sm:$0xff] }
 0xb4d   : > { %5647 = vmatprep.subr.mxu0 %v5622_v5  ;;  %v17458_v5 = vld [vmem:[#allocation61_spill] sm:$0xff] }
 0xb4e   : > { %5648 = vmatpush1.msra.mxu0 %v5621_v1  ;;  %v17459_v1 = vld [vmem:[#allocation64_spill] sm:$0xff] }
 0xb4f   : > { %5649 = vmatprep.subr.mxu0 %v5620_v39  ;;  %v17460_v39 = vld [vmem:[#allocation63_spill] sm:$0xff] }
 0xb50   : > { %5650 = vmatpush1.msra.mxu0 %v5619_v45  ;;  %v17461_v45 = vld [vmem:[#allocation66_spill] sm:$0xff] }
 0xb51   : > { %5651 = vmatprep.subr.mxu0 %v5618_v61  ;;  %v17462_v61 = vld [vmem:[#allocation65_spill] sm:$0xff] }
 0xb52   : > { %5652 = vmatpush1.msra.mxu0 %v5617_v8  ;;  %v17463_v8 = vld [vmem:[#allocation68_spill] sm:$0xff] }
 0xb53   : > { %5653 = vmatprep.subr.mxu0 %v5616_v50  ;;  %v17465_v50 = vld [vmem:[#allocation67_spill] sm:$0xff] }
 0xb54   : > { %5654 = vmatpush1.msra.mxu0 %v5615_v52  ;;  %v17466_v52 = vld [vmem:[#allocation70_spill] sm:$0xff] }
 0xb55   : > { %5655 = vmatprep.subr.mxu0 %v5614_v18  ;;  %v17467_v18 = vld [vmem:[#allocation69_spill] sm:$0xff] }
 0xb56   : > { %5656 = vmatpush1.msra.mxu0 %v5613_v28  ;;  %v17468_v28 = vld [vmem:[#allocation72_spill] sm:$0xff] }
 0xb57   : > { %5657 = vmatprep.subr.mxu0 %v5612_v17  ;;  %v17469_v17 = vld [vmem:[#allocation71_spill] sm:$0xff] }
 0xb58   : > { %5658 = vmatpush1.msra.mxu0 %v5611_v23  ;;  %v17470_v23 = vld [vmem:[#allocation74_spill] sm:$0xff] }
 0xb59   : > { %5659 = vmatprep.subr.mxu0 %v5610_v42  ;;  %v17471_v42 = vld [vmem:[#allocation73_spill] sm:$0xff] }
 0xb5a   : > { %5660 = vmatpush1.msra.mxu0 %v5609_v6  ;;  %v6485_v6 = vld [vmem:[%s17464_s26 + $0xf8] sm:$0xff] }
 0xb5b   : > { %5661 = vmatprep.subr.mxu0 %v5608_v30  ;;  %v6484_v30 = vld [vmem:[%s17464_s26 + $0xf0] sm:$0xff] }
 0xb5c   : > { %5662 = vmatpush1.msra.mxu0 %v5607_v2  ;;  %v6483_v2 = vld [vmem:[%s17464_s26 + $0xe8] sm:$0xff] }
 0xb5d   : > { %5663 = vmatprep.subr.mxu0 %v5606_v47  ;;  %v6482_v47 = vld [vmem:[%s17464_s26 + $0xe0] sm:$0xff] }
 0xb5e   : > { %5664 = vmatpush1.msra.mxu0 %v5605_v46  ;;  %v6481_v46 = vld [vmem:[%s17464_s26 + $0xd8] sm:$0xff] }
 0xb5f   : > { %5665 = vmatprep.subr.mxu0 %v5604_v26  ;;  %v6480_v26 = vld [vmem:[%s17464_s26 + $0xd0] sm:$0xff] }
 0xb60   : > { %5666 = vmatpush1.msra.mxu0 %v5603_v10  ;;  %v6479_v10 = vld [vmem:[%s17464_s26 + $0xc8] sm:$0xff] }
 0xb61   : > { %5667 = vmatprep.subr.mxu0 %v5602_v40  ;;  %v6478_v40 = vld [vmem:[%s17464_s26 + $0xc0] sm:$0xff] }
 0xb62   : > { %5668 = vmatpush1.msra.mxu0 %v5601_v58  ;;  %v6477_v58 = vld [vmem:[%s17464_s26 + $0xb8] sm:$0xff] }
 0xb63   : > { %5669 = vmatprep.subr.mxu0 %v5600_v53  ;;  %v6476_v53 = vld [vmem:[%s17464_s26 + $0xb0] sm:$0xff] }
 0xb64   : > { %5670 = vmatpush1.msra.mxu0 %v5599_v11  ;;  %v6475_v11 = vld [vmem:[%s17464_s26 + $0xa8] sm:$0xff] }
 0xb65   : > { %5671 = vmatprep.subr.mxu0 %v5598_v37  ;;  %v6474_v37 = vld [vmem:[%s17464_s26 + $0xa0] sm:$0xff] }
 0xb66   : > { %5672 = vmatpush1.msra.mxu0 %v5597_v35  ;;  %v6473_v35 = vld [vmem:[%s17464_s26 + $0x98] sm:$0xff] }
 0xb67   : > { %5706 = vmatmul.mubr.f32.vlgmr.msra.gmra.mxu0 %v17455_v63  ;;  %6744 = vmatprep.subr.mxu0 %v6485_v6  ;;  %v6472_v63 = vld [vmem:[%s17464_s26 + $0x90] sm:$0xff] }
 0xb68   : > { %5711 = vmatprep.mubr.f32.mxu0 %v17452_v25  ;;  %6745 = vmatpush1.msra.mxu0 %v6484_v30 }
 0xb69   : > { %6746 = vmatprep.subr.mxu0 %v6483_v2 }
 0xb6a   : > { %6747 = vmatpush1.msra.mxu0 %v6482_v47 }
 0xb6b   : > { %5712 = vmatmul.mubr.f32.gmra.mxu0 %v17456_v14  ;;  %6748 = vmatprep.subr.mxu0 %v6481_v46  ;;  %v6471_v14 = vld [vmem:[%s17464_s26 + $0x88] sm:$0xff] }
 0xb6c   : > { %5717 = vmatprep.mubr.f32.mxu0 %v17452_v25  ;;  %6749 = vmatpush1.msra.mxu0 %v6480_v26 }
 0xb6d   : > { %6750 = vmatprep.subr.mxu0 %v6479_v10 }
 0xb6e   : > { %6751 = vmatpush1.msra.mxu0 %v6478_v40 }
 0xb6f   : > { %5718 = vmatmul.mubr.f32.gmra.mxu0 %v17457_v43  ;;  %6752 = vmatprep.subr.mxu0 %v6477_v58  ;;  %v6470_v43 = vld [vmem:[%s17464_s26 + $0x80] sm:$0xff] }
 0xb70   : > { %5723 = vmatprep.mubr.f32.mxu0 %v17452_v25  ;;  %6753 = vmatpush1.msra.mxu0 %v6476_v53 }
 0xb71   : > { %6754 = vmatprep.subr.mxu0 %v6475_v11 }
 0xb72   : > { %6755 = vmatpush1.msra.mxu0 %v6474_v37 }
 0xb73   : > { %5724 = vmatmul.mubr.f32.gmra.mxu0 %v17458_v5  ;;  %6756 = vmatprep.subr.mxu0 %v6473_v35  ;;  %v6469_v5 = vld [vmem:[%s17464_s26 + $0x78] sm:$0xff] }
 0xb74   : > { %5729 = vmatprep.mubr.f32.mxu0 %v17452_v25  ;;  %6757 = vmatpush1.msra.mxu0 %v6472_v63 }
 0xb75   : > { %6758 = vmatprep.subr.mxu0 %v6471_v14 }
 0xb76   : > { %6759 = vmatpush1.msra.mxu0 %v6470_v43 }
 0xb77   : > { %5730 = vmatmul.mubr.f32.gmra.mxu0 %v17459_v1  ;;  %v6468_v1 = vld [vmem:[%s17464_s26 + $0x70] sm:$0xff]  ;;  %6760 = vmatprep.subr.mxu0 %v6469_v5 }
 0xb78   : > { %5735 = vmatprep.mubr.f32.mxu0 %v17452_v25  ;;  %6761 = vmatpush1.msra.mxu0 %v6468_v1 }
 0xb7b   : > { %5736 = vmatmul.mubr.f32.gmra.mxu0 %v17460_v39  ;;  %v6467_v39 = vld [vmem:[%s17464_s26 + $0x68] sm:$0xff] }
 0xb7c   : > { %5741 = vmatprep.mubr.f32.mxu0 %v17452_v25  ;;  %6762 = vmatprep.subr.mxu0 %v6467_v39 }
 0xb7f   : > { %5742 = vmatmul.mubr.f32.gmra.mxu0 %v17461_v45  ;;  %v6466_v45 = vld [vmem:[%s17464_s26 + $0x60] sm:$0xff] }
 0xb80   : > { %5747 = vmatprep.mubr.f32.mxu0 %v17452_v25  ;;  %6763 = vmatpush1.msra.mxu0 %v6466_v45  ;;  %v9756_v45 = vld [vmem:[%s17464_s26 + $0x2f8] sm:$0xff] }
 0xb83   : > { %5748 = vmatmul.mubr.f32.gmra.mxu0 %v17462_v61  ;;  %v6465_v61 = vld [vmem:[%s17464_s26 + $0x58] sm:$0xff] }
 0xb84   : > { %5753 = vmatprep.mubr.f32.mxu0 %v17452_v25  ;;  %6764 = vmatprep.subr.mxu0 %v6465_v61 }
 0xb87   : > { %5754 = vmatmul.mubr.f32.gmra.mxu0 %v17463_v8  ;;  %v6464_v8 = vld [vmem:[%s17464_s26 + $0x50] sm:$0xff] }
 0xb88   : > { %5759 = vmatprep.mubr.f32.mxu0 %v17452_v25  ;;  %6765 = vmatpush1.msra.mxu0 %v6464_v8  ;;  %v9755_v8 = vld [vmem:[%s17464_s26 + $0x2f0] sm:$0xff] }
 0xb8b   : > { %5760 = vmatmul.mubr.f32.gmra.mxu0 %v17465_v50 }
 0xb8c   : > { %5765 = vmatprep.mubr.f32.mxu0 %v17452_v25 }
 0xb8f   : > { %5766 = vmatmul.mubr.f32.gmra.mxu0 %v17466_v52  ;;  %v6463_v52 = vld [vmem:[%s17464_s26 + $0x48] sm:$0xff] }
 0xb90   : > { %5771 = vmatprep.mubr.f32.mxu0 %v17452_v25  ;;  %6766 = vmatprep.subr.mxu0 %v6463_v52  ;;  %v11897_v52 = vld [vmem:[#allocation7] sm:$0xff] }
 0xb93   : > { %5772 = vmatmul.mubr.f32.gmra.mxu0 %v17467_v18  ;;  %v6462_v18 = vld [vmem:[%s17464_s26 + $0x40] sm:$0xff] }
 0xb94   : > { %5777 = vmatprep.mubr.f32.mxu0 %v17452_v25  ;;  %6767 = vmatpush1.msra.mxu0 %v6462_v18  ;;  %v9753_v18 = vld [vmem:[%s17464_s26 + $0x2e0] sm:$0xff] }
 0xb97   : > { %5778 = vmatmul.mubr.f32.gmra.mxu0 %v17468_v28 }
 0xb98   : > { %5783 = vmatprep.mubr.f32.mxu0 %v17452_v25 }
 0xb9b   : > { %5784 = vmatmul.mubr.f32.gmra.mxu0 %v17469_v17 }
 0xb9c   : > { %5789 = vmatprep.mubr.f32.mxu0 %v17452_v25 }
 0xb9f   : > { %5790 = vmatmul.mubr.f32.gmra.mxu0 %v17470_v23  ;;  %v6461_v23 = vld [vmem:[%s17464_s26 + $0x38] sm:$0xff] }
 0xba0   : > { %5795 = vmatprep.mubr.f32.mxu0 %v17452_v25  ;;  %6768 = vmatprep.subr.mxu0 %v6461_v23  ;;  %v9750_v23 = vld [vmem:[%s17464_s26 + $0x2c8] sm:$0xff] }
 0xba3   : > { %5796 = vmatmul.mubr.f32.gmra.mxu0 %v17471_v42 }
 0xc07   : > { %v5401_v50 = vpop.f32.mrf.mxu0 }
 0xc08   : > { %v5412_v28 = vsub.f32 0.0, %v5401_v50  ;;  %v9754_v50 = vld [vmem:[%s17464_s26 + $0x2e8] sm:$0xff] }
 0xc09   : > { %v5403_v17 = vpop.f32.mrf.mxu0 }
 0xc0a   : > { %v5413_v42 = vsub.f32 0.0, %v5403_v17  ;;  %v5416_v47 = vmul.f32 1.442695, %v5412_v28  ;;  %v9752_v28 = vld [vmem:[%s17464_s26 + $0x2d8] sm:$0xff]  ;;  %v9751_v17 = vld [vmem:[%s17464_s26 + $0x2d0] sm:$0xff] }
 0xc0b   : > { %v5407_v6 = vpop.f32.mrf.mxu0 }
 0xc0c   : > { %v5418_v30 = vmul.f32 1.442695, %v5413_v42  ;;  %v5414_v2 = vsub.f32 0.0, %v5407_v6  ;;  %v11898_v42 = vld [vmem:[#allocation7 + $0x8] sm:$0xff]  ;;  %v9749_v6 = vld [vmem:[%s17464_s26 + $0x2c0] sm:$0xff] }
 0xc0d   : > { %v5409_v46 = vpop.f32.mrf.mxu0 }
 0xc0e   : > { %v5420_v26 = vmul.f32 1.442695, %v5414_v2  ;;  %v5415_v10 = vsub.f32 0.0, %v5409_v46  ;;  %11707 = vpow2.f32 %v5418_v30  ;;  %v9748_v30 = vld [vmem:[%s17464_s26 + $0x2b8] sm:$0xff]  ;;  %v9747_v2 = vld [vmem:[%s17464_s26 + $0x2b0] sm:$0xff]  ;;  %v11899_v46 = vld [vmem:[#allocation7 + $0x10] sm:$0xff] }
 0xc10   : > { %11709 = vpow2.f32 %v5420_v26  ;;  %v5422_v40 = vmul.f32 1.442695, %v5415_v10  ;;  %v9745_v26 = vld [vmem:[%s17464_s26 + $0x2a0] sm:$0xff]  ;;  %v9744_v10 = vld [vmem:[%s17464_s26 + $0x298] sm:$0xff] }
 0xc11   : > { %11711 = vpow2.f32 %v5416_v47  ;;  %v9746_v47 = vld [vmem:[%s17464_s26 + $0x2a8] sm:$0xff] }
 0xc12   : > { %11713 = vpow2.f32 %v5422_v40  ;;  %v9743_v40 = vld [vmem:[%s17464_s26 + $0x290] sm:$0xff] }
 0xc1b   : > { %v11708_v58 = vpop.eup %11707 }
 0xc1c   : > { %v5425_v63 = vadd.f32 1.0, %v11708_v58  ;;  %v9742_v58 = vld [vmem:[%s17464_s26 + $0x288] sm:$0xff] }
 0xc1d   : > { %v11710_v53 = vpop.eup %11709 }
 0xc1e   : > { %v11712_v11 = vpop.eup %11711  ;;  %v5426_v35 = vadd.f32 1.0, %v11710_v53  ;;  %v11900_v53 = vld [vmem:[#allocation7 + $0x18] sm:$0xff] }
 0xc1f   : > { %v11714_v37 = vpop.eup %11713  ;;  %v5424_v43 = vadd.f32 1.0, %v11712_v11  ;;  %v9741_v11 = vld [vmem:[%s17464_s26 + $0x280] sm:$0xff] }
 0xc20   : > { %v5427_v14 = vadd.f32 1.0, %v11714_v37  ;;  %v9740_v37 = vld [vmem:[%s17464_s26 + $0x278] sm:$0xff] }
 0xc22   : > { %11715 = vrcp.f32 %v5427_v14  ;;  %v11901_v14 = vld [vmem:[#allocation7 + $0x20] sm:$0xff] }
 0xc23   : > { %11717 = vrcp.f32 %v5426_v35  ;;  %v9739_v35 = vld [vmem:[%s17464_s26 + $0x270] sm:$0xff] }
 0xc24   : > { %11719 = vrcp.f32 %v5425_v63  ;;  %v9738_v63 = vld [vmem:[%s17464_s26 + $0x268] sm:$0xff] }
 0xc25   : > { %11721 = vrcp.f32 %v5424_v43  ;;  %v9737_v43 = vld [vmem:[%s17464_s26 + $0x260] sm:$0xff] }
 0xc2f   : > { %v11716_v5 = vpop.eup %11715 }
 0xc30   : > { %v11718_v1 = vpop.eup %11717  ;;  %5464 = vmatprep.subr.mxu1 %v11716_v5  ;;  %v9736_v5 = vld [vmem:[%s17464_s26 + $0x258] sm:$0xff] }
 0xc31   : > { %v11720_v39 = vpop.eup %11719  ;;  %5465 = vmatpush1.msra.mxu1 %v11718_v1  ;;  %v9735_v1 = vld [vmem:[%s17464_s26 + $0x250] sm:$0xff] }
 0xc32   : > { %v11722_v61 = vpop.eup %11721  ;;  %5466 = vmatprep.subr.mxu1 %v11720_v39  ;;  %v9734_v39 = vld [vmem:[%s17464_s26 + $0x248] sm:$0xff] }
 0xc33   : > { %5467 = vmatpush1.msra.mxu1 %v11722_v61  ;;  %v9733_v61 = vld [vmem:[%s17464_s26 + $0x240] sm:$0xff] }
 0xc34   : > { %9677 = vmatmul.mubr.msk.f32.vlgmr.msra.gmra.mxu1 %vm17472_vm1, %v11897_v52  ;;  %6583 = vmatprep.subr.mxu1 %v9756_v45  ;;  %v11902_v45 = vld [vmem:[#allocation7 + $0x28] sm:$0xff]  ;;  %v9730_v52 = vld [vmem:[%s17464_s26 + $0x228] sm:$0xff]  ;;  %vm17478_vm1 = vmmov %vm17473_vm0 }
 0xc35   : > { %5506 = vmatprep.mubr.f32.mxu1 %v17452_v25  ;;  %6584 = vmatpush1.msra.mxu1 %v9755_v8  ;;  %v9732_v8 = vld [vmem:[%s17464_s26 + $0x238] sm:$0xff] }
 0xc36   : > { %6585 = vmatprep.subr.mxu1 %v9754_v50  ;;  %v9731_v50 = vld [vmem:[%s17464_s26 + $0x230] sm:$0xff] }
 0xc37   : > { %6586 = vmatpush1.msra.mxu1 %v9753_v18  ;;  %v11903_v18 = vld [vmem:[#allocation7 + $0x30] sm:$0xff] }
 0xc38   : > { %9678 = vmatmul.mubr.msk.f32.gmra.mxu1 %vm17473_vm0, %v11898_v42  ;;  %6587 = vmatprep.subr.mxu1 %v9752_v28  ;;  %v9729_v28 = vld [vmem:[%s17464_s26 + $0x220] sm:$0xff]  ;;  %v9726_v42 = vld [vmem:[%s17464_s26 + $0x208] sm:$0xff] }
 0xc39   : > { %5512 = vmatprep.mubr.f32.mxu1 %v17452_v25  ;;  %6588 = vmatpush1.msra.mxu1 %v9751_v17  ;;  %v9728_v17 = vld [vmem:[%s17464_s26 + $0x218] sm:$0xff] }
 0xc3a   : > { %6589 = vmatprep.subr.mxu1 %v9750_v23  ;;  %v9727_v23 = vld [vmem:[%s17464_s26 + $0x210] sm:$0xff] }
 0xc3b   : > { %6590 = vmatpush1.msra.mxu1 %v9749_v6  ;;  %v11904_v6 = vld [vmem:[#allocation7 + $0x38] sm:$0xff] }
 0xc3c   : > { %9679 = vmatmul.mubr.msk.f32.gmra.mxu1 %vm17474_vm14, %v11899_v46  ;;  %6591 = vmatprep.subr.mxu1 %v9748_v30  ;;  %v9725_v30 = vld [vmem:[%s17464_s26 + $0x200] sm:$0xff]  ;;  %v9786_v46 = vld [vmem:[%s17464_s26 + $0x3e8] sm:$0xff]  ;;  %vm17479_vm14 = vmmov %vm17473_vm0 }
 0xc3d   : > { %5518 = vmatprep.mubr.f32.mxu1 %v17452_v25  ;;  %6592 = vmatpush1.msra.mxu1 %v9747_v2  ;;  %v9788_v2 = vld [vmem:[%s17464_s26 + $0x3f8] sm:$0xff] }
 0xc3e   : > { %6593 = vmatprep.subr.mxu1 %v9746_v47  ;;  %v9787_v47 = vld [vmem:[%s17464_s26 + $0x3f0] sm:$0xff] }
 0xc3f   : > { %6594 = vmatpush1.msra.mxu1 %v9745_v26  ;;  %v11905_v26 = vld [vmem:[#allocation7 + $0x40] sm:$0xff] }
 0xc40   : > { %9680 = vmatmul.mubr.msk.f32.gmra.mxu1 %vm17475_vm13, %v11900_v53  ;;  %6595 = vmatprep.subr.mxu1 %v9744_v10  ;;  %v11906_v10 = vld [vmem:[#allocation7 + $0x48] sm:$0xff]  ;;  %vm17480_vm13 = vmmov %vm17473_vm0  ;;  %v11909_v53 = vld [vmem:[#allocation7 + $0x60] sm:$0xff] }
 0xc41   : > { %5524 = vmatprep.mubr.f32.mxu1 %v17452_v25  ;;  %6596 = vmatpush1.msra.mxu1 %v9743_v40  ;;  %v11907_v40 = vld [vmem:[#allocation7 + $0x50] sm:$0xff] }
 0xc42   : > { %6597 = vmatprep.subr.mxu1 %v9742_v58  ;;  %v11908_v58 = vld [vmem:[#allocation7 + $0x58] sm:$0xff] }
 0xc43   : > { %6598 = vmatpush1.msra.mxu1 %v9741_v11  ;;  %v11910_v11 = vld [vmem:[#allocation7 + $0x68] sm:$0xff] }
 0xc44   : > { %9681 = vmatmul.mubr.msk.f32.gmra.mxu1 %vm17476_vm10, %v11901_v14  ;;  %6599 = vmatprep.subr.mxu1 %v9740_v37  ;;  %vm17481_vm10 = vmmov %vm17473_vm0  ;;  %v11911_v37 = vld [vmem:[#allocation7 + $0x70] sm:$0xff]  ;;  %v6460_v14 = vld [vmem:[%s17464_s26 + $0x30] sm:$0xff] }
 0xc45   : > { %5530 = vmatprep.mubr.f32.mxu1 %v17452_v25  ;;  %6600 = vmatpush1.msra.mxu1 %v9739_v35  ;;  %v11912_v35 = vld [vmem:[#allocation7 + $0x78] sm:$0xff] }
 0xc46   : > { %6601 = vmatprep.subr.mxu1 %v9738_v63  ;;  %v9785_v63 = vld [vmem:[%s17464_s26 + $0x3e0] sm:$0xff]  ;;  %6769 = vmatpush1.msra.mxu0 %v6460_v14  ;;  %v6509_v14 = vld [vmem:[%s17464_s26 + $0x1b8] sm:$0xff] }
 0xc47   : > { %6602 = vmatpush1.msra.mxu1 %v9737_v43  ;;  %v9784_v43 = vld [vmem:[%s17464_s26 + $0x3d8] sm:$0xff] }
 0xc48   : > { %9682 = vmatmul.mubr.msk.f32.gmra.mxu1 %vm17477_vm12, %v11902_v45  ;;  %6603 = vmatprep.subr.mxu1 %v9736_v5  ;;  %vm17482_vm12 = vmmov %vm17473_vm0  ;;  %v6459_v5 = vld [vmem:[%s17464_s26 + $0x28] sm:$0xff]  ;;  %v6457_v45 = vld [vmem:[%s17464_s26 + $0x18] sm:$0xff] }
 0xc49   : > { %5536 = vmatprep.mubr.f32.mxu1 %v17452_v25  ;;  %6604 = vmatpush1.msra.mxu1 %v9735_v1  ;;  %v9783_v1 = vld [vmem:[%s17464_s26 + $0x3d0] sm:$0xff] }
 0xc4a   : > { %6605 = vmatprep.subr.mxu1 %v9734_v39  ;;  %6770 = vmatprep.subr.mxu0 %v6459_v5  ;;  %v6458_v39 = vld [vmem:[%s17464_s26 + $0x20] sm:$0xff]  ;;  %v6508_v5 = vld [vmem:[%s17464_s26 + $0x1b0] sm:$0xff] }
 0xc4b   : > { %6606 = vmatpush1.msra.mxu1 %v9733_v61  ;;  %6771 = vmatpush1.msra.mxu0 %v6458_v39  ;;  %v9781_v61 = vld [vmem:[%s17464_s26 + $0x3c0] sm:$0xff]  ;;  %v6507_v39 = vld [vmem:[%s17464_s26 + $0x1a8] sm:$0xff] }
 0xc4c   : > { %9683 = vmatmul.mubr.msk.f32.gmra.mxu1 %vm17478_vm1, %v11903_v18  ;;  %6607 = vmatprep.subr.mxu1 %v9732_v8  ;;  %vm17483_vm1 = vmmov %vm17473_vm0  ;;  %v6456_v8 = vld [vmem:[%s17464_s26 + $0x10] sm:$0xff] }
 0xc4d   : > { %5542 = vmatprep.mubr.f32.mxu1 %v17452_v25  ;;  %6608 = vmatpush1.msra.mxu1 %v9731_v50  ;;  %v9780_v50 = vld [vmem:[%s17464_s26 + $0x3b8] sm:$0xff]  ;;  %v9779_v18 = vld [vmem:[%s17464_s26 + $0x3b0] sm:$0xff] }
 0xc4e   : > { %6609 = vmatprep.subr.mxu1 %v9730_v52  ;;  %6772 = vmatprep.subr.mxu0 %v6457_v45  ;;  %v6455_v52 = vld [vmem:[%s17464_s26 + $0x8] sm:$0xff]  ;;  %v6506_v45 = vld [vmem:[%s17464_s26 + $0x1a0] sm:$0xff] }
 0xc4f   : > { %6610 = vmatpush1.msra.mxu1 %v9729_v28  ;;  %6773 = vmatpush1.msra.mxu0 %v6456_v8  ;;  %v6454_v28 = vld [vmem:[%s17464_s26] sm:$0xff]  ;;  %v6505_v8 = vld [vmem:[%s17464_s26 + $0x198] sm:$0xff] }
 0xc50   : > { %9684 = vmatmul.mubr.msk.f32.gmra.mxu1 %vm17473_vm0, %v11904_v6  ;;  %6611 = vmatprep.subr.mxu1 %v9728_v17  ;;  %v9778_v17 = vld [vmem:[%s17464_s26 + $0x3a8] sm:$0xff]  ;;  %v6516_v6 = vld [vmem:[%s17464_s26 + $0x1f0] sm:$0xff] }
 0xc51   : > { %5548 = vmatprep.mubr.f32.mxu1 %v17452_v25  ;;  %6612 = vmatpush1.msra.mxu1 %v9727_v23  ;;  %v6517_v23 = vld [vmem:[%s17464_s26 + $0x1f8] sm:$0xff] }
 0xc52   : > { %6613 = vmatprep.subr.mxu1 %v9726_v42  ;;  %6774 = vmatprep.subr.mxu0 %v6455_v52  ;;  %v9777_v42 = vld [vmem:[%s17464_s26 + $0x3a0] sm:$0xff]  ;;  %v6504_v52 = vld [vmem:[%s17464_s26 + $0x190] sm:$0xff] }
 0xc53   : > { %6614 = vmatpush1.msra.mxu1 %v9725_v30  ;;  %6775 = vmatpush1.msra.mxu0 %v6454_v28  ;;  %v9776_v30 = vld [vmem:[%s17464_s26 + $0x398] sm:$0xff]  ;;  %v6503_v28 = vld [vmem:[%s17464_s26 + $0x188] sm:$0xff] }
 0xc54   : > { %9685 = vmatmul.mubr.msk.f32.gmra.mxu1 %vm17479_vm14, %v11905_v26  ;;  %6615 = vmatprep.subr.mxu1 %v9788_v2  ;;  %vm17484_vm14 = vmmov %vm17473_vm0  ;;  %v6515_v2 = vld [vmem:[%s17464_s26 + $0x1e8] sm:$0xff] }
 0xc55   : > { %5554 = vmatprep.mubr.f32.mxu1 %v17452_v25  ;;  %6616 = vmatpush2.msra.mxu1 %v9787_v47  ;;  %v9775_v47 = vld [vmem:[%s17464_s26 + $0x390] sm:$0xff]  ;;  %v9774_v26 = vld [vmem:[%s17464_s26 + $0x388] sm:$0xff] }
 0xc56   : > { %6617 = vmatprep.subr.mxu1 %v9786_v46  ;;  %6776 = vmatprep.subr.mxu0 %v6517_v23  ;;  %v6514_v46 = vld [vmem:[%s17464_s26 + $0x1e0] sm:$0xff] }
 0xc57   : > { %6618 = vmatpush2.msra.mxu1 %v9785_v63  ;;  %6777 = vmatpush2.msra.mxu0 %v6516_v6  ;;  %v9770_v63 = vld [vmem:[%s17464_s26 + $0x368] sm:$0xff]  ;;  %v6502_v23 = vld [vmem:[%s17464_s26 + $0x180] sm:$0xff]  ;;  %v6501_v6 = vld [vmem:[%s17464_s26 + $0x178] sm:$0xff] }
 0xc58   : > { %9686 = vmatmul.mubr.msk.f32.gmra.mxu1 %vm17480_vm13, %v11906_v10  ;;  %vm17485_vm13 = vmmov %vm17473_vm0  ;;  %6619 = vmatprep.subr.mxu1 %v9784_v43  ;;  %v6513_v10 = vld [vmem:[%s17464_s26 + $0x1d8] sm:$0xff]  ;;  %v9769_v43 = vld [vmem:[%s17464_s26 + $0x360] sm:$0xff] }
 0xc59   : > { %5560 = vmatprep.mubr.f32.mxu1 %v17452_v25  ;;  %6620 = vmatpush2.msra.mxu1 %v9783_v1  ;;  %v9768_v1 = vld [vmem:[%s17464_s26 + $0x358] sm:$0xff] }
 0xc5a   : > { %6778 = vmatprep.subr.mxu0 %v6515_v2  ;;  %v6500_v2 = vld [vmem:[%s17464_s26 + $0x170] sm:$0xff] }
 0xc5b   : > { %6779 = vmatpush2.msra.mxu0 %v6514_v46  ;;  %v6499_v46 = vld [vmem:[%s17464_s26 + $0x168] sm:$0xff] }
 0xc5c   : > { %9687 = vmatmul.mubr.msk.f32.gmra.mxu1 %vm17481_vm10, %v11907_v40  ;;  %6780 = vmatprep.subr.mxu0 %v6513_v10  ;;  %v9773_v40 = vld [vmem:[%s17464_s26 + $0x380] sm:$0xff] }
 0xc5d   : > { %5566 = vmatprep.mubr.f32.mxu1 %v17452_v25  ;;  %v6498_v10 = vld [vmem:[%s17464_s26 + $0x160] sm:$0xff] }
 0xc60   : > { %9688 = vmatmul.mubr.msk.f32.gmra.mxu1 %vm17482_vm12, %v11908_v58  ;;  %v6512_v58 = vld [vmem:[%s17464_s26 + $0x1d0] sm:$0xff] }
 0xc61   : > { %5572 = vmatprep.mubr.f32.mxu1 %v17452_v25  ;;  %6781 = vmatpush2.msra.mxu0 %v6512_v58  ;;  %v6497_v58 = vld [vmem:[%s17464_s26 + $0x158] sm:$0xff] }
 0xc64   : > { %9689 = vmatmul.mubr.msk.f32.gmra.mxu1 %vm17483_vm1, %v11909_v53  ;;  %v9772_v53 = vld [vmem:[%s17464_s26 + $0x378] sm:$0xff] }
 0xc65   : > { %5578 = vmatprep.mubr.f32.mxu1 %v17452_v25 }
 0xc68   : > { %9690 = vmatmul.mubr.msk.f32.gmra.mxu1 %vm17473_vm0, %v11910_v11  ;;  %v6511_v11 = vld [vmem:[%s17464_s26 + $0x1c8] sm:$0xff] }
 0xc69   : > { %5584 = vmatprep.mubr.f32.mxu1 %v17452_v25  ;;  %6782 = vmatprep.subr.mxu0 %v6511_v11  ;;  %v6496_v11 = vld [vmem:[%s17464_s26 + $0x150] sm:$0xff] }
 0xc6c   : > { %9691 = vmatmul.mubr.msk.f32.gmra.mxu1 %vm17484_vm14, %v11911_v37  ;;  %v9771_v37 = vld [vmem:[%s17464_s26 + $0x370] sm:$0xff]  ;;  %vm6090_vm14 = vcmask 1040384  }
 0xc6d   : > { %5590 = vmatprep.mubr.f32.mxu1 %v17452_v25  ;;  %v9782_v25 = vld [vmem:[%s17464_s26 + $0x3c8] sm:$0xff] }
 0xc6e   : > { %6621 = vmatprep.subr.mxu1 %v9782_v25  ;;  %v9767_v25 = vld [vmem:[%s17464_s26 + $0x350] sm:$0xff] }
 0xc6f   : > { %6622 = vmatpush2.msra.mxu1 %v9781_v61  ;;  %v9766_v61 = vld [vmem:[%s17464_s26 + $0x348] sm:$0xff] }
 0xc70   : > { %9692 = vmatmul.mubr.msk.f32.gmra.mxu1 %vm17485_vm13, %v11912_v35  ;;  %6623 = vmatprep.subr.mxu1 %v9780_v50  ;;  %v6510_v35 = vld [vmem:[%s17464_s26 + $0x1c0] sm:$0xff] }
 0xc71   : > { %6624 = vmatpush2.msra.mxu1 %v9779_v18  ;;  %6783 = vmatpush2.msra.mxu0 %v6510_v35  ;;  %v9765_v50 = vld [vmem:[%s17464_s26 + $0x340] sm:$0xff]  ;;  %v9764_v18 = vld [vmem:[%s17464_s26 + $0x338] sm:$0xff] }
 0xc72   : > { %6625 = vmatprep.subr.mxu1 %v9778_v17  ;;  %6784 = vmatprep.subr.mxu0 %v6509_v14  ;;  %v9763_v17 = vld [vmem:[%s17464_s26 + $0x330] sm:$0xff]  ;;  %v9852_v35 = vld [vmem:[%s17464_s26 + $0x4f8] sm:$0xff] }
 0xc73   : > { %6626 = vmatpush2.msra.mxu1 %v9777_v42  ;;  %6785 = vmatpush2.msra.mxu0 %v6508_v5  ;;  %v9762_v42 = vld [vmem:[%s17464_s26 + $0x328] sm:$0xff]  ;;  %v6493_v14 = vld [vmem:[%s17464_s26 + $0x138] sm:$0xff] }
 0xc74   : > { %6627 = vmatprep.subr.mxu1 %v9776_v30  ;;  %6786 = vmatprep.subr.mxu0 %v6507_v39  ;;  %v9761_v30 = vld [vmem:[%s17464_s26 + $0x320] sm:$0xff]  ;;  %v6491_v5 = vld [vmem:[%s17464_s26 + $0x128] sm:$0xff]  ;;  %v6489_v39 = vld [vmem:[%s17464_s26 + $0x118] sm:$0xff] }
 0xc75   : > { %6628 = vmatpush2.msra.mxu1 %v9775_v47  ;;  %6787 = vmatpush2.msra.mxu0 %v6506_v45  ;;  %v9760_v47 = vld [vmem:[%s17464_s26 + $0x318] sm:$0xff]  ;;  %v5707_v45 = vpop.f32.mrf.mxu0 }
 0xc76   : > { %6629 = vmatprep.subr.mxu1 %v9774_v26  ;;  %6788 = vmatprep.subr.mxu0 %v6505_v8  ;;  %v9759_v26 = vld [vmem:[%s17464_s26 + $0x310] sm:$0xff]  ;;  %v6486_v8 = vld [vmem:[%s17464_s26 + $0x100] sm:$0xff] }
 0xc77   : > { %6630 = vmatpush2.msra.mxu1 %v9773_v40  ;;  %6789 = vmatpush2.msra.mxu0 %v6504_v52  ;;  %v9758_v40 = vld [vmem:[%s17464_s26 + $0x308] sm:$0xff] }
 0xc78   : > { %6631 = vmatprep.subr.mxu1 %v9772_v53  ;;  %6790 = vmatprep.subr.mxu0 %v6503_v28  ;;  %v9757_v53 = vld [vmem:[%s17464_s26 + $0x300] sm:$0xff] }
 0xc79   : > { %6632 = vmatpush2.msra.mxu1 %v9771_v37  ;;  %6791 = vmatpush2.msra.mxu0 %v6502_v23  ;;  %v6495_v37 = vld [vmem:[%s17464_s26 + $0x148] sm:$0xff] }
 0xc7a   : > { %6633 = vmatprep.subr.mxu1 %v9770_v63  ;;  %6792 = vmatprep.subr.mxu0 %v6501_v6  ;;  %v6494_v63 = vld [vmem:[%s17464_s26 + $0x140] sm:$0xff] }
 0xc7b   : > { %6634 = vmatpush2.msra.mxu1 %v9769_v43  ;;  %6793 = vmatpush2.msra.mxu0 %v6500_v2  ;;  %v6492_v43 = vld [vmem:[%s17464_s26 + $0x130] sm:$0xff] }
 0xc7c   : > { %6635 = vmatprep.subr.mxu1 %v9768_v1  ;;  %6794 = vmatprep.subr.mxu0 %v6499_v46  ;;  %v6490_v1 = vld [vmem:[%s17464_s26 + $0x120] sm:$0xff] }
 0xc7d   : > { %6636 = vmatpush2.msra.mxu1 %v9767_v25  ;;  %6795 = vmatpush2.msra.mxu0 %v6498_v10  ;;  %v6488_v25 = vld [vmem:[%s17464_s26 + $0x110] sm:$0xff] }
 0xc7e   : > { %6637 = vmatprep.subr.mxu1 %v9766_v61  ;;  %6796 = vmatprep.subr.mxu0 %v6497_v58  ;;  %v6487_v61 = vld [vmem:[%s17464_s26 + $0x108] sm:$0xff] }
 0xc7f   : > { %6638 = vmatpush2.msra.mxu1 %v9765_v50  ;;  %6797 = vmatpush2.msra.mxu0 %v6496_v11  ;;  %v5709_v50 = vpop.f32.mrf.mxu0 }
 0xc80   : > { %6639 = vmatprep.subr.mxu1 %v9764_v18  ;;  %6798 = vmatprep.subr.mxu0 %v6495_v37 }
 0xc81   : > { %6640 = vmatpush2.msra.mxu1 %v9763_v17  ;;  %6799 = vmatpush2.msra.mxu0 %v6494_v63  ;;  %v5713_v52 = vpop.f32.mrf.mxu0  ;;  %v5629_v63 = vld [vmem:[%s17486_s6] sm:$0x3] }
 0xc82   : > { %6641 = vmatprep.subr.mxu1 %v9762_v42  ;;  %6800 = vmatprep.subr.mxu0 %v6493_v14 }
 0xc83   : > { %6642 = vmatpush2.msra.mxu1 %v9761_v30  ;;  %6801 = vmatpush2.msra.mxu0 %v6492_v43  ;;  %v5715_v18 = vpop.f32.mrf.mxu0  ;;  %v14845_v43 = vrot.slane %v5629_v63, %v14398_v60 }
 0xc84   : > { %6643 = vmatprep.subr.mxu1 %v9760_v47  ;;  %6802 = vmatprep.subr.mxu0 %v6491_v5  ;;  %v14848_v5 = vrot.slane %v5629_v63, %v14396_v0 }
 0xc85   : > { %6644 = vmatpush2.msra.mxu1 %v9759_v26  ;;  %6803 = vmatpush2.msra.mxu0 %v6490_v1  ;;  %v5719_v28 = vpop.f32.mrf.mxu0  ;;  %v5714_v63 = vadd.f32 %v5713_v52, %v14845_v43 }
 0xc86   : > { %6645 = vmatprep.subr.mxu1 %v9758_v40  ;;  %6804 = vmatprep.subr.mxu0 %v6489_v39  ;;  %v5710_v20 = vadd.f32 %v5709_v50, %v14848_v5 }
 0xc87   : > { %6646 = vmatpush2.msra.mxu1 %v9757_v53  ;;  %6805 = vmatpush2.msra.mxu0 %v6488_v25  ;;  %v5721_v17 = vpop.f32.mrf.mxu0  ;;  %v5708_v25 = vadd.f32 %v5707_v45, %v14845_v43 }
 0xc88   : > { %6970 = vmatprep.subr.mxu1 %v9852_v35  ;;  %6806 = vmatprep.subr.mxu0 %v6487_v61 }
 0xc89   : > { %6807 = vmatpush2.msra.mxu0 %v6486_v8  ;;  %v5725_v23 = vpop.f32.mrf.mxu0 }
 0xc8b   : > { %v5727_v42 = vpop.f32.mrf.mxu0 }
 0xc8d   : > { %v5731_v6 = vpop.f32.mrf.mxu0 }
 0xc8f   : > { %v5733_v30 = vpop.f32.mrf.mxu0 }
 0xc91   : > { %v5737_v2 = vpop.f32.mrf.mxu0 }
 0xc93   : > { %v5739_v47 = vpop.f32.mrf.mxu0 }
 0xc95   : > { %v5743_v46 = vpop.f32.mrf.mxu0 }
 0xc97   : > { %v14825_v26 = vpop.f32.mrf.mxu0 }
 0xc99   : > { %v14827_v10 = vpop.f32.mrf.mxu0 }
 0xc9b   : > { %v14829_v40 = vpop.f32.mrf.mxu0 }
 0xc9d   : > { %v14831_v58 = vpop.f32.mrf.mxu0 }
 0xc9f   : > { %v14833_v53 = vpop.f32.mrf.mxu0 }
 0xca1   : > { %v14835_v11 = vpop.f32.mrf.mxu0 }
 0xca3   : > { %v14837_v37 = vpop.f32.mrf.mxu0 }
 0xca5   : > { %v14839_v35 = vpop.f32.mrf.mxu0 }
 0xca7   : > { %v14842_v14 = vpop.f32.mrf.mxu0 }
 0xca9   : > { %v14850_v1 = vpop.f32.mrf.mxu0 }
 0xcab   : > { %v14858_v16 = vpop.f32.mrf.mxu0 }
 0xcf4   : > { %v5502_v39 = vpop.f32.mrf.mxu1 }
 0xcf5   : > { %v5802_v61 = vmul.f32 %v5502_v39, %v14591_v49  ;;  %v5716_v49 = vadd.f32 %v5715_v18, %v14848_v5 }
 0xcf6   : > { %v5504_v8 = vpop.f32.mrf.mxu1 }
 0xcf7   : > { %v14855_v15 = vadd.f32 %v5802_v61, %v5708_v25  ;;  %v5803_v19 = vmul.f32 %v5504_v8, %v14586_v33  ;;  %v14870_v61 = vpop.f32.mrf.mxu0 }
 0xcf8   : > { %v5508_v60 = vpop.f32.mrf.mxu1 }
 0xcf9   : > { %v5898_v0 = vmin.f32 %v14855_v15, 0.0  ;;  %v14862_v32 = vadd.f32 %v5803_v19, %v5710_v20  ;;  %v5804_v45 = vmul.f32 %v5508_v60, %v14582_v38  ;;  %v5720_v60 = vadd.f32 %v5719_v28, %v14845_v43  ;;  %v5781_v28 = vpop.f32.mrf.mxu0 }
 0xcfa   : > { %v5510_v39 = vpop.f32.mrf.mxu1  ;;  %v5722_v38 = vadd.f32 %v5721_v17, %v14848_v5  ;;  %vm5866_vm10 = vcmp.gt.f32.partialorder %v14855_v15, 0.0 }
 0xcfb   : > { %v5930_v12 = vmul.f32 1.442695, %v5898_v0  ;;  %v5899_v50 = vmin.f32 %v14862_v32, 0.0  ;;  %v14867_v25 = vadd.f32 %v5804_v45, %v5714_v63  ;;  %v5805_v33 = vmul.f32 %v5510_v39, %v14577_v34 }
 0xcfc   : > { %v5514_v8 = vpop.f32.mrf.mxu1  ;;  %v5726_v0 = vadd.f32 %v5725_v23, %v14845_v43  ;;  %v5728_v39 = vadd.f32 %v5727_v42, %v14848_v5  ;;  %v5744_v42 = vadd.f32 %v5743_v46, %v14845_v43  ;;  %vm5867_vm12 = vcmp.gt.f32.partialorder %v14862_v32, 0.0 }
 0xcfd   : > { %11723 = vpow2.f32 %v5930_v12  ;;  %v5932_v52 = vmul.f32 1.442695, %v5899_v50  ;;  %v5900_v20 = vmin.f32 %v14867_v25, 0.0  ;;  %v14873_v19 = vadd.f32 %v5805_v33, %v5716_v49 }
 0xcfe   : > { %v5806_v18 = vmul.f32 %v5514_v8, %v14573_v48  ;;  %v5516_v63 = vpop.f32.mrf.mxu1  ;;  %v5732_v49 = vadd.f32 %v5731_v6, %v14845_v43  ;;  %v5734_v50 = vadd.f32 %v5733_v30, %v14848_v5  ;;  %vm5868_vm1 = vcmp.gt.f32.partialorder %v14867_v25, 0.0 }
 0xcff   : > { %11725 = vpow2.f32 %v5932_v52  ;;  %v5934_v34 = vmul.f32 1.442695, %v5900_v20  ;;  %v5901_v45 = vmin.f32 %v14873_v19, 0.0  ;;  %v5807_v12 = vmul.f32 %v5516_v63, %v14568_v41 }
 0xd00   : > { %v14884_v33 = vadd.f32 %v5806_v18, %v5720_v60  ;;  %v5520_v17 = vpop.f32.mrf.mxu1  ;;  %v5738_v52 = vadd.f32 %v5737_v2, %v14845_v43  ;;  %v5740_v41 = vadd.f32 %v5739_v47, %v14848_v5  ;;  %v14907_v2 = vadd.f32 %v14829_v40, %v14848_v5  ;;  %v5785_v47 = vpop.f32.mrf.mxu0 }
 0xd01   : > { %11727 = vpow2.f32 %v5934_v34  ;;  %v5936_v23 = vmul.f32 1.442695, %v5901_v45  ;;  %v14886_v48 = vadd.f32 %v5807_v12, %v5722_v38  ;;  %v5808_v8 = vmul.f32 %v5520_v17, %v14563_v4 }
 0xd02   : > { %v5902_v6 = vmin.f32 %v14884_v33, 0.0  ;;  %v5522_v20 = vpop.f32.mrf.mxu1  ;;  %v14899_v38 = vadd.f32 %v14825_v26, %v14848_v5  ;;  %v14903_v4 = vadd.f32 %v14827_v10, %v14845_v43  ;;  %v14915_v26 = vadd.f32 %v14831_v58, %v14845_v43  ;;  %v5787_v17 = vpop.f32.mrf.mxu0 }
 0xd03   : > { %11729 = vpow2.f32 %v5936_v23  ;;  %v5903_v30 = vmin.f32 %v14886_v48, 0.0  ;;  %v14894_v60 = vadd.f32 %v5808_v8, %v5726_v0  ;;  %v5809_v18 = vmul.f32 %v5522_v20, %v14558_v51 }
 0xd04   : > { %v5938_v46 = vmul.f32 1.442695, %v5902_v6  ;;  %v5526_v63 = vpop.f32.mrf.mxu1  ;;  %v14919_v10 = vadd.f32 %v14833_v53, %v14848_v5  ;;  %v14923_v40 = vadd.f32 %v14835_v11, %v14845_v43  ;;  %v14936_v53 = vadd.f32 %v14842_v14, %v14848_v5 }
 0xd05   : > { %v5940_v34 = vmul.f32 1.442695, %v5903_v30  ;;  %v5904_v0 = vmin.f32 %v14894_v60, 0.0  ;;  %v14910_v45 = vadd.f32 %v5809_v18, %v5728_v39  ;;  %v5810_v51 = vmul.f32 %v5526_v63, %v14551_v44 }
 0xd06   : > { %11731 = vpow2.f32 %v5938_v46  ;;  %v5528_v12 = vpop.f32.mrf.mxu1  ;;  %v14927_v39 = vadd.f32 %v14837_v37, %v14848_v5  ;;  %v14931_v44 = vadd.f32 %v14839_v35, %v14845_v43  ;;  %v14940_v11 = vadd.f32 %v14850_v1, %v14845_v43 }
 0xd07   : > { %11733 = vpow2.f32 %v5940_v34  ;;  %v5905_v58 = vmin.f32 %v14910_v45, 0.0  ;;  %v14942_v23 = vadd.f32 %v5810_v51, %v5732_v49  ;;  %v5811_v37 = vmul.f32 %v5528_v12, %v14546_v62 }
 0xd08   : > { %v5532_v8 = vpop.f32.mrf.mxu1  ;;  %v14947_v35 = vadd.f32 %v14858_v16, %v14848_v5  ;;  %v5942_v6 = vmul.f32 1.442695, %v5904_v0  ;;  %v14952_v18 = vadd.f32 %v14870_v61, %v14845_v43  ;;  %v14955_v1 = vadd.f32 %v5781_v28, %v14848_v5 }
 0xd09   : > { %v5944_v20 = vmul.f32 1.442695, %v5905_v58  ;;  %v5812_v30 = vmul.f32 %v5532_v8, %v14539_v36  ;;  %v14958_v49 = vadd.f32 %v5785_v47, %v14845_v43  ;;  %v14960_v62 = vadd.f32 %v5811_v37, %v5734_v50 }
 0xd0a   : > { %v11724_v14 = vpop.eup %11723  ;;  %v5534_v46 = vpop.f32.mrf.mxu1  ;;  %v14963_v16 = vadd.f32 %v5787_v17, %v14848_v5  ;;  %v5906_v61 = vmin.f32 %v14942_v23, 0.0  ;;  %vm5869_vm0 = vcmp.gt.f32.partialorder %v14873_v19, 0.0  ;;  %vm5870_vm13 = vcmp.gt.f32.partialorder %v14884_v33, 0.0 }
 0xd0b   : > { %v9693_v63 = vadd.f32 -1.0, %v11724_v14  ;;  %11735 = vpow2.f32 %v5944_v20  ;;  %v14965_v36 = vadd.f32 %v5812_v30, %v5738_v52  ;;  %v5907_v28 = vmin.f32 %v14960_v62, 0.0  ;;  %v9851_v14 = vld [vmem:[%s17464_s26 + $0x4f0] sm:$0xff] }
 0xd0c   : > { %v11726_v34 = vpop.eup %11725  ;;  %v5813_v47 = vmul.f32 %v5534_v46, %v14535_v55  ;;  %v5538_v0 = vpop.f32.mrf.mxu1  ;;  %11737 = vpow2.f32 %v5942_v6 }
 0xd0d   : > { %v14972_v50 = vsel %vm5866_vm10, %v14855_v15, %v9693_v63  ;;  %v5908_v51 = vmin.f32 %v14965_v36, 0.0  ;;  %v5814_v12 = vmul.f32 %v5538_v0, %v14528_v3  ;;  %v5948_v17 = vmul.f32 1.442695, %v5907_v28 }
 0xd0e   : > { %17487 = vst [vmem:[#allocation125_spill] sm:$0xff] %v14972_v50  ;;  %v11728_v52 = vpop.eup %11727  ;;  %v6091_v58 = vrot.slane %v14972_v50, 7  ;;  %v14977_v37 = vadd.f32 %v5813_v47, %v5740_v41  ;;  %v5540_v8 = vpop.f32.mrf.mxu1  ;;  %v9694_v20 = vadd.f32 -1.0, %v11726_v34  ;;  %v5946_v3 = vmul.f32 1.442695, %v5906_v61  ;;  %v9850_v34 = vld [vmem:[%s17464_s26 + $0x4e8] sm:$0xff] }
 0xd0f   : > { %v14979_v30 = vadd.f32 %v5814_v12, %v5744_v42  ;;  %v5815_v15 = vmul.f32 %v5540_v8, %v14524_v22  ;;  %11739 = vpow2.f32 %v5948_v17  ;;  %v5950_v46 = vmul.f32 1.442695, %v5908_v51  ;;  %v9849_v51 = vld [vmem:[%s17464_s26 + $0x4e0] sm:$0xff] }
 0xd10   : > { %v11730_v55 = vpop.eup %11729  ;;  %6187 = vst [vmem:[#allocation4 + $0xb0] sm:$0xfe] %v6091_v58  ;;  %v5909_v41 = vmin.f32 %v14977_v37, 0.0  ;;  %v5544_v6 = vpop.f32.mrf.mxu1  ;;  %v14988_v42 = vsel %vm5867_vm12, %v14862_v32, %v9694_v20  ;;  %v9695_v61 = vadd.f32 -1.0, %v11728_v52  ;;  %v9848_v52 = vld [vmem:[%s17464_s26 + $0x4d8] sm:$0xff]  ;;  %11741 = vpow2.f32 %v5946_v3 }
 0xd11   : > { %17488 = vst [vmem:[#allocation142_spill] sm:$0xff] %v14988_v42  ;;  %v14992_v22 = vadd.f32 %v5815_v15, %v14899_v38  ;;  %v5816_v63 = vmul.f32 %v5544_v6, %v14517_v9  ;;  %6647 = vmatprep.mubr.f32.mxu1 %v14988_v42  ;;  %v5910_v28 = vmin.f32 %v14979_v30, 0.0  ;;  %v6092_v47 = vrot.slane %v14988_v42, 7 }
 0xd12   : > { %6648 = vmatmul.mubr.f32.vlgmr.msra.gmra.mxu1 %v14972_v50  ;;  %v5546_v32 = vpop.f32.mrf.mxu1  ;;  %v9696_v0 = vadd.f32 -1.0, %v11730_v55  ;;  %v5952_v12 = vmul.f32 1.442695, %v5909_v41  ;;  %vm5871_vm10 = vcmp.gt.f32.partialorder %v14886_v48, 0.0  ;;  %11743 = vpow2.f32 %v5950_v46  ;;  %v9846_v41 = vld [vmem:[%s17464_s26 + $0x4c8] sm:$0xff] }
 0xd13   : > { %v11732_v38 = vpop.eup %11731  ;;  %v15003_v9 = vadd.f32 %v5816_v63, %v14903_v4  ;;  %v5817_v17 = vmul.f32 %v5546_v32, %v14512_v27  ;;  %6971 = vmatpush1.msra.mxu1 %v9851_v14  ;;  %v5911_v20 = vmin.f32 %v14992_v22, 0.0  ;;  %6188 = vst [vmem:[#allocation4 + $0xd0] sm:$0xfe] %v6092_v47  ;;  %v9847_v27 = vld [vmem:[%s17464_s26 + $0x4d0] sm:$0xff]  ;;  %v15025_v3 = vsel %vm5868_vm1, %v14867_v25, %v9695_v61  ;;  %v9844_v61 = vld [vmem:[%s17464_s26 + $0x4b8] sm:$0xff] }
 0xd14   : > { %v11734_v8 = vpop.eup %11733  ;;  %6972 = vmatprep.subr.mxu1 %v9850_v34  ;;  %v5550_v15 = vpop.f32.mrf.mxu1  ;;  %v15014_v4 = vsel %vm5869_vm0, %v14873_v19, %v9696_v0  ;;  %17490 = vst [vmem:[#allocation124_spill] sm:$0xff] %v15025_v3  ;;  %v9697_v19 = vadd.f32 -1.0, %v11732_v38  ;;  %v5954_v6 = vmul.f32 1.442695, %v5910_v28  ;;  %v9845_v34 = vld [vmem:[%s17464_s26 + $0x4c0] sm:$0xff]  ;;  %11745 = vpow2.f32 %v5952_v12  ;;  %v9843_v12 = vld [vmem:[%s17464_s26 + $0x4b0] sm:$0xff] }
 0xd15   : > { %17489 = vst [vmem:[#allocation119_spill] sm:$0xff] %v15014_v4  ;;  %v15019_v55 = vadd.f32 %v5817_v17, %v14907_v2  ;;  %6653 = vmatprep.mubr.f32.mxu1 %v15014_v4  ;;  %6973 = vmatpush1.msra.mxu1 %v9849_v51  ;;  %v5912_v14 = vmin.f32 %v15003_v9, 0.0  ;;  %v5818_v63 = vmul.f32 %v5550_v15, %v14505_v13  ;;  %v9698_v46 = vadd.f32 -1.0, %v11734_v8 }
 0xd16   : > { %6654 = vmatmul.mubr.f32.gmra.mxu1 %v15025_v3  ;;  %6974 = vmatprep.subr.mxu1 %v9848_v52  ;;  %v5552_v2 = vpop.f32.mrf.mxu1  ;;  %vm5873_vm12 = vcmp.gt.f32.partialorder %v14910_v45, 0.0  ;;  %vm5872_vm1 = vcmp.gt.f32.partialorder %v14894_v60, 0.0  ;;  %v5956_v28 = vmul.f32 1.442695, %v5911_v20  ;;  %v6095_v51 = vrot.slane %v15014_v4, 7  ;;  %v9842_v20 = vld [vmem:[%s17464_s26 + $0x4a8] sm:$0xff] }
 0xd17   : > { %v5913_v32 = vmin.f32 %v15019_v55, 0.0  ;;  %v5819_v25 = vmul.f32 %v5552_v2, %v14498_v7  ;;  %6975 = vmatpush1.msra.mxu1 %v9847_v27  ;;  %v15038_v0 = vadd.f32 %v5818_v63, %v14915_v26  ;;  %v15044_v7 = vsel %vm5871_vm10, %v14886_v48, %v9698_v46 }
 0xd18   : > { %v11736_v13 = vpop.eup %11735  ;;  %6976 = vmatprep.subr.mxu1 %v9846_v41  ;;  %v5556_v38 = vpop.f32.mrf.mxu1  ;;  %17491 = vst [vmem:[#allocation141_spill] sm:$0xff] %v15044_v7  ;;  %v6093_v17 = vrot.slane %v15025_v3, 7  ;;  %6659 = vmatprep.mubr.f32.mxu1 %v15044_v7  ;;  %v15056_v26 = vsel %vm5870_vm13, %v14884_v33, %v9697_v19  ;;  %vm5875_vm0 = vcmp.gt.f32.partialorder %v14960_v62, 0.0  ;;  %11747 = vpow2.f32 %v5954_v6  ;;  %v9841_v6 = vld [vmem:[%s17464_s26 + $0x4a0] sm:$0xff] }
 0xd19   : > { %v15049_v52 = vadd.f32 %v5819_v25, %v14919_v10  ;;  %v5820_v8 = vmul.f32 %v5556_v38, %v14491_v31  ;;  %6977 = vmatpush1.msra.mxu1 %v9845_v34  ;;  %17492 = vst [vmem:[#allocation118_spill] sm:$0xff] %v15056_v26  ;;  %v11738_v48 = vpop.eup %11737  ;;  %v5958_v15 = vmul.f32 1.442695, %v5912_v14  ;;  %v5914_v10 = vmin.f32 %v15038_v0, 0.0  ;;  %v9840_v25 = vld [vmem:[%s17464_s26 + $0x498] sm:$0xff] }
 0xd1a   : > { %6660 = vmatmul.mubr.f32.gmra.mxu1 %v15056_v26  ;;  %6978 = vmatprep.subr.mxu1 %v9844_v61  ;;  %v5558_v31 = vpop.f32.mrf.mxu1  ;;  %v9700_v27 = vadd.f32 -1.0, %v11736_v13  ;;  %v5960_v41 = vmul.f32 1.442695, %v5913_v32  ;;  %v6222_v2 = vld [vmem:[#allocation4 + $0xd0] sm:$0xff]  ;;  %11749 = vpow2.f32 %v5956_v28  ;;  %v15071_v14 = vsel %vm6090_vm14, %v6092_v47, %v6095_v51 }
 0xd1b   : > { %v5915_v63 = vmin.f32 %v15049_v52, 0.0  ;;  %v15064_v33 = vadd.f32 %v5820_v8, %v14923_v40  ;;  %v5821_v19 = vmul.f32 %v5558_v31, %v14484_v21  ;;  %6979 = vmatpush1.msra.mxu1 %v9843_v12  ;;  %v6099_v46 = vrot.slane %v15044_v7, 7  ;;  %9789 = vmatprep.mubr.msk.f32.mxu0 %vm1359_vm2, %v6222_v2  ;;  %v6221_v32 = vld [vmem:[#allocation4 + $0xb0] sm:$0xff]  ;;  %v9839_v12 = vld [vmem:[%s17464_s26 + $0x490] sm:$0xff] }
 0xd1c   : > { %6980 = vmatprep.subr.mxu1 %v9842_v20  ;;  %v5562_v40 = vpop.f32.mrf.mxu1  ;;  %v15079_v21 = vsel %vm5873_vm12, %v14910_v45, %v9700_v27  ;;  %v11740_v61 = vpop.eup %11739  ;;  %v5962_v13 = vmul.f32 1.442695, %v5914_v10  ;;  %9790 = vmatmul.mubr.msk.f32.vlgmr.msra.gmra.mxu0 %vm1359_vm2, %v6221_v32  ;;  %vm5874_vm13 = vcmp.gt.f32.partialorder %v14942_v23, 0.0  ;;  %11751 = vpow2.f32 %v5958_v15  ;;  %v9838_v10 = vld [vmem:[%s17464_s26 + $0x488] sm:$0xff]  ;;  %v17615_v20 = vld [vmem:[#allocation143_spill] sm:$0xff] }
 0xd1d   : > { %17494 = vst [vmem:[#allocation123_spill] sm:$0xff] %v15079_v21  ;;  %v5916_v47 = vmin.f32 %v15064_v33, 0.0  ;;  %v15084_v28 = vadd.f32 %v5821_v19, %v14927_v39  ;;  %v5822_v38 = vmul.f32 %v5562_v40, %v14477_v56  ;;  %6665 = vmatprep.mubr.f32.mxu1 %v15079_v21  ;;  %v15097_v45 = vsel %vm6090_vm14, %v6091_v58, %v6093_v17  ;;  %v9837_v58 = vld [vmem:[%s17464_s26 + $0x480] sm:$0xff] }
 0xd1e   : > { %v6097_v39 = vrot.slane %v15056_v26, 7  ;;  %6981 = vmatpush1.msra.mxu1 %v9841_v6  ;;  %v9699_v8 = vadd.f32 -1.0, %v11738_v48  ;;  %v5564_v56 = vpop.f32.mrf.mxu1  ;;  %9791 = vmatprep.mubr.msk.f32.mxu0 %vm1360_vm4, %v15071_v14  ;;  %11753 = vpow2.f32 %v5960_v41  ;;  %v5964_v15 = vmul.f32 1.442695, %v5915_v63  ;;  %v11742_v6 = vpop.eup %11741 }
 0xd1f   : > { %v5917_v31 = vmin.f32 %v15084_v28, 0.0  ;;  %v15106_v27 = vadd.f32 %v5822_v38, %v14931_v44  ;;  %6982 = vmatprep.subr.mxu1 %v9840_v25  ;;  %v15112_v48 = vsel %vm6090_vm14, %v6095_v51, %v6099_v46  ;;  %v5823_v41 = vmul.f32 %v5564_v56, %v14470_v54  ;;  %v9836_v44 = vld [vmem:[%s17464_s26 + $0x478] sm:$0xff]  ;;  %v11744_v54 = vpop.eup %11743 }
 0xd20   : > { %v15117_v19 = vsel %vm5872_vm1, %v14894_v60, %v9699_v8  ;;  %6983 = vmatpush1.msra.mxu1 %v9839_v12  ;;  %v5568_v63 = vpop.f32.mrf.mxu1  ;;  %v9702_v2 = vadd.f32 -1.0, %v11740_v61  ;;  %vm5877_vm10 = vcmp.gt.f32.partialorder %v14977_v37, 0.0  ;;  %11755 = vpow2.f32 %v5962_v13  ;;  %v9835_v60 = vld [vmem:[%s17464_s26 + $0x470] sm:$0xff]  ;;  %9792 = vmatmul.mubr.msk.f32.gmra.mxu0 %vm1360_vm4, %v15097_v45  ;;  %v9834_v12 = vld [vmem:[%s17464_s26 + $0x468] sm:$0xff]  ;;  %v9833_v8 = vld [vmem:[%s17464_s26 + $0x460] sm:$0xff] }
 0xd21   : > { %17496 = vst [vmem:[#allocation140_spill] sm:$0xff] %v15117_v19  ;;  %v5966_v32 = vmul.f32 1.442695, %v5916_v47  ;;  %v5918_v51 = vmin.f32 %v15106_v27, 0.0  ;;  %v6103_v40 = vrot.slane %v15079_v21, 7  ;;  %6666 = vmatmul.mubr.f32.gmra.mxu1 %v15117_v19  ;;  %6984 = vmatprep.subr.mxu1 %v9838_v10  ;;  %v15127_v61 = vadd.f32 %v5823_v41, %v14936_v53  ;;  %v11746_v56 = vpop.eup %11745 }
 0xd22   : > { %v5968_v25 = vmul.f32 1.442695, %v5917_v31  ;;  %v5824_v38 = vmul.f32 %v5568_v63, %v14463_v57  ;;  %v15133_v13 = vsel %vm5875_vm0, %v14960_v62, %v9702_v2  ;;  %6985 = vmatpush1.msra.mxu1 %v9837_v58  ;;  %v5570_v47 = vpop.f32.mrf.mxu1  ;;  %11757 = vpow2.f32 %v5964_v15  ;;  %9793 = vmatprep.mubr.msk.f32.mxu0 %vm1361_vm3, %v15112_v48  ;;  %v9832_v63 = vld [vmem:[%s17464_s26 + $0x458] sm:$0xff]  ;;  %v5791_v2 = vpop.f32.mrf.mxu0 }
 0xd23   : > { %17497 = vst [vmem:[#allocation116_spill] sm:$0xff] %v15133_v13  ;;  %v15144_v57 = vsel %vm6090_vm14, %v6093_v17, %v6097_v39  ;;  %v5970_v53 = vmul.f32 1.442695, %v5918_v51  ;;  %v17072_v62 = vrot.slane %v15117_v19, 7  ;;  %6671 = vmatprep.mubr.f32.mxu1 %v15133_v13  ;;  %6986 = vmatprep.subr.mxu1 %v9836_v44  ;;  %v5919_v10 = vmin.f32 %v15127_v61, 0.0 }
 0xd24   : > { %v15151_v15 = vadd.f32 %v5824_v38, %v14940_v11  ;;  %v9701_v31 = vadd.f32 -1.0, %v11742_v6  ;;  %v5825_v58 = vmul.f32 %v5570_v47, %v14456_v59  ;;  %6987 = vmatpush1.msra.mxu1 %v9835_v60  ;;  %v5574_v41 = vpop.f32.mrf.mxu1  ;;  %11759 = vpow2.f32 %v5966_v32  ;;  %v9831_v6 = vld [vmem:[%s17464_s26 + $0x450] sm:$0xff]  ;;  %9794 = vmatmul.mubr.msk.f32.gmra.mxu0 %vm1361_vm3, %v15144_v57 }
 0xd25   : > { %v15161_v44 = vsel %vm6090_vm14, %v6099_v46, %v6103_v40  ;;  %v17073_v11 = vrot.slane %v15133_v13, 7  ;;  %6988 = vmatprep.subr.mxu1 %v9834_v12  ;;  %v5826_v59 = vmul.f32 %v5574_v41, %v14449_v29  ;;  %11761 = vpow2.f32 %v5968_v25  ;;  %v9830_v29 = vld [vmem:[%s17464_s26 + $0x448] sm:$0xff]  ;;  %v15179_v38 = vpop.eup %11747 }
 0xd26   : > { %v5920_v51 = vmin.f32 %v15151_v15, 0.0  ;;  %v15170_v60 = vsel %vm5874_vm13, %v14942_v23, %v9701_v31  ;;  %v15173_v32 = vadd.f32 %v5825_v58, %v14947_v35  ;;  %6989 = vmatpush1.msra.mxu1 %v9833_v8  ;;  %v5576_v46 = vpop.f32.mrf.mxu1  ;;  %v15186_v23 = vsel %vm6090_vm14, %v6097_v39, %v17072_v62  ;;  %9795 = vmatprep.mubr.msk.f32.mxu0 %vm1362_vm5, %v15161_v44 }
 0xd27   : > { %17499 = vst [vmem:[#allocation122_spill] sm:$0xff] %v15170_v60  ;;  %v5972_v25 = vmul.f32 1.442695, %v5919_v10  ;;  %6672 = vmatmul.mubr.f32.gmra.mxu1 %v15170_v60  ;;  %v15190_v35 = vadd.f32 %v5826_v59, %v14952_v18  ;;  %v9704_v47 = vadd.f32 -1.0, %v11746_v56  ;;  %6990 = vmatprep.subr.mxu1 %v9832_v63  ;;  %11763 = vpow2.f32 %v5970_v53  ;;  %v9829_v10 = vld [vmem:[%s17464_s26 + $0x440] sm:$0xff]  ;;  %v11750_v41 = vpop.eup %11749  ;;  %v5793_v18 = vpop.f32.mrf.mxu0 }
 0xd28   : > { %v5974_v12 = vmul.f32 1.442695, %v5920_v51  ;;  %v5921_v31 = vmin.f32 %v15173_v32, 0.0  ;;  %6991 = vmatpush1.msra.mxu1 %v9831_v6  ;;  %v5580_v39 = vpop.f32.mrf.mxu1  ;;  %v15201_v56 = vsel %vm6090_vm14, %v6103_v40, %v17073_v11  ;;  %v9703_v59 = vadd.f32 -1.0, %v11744_v54  ;;  %v9828_v6 = vld [vmem:[%s17464_s26 + $0x438] sm:$0xff]  ;;  %9796 = vmatmul.mubr.msk.f32.gmra.mxu0 %vm1362_vm5, %v15186_v23 }
 0xd29   : > { %v5922_v53 = vmin.f32 %v15190_v35, 0.0  ;;  %v15207_v63 = vsel %vm5877_vm10, %v14977_v37, %v9704_v47  ;;  %6992 = vmatprep.subr.mxu1 %v9830_v29  ;;  %vm5876_vm12 = vcmp.gt.f32.partialorder %v14965_v36, 0.0  ;;  %v5827_v40 = vmul.f32 %v5576_v46, %v14443_v24  ;;  %v9827_v37 = vld [vmem:[%s17464_s26 + $0x430] sm:$0xff]  ;;  %v15218_v47 = vpop.eup %11751  ;;  %9797 = vmatprep.mubr.msk.f32.mxu0 %vm1363_vm6, %v15201_v56  ;;  %v9826_v46 = vld [vmem:[%s17464_s26 + $0x428] sm:$0xff] }
 0xd2a   : > { %17501 = vst [vmem:[#allocation139_spill] sm:$0xff] %v15207_v63  ;;  %v5976_v51 = vmul.f32 1.442695, %v5921_v31  ;;  %6677 = vmatprep.mubr.f32.mxu1 %v15207_v63  ;;  %v5582_v11 = vpop.f32.mrf.mxu1  ;;  %v5792_v54 = vadd.f32 %v5791_v2, %v14845_v43  ;;  %11765 = vpow2.f32 %v5972_v25  ;;  %v15222_v29 = vsel %vm5876_vm12, %v14965_v36, %v9703_v59  ;;  %v17503_v31 = vld [vmem:[#allocation150_spill] sm:$0xff]  ;;  %6993 = vmatpush1.msra.mxu1 %v9829_v10  ;;  %v9825_v59 = vld [vmem:[%s17464_s26 + $0x420] sm:$0xff] }
 0xd2b   : > { %17502 = vst [vmem:[#allocation115_spill] sm:$0xff] %v15222_v29  ;;  %v5828_v62 = vmul.f32 %v5580_v39, %v17503_v31  ;;  %v11754_v8 = vpop.eup %11753  ;;  %v15230_v21 = vadd.f32 %v5793_v18, %v14848_v5  ;;  %11767 = vpow2.f32 %v5974_v12  ;;  %v17505_v2 = vrot.slane %v15170_v60, 7  ;;  %6678 = vmatmul.mubr.f32.gmra.mxu1 %v15222_v29  ;;  %6994 = vmatprep.subr.mxu1 %v9828_v6 }
 0xd2c   : > { %v17506_v25 = vrot.slane %v15117_v19, 7  ;;  %v15241_v39 = vadd.f32 %v5827_v40, %v14955_v1  ;;  %v5586_v10 = vpop.f32.mrf.mxu1  ;;  %11769 = vpow2.f32 %v5976_v51  ;;  %v5978_v18 = vmul.f32 1.442695, %v5922_v53  ;;  %6995 = vmatpush1.msra.mxu1 %v9827_v37  ;;  %v9824_v19 = vld [vmem:[%s17464_s26 + $0x418] sm:$0xff]  ;;  %v17510_v37 = vld [vmem:[#allocation149_spill] sm:$0xff] }
 0xd2d   : > { %v15245_v12 = vadd.f32 %v5828_v62, %v14958_v49  ;;  %v9706_v31 = vadd.f32 -1.0, %v11750_v41  ;;  %v15248_v26 = vpop.eup %11755  ;;  %v17508_v1 = vrot.slane %v15133_v13, 7  ;;  %v6109_v51 = vrot.slane %v15222_v29, 7  ;;  %6996 = vmatprep.subr.mxu1 %v9826_v46  ;;  %v9823_v49 = vld [vmem:[%s17464_s26 + $0x410] sm:$0xff]  ;;  %v9822_v46 = vld [vmem:[%s17464_s26 + $0x408] sm:$0xff] }
 0xd2e   : > { %v15237_v36 = vsel %vm6090_vm14, %v17506_v25, %v17505_v2  ;;  %v5797_v2 = vpop.f32.mrf.mxu0  ;;  %v17507_v25 = vrot.slane %v15207_v63, 7  ;;  %v5923_v53 = vmin.f32 %v15241_v39, 0.0  ;;  %vm5879_vm1 = vcmp.gt.f32.partialorder %v14992_v22, 0.0  ;;  %6997 = vmatpush1.msra.mxu1 %v9825_v59 }
 0xd2f   : > { %9798 = vmatmul.mubr.msk.f32.gmra.mxu0 %vm1363_vm6, %v15237_v36  ;;  %v5924_v62 = vmin.f32 %v15245_v12, 0.0  ;;  %v15266_v41 = vsel %vm5879_vm1, %v14992_v22, %v9706_v31  ;;  %v9705_v40 = vadd.f32 -1.0, %v15179_v38  ;;  %v15274_v13 = vpop.eup %11757  ;;  %vm5878_vm0 = vcmp.gt.f32.partialorder %v14979_v30, 0.0  ;;  %v17512_v22 = vld [vmem:[#allocation148_spill] sm:$0xff]  ;;  %6998 = vmatprep.subr.mxu1 %v9824_v19 }
 0xd30   : > { %v15255_v6 = vsel %vm6090_vm14, %v17508_v1, %v17507_v25  ;;  %17509 = vst [vmem:[#allocation121_spill] sm:$0xff] %v15266_v41  ;;  %v5829_v25 = vmul.f32 %v5582_v11, %v17510_v37  ;;  %v5588_v1 = vpop.f32.mrf.mxu1  ;;  %v5980_v7 = vmul.f32 1.442695, %v5923_v53  ;;  %v6115_v3 = vrot.slane %v15266_v41, 7  ;;  %6683 = vmatprep.mubr.f32.mxu1 %v15266_v41  ;;  %v9821_v11 = vld [vmem:[%s17464_s26 + $0x400] sm:$0xff]  ;;  %6999 = vmatpush1.msra.mxu1 %v9823_v49  ;;  %v9884_v53 = vld [vmem:[%s17464_s26 + $0x5f8] sm:$0xff] }
 0xd31   : > { %9799 = vmatprep.mubr.msk.f32.mxu0 %vm1364_vm7, %v15255_v6  ;;  %v5830_v38 = vmul.f32 %v5586_v10, %v17512_v22  ;;  %v5798_v59 = vadd.f32 %v5797_v2, %v14845_v43  ;;  %11771 = vpow2.f32 %v5978_v18  ;;  %v15283_v31 = vsel %vm5878_vm0, %v14979_v30, %v9705_v40  ;;  %v15289_v4 = vpop.eup %11759  ;;  %7000 = vmatprep.subr.mxu1 %v9822_v46 }
 0xd32   : > { %17513 = vst [vmem:[#allocation138_spill] sm:$0xff] %v15283_v31  ;;  %v15286_v37 = vadd.f32 %v5829_v25, %v14963_v16  ;;  %v17514_v41 = vrot.slane %v15170_v60, 7  ;;  %v5982_v19 = vmul.f32 1.442695, %v5924_v62  ;;  %v17083_v43 = vrot.slane %v15283_v31, 7  ;;  %6684 = vmatmul.mubr.f32.gmra.mxu1 %v15283_v31  ;;  %v9883_v16 = vld [vmem:[%s17464_s26 + $0x5f0] sm:$0xff]  ;;  %v15301_v18 = vpop.eup %11761 }
 0xd33   : > { %v15298_v30 = vadd.f32 %v5830_v38, %v5792_v54  ;;  %v17515_v2 = vrot.slane %v15207_v63, 7  ;;  %vm5881_vm13 = vcmp.gt.f32.partialorder %v15019_v55, 0.0  ;;  %v9708_v62 = vadd.f32 -1.0, %v11754_v8  ;;  %7001 = vmatpush1.msra.mxu1 %v9821_v11  ;;  %v9882_v54 = vld [vmem:[%s17464_s26 + $0x5e8] sm:$0xff] }
 0xd34   : > { %v15294_v10 = vsel %vm6090_vm14, %v17514_v41, %v6109_v51  ;;  %v5925_v40 = vmin.f32 %v15286_v37, 0.0  ;;  %v5592_v41 = vpop.f32.mrf.mxu1  ;;  %11773 = vpow2.f32 %v5980_v7  ;;  %v15317_v25 = vsel %vm6090_vm14, %v6109_v51, %v17083_v43  ;;  %7002 = vmatprep.subr.mxu1 %v9884_v53  ;;  %v15324_v38 = vpop.eup %11763  ;;  %v17518_v51 = vld [vmem:[#allocation147_spill] sm:$0xff]  ;;  %v17614_v8 = vld [vmem:[#allocation144_spill] sm:$0xff] }
 0xd35   : > { %v15306_v49 = vsel %vm6090_vm14, %v17515_v2, %v6115_v3  ;;  %9800 = vmatmul.mubr.msk.f32.gmra.mxu0 %vm1364_vm7, %v15294_v10  ;;  %v5926_v46 = vmin.f32 %v15298_v30, 0.0  ;;  %v9707_v22 = vadd.f32 -1.0, %v15218_v47  ;;  %v15327_v7 = vsel %vm5881_vm13, %v15019_v55, %v9708_v62  ;;  %7003 = vmatpush2.msra.mxu1 %v9883_v16  ;;  %v9881_v43 = vld [vmem:[%s17464_s26 + $0x5e0] sm:$0xff]  ;;  %v5799_v47 = vpop.f32.mrf.mxu0  ;;  %v9880_v55 = vld [vmem:[%s17464_s26 + $0x5d8] sm:$0xff] }
 0xd36   : > { %9801 = vmatprep.mubr.msk.f32.mxu0 %vm1365_vm8, %v15306_v49  ;;  %v5984_v11 = vmul.f32 1.442695, %v5925_v40  ;;  %17517 = vst [vmem:[#allocation113_spill] sm:$0xff] %v15327_v7  ;;  %vm5880_vm10 = vcmp.gt.f32.partialorder %v15003_v9, 0.0  ;;  %v5831_v2 = vmul.f32 %v5588_v1, %v17518_v51  ;;  %v6119_v63 = vrot.slane %v15327_v7, 7  ;;  %6689 = vmatprep.mubr.f32.mxu1 %v15327_v7  ;;  %v17520_v40 = vld [vmem:[#allocation146_spill] sm:$0xff]  ;;  %v5594_v62 = vpop.f32.mrf.mxu1 }
 0xd37   : > { %v5986_v53 = vmul.f32 1.442695, %v5926_v46  ;;  %v15335_v60 = vsel %vm5880_vm10, %v15003_v9, %v9707_v22  ;;  %v5832_v50 = vmul.f32 %v5592_v41, %v17520_v40  ;;  %7004 = vmatprep.subr.mxu1 %v9882_v54  ;;  %11775 = vpow2.f32 %v5982_v19  ;;  %v9879_v9 = vld [vmem:[%s17464_s26 + $0x5d0] sm:$0xff]  ;;  %v11766_v46 = vpop.eup %11765 }
 0xd38   : > { %17519 = vst [vmem:[#allocation120_spill] sm:$0xff] %v15335_v60  ;;  %v6117_v1 = vrot.slane %v15335_v60, 7  ;;  %6690 = vmatmul.mubr.f32.gmra.mxu1 %v15335_v60  ;;  %v15342_v16 = vadd.f32 %v5831_v2, %v15230_v21  ;;  %11777 = vpow2.f32 %v5984_v11  ;;  %v15349_v41 = vsel %vm6090_vm14, %v6115_v3, %v6119_v63  ;;  %v9878_v21 = vld [vmem:[%s17464_s26 + $0x5c8] sm:$0xff]  ;;  %v15355_v22 = vpop.eup %11767 }
 0xd39   : > { %9802 = vmatmul.mubr.msk.f32.gmra.mxu0 %vm1365_vm8, %v15317_v25  ;;  %v15351_v19 = vadd.f32 %v5832_v50, %v5798_v59  ;;  %v9710_v54 = vadd.f32 -1.0, %v15274_v13  ;;  %7005 = vmatpush2.msra.mxu1 %v9881_v43  ;;  %v5800_v51 = vadd.f32 %v5799_v47, %v14848_v5  ;;  %11779 = vpow2.f32 %v5986_v53  ;;  %v9877_v50 = vld [vmem:[%s17464_s26 + $0x5c0] sm:$0xff]  ;;  %v15364_v13 = vpop.eup %11769  ;;  %v17523_v11 = vld [vmem:[#allocation145_spill] sm:$0xff]  ;;  %v9876_v53 = vld [vmem:[%s17464_s26 + $0x5b8] sm:$0xff] }
 0xd3a   : > { %v5927_v2 = vmin.f32 %v15342_v16, 0.0  ;;  %vm5883_vm12 = vcmp.gt.f32.partialorder %v15049_v52, 0.0  ;;  %7006 = vmatprep.subr.mxu1 %v9880_v55  ;;  %9803 = vmatprep.mubr.msk.f32.mxu0 %vm1366_vm9, %v15349_v41  ;;  %v9709_v5 = vadd.f32 -1.0, %v15248_v26  ;;  %v5833_v47 = vmul.f32 %v5594_v62, %v17523_v11 }
 0xd3b   : > { %v5928_v59 = vmin.f32 %v15351_v19, 0.0  ;;  %v15368_v43 = vsel %vm5883_vm12, %v15049_v52, %v9710_v54  ;;  %7007 = vmatpush2.msra.mxu1 %v9879_v9  ;;  %v17524_v40 = vrot.slane %v15283_v31, 7  ;;  %vm5882_vm1 = vcmp.gt.f32.partialorder %v15038_v0, 0.0  ;;  %v9875_v52 = vld [vmem:[%s17464_s26 + $0x5b0] sm:$0xff] }
 0xd3c   : > { %17522 = vst [vmem:[#allocation137_spill] sm:$0xff] %v15368_v43  ;;  %v5988_v60 = vmul.f32 1.442695, %v5927_v2  ;;  %v6123_v7 = vrot.slane %v15368_v43, 7  ;;  %6695 = vmatprep.mubr.f32.mxu1 %v15368_v43  ;;  %7008 = vmatprep.subr.mxu1 %v9878_v21  ;;  %v15383_v62 = vsel %vm5882_vm1, %v15038_v0, %v9709_v5  ;;  %v15385_v9 = vadd.f32 %v5833_v47, %v5800_v51  ;;  %v9874_v2 = vld [vmem:[%s17464_s26 + $0x5a8] sm:$0xff]  ;;  %v9873_v0 = vld [vmem:[%s17464_s26 + $0x5a0] sm:$0xff] }
 0xd3d   : > { %v15376_v55 = vsel %vm6090_vm14, %v17524_v40, %v6117_v1  ;;  %v5990_v26 = vmul.f32 1.442695, %v5928_v59  ;;  %17525 = vst [vmem:[#allocation136_spill] sm:$0xff] %v15383_v62  ;;  %v9712_v54 = vadd.f32 -1.0, %v15301_v18  ;;  %7009 = vmatpush2.msra.mxu1 %v9877_v50  ;;  %v6121_v21 = vrot.slane %v15383_v62, 7 }
 0xd3e   : > { %9804 = vmatmul.mubr.msk.f32.gmra.mxu0 %vm1366_vm9, %v15376_v55  ;;  %11781 = vpow2.f32 %v5988_v60  ;;  %v15393_v11 = vsel %vm6090_vm14, %v6119_v63, %v6123_v7  ;;  %6696 = vmatmul.mubr.f32.gmra.mxu1 %v15383_v62  ;;  %vm5885_vm0 = vcmp.gt.f32.partialorder %v15084_v28, 0.0  ;;  %v11772_v18 = vpop.eup %11771  ;;  %v5929_v51 = vmin.f32 %v15385_v9, 0.0  ;;  %v9872_v63 = vld [vmem:[%s17464_s26 + $0x598] sm:$0xff] }
 0xd3f   : > { %7010 = vmatprep.subr.mxu1 %v9876_v53  ;;  %v15401_v59 = vsel %vm5885_vm0, %v15084_v28, %v9712_v54  ;;  %9805 = vmatprep.mubr.msk.f32.mxu0 %vm1367_vm11, %v15393_v11  ;;  %v15408_v50 = vsel %vm6090_vm14, %v6117_v1, %v6121_v21  ;;  %v9711_v47 = vadd.f32 -1.0, %v15289_v4  ;;  %11783 = vpow2.f32 %v5990_v26  ;;  %v9871_v1 = vld [vmem:[%s17464_s26 + $0x590] sm:$0xff] }
 0xd40   : > { %17526 = vst [vmem:[#allocation111_spill] sm:$0xff] %v15401_v59  ;;  %7011 = vmatpush2.msra.mxu1 %v9875_v52  ;;  %v6127_v5 = vrot.slane %v15401_v59, 7  ;;  %6701 = vmatprep.mubr.f32.mxu1 %v15401_v59  ;;  %v5992_v28 = vmul.f32 1.442695, %v5929_v51  ;;  %vm5884_vm13 = vcmp.gt.f32.partialorder %v15064_v33, 0.0  ;;  %v9714_v53 = vadd.f32 -1.0, %v11766_v46 }
 0xd41   : > { %7012 = vmatprep.subr.mxu1 %v9874_v2  ;;  %v11774_v40 = vpop.eup %11773  ;;  %v15422_v54 = vsel %vm5884_vm13, %v15064_v33, %v9711_v47  ;;  %vm5887_vm10 = vcmp.gt.f32.partialorder %v15127_v61, 0.0  ;;  %v9713_v4 = vadd.f32 -1.0, %v15324_v38  ;;  %v9870_v46 = vld [vmem:[%s17464_s26 + $0x588] sm:$0xff]  ;;  %vm5886_vm12 = vcmp.gt.f32.partialorder %v15106_v27, 0.0  ;;  %v17530_v33 = vld [vmem:[#allocation83_spill] sm:$0xff] }
 0xd42   : > { %9806 = vmatmul.mubr.msk.f32.gmra.mxu0 %vm1367_vm11, %v15408_v50  ;;  %7013 = vmatpush2.msra.mxu1 %v9873_v0  ;;  %v15419_v52 = vsel %vm6090_vm14, %v6123_v7, %v6127_v5  ;;  %17528 = vst [vmem:[#allocation117_spill] sm:$0xff] %v15422_v54  ;;  %11785 = vpow2.f32 %v5992_v28  ;;  %v6125_v26 = vrot.slane %v15422_v54, 7  ;;  %v15430_v2 = vsel %vm5887_vm10, %v15127_v61, %v9714_v53  ;;  %v9869_v7 = vld [vmem:[%s17464_s26 + $0x580] sm:$0xff]  ;;  %v9868_v61 = vld [vmem:[%s17464_s26 + $0x578] sm:$0xff]  ;;  %v9867_v53 = vld [vmem:[%s17464_s26 + $0x570] sm:$0xff] }
 0xd43   : > { %7014 = vmatprep.subr.mxu1 %v9872_v63  ;;  %6702 = vmatmul.mubr.f32.gmra.mxu1 %v15422_v54  ;;  %17529 = vst [vmem:[#allocation135_spill] sm:$0xff] %v15430_v2  ;;  %vm17531_vm1 = vcmp.eq.s32.totalorder %v17530_v33, 1  ;;  %v6131_v38 = vrot.slane %v15430_v2, 7  ;;  %v15440_v0 = vsel %vm5886_vm12, %v15106_v27, %v9713_v4  ;;  %v9716_v51 = vadd.f32 -1.0, %v15364_v13  ;;  %v9866_v13 = vld [vmem:[%s17464_s26 + $0x568] sm:$0xff] }
 0xd44   : > { %9807 = vmatprep.mubr.msk.f32.mxu0 %vm17531_vm1, %v15419_v52  ;;  %6707 = vmatprep.mubr.f32.mxu1 %v15430_v2  ;;  %17532 = vst [vmem:[#allocation109_spill] sm:$0xff] %v15440_v0  ;;  %v11776_v63 = vpop.eup %11775  ;;  %v15445_v47 = vsel %vm6090_vm14, %v6121_v21, %v6125_v26  ;;  %v6129_v28 = vrot.slane %v15440_v0, 7  ;;  %vm5889_vm0 = vcmp.gt.f32.partialorder %v15173_v32, 0.0  ;;  %v9715_v27 = vadd.f32 -1.0, %v15355_v22  ;;  %vm17534_vm13 = vmmov %vm17531_vm1 }
 0xd45   : > { %7015 = vmatpush2.msra.mxu1 %v9871_v1  ;;  %v11778_v2 = vpop.eup %11777  ;;  %v15451_v54 = vsel %vm5889_vm0, %v15173_v32, %v9716_v51  ;;  %vm5888_vm10 = vcmp.gt.f32.partialorder %v15151_v15, 0.0  ;;  %v9718_v4 = vadd.f32 -1.0, %v11774_v40  ;;  %v9865_v32 = vld [vmem:[%s17464_s26 + $0x560] sm:$0xff]  ;;  %v15463_v22 = vsel %vm6090_vm14, %v6127_v5, %v6131_v38  ;;  %v9864_v51 = vld [vmem:[%s17464_s26 + $0x558] sm:$0xff] }
 0xd46   : > { %7016 = vmatprep.subr.mxu1 %v9870_v46  ;;  %17533 = vst [vmem:[#allocation114_spill] sm:$0xff] %v15451_v54  ;;  %9808 = vmatmul.mubr.msk.f32.gmra.mxu0 %vm17534_vm13, %v15445_v47  ;;  %v11780_v21 = vpop.eup %11779  ;;  %v6135_v1 = vrot.slane %v15451_v54, 7  ;;  %v15467_v46 = vsel %vm5888_vm10, %v15151_v15, %v9715_v27  ;;  %vm5891_vm12 = vcmp.gt.f32.partialorder %v15241_v39, 0.0  ;;  %vm5890_vm1 = vcmp.gt.f32.partialorder %v15190_v35, 0.0  ;;  %v17537_v15 = vld [vmem:[#allocation86_spill] sm:$0xff] }
 0xd47   : > { %7017 = vmatpush2.msra.mxu1 %v9869_v7  ;;  %17535 = vst [vmem:[#allocation133_spill] sm:$0xff] %v15467_v46  ;;  %v9717_v7 = vadd.f32 -1.0, %v11772_v18  ;;  %v6133_v40 = vrot.slane %v15467_v46, 7  ;;  %v15476_v5 = vsel %vm5891_vm12, %v15241_v39, %v9718_v4  ;;  %vm17538_vm0 = vcmp.eq.s32.totalorder %v17537_v15, 1  ;;  %v9862_v39 = vld [vmem:[%s17464_s26 + $0x548] sm:$0xff] }
 0xd48   : > { %6708 = vmatmul.mubr.f32.gmra.mxu1 %v15440_v0  ;;  %7018 = vmatprep.subr.mxu1 %v9868_v61  ;;  %v15472_v0 = vsel %vm6090_vm14, %v6125_v26, %v6129_v28  ;;  %17536 = vst [vmem:[#allocation108_spill] sm:$0xff] %v15476_v5  ;;  %v9863_v61 = vld [vmem:[%s17464_s26 + $0x550] sm:$0xff]  ;;  %v9720_v26 = vadd.f32 -1.0, %v11778_v2  ;;  %vm17540_vm13 = vmmov %vm17538_vm0  ;;  %v15491_v27 = vsel %vm6090_vm14, %v6131_v38, %v6135_v1  ;;  %v6139_v2 = vrot.slane %v15476_v5, 7  ;;  %v7163_v15 = vld [vmem:[%s17608_s2] sm:$0x3] }
 0xd49   : > { %6713 = vmatprep.mubr.f32.mxu1 %v15451_v54  ;;  %7019 = vmatpush2.msra.mxu1 %v9867_v53  ;;  %v15484_v18 = vsel %vm5890_vm1, %v15190_v35, %v9717_v7  ;;  %v15496_v35 = vsel %vm6090_vm14, %v6129_v28, %v6133_v40  ;;  %vm5893_vm10 = vcmp.gt.f32.partialorder %v15286_v37, 0.0  ;;  %v9719_v4 = vadd.f32 -1.0, %v11776_v63  ;;  %v17542_v28 = vld [vmem:[#allocation85_spill] sm:$0xff] }
 0xd4a   : > { %9809 = vmatprep.mubr.msk.f32.mxu0 %vm17538_vm0, %v15463_v22  ;;  %7020 = vmatprep.subr.mxu1 %v9866_v13  ;;  %17539 = vst [vmem:[#allocation112_spill] sm:$0xff] %v15484_v18  ;;  %v9861_v13 = vld [vmem:[%s17464_s26 + $0x540] sm:$0xff]  ;;  %v6137_v38 = vrot.slane %v15484_v18, 7  ;;  %v15504_v7 = vsel %vm5893_vm10, %v15286_v37, %v9720_v26  ;;  %vm5892_vm12 = vcmp.gt.f32.partialorder %v15245_v12, 0.0  ;;  %vm17543_vm1 = vcmp.eq.s32.totalorder %v17542_v28, 1 }
 0xd4b   : > { %9810 = vmatmul.mubr.msk.f32.gmra.mxu0 %vm17540_vm13, %v15472_v0  ;;  %7021 = vmatpush2.msra.mxu1 %v9865_v32  ;;  %v11782_v53 = vpop.eup %11781  ;;  %v9860_v32 = vld [vmem:[%s17464_s26 + $0x538] sm:$0xff]  ;;  %17541 = vst [vmem:[#allocation131_spill] sm:$0xff] %v15504_v7  ;;  %v15512_v63 = vsel %vm5892_vm12, %v15245_v12, %v9719_v4  ;;  %vm5895_vm0 = vcmp.gt.f32.partialorder %v15342_v16, 0.0  ;;  %vm17545_vm13 = vmmov %vm17543_vm1  ;;  %v9721_v37 = vadd.f32 -1.0, %v11780_v21  ;;  %v15525_v12 = vsel %vm6090_vm14, %v6135_v1, %v6139_v2 }
 0xd4c   : > { %6714 = vmatmul.mubr.f32.gmra.mxu1 %v15467_v46  ;;  %7022 = vmatprep.subr.mxu1 %v9864_v51  ;;  %v9722_v51 = vadd.f32 -1.0, %v11782_v53  ;;  %v11784_v46 = vpop.eup %11783  ;;  %17544 = vst [vmem:[#allocation134_spill] sm:$0xff] %v15512_v63  ;;  %v6143_v4 = vrot.slane %v15504_v7, 7  ;;  %v9856_v21 = vld [vmem:[%s17464_s26 + $0x518] sm:$0xff]  ;;  %vm5894_vm10 = vcmp.gt.f32.partialorder %v15298_v30, 0.0  ;;  %v15831_v29 = vrot.slane %v7163_v15, %v17614_v8 }
 0xd4d   : > { %6719 = vmatprep.mubr.f32.mxu1 %v15476_v5  ;;  %7023 = vmatpush2.msra.mxu1 %v9863_v61  ;;  %v9859_v5 = vld [vmem:[%s17464_s26 + $0x530] sm:$0xff]  ;;  %v9858_v61 = vld [vmem:[%s17464_s26 + $0x528] sm:$0xff]  ;;  %v15835_v34 = vrot.slane %v7163_v15, %v17615_v20 }
 0xd4e   : > { %9811 = vmatprep.mubr.msk.f32.mxu0 %vm17543_vm1, %v15491_v27  ;;  %7024 = vmatprep.subr.mxu1 %v9862_v39  ;;  %v15521_v26 = vsel %vm5895_vm0, %v15342_v16, %v9722_v51  ;;  %v9857_v39 = vld [vmem:[%s17464_s26 + $0x520] sm:$0xff]  ;;  %vm5897_vm1 = vcmp.gt.f32.partialorder %v15385_v9, 0.0 }
 0xd4f   : > { %9812 = vmatmul.mubr.msk.f32.gmra.mxu0 %vm17545_vm13, %v15496_v35  ;;  %7025 = vmatpush2.msra.mxu1 %v9861_v13  ;;  %17546 = vst [vmem:[#allocation107_spill] sm:$0xff] %v15521_v26  ;;  %v11786_v53 = vpop.eup %11785  ;;  %v15531_v13 = vsel %vm6090_vm14, %v6133_v40, %v6137_v38  ;;  %v17547_v16 = vld [vmem:[#allocation88_spill] sm:$0xff]  ;;  %v6147_v51 = vrot.slane %v15521_v26, 7  ;;  %v9723_v40 = vadd.f32 -1.0, %v11784_v46  ;;  %vm5896_vm13 = vcmp.gt.f32.partialorder %v15351_v19, 0.0 }
 0xd50   : > { %6720 = vmatmul.mubr.f32.gmra.mxu1 %v15484_v18  ;;  %7026 = vmatprep.subr.mxu1 %v9860_v32  ;;  %v6141_v18 = vrot.slane %v15512_v63, 7  ;;  %vm17548_vm12 = vcmp.eq.s32.totalorder %v17547_v16, 1  ;;  %v9724_v1 = vadd.f32 -1.0, %v11786_v53  ;;  %v9855_v32 = vld [vmem:[%s17464_s26 + $0x510] sm:$0xff]  ;;  %v9853_v53 = vld [vmem:[%s17464_s26 + $0x500] sm:$0xff] }
 0xd51   : > { %6725 = vmatprep.mubr.f32.mxu1 %v15504_v7  ;;  %7027 = vmatpush2.msra.mxu1 %v9859_v5  ;;  %v15541_v5 = vsel %vm5894_vm10, %v15298_v30, %v9721_v37  ;;  %vm17550_vm0 = vmmov %vm17548_vm12  ;;  %v9854_v7 = vld [vmem:[%s17464_s26 + $0x508] sm:$0xff]  ;;  %v15555_v30 = vsel %vm6090_vm14, %v6139_v2, %v6143_v4  ;;  %v6286_v46 = vld [vmem:[#allocation4 + $0xd0] sm:$0xfc]  ;;  %v15571_v2 = vsel %vm6090_vm14, %v6143_v4, %v6147_v51 }
 0xd52   : > { %9813 = vmatprep.mubr.msk.f32.mxu0 %vm17548_vm12, %v15525_v12  ;;  %7028 = vmatprep.subr.mxu1 %v9858_v61  ;;  %17549 = vst [vmem:[#allocation110_spill] sm:$0xff] %v15541_v5  ;;  %v15550_v61 = vsel %vm5897_vm1, %v15385_v9, %v9724_v1  ;;  %v6145_v9 = vrot.slane %v15541_v5, 7  ;;  %v17553_v1 = vld [vmem:[#allocation87_spill] sm:$0xff] }
 0xd53   : > { %9814 = vmatmul.mubr.msk.f32.gmra.mxu0 %vm17550_vm0, %v15531_v13  ;;  %7029 = vmatpush2.msra.mxu1 %v9857_v39  ;;  %17551 = vst [vmem:[#allocation129_spill] sm:$0xff] %v15550_v61  ;;  %v6151_v37 = vrot.slane %v15550_v61, 7  ;;  %v15560_v39 = vsel %vm5896_vm13, %v15351_v19, %v9723_v40  ;;  %vm17554_vm10 = vcmp.eq.s32.totalorder %v17553_v1, 1  ;;  %v6327_v19 = vrot.slane %v6286_v46, 2 }
 0xd54   : > { %6726 = vmatmul.mubr.f32.gmra.mxu1 %v15512_v63  ;;  %7030 = vmatprep.subr.mxu1 %v9856_v21  ;;  %17552 = vst [vmem:[#allocation132_spill] sm:$0xff] %v15560_v39  ;;  %v15563_v63 = vsel %vm6090_vm14, %v6137_v38, %v6141_v18  ;;  %v6149_v21 = vrot.slane %v15560_v39, 7  ;;  %vm17555_vm12 = vmmov %vm17554_vm10  ;;  %v6285_v38 = vld [vmem:[#allocation4 + $0xb0] sm:$0xfc]  ;;  %v15583_v4 = vsel %vm6090_vm14, %v6141_v18, %v6145_v9  ;;  %vm6323_vm0 = vcmask 1045504  }
 0xd55   : > { %6731 = vmatprep.mubr.f32.mxu1 %v15521_v26  ;;  %7031 = vmatpush2.msra.mxu1 %v9855_v32  ;;  %6220 = vst [vmem:[#allocation4 + $0xd8] sm:$0x1] %v6151_v37  ;;  %v17556_v32 = vld [vmem:[#allocation90_spill] sm:$0xff]  ;;  %v15586_v40 = vsel %vm6090_vm14, %v6147_v51, %v6151_v37  ;;  %v6332_v46 = vrot.slane %v15112_v48, 2  ;;  %v6325_v18 = vrot.slane %v15097_v45, 2  ;;  %v17561_v51 = vld [vmem:[#allocation92_spill] sm:$0xff] }
 0xd56   : > { %9815 = vmatprep.mubr.msk.f32.mxu0 %vm17554_vm10, %v15555_v30  ;;  %7032 = vmatprep.subr.mxu1 %v9854_v7  ;;  %6219 = vst [vmem:[#allocation4 + $0x70] sm:$0x1] %v6149_v21  ;;  %vm17557_vm1 = vcmp.eq.s32.totalorder %v17556_v32, 1  ;;  %v6328_v7 = vrot.slane %v15071_v14, 2  ;;  %v17559_v14 = vld [vmem:[#allocation89_spill] sm:$0xff]  ;;  %v15601_v37 = vsel %vm6090_vm14, %v6145_v9, %v6149_v21  ;;  %v6340_v9 = vrot.slane %v15201_v56, 2 }
 0xd57   : > { %9816 = vmatmul.mubr.msk.f32.gmra.mxu0 %vm17555_vm12, %v15563_v63  ;;  %7033 = vmatpush2.msra.mxu1 %v9853_v53  ;;  %v6324_v53 = vrot.slane %v6285_v38, 2  ;;  %vm17558_vm13 = vmmov %vm17557_vm1  ;;  %vm17560_vm10 = vcmp.eq.s32.totalorder %v17559_v14, 1  ;;  %vm17562_vm12 = vcmp.eq.s32.totalorder %v17561_v51, 1  ;;  %v6330_v38 = vrot.slane %v15144_v57, 2  ;;  %v17571_v56 = vld [vmem:[#allocation93_spill] sm:$0xff] }
 0xd58   : > { %6732 = vmatmul.mubr.f32.gmra.mxu1 %v15541_v5  ;;  %9817 = vmatprep.mubr.msk.f32.mxu0 %vm17557_vm1, %v15571_v2  ;;  %vm17563_vm1 = vmmov %vm17560_vm10  ;;  %v6333_v45 = vsel %vm6323_vm0, %v6328_v7, %v6332_v46 }
 0xd59   : > { %6737 = vmatprep.mubr.f32.mxu1 %v15550_v61  ;;  %v6329_v61 = vsel %vm6323_vm0, %v6327_v19, %v6328_v7  ;;  %v6326_v48 = vsel %vm6323_vm0, %v6324_v53, %v6325_v18  ;;  %v6336_v19 = vrot.slane %v15161_v44, 2  ;;  %v6331_v57 = vsel %vm6323_vm0, %v6325_v18, %v6330_v38  ;;  %v17568_v44 = vld [vmem:[#allocation94_spill] sm:$0xff] }
 0xd5a   : > { %v6338_v53 = vrot.slane %v15237_v36, 2  ;;  %v6342_v18 = vrot.slane %v15294_v10, 2 }
 0xd5b   : > { %9818 = vmatmul.mubr.msk.f32.gmra.mxu0 %vm17558_vm13, %v15583_v4  ;;  %vm17564_vm13 = vmmov %vm17562_vm12  ;;  %v6337_v21 = vsel %vm6323_vm0, %v6332_v46, %v6336_v19 }
 0xd5c   : > { %6738 = vmatmul.mubr.f32.gmra.mxu1 %v15560_v39  ;;  %9819 = vmatprep.mubr.msk.f32.mxu0 %vm17560_vm10, %v15586_v40  ;;  %v17565_v39 = vld [vmem:[#allocation91_spill] sm:$0xff] }
 0xd5d   : > { %9885 = vmatprep.mubr.msk.f32.mxu1 %vm17562_vm12, %v6329_v61  ;;  %vm17566_vm10 = vcmp.eq.s32.totalorder %v17565_v39, 1  ;;  %v6334_v61 = vrot.slane %v15186_v23, 2  ;;  %v6341_v23 = vsel %vm6323_vm0, %v6336_v19, %v6340_v9  ;;  %v6343_v19 = vsel %vm6323_vm0, %v6338_v53, %v6342_v18 }
 0xd5e   : > { %vm17567_vm12 = vmmov %vm17566_vm10 }
 0xd5f   : > { %9820 = vmatmul.mubr.msk.f32.gmra.mxu0 %vm17563_vm1, %v15601_v37  ;;  %vm17569_vm1 = vcmp.eq.s32.totalorder %v17568_v44, 1  ;;  %v6335_v7 = vsel %vm6323_vm0, %v6330_v38, %v6334_v61  ;;  %v6339_v46 = vsel %vm6323_vm0, %v6334_v61, %v6338_v53  ;;  %v6346_v38 = vrot.slane %v15317_v25, 2 }
 0xd60   : > { %9886 = vmatmul.mubr.msk.f32.vlgmr.msra.gmra.mxu1 %vm17564_vm13, %v6326_v48  ;;  %v6344_v48 = vrot.slane %v15255_v6, 2  ;;  %vm17570_vm13 = vmmov %vm17569_vm1  ;;  %v17574_v6 = vld [vmem:[#allocation96_spill] sm:$0xff]  ;;  %v6350_v61 = vrot.slane %v15376_v55, 2  ;;  %v6354_v53 = vrot.slane %v15408_v50, 2 }
 0xd61   : > { %9887 = vmatprep.mubr.msk.f32.mxu1 %vm17566_vm10, %v6333_v45  ;;  %vm17572_vm10 = vcmp.eq.s32.totalorder %v17571_v56, 1  ;;  %v6348_v45 = vrot.slane %v15306_v49, 2  ;;  %v17577_v49 = vld [vmem:[#allocation95_spill] sm:$0xff] }
 0xd62   : > { %v6345_v36 = vsel %vm6323_vm0, %v6340_v9, %v6344_v48  ;;  %v6347_v9 = vsel %vm6323_vm0, %v6342_v18, %v6346_v38  ;;  %v6355_v18 = vsel %vm6323_vm0, %v6350_v61, %v6354_v53 }
 0xd63   : > { %v6349_v10 = vsel %vm6323_vm0, %v6344_v48, %v6348_v45  ;;  %v6360_v48 = vrot.slane %v15419_v52, 2  ;;  %v17586_v52 = vld [vmem:[#allocation100_spill] sm:$0xff] }
 0xd64   : > { %9888 = vmatmul.mubr.msk.f32.gmra.mxu1 %vm17567_vm12, %v6331_v57  ;;  %vm17573_vm12 = vmmov %vm17572_vm10  ;;  %v6352_v57 = vrot.slane %v15349_v41, 2  ;;  %v17580_v41 = vld [vmem:[#allocation98_spill] sm:$0xff] }
 0xd65   : > { %9889 = vmatprep.mubr.msk.f32.mxu1 %vm17569_vm1, %v6337_v21  ;;  %vm17575_vm1 = vcmp.eq.s32.totalorder %v17574_v6, 1  ;;  %v6356_v21 = vrot.slane %v15393_v11, 2  ;;  %v17583_v11 = vld [vmem:[#allocation97_spill] sm:$0xff] }
 0xd66   : > { %v6353_v25 = vsel %vm6323_vm0, %v6348_v45, %v6352_v57  ;;  %v6362_v45 = vrot.slane %v15472_v0, 2 }
 0xd67   : > { %v6357_v55 = vsel %vm6323_vm0, %v6352_v57, %v6356_v21  ;;  %v6361_v50 = vsel %vm6323_vm0, %v6356_v21, %v6360_v48  ;;  %v6376_v21 = vrot.slane %v15555_v30, 2  ;;  %v17596_v30 = vld [vmem:[#allocation104_spill] sm:$0xff] }
 0xd68   : > { %9890 = vmatmul.mubr.msk.f32.gmra.mxu1 %vm17570_vm13, %v6335_v7  ;;  %vm17576_vm13 = vmmov %vm17575_vm1  ;;  %v6351_v7 = vsel %vm6323_vm0, %v6346_v38, %v6350_v61  ;;  %v6368_v38 = vrot.slane %v15491_v27, 2  ;;  %v17592_v27 = vld [vmem:[#allocation102_spill] sm:$0xff]  ;;  %v6370_v61 = vrot.slane %v15531_v13, 2 }
 0xd69   : > { %9891 = vmatprep.mubr.msk.f32.mxu1 %vm17572_vm10, %v6341_v23  ;;  %vm17578_vm10 = vcmp.eq.s32.totalorder %v17577_v49, 1  ;;  %v6358_v23 = vrot.slane %v15445_v47, 2 }
 0xd6b   : > { %v6363_v57 = vsel %vm6323_vm0, %v6358_v23, %v6362_v45 }
 0xd6c   : > { %9892 = vmatmul.mubr.msk.f32.gmra.mxu1 %vm17573_vm12, %v6339_v46  ;;  %vm17579_vm12 = vmmov %vm17578_vm10  ;;  %v6364_v46 = vrot.slane %v15463_v22, 2  ;;  %v17589_v22 = vld [vmem:[#allocation99_spill] sm:$0xff] }
 0xd6d   : > { %9893 = vmatprep.mubr.msk.f32.mxu1 %vm17575_vm1, %v6345_v36  ;;  %vm17581_vm1 = vcmp.eq.s32.totalorder %v17580_v41, 1  ;;  %v6359_v36 = vsel %vm6323_vm0, %v6354_v53, %v6358_v23  ;;  %v6384_v23 = vrot.slane %v15586_v40, 2  ;;  %v6287_v40 = vld [vmem:[#allocation4 + $0x70] sm:$0x3] }
 0xd6e   : > { %v6365_v47 = vsel %vm6323_vm0, %v6360_v48, %v6364_v46  ;;  %v6369_v0 = vsel %vm6323_vm0, %v6364_v46, %v6368_v38  ;;  %v6378_v48 = vrot.slane %v15583_v4, 2  ;;  %v6382_v46 = vrot.slane %v15601_v37, 2 }
 0xd70   : > { %9894 = vmatmul.mubr.msk.f32.gmra.mxu1 %vm17576_vm13, %v6343_v19  ;;  %vm17582_vm13 = vmmov %vm17581_vm1  ;;  %v6366_v19 = vrot.slane %v15496_v35, 2 }
 0xd71   : > { %9895 = vmatprep.mubr.msk.f32.mxu1 %vm17578_vm10, %v6349_v10  ;;  %vm17584_vm10 = vcmp.eq.s32.totalorder %v17583_v11, 1  ;;  %v6372_v10 = vrot.slane %v15525_v12, 2 }
 0xd72   : > { %v6371_v53 = vsel %vm6323_vm0, %v6366_v19, %v6370_v61 }
 0xd73   : > { %v6373_v35 = vsel %vm6323_vm0, %v6368_v38, %v6372_v10  ;;  %v6377_v13 = vsel %vm6323_vm0, %v6372_v10, %v6376_v21  ;;  %v6383_v38 = vsel %vm6323_vm0, %v6378_v48, %v6382_v46  ;;  %v7857_v10 = vld [vmem:[#allocation27 + $0x1f8] sm:$0xff] }
 0xd74   : > { %9896 = vmatmul.mubr.msk.f32.gmra.mxu1 %vm17579_vm12, %v6347_v9  ;;  %vm17585_vm12 = vmmov %vm17584_vm10  ;;  %v6367_v9 = vsel %vm6323_vm0, %v6362_v45, %v6366_v19  ;;  %v17605_v19 = vld [vmem:[#allocation105_spill] sm:$0xff]  ;;  %10384 = vmatprep.subr.mxu0 %v7857_v10 }
 0xd75   : > { %9897 = vmatprep.mubr.msk.f32.mxu1 %vm17581_vm1, %v6353_v25  ;;  %vm17587_vm1 = vcmp.eq.s32.totalorder %v17586_v52, 1  ;;  %v6374_v25 = vrot.slane %v15563_v63, 2  ;;  %v7804_v10 = vld [vmem:[#allocation27 + $0x58] sm:$0xff] }
 0xd78   : > { %9898 = vmatmul.mubr.msk.f32.gmra.mxu1 %vm17582_vm13, %v6351_v7  ;;  %vm17588_vm13 = vmmov %vm17587_vm1  ;;  %v6380_v7 = vrot.slane %v15571_v2, 2  ;;  %v17599_v2 = vld [vmem:[#allocation103_spill] sm:$0xff] }
 0xd79   : > { %9899 = vmatprep.mubr.msk.f32.mxu1 %vm17584_vm10, %v6357_v55  ;;  %vm17590_vm10 = vcmp.eq.s32.totalorder %v17589_v22, 1  ;;  %v6375_v55 = vsel %vm6323_vm0, %v6370_v61, %v6374_v25  ;;  %v7856_v61 = vld [vmem:[#allocation27 + $0x1f0] sm:$0xff] }
 0xd7a   : > { %v6381_v63 = vsel %vm6323_vm0, %v6376_v21, %v6380_v7  ;;  %v6385_v4 = vsel %vm6323_vm0, %v6380_v7, %v6384_v23  ;;  %v7855_v21 = vld [vmem:[#allocation27 + $0x1e8] sm:$0xff]  ;;  %v7824_v7 = vld [vmem:[#allocation27 + $0xf8] sm:$0xff] }
 0xd7b   : > { %10464 = vmatprep.subr.mxu1 %v7824_v7  ;;  %v7802_v7 = vld [vmem:[#allocation27 + $0x48] sm:$0xff] }
 0xd7c   : > { %9900 = vmatmul.mubr.msk.f32.gmra.mxu1 %vm17585_vm12, %v6355_v18  ;;  %vm17591_vm12 = vmmov %vm17590_vm10  ;;  %v6288_v18 = vld [vmem:[#allocation4 + $0xd8] sm:$0x3] }
 0xd7d   : > { %9901 = vmatprep.mubr.msk.f32.mxu1 %vm17587_vm1, %v6361_v50  ;;  %vm17593_vm1 = vcmp.eq.s32.totalorder %v17592_v27, 1  ;;  %v6379_v50 = vsel %vm6323_vm0, %v6374_v25, %v6378_v48  ;;  %v6388_v45 = vrot.slane %v6288_v18, 2  ;;  %v7854_v25 = vld [vmem:[#allocation27 + $0x1e0] sm:$0xff]  ;;  %v7808_v48 = vld [vmem:[#allocation27 + $0x78] sm:$0xff]  ;;  %v7852_v18 = vld [vmem:[#allocation27 + $0x1d0] sm:$0xff] }
 0xd7e   : > { %10465 = vmatpush3.msra.mxu1 %v7808_v48  ;;  %v7817_v48 = vld [vmem:[#allocation27 + $0xc0] sm:$0xff] }
 0xd7f   : > { %v6389_v37 = vsel %vm6323_vm0, %v6384_v23, %v6388_v45  ;;  %v7823_v23 = vld [vmem:[#allocation27 + $0xf0] sm:$0xff]  ;;  %v7821_v45 = vld [vmem:[#allocation27 + $0xe0] sm:$0xff] }
 0xd80   : > { %9902 = vmatmul.mubr.msk.f32.gmra.mxu1 %vm17588_vm13, %v6359_v36  ;;  %vm17594_vm13 = vmmov %vm17593_vm1  ;;  %v17602_v36 = vld [vmem:[#allocation106_spill] sm:$0xff]  ;;  %10466 = vmatprep.subr.mxu1 %v7823_v23 }
 0xd81   : > { %9903 = vmatprep.mubr.msk.f32.mxu1 %vm17590_vm10, %v6365_v47  ;;  %vm17597_vm10 = vcmp.eq.s32.totalorder %v17596_v30, 1  ;;  %v6386_v47 = vrot.slane %v6287_v40, 2  ;;  %v7851_v40 = vld [vmem:[#allocation27 + $0x1c8] sm:$0xff]  ;;  %v7801_v23 = vld [vmem:[#allocation27 + $0x40] sm:$0xff] }
 0xd84   : > { %9904 = vmatmul.mubr.msk.f32.gmra.mxu1 %vm17591_vm12, %v6363_v57  ;;  %vm17598_vm12 = vmmov %vm17597_vm10  ;;  %v6387_v57 = vsel %vm6323_vm0, %v6382_v46, %v6386_v47  ;;  %v7822_v46 = vld [vmem:[#allocation27 + $0xe8] sm:$0xff] }
 0xd85   : > { %9905 = vmatprep.mubr.msk.f32.mxu1 %vm17593_vm1, %v6369_v0  ;;  %vm17600_vm1 = vcmp.eq.s32.totalorder %v17599_v2, 1  ;;  %v7841_v0 = vld [vmem:[#allocation27 + $0x178] sm:$0xff]  ;;  %v7835_v47 = vld [vmem:[#allocation27 + $0x148] sm:$0xff] }
 0xd86   : > { %10385 = vmatpush3.msra.mxu0 %v7841_v0  ;;  %v7834_v0 = vld [vmem:[#allocation27 + $0x140] sm:$0xff] }
 0xd87   : > { %10386 = vmatprep.subr.mxu0 %v7856_v61  ;;  %v7819_v61 = vld [vmem:[#allocation27 + $0xd0] sm:$0xff] }
 0xd88   : > { %9906 = vmatmul.mubr.msk.f32.gmra.mxu1 %vm17594_vm13, %v6367_v9  ;;  %vm17601_vm13 = vmmov %vm17600_vm1  ;;  %v7840_v9 = vld [vmem:[#allocation27 + $0x170] sm:$0xff] }
 0xd89   : > { %9907 = vmatprep.mubr.msk.f32.mxu1 %vm1482_vm15, %v6373_v35  ;;  %v7839_v35 = vld [vmem:[#allocation27 + $0x168] sm:$0xff]  ;;  %10387 = vmatpush3.msra.mxu0 %v7840_v9  ;;  %v7849_v9 = vld [vmem:[#allocation27 + $0x1b8] sm:$0xff] }
 0xd8a   : > { %10388 = vmatprep.subr.mxu0 %v7855_v21  ;;  %v7803_v21 = vld [vmem:[#allocation27 + $0x50] sm:$0xff] }
 0xd8b   : > { %10389 = vmatpush3.msra.mxu0 %v7839_v35  ;;  %v7833_v35 = vld [vmem:[#allocation27 + $0x138] sm:$0xff] }
 0xd8c   : > { %9908 = vmatmul.mubr.msk.f32.gmra.mxu1 %vm1482_vm15, %v6371_v53  ;;  %v7838_v53 = vld [vmem:[#allocation27 + $0x160] sm:$0xff]  ;;  %10390 = vmatprep.subr.mxu0 %v7854_v25  ;;  %v7818_v25 = vld [vmem:[#allocation27 + $0xc8] sm:$0xff] }
 0xd8d   : > { %9909 = vmatprep.mubr.msk.f32.mxu1 %vm17597_vm10, %v6377_v13  ;;  %vm17603_vm10 = vcmp.eq.s32.totalorder %v17602_v36, 1  ;;  %v7853_v13 = vld [vmem:[#allocation27 + $0x1d8] sm:$0xff]  ;;  %10391 = vmatpush3.msra.mxu0 %v7838_v53  ;;  %v7848_v53 = vld [vmem:[#allocation27 + $0x1b0] sm:$0xff] }
 0xd8e   : > { %10392 = vmatprep.subr.mxu0 %v7853_v13  ;;  %v7832_v13 = vld [vmem:[#allocation27 + $0x130] sm:$0xff] }
 0xd90   : > { %9910 = vmatmul.mubr.msk.f32.gmra.mxu1 %vm17598_vm12, %v6375_v55  ;;  %vm17604_vm12 = vmmov %vm17603_vm10  ;;  %v7837_v55 = vld [vmem:[#allocation27 + $0x158] sm:$0xff] }
 0xd91   : > { %9911 = vmatprep.mubr.msk.f32.mxu1 %vm17600_vm1, %v6381_v63  ;;  %vm17606_vm1 = vcmp.eq.s32.totalorder %v17605_v19, 1  ;;  %v7807_v63 = vld [vmem:[#allocation27 + $0x70] sm:$0xff]  ;;  %10393 = vmatpush3.msra.mxu0 %v7837_v55  ;;  %v7847_v55 = vld [vmem:[#allocation27 + $0x1a8] sm:$0xff] }
 0xd92   : > { %10467 = vmatpush3.msra.mxu1 %v7807_v63  ;;  %10394 = vmatprep.subr.mxu0 %v7852_v18  ;;  %v7831_v63 = vld [vmem:[#allocation27 + $0x128] sm:$0xff]  ;;  %v7816_v18 = vld [vmem:[#allocation27 + $0xb8] sm:$0xff] }
 0xd93   : > { %10468 = vmatprep.subr.mxu1 %v7822_v46  ;;  %v7846_v46 = vld [vmem:[#allocation27 + $0x1a0] sm:$0xff] }
 0xd94   : > { %9912 = vmatmul.mubr.msk.f32.gmra.mxu1 %vm17601_vm13, %v6379_v50  ;;  %vm17607_vm13 = vmmov %vm17606_vm1  ;;  %v7836_v50 = vld [vmem:[#allocation27 + $0x150] sm:$0xff] }
 0xd95   : > { %9913 = vmatprep.mubr.msk.f32.mxu1 %vm17603_vm10, %v6385_v4  ;;  %v7806_v4 = vld [vmem:[#allocation27 + $0x68] sm:$0xff]  ;;  %10395 = vmatpush3.msra.mxu0 %v7836_v50  ;;  %v7800_v50 = vld [vmem:[#allocation27 + $0x38] sm:$0xff] }
 0xd96   : > { %10469 = vmatpush3.msra.mxu1 %v7806_v4  ;;  %10396 = vmatprep.subr.mxu0 %v7851_v40  ;;  %v7830_v4 = vld [vmem:[#allocation27 + $0x120] sm:$0xff]  ;;  %v7845_v40 = vld [vmem:[#allocation27 + $0x198] sm:$0xff] }
 0xd97   : > { %10470 = vmatprep.subr.mxu1 %v7821_v45  ;;  %10397 = vmatpush3.msra.mxu0 %v7835_v47  ;;  %v7815_v45 = vld [vmem:[#allocation27 + $0xb0] sm:$0xff]  ;;  %v7829_v47 = vld [vmem:[#allocation27 + $0x118] sm:$0xff] }
 0xd98   : > { %9914 = vmatmul.mubr.msk.f32.gmra.mxu1 %vm17604_vm12, %v6383_v38  ;;  %v7805_v38 = vld [vmem:[#allocation27 + $0x60] sm:$0xff] }
 0xd99   : > { %9915 = vmatprep.mubr.msk.f32.mxu1 %vm17606_vm1, %v6389_v37  ;;  %v7820_v37 = vld [vmem:[#allocation27 + $0xd8] sm:$0xff]  ;;  %10471 = vmatpush3.msra.mxu1 %v7805_v38  ;;  %v7799_v38 = vld [vmem:[#allocation27 + $0x30] sm:$0xff] }
 0xd9a   : > { %10472 = vmatprep.subr.mxu1 %v7820_v37  ;;  %v7814_v37 = vld [vmem:[#allocation27 + $0xa8] sm:$0xff] }
 0xd9b   : > { %10473 = vmatpush3.msra.mxu1 %v7804_v10  ;;  %v7798_v10 = vld [vmem:[#allocation27 + $0x28] sm:$0xff] }
 0xd9c   : > { %9916 = vmatmul.mubr.msk.f32.gmra.mxu1 %vm17607_vm13, %v6387_v57  ;;  %v7850_v57 = vld [vmem:[#allocation27 + $0x1c0] sm:$0xff]  ;;  %10474 = vmatprep.subr.mxu1 %v7819_v61 }
 0xd9d   : > { %10398 = vmatprep.subr.mxu0 %v7850_v57  ;;  %10475 = vmatpush3.msra.mxu1 %v7803_v21  ;;  %v7844_v57 = vld [vmem:[#allocation27 + $0x190] sm:$0xff]  ;;  %v7813_v61 = vld [vmem:[#allocation27 + $0xa0] sm:$0xff] }
 0xd9e   : > { %10399 = vmatpush3.msra.mxu0 %v7834_v0  ;;  %10476 = vmatprep.subr.mxu1 %v7818_v25  ;;  %v7828_v0 = vld [vmem:[#allocation27 + $0x110] sm:$0xff]  ;;  %v7797_v21 = vld [vmem:[#allocation27 + $0x20] sm:$0xff]  ;;  %v7827_v25 = vld [vmem:[#allocation27 + $0x108] sm:$0xff] }
 0xd9f   : > { %10400 = vmatprep.subr.mxu0 %v7849_v9  ;;  %10477 = vmatpush3.msra.mxu1 %v7802_v7  ;;  %v7843_v9 = vld [vmem:[#allocation27 + $0x188] sm:$0xff]  ;;  %v7842_v7 = vld [vmem:[#allocation27 + $0x180] sm:$0xff] }
 0xda0   : > { %10401 = vmatpush3.msra.mxu0 %v7833_v35  ;;  %10478 = vmatprep.subr.mxu1 %v7817_v48 }
 0xda1   : > { %10402 = vmatprep.subr.mxu0 %v7848_v53  ;;  %10479 = vmatpush3.msra.mxu1 %v7801_v23  ;;  %v7812_v53 = vld [vmem:[#allocation27 + $0x98] sm:$0xff]  ;;  %v7811_v23 = vld [vmem:[#allocation27 + $0x90] sm:$0xff] }
 0xda2   : > { %10403 = vmatpush3.msra.mxu0 %v7832_v13  ;;  %10480 = vmatprep.subr.mxu1 %v7816_v18  ;;  %v7796_v13 = vld [vmem:[#allocation27 + $0x18] sm:$0xff] }
 0xda3   : > { %10404 = vmatprep.subr.mxu0 %v7847_v55  ;;  %10481 = vmatpush3.msra.mxu1 %v7800_v50  ;;  %v7826_v55 = vld [vmem:[#allocation27 + $0x100] sm:$0xff]  ;;  %v7794_v50 = vld [vmem:[#allocation27 + $0x8] sm:$0xff] }
 0xda4   : > { %10405 = vmatpush3.msra.mxu0 %v7831_v63  ;;  %10482 = vmatprep.subr.mxu1 %v7815_v45  ;;  %v7795_v63 = vld [vmem:[#allocation27 + $0x10] sm:$0xff]  ;;  %v7809_v45 = vld [vmem:[#allocation27 + $0x80] sm:$0xff] }
 0xda5   : > { %10406 = vmatprep.subr.mxu0 %v7846_v46  ;;  %10483 = vmatpush3.msra.mxu1 %v7799_v38  ;;  %v7810_v46 = vld [vmem:[#allocation27 + $0x88] sm:$0xff] }
 0xda6   : > { %10407 = vmatpush3.msra.mxu0 %v7830_v4  ;;  %10484 = vmatprep.subr.mxu1 %v7814_v37 }
 0xda7   : > { %10408 = vmatprep.subr.mxu0 %v7845_v40  ;;  %10485 = vmatpush3.msra.mxu1 %v7798_v10  ;;  %v7793_v40 = vld [vmem:[#allocation27] sm:$0xff] }
 0xda8   : > { %10409 = vmatpush3.msra.mxu0 %v7829_v47  ;;  %10486 = vmatprep.subr.mxu1 %v7813_v61 }
 0xda9   : > { %10410 = vmatprep.subr.mxu0 %v7844_v57  ;;  %10487 = vmatpush3.msra.mxu1 %v7797_v21 }
 0xdaa   : > { %10411 = vmatpush3.msra.mxu0 %v7828_v0  ;;  %10488 = vmatprep.subr.mxu1 %v7812_v53 }
 0xdab   : > { %10412 = vmatprep.subr.mxu0 %v7843_v9  ;;  %10489 = vmatpush3.msra.mxu1 %v7796_v13 }
 0xdac   : > { %10413 = vmatpush3.msra.mxu0 %v7827_v25  ;;  %10490 = vmatprep.subr.mxu1 %v7811_v23 }
 0xdad   : > { %10414 = vmatprep.subr.mxu0 %v7842_v7  ;;  %10491 = vmatpush3.msra.mxu1 %v7795_v63 }
 0xdae   : > { %10415 = vmatpush3.msra.mxu0 %v7826_v55  ;;  %10492 = vmatprep.subr.mxu1 %v7810_v46  ;;  %v8180_v55 = vld [vmem:[#allocation27 + $0x2f8] sm:$0xff] }
 0xdaf   : > { %10493 = vmatpush3.msra.mxu1 %v7794_v50  ;;  %10544 = vmatprep.subr.mxu0 %v8180_v55 }
 0xdb0   : > { %10494 = vmatprep.subr.mxu1 %v7809_v45 }
 0xdb1   : > { %10495 = vmatpush3.msra.mxu1 %v7793_v40 }
 0xdd2   : > { %v15726_v35 = vpop.f32.mrf.mxu1 }
 0xdd4   : > { %v15728_v48 = vpop.f32.mrf.mxu1 }
 0xdd6   : > { %v15730_v18 = vpop.f32.mrf.mxu1 }
 0xdd8   : > { %v15732_v4 = vpop.f32.mrf.mxu1 }
 0xdda   : > { %v15734_v38 = vpop.f32.mrf.mxu1 }
 0xddc   : > { %v15736_v47 = vpop.f32.mrf.mxu1  ;;  %v6810_v37 = vpop.f32.mrf.mxu0 }
 0xddd   : > { %v6811_v3 = vadd.f32 %v6810_v37, %v15726_v35 }
 0xdde   : > { %v6812_v57 = vpop.f32.mrf.mxu0 }
 0xddf   : > { %v6813_v58 = vadd.f32 %v6812_v57, %v15728_v48 }
 0xde0   : > { %v6816_v0 = vpop.f32.mrf.mxu0 }
 0xde1   : > { %v15738_v10 = vpop.f32.mrf.mxu1 }
 0xde2   : > { %v6818_v9 = vpop.f32.mrf.mxu0 }
 0xde3   : > { %v15740_v61 = vpop.f32.mrf.mxu1  ;;  %v6819_v8 = vadd.f32 %v6818_v9, %v15732_v4 }
 0xde4   : > { %v15742_v21 = vpop.f32.mrf.mxu0 }
 0xde6   : > { %v15746_v53 = vpop.f32.mrf.mxu0 }
 0xde7   : > { %v15744_v25 = vpop.f32.mrf.mxu1 }
 0xde8   : > { %v15750_v13 = vpop.f32.mrf.mxu0 }
 0xde9   : > { %v15748_v7 = vpop.f32.mrf.mxu1  ;;  %v6829_v9 = vadd.f32 %v15750_v13, %v15738_v10 }
 0xdea   : > { %v15754_v63 = vpop.f32.mrf.mxu0 }
 0xdeb   : > { %v15752_v23 = vpop.f32.mrf.mxu1 }
 0xded   : > { %v15756_v46 = vpop.f32.mrf.mxu1 }
 0xdef   : > { %v15758_v50 = vpop.f32.mrf.mxu0 }
 0xdf1   : > { %v15760_v45 = vpop.f32.mrf.mxu0 }
 0xdf2   : > { %v15762_v40 = vpop.f32.mrf.mxu1 }
 0xdf4   : > { %v15766_v26 = vpop.f32.mrf.mxu1 }
 0xdf5   : > { %v15764_v5 = vpop.f32.mrf.mxu0 }
 0xdf7   : > { %v15768_v54 = vpop.f32.mrf.mxu0 }
 0xdf8   : > { %v15770_v59 = vpop.f32.mrf.mxu1 }
 0xdf9   : > { %v15772_v55 = vpop.f32.mrf.mxu0 }
 0xdfa   : > { %v15774_v62 = vpop.f32.mrf.mxu1 }
 0xdfb   : > { %v15776_v43 = vpop.f32.mrf.mxu0 }
 0xdfe   : > { %v15778_v31 = vpop.f32.mrf.mxu0  ;;  %v15780_v42 = vpop.f32.mrf.mxu1 }
 0xe00   : > { %v15782_v19 = vpop.f32.mrf.mxu1  ;;  %v15784_v36 = vpop.f32.mrf.mxu0 }
 0xe02   : > { %v15790_v12 = vpop.f32.mrf.mxu0 }
 0xe03   : > { %v15786_v2 = vpop.f32.mrf.mxu1 }
 0xe04   : > { %v15796_v52 = vpop.f32.mrf.mxu0 }
 0xe05   : > { %v15788_v30 = vpop.f32.mrf.mxu1 }
 0xe06   : > { %v15802_v49 = vpop.f32.mrf.mxu0 }
 0xe08   : > { %v15792_v27 = vpop.f32.mrf.mxu1  ;;  %v15806_v56 = vpop.f32.mrf.mxu0 }
 0xe0a   : > { %v15794_v22 = vpop.f32.mrf.mxu1 }
 0xe0b   : > { %v15812_v51 = vpop.f32.mrf.mxu0 }
 0xe0c   : > { %v15798_v11 = vpop.f32.mrf.mxu1 }
 0xe0d   : > { %v15818_v1 = vpop.f32.mrf.mxu0 }
 0xe0e   : > { %v15800_v41 = vpop.f32.mrf.mxu1 }
 0xe0f   : > { %v15825_v33 = vpop.f32.mrf.mxu0 }
 0xe10   : > { %v15804_v6 = vpop.f32.mrf.mxu1 }
 0xe12   : > { %v15808_v44 = vpop.f32.mrf.mxu1 }
 0xe14   : > { %v15810_v39 = vpop.f32.mrf.mxu1 }
 0xe16   : > { %v15814_v14 = vpop.f32.mrf.mxu1 }
 0xe17   : > { %17609 = vst [vmem:[#allocation127_spill] sm:$0xff] %v15814_v14 }
 0xe18   : > { %v15816_v32 = vpop.f32.mrf.mxu1 }
 0xe19   : > { %17610 = vst [vmem:[#allocation130_spill] sm:$0xff] %v15816_v32  ;;  %v6817_v32 = vadd.f32 %v6816_v0, %v15730_v18 }
 0xe1a   : > { %v15820_v16 = vpop.f32.mrf.mxu1 }
 0xe1b   : > { %17611 = vst [vmem:[#allocation128_spill] sm:$0xff] %v15820_v16  ;;  %v15837_v16 = vpop.f32.mrf.mxu0 }
 0xe1c   : > { %v15822_v28 = vpop.f32.mrf.mxu1 }
 0xe1d   : > { %17612 = vst [vmem:[#allocation126_spill] sm:$0xff] %v15822_v28  ;;  %v15848_v20 = vpop.f32.mrf.mxu0 }
 0xe1e   : > { %v15827_v60 = vpop.f32.mrf.mxu1 }
 0xe1f   : > { %17613 = vst [vmem:[#allocation60_spill] sm:$0xff] %v15827_v60 }
 0xe20   : > { %v7036_v24 = vpop.f32.mrf.mxu1 }
 0xe21   : > { %v7131_v17 = vadd.f32 %v7036_v24, %v6811_v3 }
 0xe22   : > { %v7038_v28 = vpop.f32.mrf.mxu1 }
 0xe23   : > { %v15841_v14 = vadd.f32 %v15831_v29, %v7131_v17  ;;  %v7132_v60 = vadd.f32 %v7038_v28, %v6813_v58  ;;  %v6823_v58 = vadd.f32 %v15742_v21, %v15734_v38  ;;  %v6825_v28 = vadd.f32 %v15746_v53, %v15736_v47 }
 0xe24   : > { %v7042_v35 = vpop.f32.mrf.mxu1  ;;  %v6831_v47 = vadd.f32 %v15754_v63, %v15740_v61  ;;  %v6835_v53 = vadd.f32 %v15758_v50, %v15744_v25  ;;  %v6843_v61 = vadd.f32 %v15768_v54, %v15756_v46  ;;  %v15883_v25 = vadd.f32 %v15772_v55, %v15762_v40 }
 0xe25   : > { %v7239_v37 = vmin.f32 %v15841_v14, 0.0  ;;  %v15846_v48 = vadd.f32 %v15835_v34, %v7132_v60  ;;  %v7133_v24 = vadd.f32 %v7042_v35, %v6817_v32  ;;  %v6884_v35 = vpop.f32.mrf.mxu0  ;;  %v15894_v54 = vadd.f32 %v15778_v31, %v15770_v59 }
 0xe26   : > { %v7044_v3 = vpop.f32.mrf.mxu1  ;;  %v15910_v31 = vadd.f32 %v15796_v52, %v15782_v19  ;;  %v15926_v52 = vadd.f32 %v15812_v51, %v15792_v27  ;;  %v15942_v51 = vadd.f32 %v15848_v20, %v15804_v6  ;;  %v17616_v27 = vld [vmem:[#allocation127_spill] sm:$0xff]  ;;  %vm7207_vm10 = vcmp.gt.f32.partialorder %v15841_v14, 0.0 }
 0xe27   : > { %v7271_v15 = vmul.f32 1.442695, %v7239_v37  ;;  %v7240_v57 = vmin.f32 %v15846_v48, 0.0  ;;  %v15852_v18 = vadd.f32 %v15831_v29, %v7133_v24  ;;  %v7134_v17 = vadd.f32 %v7044_v3, %v6819_v8 }
 0xe28   : > { %v7048_v4 = vpop.f32.mrf.mxu1  ;;  %v6837_v3 = vadd.f32 %v15760_v45, %v15748_v7  ;;  %v6888_v7 = vpop.f32.mrf.mxu0  ;;  %vm7208_vm12 = vcmp.gt.f32.partialorder %v15846_v48, 0.0 }
 0xe29   : > { %11787 = vpow2.f32 %v7271_v15  ;;  %v7273_v60 = vmul.f32 1.442695, %v7240_v57  ;;  %v7241_v32 = vmin.f32 %v15852_v18, 0.0  ;;  %v15860_v0 = vadd.f32 %v15835_v34, %v7134_v17 }
 0xe2a   : > { %v7135_v37 = vadd.f32 %v7048_v4, %v6823_v58  ;;  %v7050_v8 = vpop.f32.mrf.mxu1  ;;  %v6841_v58 = vadd.f32 %v15764_v5, %v15752_v23  ;;  %v6849_v5 = vadd.f32 %v15776_v43, %v15766_v26  ;;  %v15898_v23 = vadd.f32 %v15784_v36, %v15774_v62  ;;  %v6890_v59 = vpop.f32.mrf.mxu0 }
 0xe2b   : > { %11789 = vpow2.f32 %v7273_v60  ;;  %v7275_v24 = vmul.f32 1.442695, %v7241_v32  ;;  %v7242_v38 = vmin.f32 %v15860_v0, 0.0  ;;  %v7136_v21 = vadd.f32 %v7050_v8, %v6825_v28 }
 0xe2c   : > { %v15872_v15 = vadd.f32 %v15831_v29, %v7135_v37  ;;  %v7054_v10 = vpop.f32.mrf.mxu1  ;;  %v15906_v43 = vadd.f32 %v15790_v12, %v15780_v42  ;;  %v15914_v62 = vadd.f32 %v15802_v49, %v15786_v2  ;;  %v15918_v36 = vadd.f32 %v15806_v56, %v15788_v30 }
 0xe2d   : > { %11791 = vpow2.f32 %v7275_v24  ;;  %v7277_v13 = vmul.f32 1.442695, %v7242_v38  ;;  %v15875_v57 = vadd.f32 %v15835_v34, %v7136_v21  ;;  %v7137_v17 = vadd.f32 %v7054_v10, %v6829_v9 }
 0xe2e   : > { %v7243_v63 = vmin.f32 %v15872_v15, 0.0  ;;  %v7056_v50 = vpop.f32.mrf.mxu1  ;;  %v15930_v49 = vadd.f32 %v15818_v1, %v15794_v22  ;;  %v15934_v12 = vadd.f32 %v15825_v33, %v15798_v11  ;;  %v15938_v2 = vadd.f32 %v15837_v16, %v15800_v41  ;;  %v6894_v11 = vpop.f32.mrf.mxu0 }
 0xe2f   : > { %11793 = vpow2.f32 %v7277_v13  ;;  %v7244_v45 = vmin.f32 %v15875_v57, 0.0  ;;  %v15888_v28 = vadd.f32 %v15831_v29, %v7137_v17  ;;  %v7138_v4 = vadd.f32 %v7056_v50, %v6831_v47 }
 0xe30   : > { %v7279_v46 = vmul.f32 1.442695, %v7243_v63  ;;  %v7060_v40 = vpop.f32.mrf.mxu1  ;;  %v15945_v1 = vadd.f32 %v6884_v35, %v15808_v44  ;;  %v15948_v33 = vadd.f32 %v6888_v7, %v15810_v39  ;;  %v15954_v21 = vadd.f32 %v6890_v59, %v17616_v27  ;;  %v8164_v59 = vld [vmem:[#allocation27 + $0x278] sm:$0xff] }
 0xe31   : > { %v7281_v55 = vmul.f32 1.442695, %v7244_v45  ;;  %v7245_v60 = vmin.f32 %v15888_v28, 0.0  ;;  %v15902_v32 = vadd.f32 %v15835_v34, %v7138_v4  ;;  %v7139_v9 = vadd.f32 %v7060_v40, %v6835_v53 }
 0xe32   : > { %11795 = vpow2.f32 %v7279_v46  ;;  %v7062_v26 = vpop.f32.mrf.mxu1  ;;  %vm7210_vm1 = vcmp.gt.f32.partialorder %v15860_v0, 0.0  ;;  %vm7209_vm13 = vcmp.gt.f32.partialorder %v15852_v18, 0.0 }
 0xe33   : > { %11797 = vpow2.f32 %v7281_v55  ;;  %v7246_v37 = vmin.f32 %v15902_v32, 0.0  ;;  %v15922_v42 = vadd.f32 %v15831_v29, %v7139_v9  ;;  %v7140_v56 = vadd.f32 %v7062_v26, %v6837_v3  ;;  %v17617_v3 = vld [vmem:[#allocation130_spill] sm:$0xff] }
 0xe34   : > { %v7066_v30 = vpop.f32.mrf.mxu1  ;;  %v7283_v19 = vmul.f32 1.442695, %v7245_v60  ;;  %v15964_v10 = vadd.f32 %v6894_v11, %v17617_v3  ;;  %v8178_v11 = vld [vmem:[#allocation27 + $0x2e8] sm:$0xff] }
 0xe35   : > { %v7285_v8 = vmul.f32 1.442695, %v7246_v37  ;;  %v7141_v24 = vadd.f32 %v7066_v30, %v6841_v58  ;;  %v15951_v22 = vadd.f32 %v15835_v34, %v7140_v56  ;;  %v7247_v47 = vmin.f32 %v15922_v42, 0.0 }
 0xe36   : > { %v11788_v38 = vpop.eup %11787  ;;  %v7068_v16 = vpop.f32.mrf.mxu1 }
 0xe37   : > { %v9917_v41 = vadd.f32 -1.0, %v11788_v38  ;;  %11799 = vpow2.f32 %v7285_v8  ;;  %v7248_v44 = vmin.f32 %v15951_v22, 0.0  ;;  %v15960_v39 = vadd.f32 %v15831_v29, %v7141_v24 }
 0xe38   : > { %v11790_v6 = vpop.eup %11789  ;;  %v7142_v20 = vadd.f32 %v7068_v16, %v6843_v61  ;;  %v7072_v35 = vpop.f32.mrf.mxu1  ;;  %11801 = vpow2.f32 %v7283_v19  ;;  %v7287_v45 = vmul.f32 1.442695, %v7247_v47 }
 0xe39   : > { %v7367_v53 = vsel %vm7207_vm10, %v15841_v14, %v9917_v41  ;;  %v7289_v58 = vmul.f32 1.442695, %v7248_v44  ;;  %v9918_v50 = vadd.f32 -1.0, %v11790_v6  ;;  %v7143_v61 = vadd.f32 %v7072_v35, %v15883_v25  ;;  %v8162_v44 = vld [vmem:[#allocation27 + $0x268] sm:$0xff] }
 0xe3a   : > { %v11792_v13 = vpop.eup %11791  ;;  %v7431_v17 = vrot.slane %v7367_v53, 7  ;;  %v15968_v7 = vadd.f32 %v15835_v34, %v7142_v20  ;;  %v7074_v63 = vpop.f32.mrf.mxu1  ;;  %v7249_v40 = vmin.f32 %v15960_v39, 0.0  ;;  %vm7211_vm10 = vcmp.gt.f32.partialorder %v15872_v15, 0.0 }
 0xe3b   : > { %v7144_v4 = vadd.f32 %v7074_v63, %v6849_v5  ;;  %v9919_v46 = vadd.f32 -1.0, %v11792_v13  ;;  %11803 = vpow2.f32 %v7289_v58  ;;  %v7368_v9 = vsel %vm7208_vm12, %v15846_v48, %v9918_v50  ;;  %v8179_v5 = vld [vmem:[#allocation27 + $0x2f0] sm:$0xff]  ;;  %v8161_v63 = vld [vmem:[#allocation27 + $0x260] sm:$0xff] }
 0xe3c   : > { %v11794_v14 = vpop.eup %11793  ;;  %7527 = vst [vmem:[#allocation4 + $0xb0] sm:$0xfe] %v7431_v17  ;;  %v7250_v55 = vmin.f32 %v15968_v7, 0.0  ;;  %v7078_v60 = vpop.f32.mrf.mxu1  ;;  %7922 = vmatprep.mubr.f32.mxu0 %v7368_v9  ;;  %v7432_v37 = vrot.slane %v7368_v9, 7  ;;  %v8163_v48 = vld [vmem:[#allocation27 + $0x270] sm:$0xff]  ;;  %11805 = vpow2.f32 %v7287_v45  ;;  %vm7212_vm12 = vcmp.gt.f32.partialorder %v15875_v57, 0.0 }
 0xe3d   : > { %v15977_v26 = vadd.f32 %v15835_v34, %v7144_v4  ;;  %v7145_v25 = vadd.f32 %v7078_v60, %v15894_v54  ;;  %7923 = vmatmul.mubr.f32.vlgmr.msra.gmra.mxu0 %v7367_v53  ;;  %v9920_v30 = vadd.f32 -1.0, %v11794_v14  ;;  %v15983_v19 = vsel %vm7209_vm13, %v15852_v18, %v9919_v46 }
 0xe3e   : > { %v7080_v56 = vpop.f32.mrf.mxu1  ;;  %v7293_v24 = vmul.f32 1.442695, %v7250_v55  ;;  %v15987_v54 = vadd.f32 %v15831_v29, %v7143_v61  ;;  %10545 = vmatpush3.msra.mxu0 %v8164_v59  ;;  %v7291_v41 = vmul.f32 1.442695, %v7249_v40  ;;  %7528 = vst [vmem:[#allocation4 + $0xd0] sm:$0xfe] %v7432_v37 }
 0xe3f   : > { %v11796_v8 = vpop.eup %11795  ;;  %v7146_v38 = vadd.f32 %v7080_v56, %v15898_v23  ;;  %v7370_v18 = vsel %vm7210_vm1, %v15860_v0, %v9920_v30  ;;  %v7433_v47 = vrot.slane %v15983_v19, 7  ;;  %10546 = vmatprep.subr.mxu0 %v8179_v5  ;;  %v7252_v20 = vmin.f32 %v15977_v26, 0.0  ;;  %v8177_v23 = vld [vmem:[#allocation27 + $0x2e0] sm:$0xff] }
 0xe40   : > { %v11798_v16 = vpop.eup %11797  ;;  %v7084_v27 = vpop.f32.mrf.mxu1  ;;  %v9921_v6 = vadd.f32 -1.0, %v11796_v8  ;;  %v15996_v35 = vadd.f32 %v15831_v29, %v7145_v25  ;;  %7927 = vmatprep.mubr.f32.mxu0 %v7370_v18  ;;  %vm7214_vm13 = vcmp.gt.f32.partialorder %v15902_v32, 0.0  ;;  %10547 = vmatpush3.msra.mxu0 %v8163_v48  ;;  %v7435_v0 = vrot.slane %v7370_v18, 7 }
 0xe41   : > { %v7147_v53 = vadd.f32 %v7084_v27, %v15906_v43  ;;  %v16002_v3 = vsel %vm6090_vm14, %v7431_v17, %v7433_v47  ;;  %7928 = vmatmul.mubr.f32.gmra.mxu0 %v15983_v19  ;;  %v9922_v58 = vadd.f32 -1.0, %v11798_v16  ;;  %10548 = vmatprep.subr.mxu0 %v8178_v11  ;;  %11807 = vpow2.f32 %v7293_v24  ;;  %v8176_v43 = vld [vmem:[#allocation27 + $0x2d8] sm:$0xff] }
 0xe42   : > { %v7086_v13 = vpop.f32.mrf.mxu1  ;;  %v7251_v50 = vmin.f32 %v15987_v54, 0.0  ;;  %v16007_v45 = vadd.f32 %v15835_v34, %v7146_v38  ;;  %vm7213_vm1 = vcmp.gt.f32.partialorder %v15888_v28, 0.0  ;;  %10549 = vmatpush3.msra.mxu0 %v8162_v44  ;;  %11809 = vpow2.f32 %v7291_v41  ;;  %v8159_v38 = vld [vmem:[#allocation27 + $0x250] sm:$0xff]  ;;  %v6896_v41 = vpop.f32.mrf.mxu0 }
 0xe43   : > { %v7148_v61 = vadd.f32 %v7086_v13, %v15910_v31  ;;  %v16012_v4 = vsel %vm6090_vm14, %v7432_v37, %v7435_v0  ;;  %v7372_v14 = vsel %vm7212_vm12, %v15875_v57, %v9922_v58  ;;  %v16020_v40 = vsel %vm7211_vm10, %v15872_v15, %v9921_v6  ;;  %10550 = vmatprep.subr.mxu0 %v8177_v23  ;;  %v8160_v31 = vld [vmem:[#allocation27 + $0x258] sm:$0xff]  ;;  %v8175_v57 = vld [vmem:[#allocation27 + $0x2d0] sm:$0xff]  ;;  %v8174_v6 = vld [vmem:[#allocation27 + $0x2c8] sm:$0xff] }
 0xe44   : > { %v11800_v17 = vpop.eup %11799  ;;  %v7090_v46 = vpop.f32.mrf.mxu1  ;;  %v7253_v55 = vmin.f32 %v15996_v35, 0.0  ;;  %v16024_v60 = vadd.f32 %v15831_v29, %v7147_v53  ;;  %7932 = vmatprep.mubr.f32.mxu0 %v7372_v14  ;;  %10551 = vmatpush3.msra.mxu0 %v8161_v63  ;;  %v7297_v5 = vmul.f32 1.442695, %v7252_v20  ;;  %v7439_v37 = vrot.slane %v7372_v14, 7  ;;  %v7561_v27 = vld [vmem:[#allocation4 + $0xb0] sm:$0xff] }
 0xe45   : > { %v16027_v9 = vadd.f32 %v15835_v34, %v7148_v61  ;;  %v7149_v59 = vadd.f32 %v7090_v46, %v15914_v62  ;;  %v11802_v25 = vpop.eup %11801  ;;  %v7437_v15 = vrot.slane %v16020_v40, 7  ;;  %7933 = vmatmul.mubr.f32.gmra.mxu0 %v16020_v40  ;;  %v9924_v30 = vadd.f32 -1.0, %v11800_v17  ;;  %10552 = vmatprep.subr.mxu0 %v8176_v43  ;;  %v7562_v24 = vld [vmem:[#allocation4 + $0xd0] sm:$0xff]  ;;  %v8173_v17 = vld [vmem:[#allocation27 + $0x2c0] sm:$0xff] }
 0xe46   : > { %v7092_v56 = vpop.f32.mrf.mxu1  ;;  %v7295_v19 = vmul.f32 1.442695, %v7251_v50  ;;  %v7254_v48 = vmin.f32 %v16007_v45, 0.0  ;;  %10553 = vmatpush3.msra.mxu0 %v8160_v31  ;;  %v16038_v11 = vsel %vm6090_vm14, %v7435_v0, %v7439_v37  ;;  %9949 = vmatprep.mubr.msk.f32.mxu1 %vm1359_vm2, %v7562_v24  ;;  %vm7216_vm10 = vcmp.gt.f32.partialorder %v15951_v22, 0.0  ;;  %v8158_v0 = vld [vmem:[#allocation27 + $0x248] sm:$0xff] }
 0xe47   : > { %v16034_v8 = vadd.f32 %v15831_v29, %v7149_v59  ;;  %v7150_v62 = vadd.f32 %v7092_v56, %v15918_v36  ;;  %v16043_v16 = vsel %vm6090_vm14, %v7433_v47, %v7437_v15  ;;  %v16050_v36 = vsel %vm7214_vm13, %v15902_v32, %v9924_v30  ;;  %10554 = vmatprep.subr.mxu0 %v8175_v57 }
 0xe48   : > { %v7096_v18 = vpop.f32.mrf.mxu1  ;;  %v11804_v44 = vpop.eup %11803  ;;  %v7299_v20 = vmul.f32 1.442695, %v7253_v55  ;;  %v7255_v23 = vmin.f32 %v16024_v60, 0.0  ;;  %v7256_v47 = vmin.f32 %v16027_v9, 0.0  ;;  %9950 = vmatmul.mubr.msk.f32.vlgmr.msra.gmra.mxu1 %vm1359_vm2, %v7561_v27  ;;  %7937 = vmatprep.mubr.f32.mxu0 %v16050_v36  ;;  %11811 = vpow2.f32 %v7297_v5 }
 0xe49   : > { %v7151_v53 = vadd.f32 %v7096_v18, %v15926_v52  ;;  %v16060_v32 = vadd.f32 %v15835_v34, %v7150_v62  ;;  %v7443_v13 = vrot.slane %v16050_v36, 7  ;;  %v9923_v58 = vadd.f32 -1.0, %v11802_v25  ;;  %9951 = vmatprep.mubr.msk.f32.mxu1 %vm1360_vm4, %v16012_v4  ;;  %10555 = vmatpush3.msra.mxu0 %v8159_v38  ;;  %v11806_v46 = vpop.eup %11805  ;;  %v8157_v25 = vld [vmem:[#allocation27 + $0x240] sm:$0xff]  ;;  %v8156_v38 = vld [vmem:[#allocation27 + $0x238] sm:$0xff] }
 0xe4a   : > { %v7098_v63 = vpop.f32.mrf.mxu1  ;;  %11813 = vpow2.f32 %v7295_v19  ;;  %v7301_v61 = vmul.f32 1.442695, %v7254_v48  ;;  %v7257_v52 = vmin.f32 %v16034_v8, 0.0  ;;  %10556 = vmatprep.subr.mxu0 %v8174_v6  ;;  %v9926_v57 = vadd.f32 -1.0, %v11804_v44 }
 0xe4b   : > { %v16068_v43 = vadd.f32 %v15831_v29, %v7151_v53  ;;  %v16071_v14 = vsel %vm6090_vm14, %v7439_v37, %v7443_v13  ;;  %v16076_v31 = vsel %vm7213_vm1, %v15888_v28, %v9923_v58  ;;  %v7152_v55 = vadd.f32 %v7098_v63, %v15930_v49  ;;  %10557 = vmatpush3.msra.mxu0 %v8158_v0  ;;  %v8172_v37 = vld [vmem:[#allocation27 + $0x2b8] sm:$0xff]  ;;  %v8155_v0 = vld [vmem:[#allocation27 + $0x230] sm:$0xff] }
 0xe4c   : > { %v7102_v59 = vpop.f32.mrf.mxu1  ;;  %11815 = vpow2.f32 %v7299_v20  ;;  %v7303_v5 = vmul.f32 1.442695, %v7255_v23  ;;  %v7305_v56 = vmul.f32 1.442695, %v7256_v47  ;;  %v7441_v30 = vrot.slane %v16076_v31, 7  ;;  %7938 = vmatmul.mubr.f32.gmra.mxu0 %v16076_v31  ;;  %9952 = vmatmul.mubr.msk.f32.gmra.mxu1 %vm1360_vm4, %v16002_v3  ;;  %v17621_v58 = vld [vmem:[#allocation128_spill] sm:$0xff] }
 0xe4d   : > { %v7258_v28 = vmin.f32 %v16060_v32, 0.0  ;;  %v16086_v49 = vadd.f32 %v15835_v34, %v7152_v55  ;;  %v7153_v19 = vadd.f32 %v7102_v59, %v15934_v12  ;;  %v16092_v48 = vsel %vm7216_vm10, %v15951_v22, %v9926_v57  ;;  %9953 = vmatprep.mubr.msk.f32.mxu1 %vm1361_vm3, %v16038_v11  ;;  %10558 = vmatprep.subr.mxu0 %v8173_v17  ;;  %v8171_v22 = vld [vmem:[#allocation27 + $0x2b0] sm:$0xff]  ;;  %v6900_v59 = vpop.f32.mrf.mxu0 }
 0xe4e   : > { %v7104_v62 = vpop.f32.mrf.mxu1  ;;  %11817 = vpow2.f32 %v7301_v61  ;;  %v16100_v27 = vsel %vm6090_vm14, %v7437_v15, %v7441_v30  ;;  %v7447_v12 = vrot.slane %v16092_v48, 7  ;;  %7942 = vmatprep.mubr.f32.mxu0 %v16092_v48  ;;  %vm7215_vm2 = vcmp.gt.f32.partialorder %v15922_v42, 0.0  ;;  %10559 = vmatpush3.msra.mxu0 %v8157_v25  ;;  %v11808_v18 = vpop.eup %11807  ;;  %v8152_v48 = vld [vmem:[#allocation27 + $0x218] sm:$0xff] }
 0xe4f   : > { %v7307_v36 = vmul.f32 1.442695, %v7257_v52  ;;  %v7259_v6 = vmin.f32 %v16068_v43, 0.0  ;;  %v7260_v44 = vmin.f32 %v16086_v49, 0.0  ;;  %v9925_v20 = vadd.f32 -1.0, %v11806_v46  ;;  %10560 = vmatprep.subr.mxu0 %v8172_v37  ;;  %v11810_v40 = vpop.eup %11809 }
 0xe50   : > { %v7108_v23 = vpop.f32.mrf.mxu1  ;;  %11819 = vpow2.f32 %v7303_v5  ;;  %v16108_v15 = vadd.f32 %v15831_v29, %v7153_v19  ;;  %v16113_v47 = vsel %vm6090_vm14, %v7443_v13, %v7447_v12  ;;  %v7154_v53 = vadd.f32 %v7104_v62, %v15938_v2  ;;  %9954 = vmatmul.mubr.msk.f32.gmra.mxu1 %vm1361_vm3, %v16043_v16  ;;  %10561 = vmatpush3.msra.mxu0 %v8156_v38  ;;  %v8170_v2 = vld [vmem:[#allocation27 + $0x2a8] sm:$0xff] }
 0xe51   : > { %v16120_v63 = vadd.f32 %v6896_v41, %v17621_v58  ;;  %11821 = vpow2.f32 %v7305_v56  ;;  %v7309_v50 = vmul.f32 1.442695, %v7258_v28  ;;  %v16125_v61 = vsel %vm7215_vm2, %v15922_v42, %v9925_v20  ;;  %9955 = vmatprep.mubr.msk.f32.mxu1 %vm1362_vm5, %v16071_v14  ;;  %10562 = vmatprep.subr.mxu0 %v8171_v22  ;;  %v8154_v5 = vld [vmem:[#allocation27 + $0x228] sm:$0xff] }
 0xe52   : > { %v7110_v13 = vpop.f32.mrf.mxu1  ;;  %v7445_v17 = vrot.slane %v16125_v61, 7  ;;  %7943 = vmatmul.mubr.f32.gmra.mxu0 %v16125_v61  ;;  %v16133_v46 = vadd.f32 %v15835_v34, %v7154_v53  ;;  %v7155_v31 = vadd.f32 %v7108_v23, %v15942_v51  ;;  %v9928_v55 = vadd.f32 -1.0, %v11808_v18  ;;  %v8169_v51 = vld [vmem:[#allocation27 + $0x2a0] sm:$0xff] }
 0xe53   : > { %11823 = vpow2.f32 %v7307_v36  ;;  %v7311_v42 = vmul.f32 1.442695, %v7259_v6  ;;  %v7313_v57 = vmul.f32 1.442695, %v7260_v44  ;;  %vm7218_vm3 = vcmp.gt.f32.partialorder %v15968_v7, 0.0  ;;  %10563 = vmatpush3.msra.mxu0 %v8155_v0  ;;  %v17624_v18 = vld [vmem:[#allocation126_spill] sm:$0xff] }
 0xe54   : > { %v7114_v25 = vpop.f32.mrf.mxu1  ;;  %v7261_v56 = vmin.f32 %v16108_v15, 0.0  ;;  %v16139_v37 = vsel %vm6090_vm14, %v7441_v30, %v7445_v17  ;;  %v7262_v28 = vmin.f32 %v16133_v46, 0.0  ;;  %v16143_v19 = vsel %vm7218_vm3, %v15968_v7, %v9928_v55  ;;  %9956 = vmatmul.mubr.msk.f32.gmra.mxu1 %vm1362_vm5, %v16100_v27  ;;  %10564 = vmatprep.subr.mxu0 %v8170_v2  ;;  %v8153_v44 = vld [vmem:[#allocation27 + $0x220] sm:$0xff]  ;;  %v8168_v0 = vld [vmem:[#allocation27 + $0x298] sm:$0xff]  ;;  %v8166_v7 = vld [vmem:[#allocation27 + $0x288] sm:$0xff] }
 0xe55   : > { %v16149_v62 = vadd.f32 %v15831_v29, %v7155_v31  ;;  %v7451_v24 = vrot.slane %v16143_v19, 7  ;;  %7947 = vmatprep.mubr.f32.mxu0 %v16143_v19  ;;  %v9927_v30 = vadd.f32 -1.0, %v11810_v40  ;;  %v7156_v38 = vadd.f32 %v7110_v13, %v15945_v1  ;;  %9957 = vmatprep.mubr.msk.f32.mxu1 %vm1363_vm6, %v16113_v47  ;;  %v11812_v22 = vpop.eup %11811 }
 0xe56   : > { %v7116_v41 = vpop.f32.mrf.mxu1  ;;  %v16158_v36 = vadd.f32 %v6900_v59, %v17624_v18  ;;  %11825 = vpow2.f32 %v7309_v50  ;;  %vm7217_vm4 = vcmp.gt.f32.partialorder %v15960_v39, 0.0  ;;  %v7157_v6 = vadd.f32 %v7114_v25, %v15948_v33  ;;  %10565 = vmatpush3.msra.mxu0 %v8154_v5 }
 0xe57   : > { %v11814_v20 = vpop.eup %11813  ;;  %11827 = vpow2.f32 %v7311_v42  ;;  %v16167_v1 = vsel %vm6090_vm14, %v7447_v12, %v7451_v24  ;;  %v7377_v23 = vsel %vm7217_vm4, %v15960_v39, %v9927_v30  ;;  %v16171_v40 = vadd.f32 %v15835_v34, %v7156_v38  ;;  %10566 = vmatprep.subr.mxu0 %v8169_v51  ;;  %v8151_v51 = vld [vmem:[#allocation27 + $0x210] sm:$0xff] }
 0xe58   : > { %v7120_v53 = vpop.f32.mrf.mxu1  ;;  %11829 = vpow2.f32 %v7313_v57  ;;  %v7315_v33 = vmul.f32 1.442695, %v7261_v56  ;;  %v7449_v58 = vrot.slane %v7377_v23, 7  ;;  %7948 = vmatmul.mubr.f32.gmra.mxu0 %v7377_v23  ;;  %v16174_v50 = vadd.f32 %v15831_v29, %v7157_v6  ;;  %9958 = vmatmul.mubr.msk.f32.gmra.mxu1 %vm1363_vm6, %v16139_v37  ;;  %v8167_v57 = vld [vmem:[#allocation27 + $0x290] sm:$0xff] }
 0xe59   : > { %v11816_v12 = vpop.eup %11815  ;;  %v7317_v39 = vmul.f32 1.442695, %v7262_v28  ;;  %v7263_v61 = vmin.f32 %v16149_v62, 0.0  ;;  %v7264_v13 = vmin.f32 %v16171_v40, 0.0  ;;  %v9930_v52 = vadd.f32 -1.0, %v11812_v22  ;;  %9959 = vmatprep.mubr.msk.f32.mxu1 %vm1364_vm7, %v16167_v1  ;;  %10567 = vmatpush3.msra.mxu0 %v8153_v44 }
 0xe5a   : > { %v16185_v31 = vsel %vm6090_vm14, %v7445_v17, %v7449_v58  ;;  %v7265_v55 = vmin.f32 %v16174_v50, 0.0  ;;  %vm7220_vm5 = vcmp.gt.f32.partialorder %v15977_v26, 0.0  ;;  %v9929_v59 = vadd.f32 -1.0, %v11814_v20  ;;  %v7122_v42 = vpop.f32.mrf.mxu1  ;;  %10568 = vmatprep.subr.mxu0 %v8168_v0  ;;  %v6902_v0 = vpop.f32.mrf.mxu0 }
 0xe5b   : > { %v11818_v25 = vpop.eup %11817  ;;  %v7321_v5 = vmul.f32 1.442695, %v7264_v13  ;;  %v7380_v56 = vsel %vm7220_vm5, %v15977_v26, %v9930_v52  ;;  %vm7219_vm6 = vcmp.gt.f32.partialorder %v15987_v54, 0.0  ;;  %v7158_v28 = vadd.f32 %v7116_v41, %v15954_v21  ;;  %10569 = vmatpush3.msra.mxu0 %v8152_v48 }
 0xe5c   : > { %11831 = vpow2.f32 %v7315_v33  ;;  %v7455_v17 = vrot.slane %v7380_v56, 7  ;;  %7952 = vmatprep.mubr.f32.mxu0 %v7380_v56  ;;  %v16193_v30 = vsel %vm7219_vm6, %v15987_v54, %v9929_v59  ;;  %v7159_v38 = vadd.f32 %v7120_v53, %v15964_v10  ;;  %9960 = vmatmul.mubr.msk.f32.gmra.mxu1 %vm1364_vm7, %v16185_v31  ;;  %v8150_v54 = vld [vmem:[#allocation27 + $0x208] sm:$0xff]  ;;  %v7126_v23 = vpop.f32.mrf.mxu1  ;;  %v8165_v53 = vld [vmem:[#allocation27 + $0x280] sm:$0xff] }
 0xe5d   : > { %v11820_v26 = vpop.eup %11819  ;;  %11833 = vpow2.f32 %v7317_v39  ;;  %v7319_v22 = vmul.f32 1.442695, %v7263_v61  ;;  %v7453_v21 = vrot.slane %v16193_v30, 7  ;;  %7953 = vmatmul.mubr.f32.gmra.mxu0 %v16193_v30  ;;  %v16202_v41 = vadd.f32 %v15835_v34, %v7158_v28  ;;  %10570 = vmatprep.subr.mxu0 %v8167_v57  ;;  %v17627_v57 = vld [vmem:[#allocation60_spill] sm:$0xff] }
 0xe5e   : > { %v11822_v18 = vpop.eup %11821  ;;  %v7323_v6 = vmul.f32 1.442695, %v7265_v55  ;;  %v16207_v10 = vsel %vm6090_vm14, %v7451_v24, %v7455_v17  ;;  %v16210_v44 = vadd.f32 %v15831_v29, %v7159_v38  ;;  %v9932_v20 = vadd.f32 -1.0, %v11818_v25  ;;  %10571 = vmatpush3.msra.mxu0 %v8151_v51  ;;  %v8149_v24 = vld [vmem:[#allocation27 + $0x200] sm:$0xff] }
 0xe5f   : > { %11835 = vpow2.f32 %v7321_v5  ;;  %v16213_v33 = vsel %vm6090_vm14, %v7449_v58, %v7453_v21  ;;  %v7266_v48 = vmin.f32 %v16202_v41, 0.0  ;;  %vm7222_vm7 = vcmp.gt.f32.partialorder %v16007_v45, 0.0  ;;  %9961 = vmatprep.mubr.msk.f32.mxu1 %vm1365_vm8, %v16207_v10  ;;  %10572 = vmatprep.subr.mxu0 %v8166_v7 }
 0xe60   : > { %v11824_v39 = vpop.eup %11823  ;;  %v7267_v61 = vmin.f32 %v16210_v44, 0.0  ;;  %v7382_v13 = vsel %vm7222_vm7, %v16007_v45, %v9932_v20  ;;  %v9931_v52 = vadd.f32 -1.0, %v11816_v12  ;;  %v7160_v2 = vadd.f32 %v7122_v42, %v16120_v63  ;;  %9962 = vmatmul.mubr.msk.f32.gmra.mxu1 %vm1365_vm8, %v16213_v33  ;;  %10573 = vmatpush3.msra.mxu0 %v8150_v54 }
 0xe61   : > { %v7325_v58 = vmul.f32 1.442695, %v7266_v48  ;;  %v7459_v55 = vrot.slane %v7382_v13, 7  ;;  %7957 = vmatprep.mubr.f32.mxu0 %v7382_v13  ;;  %vm7221_vm12 = vcmp.gt.f32.partialorder %v15996_v35, 0.0  ;;  %v7161_v59 = vadd.f32 %v7126_v23, %v16158_v36  ;;  %10574 = vmatprep.subr.mxu0 %v8165_v53  ;;  %v7128_v36 = vpop.f32.mrf.mxu1 }
 0xe62   : > { %v6903_v25 = vadd.f32 %v6902_v0, %v17627_v57  ;;  %11837 = vpow2.f32 %v7319_v22  ;;  %v7381_v45 = vsel %vm7221_vm12, %v15996_v35, %v9931_v52  ;;  %v16231_v63 = vadd.f32 %v15835_v34, %v7160_v2  ;;  %10575 = vmatpush3.msra.mxu0 %v8149_v24 }
 0xe63   : > { %v11826_v12 = vpop.eup %11825  ;;  %11839 = vpow2.f32 %v7323_v6  ;;  %v16234_v42 = vsel %vm6090_vm14, %v7455_v17, %v7459_v55  ;;  %v7457_v5 = vrot.slane %v7381_v45, 7  ;;  %7958 = vmatmul.mubr.f32.gmra.mxu0 %v7381_v45  ;;  %v16237_v56 = vadd.f32 %v15831_v29, %v7161_v59 }
 0xe64   : > { %v11828_v28 = vpop.eup %11827  ;;  %v7327_v51 = vmul.f32 1.442695, %v7267_v61  ;;  %v7268_v30 = vmin.f32 %v16231_v63, 0.0  ;;  %vm7224_vm8 = vcmp.gt.f32.partialorder %v16027_v9, 0.0  ;;  %v9934_v35 = vadd.f32 -1.0, %v11822_v18  ;;  %9963 = vmatprep.mubr.msk.f32.mxu1 %vm1366_vm9, %v16234_v42 }
 0xe65   : > { %v11830_v7 = vpop.eup %11829  ;;  %11841 = vpow2.f32 %v7325_v58  ;;  %v16245_v17 = vsel %vm6090_vm14, %v7453_v21, %v7457_v5  ;;  %v7269_v29 = vmin.f32 %v16237_v56, 0.0  ;;  %v9933_v22 = vadd.f32 -1.0, %v11820_v26 }
 0xe66   : > { %v7329_v54 = vmul.f32 1.442695, %v7268_v30  ;;  %v7384_v6 = vsel %vm7224_vm8, %v16027_v9, %v9934_v35  ;;  %vm7223_vm13 = vcmp.gt.f32.partialorder %v16024_v60, 0.0  ;;  %v7162_v20 = vadd.f32 %v7128_v36, %v6903_v25  ;;  %9964 = vmatmul.mubr.msk.f32.gmra.mxu1 %vm1366_vm9, %v16245_v17 }
 0xe67   : > { %v7331_v18 = vmul.f32 1.442695, %v7269_v29  ;;  %v7463_v23 = vrot.slane %v7384_v6, 7  ;;  %7962 = vmatprep.mubr.f32.mxu0 %v7384_v6  ;;  %v7383_v53 = vsel %vm7223_vm13, %v16024_v60, %v9933_v22  ;;  %v9936_v0 = vadd.f32 -1.0, %v11826_v12  ;;  %v17630_v12 = vld [vmem:[#allocation83_spill] sm:$0xff] }
 0xe68   : > { %11843 = vpow2.f32 %v7329_v54  ;;  %v7461_v21 = vrot.slane %v7383_v53, 7  ;;  %7963 = vmatmul.mubr.f32.gmra.mxu0 %v7383_v53  ;;  %v16255_v26 = vadd.f32 %v15835_v34, %v7162_v20  ;;  %vm7226_vm1 = vcmp.gt.f32.partialorder %v16060_v32, 0.0 }
 0xe69   : > { %v11832_v9 = vpop.eup %11831  ;;  %11845 = vpow2.f32 %v7327_v51  ;;  %v16258_v48 = vsel %vm6090_vm14, %v7459_v55, %v7463_v23  ;;  %v7386_v61 = vsel %vm7226_vm1, %v16060_v32, %v9936_v0  ;;  %v9935_v13 = vadd.f32 -1.0, %v11824_v39 }
 0xe6a   : > { %v11834_v19 = vpop.eup %11833  ;;  %v16262_v24 = vsel %vm6090_vm14, %v7457_v5, %v7461_v21  ;;  %v7270_v60 = vmin.f32 %v16255_v26, 0.0  ;;  %9965 = vmatprep.mubr.msk.f32.mxu1 %vm1367_vm11, %v16258_v48  ;;  %v7467_v52 = vrot.slane %v7386_v61, 7  ;;  %7967 = vmatprep.mubr.f32.mxu0 %v7386_v61  ;;  %vm7225_vm9 = vcmp.gt.f32.partialorder %v16034_v8, 0.0 }
 0xe6b   : > { %v9938_v2 = vadd.f32 -1.0, %v11830_v7  ;;  %9966 = vmatmul.mubr.msk.f32.gmra.mxu1 %vm1367_vm11, %v16262_v24  ;;  %11847 = vpow2.f32 %v7331_v18  ;;  %v7385_v59 = vsel %vm7225_vm9, %v16034_v8, %v9935_v13  ;;  %vm7228_vm10 = vcmp.gt.f32.partialorder %v16086_v49, 0.0 }
 0xe6c   : > { %v11836_v58 = vpop.eup %11835  ;;  %v7333_v55 = vmul.f32 1.442695, %v7270_v60  ;;  %v16276_v32 = vsel %vm6090_vm14, %v7463_v23, %v7467_v52  ;;  %v7465_v39 = vrot.slane %v7385_v59, 7  ;;  %7968 = vmatmul.mubr.f32.gmra.mxu0 %v7385_v59  ;;  %v9937_v25 = vadd.f32 -1.0, %v11828_v28 }
 0xe6d   : > { %v7388_v57 = vsel %vm7228_vm10, %v16086_v49, %v9938_v2  ;;  %vm7227_vm11 = vcmp.gt.f32.partialorder %v16068_v43, 0.0  ;;  %vm17631_vm2 = vcmp.eq.s32.totalorder %v17630_v12, 1  ;;  %v9940_v51 = vadd.f32 -1.0, %v11834_v19 }
 0xe6e   : > { %11849 = vpow2.f32 %v7333_v55  ;;  %v7471_v45 = vrot.slane %v7388_v57, 7  ;;  %7972 = vmatprep.mubr.f32.mxu0 %v7388_v57  ;;  %9967 = vmatprep.mubr.msk.f32.mxu1 %vm17631_vm2, %v16276_v32  ;;  %v16284_v5 = vsel %vm6090_vm14, %v7461_v21, %v7465_v39  ;;  %v7387_v36 = vsel %vm7227_vm11, %v16068_v43, %v9937_v25  ;;  %vm17632_vm4 = vmmov %vm17631_vm2  ;;  %v17633_v43 = vld [vmem:[#allocation86_spill] sm:$0xff]  ;;  %v17639_v57 = vld [vmem:[#allocation88_spill] sm:$0xff] }
 0xe6f   : > { %v11838_v8 = vpop.eup %11837  ;;  %v7469_v28 = vrot.slane %v7387_v36, 7  ;;  %vm7230_vm3 = vcmp.gt.f32.partialorder %v16133_v46, 0.0  ;;  %v9939_v35 = vadd.f32 -1.0, %v11832_v9  ;;  %9968 = vmatmul.mubr.msk.f32.gmra.mxu1 %vm17632_vm4, %v16284_v5  ;;  %vm7229_vm5 = vcmp.gt.f32.partialorder %v16108_v15, 0.0 }
 0xe70   : > { %v11840_v30 = vpop.eup %11839  ;;  %v16288_v49 = vsel %vm6090_vm14, %v7467_v52, %v7471_v45  ;;  %7973 = vmatmul.mubr.f32.gmra.mxu0 %v7387_v36  ;;  %v7390_v38 = vsel %vm7230_vm3, %v16133_v46, %v9940_v51  ;;  %v9942_v7 = vadd.f32 -1.0, %v11836_v58  ;;  %vm17634_vm6 = vcmp.eq.s32.totalorder %v17633_v43, 1 }
 0xe71   : > { %9969 = vmatprep.mubr.msk.f32.mxu1 %vm17634_vm6, %v16288_v49  ;;  %v16300_v22 = vsel %vm6090_vm14, %v7465_v39, %v7469_v28  ;;  %v7475_v54 = vrot.slane %v7390_v38, 7  ;;  %7977 = vmatprep.mubr.f32.mxu0 %v7390_v38  ;;  %v7389_v6 = vsel %vm7229_vm5, %v16108_v15, %v9939_v35  ;;  %vm7232_vm7 = vcmp.gt.f32.partialorder %v16171_v40, 0.0  ;;  %vm17635_vm8 = vmmov %vm17634_vm6 }
 0xe72   : > { %v11842_v29 = vpop.eup %11841  ;;  %v7473_v20 = vrot.slane %v7389_v6, 7  ;;  %v7392_v46 = vsel %vm7232_vm7, %v16171_v40, %v9942_v7  ;;  %v9941_v18 = vadd.f32 -1.0, %v11838_v8  ;;  %vm7231_vm12 = vcmp.gt.f32.partialorder %v16149_v62, 0.0  ;;  %v17636_v40 = vld [vmem:[#allocation85_spill] sm:$0xff] }
 0xe73   : > { %v16306_v23 = vsel %vm6090_vm14, %v7471_v45, %v7475_v54  ;;  %v7479_v53 = vrot.slane %v7392_v46, 7  ;;  %9970 = vmatmul.mubr.msk.f32.gmra.mxu1 %vm17635_vm8, %v16300_v22  ;;  %v9944_v9 = vadd.f32 -1.0, %v11842_v29  ;;  %vm17637_vm13 = vcmp.eq.s32.totalorder %v17636_v40, 1 }
 0xe74   : > { %v16313_v0 = vsel %vm6090_vm14, %v7469_v28, %v7473_v20  ;;  %7978 = vmatmul.mubr.f32.gmra.mxu0 %v7389_v6  ;;  %v7391_v15 = vsel %vm7231_vm12, %v16149_v62, %v9941_v18  ;;  %9971 = vmatprep.mubr.msk.f32.mxu1 %vm17637_vm13, %v16306_v23  ;;  %vm7234_vm1 = vcmp.gt.f32.partialorder %v16202_v41, 0.0  ;;  %v9943_v13 = vadd.f32 -1.0, %v11840_v30  ;;  %vm17638_vm11 = vmmov %vm17637_vm13 }
 0xe75   : > { %v11844_v21 = vpop.eup %11843  ;;  %v16320_v60 = vsel %vm6090_vm14, %v7475_v54, %v7479_v53  ;;  %7982 = vmatprep.mubr.f32.mxu0 %v7392_v46  ;;  %v7477_v61 = vrot.slane %v7391_v15, 7  ;;  %v7394_v34 = vsel %vm7234_vm1, %v16202_v41, %v9944_v9  ;;  %vm7233_vm9 = vcmp.gt.f32.partialorder %v16174_v50, 0.0  ;;  %v7626_v54 = vld [vmem:[#allocation4 + $0xd0] sm:$0xfc] }
 0xe76   : > { %v11846_v19 = vpop.eup %11845  ;;  %v9946_v52 = vadd.f32 -1.0, %v11844_v21  ;;  %v7483_v2 = vrot.slane %v7394_v34, 7  ;;  %v7393_v58 = vsel %vm7233_vm9, %v16174_v50, %v9943_v13  ;;  %vm7236_vm10 = vcmp.gt.f32.partialorder %v16231_v63, 0.0 }
 0xe77   : > { %v16326_v62 = vsel %vm6090_vm14, %v7473_v20, %v7477_v61  ;;  %9972 = vmatmul.mubr.msk.f32.gmra.mxu1 %vm17638_vm11, %v16313_v0  ;;  %v7481_v59 = vrot.slane %v7393_v58, 7  ;;  %v9945_v39 = vadd.f32 -1.0, %v11846_v19  ;;  %vm17640_vm2 = vcmp.eq.s32.totalorder %v17639_v57, 1 }
 0xe78   : > { %v11848_v55 = vpop.eup %11847  ;;  %7983 = vmatmul.mubr.f32.gmra.mxu0 %v7391_v15  ;;  %v7396_v41 = vsel %vm7236_vm10, %v16231_v63, %v9946_v52  ;;  %9973 = vmatprep.mubr.msk.f32.mxu1 %vm17640_vm2, %v16320_v60  ;;  %v7664_v25 = vrot.slane %v16002_v3, 2  ;;  %v16339_v50 = vsel %vm6090_vm14, %v7479_v53, %v7483_v2  ;;  %vm7235_vm3 = vcmp.gt.f32.partialorder %v16210_v44, 0.0  ;;  %vm17641_vm4 = vmmov %vm17640_vm2  ;;  %v17654_v3 = vld [vmem:[#allocation91_spill] sm:$0xff] }
 0xe79   : > { %7987 = vmatprep.mubr.f32.mxu0 %v7394_v34  ;;  %v7487_v45 = vrot.slane %v7396_v41, 7  ;;  %v7669_v8 = vrot.slane %v16043_v16, 2  ;;  %v7673_v36 = vrot.slane %v16100_v27, 2  ;;  %v7482_v63 = vsel %vm6090_vm14, %v7477_v61, %v7481_v59  ;;  %v17642_v27 = vld [vmem:[#allocation87_spill] sm:$0xff] }
 0xe7a   : > { %v7395_v51 = vsel %vm7235_vm3, %v16210_v44, %v9945_v39  ;;  %v9947_v38 = vadd.f32 -1.0, %v11848_v55  ;;  %v7677_v7 = vrot.slane %v16139_v37, 2  ;;  %v7681_v16 = vrot.slane %v16185_v31, 2  ;;  %v17650_v39 = vld [vmem:[#allocation92_spill] sm:$0xff] }
 0xe7b   : > { %v11850_v12 = vpop.eup %11849  ;;  %v16347_v30 = vsel %vm6090_vm14, %v7483_v2, %v7487_v45  ;;  %v7485_v28 = vrot.slane %v7395_v51, 7  ;;  %9974 = vmatmul.mubr.msk.f32.gmra.mxu1 %vm17641_vm4, %v16326_v62  ;;  %vm7238_vm5 = vcmp.gt.f32.partialorder %v16255_v26, 0.0  ;;  %vm7237_vm6 = vcmp.gt.f32.partialorder %v16237_v56, 0.0 }
 0xe7c   : > { %v9948_v35 = vadd.f32 -1.0, %v11850_v12  ;;  %7988 = vmatmul.mubr.f32.gmra.mxu0 %v7393_v58  ;;  %vm17643_vm7 = vcmp.eq.s32.totalorder %v17642_v27, 1  ;;  %v7685_v44 = vrot.slane %v16213_v33, 2  ;;  %v7397_v37 = vsel %vm7237_vm6, %v16237_v56, %v9947_v38  ;;  %v17657_v38 = vld [vmem:[#allocation94_spill] sm:$0xff] }
 0xe7d   : > { %9975 = vmatprep.mubr.msk.f32.mxu1 %vm17643_vm7, %v16339_v50  ;;  %7992 = vmatprep.mubr.f32.mxu0 %v7396_v41  ;;  %v7486_v43 = vsel %vm6090_vm14, %v7481_v59, %v7485_v28  ;;  %v7689_v31 = vrot.slane %v16245_v17, 2  ;;  %v7693_v6 = vrot.slane %v16262_v24, 2  ;;  %v7489_v46 = vrot.slane %v7397_v37, 7  ;;  %vm17644_vm12 = vmmov %vm17643_vm7  ;;  %v17648_v59 = vld [vmem:[#allocation89_spill] sm:$0xff] }
 0xe7e   : > { %v7398_v29 = vsel %vm7238_vm5, %v16255_v26, %v9948_v35  ;;  %v7697_v18 = vrot.slane %v16284_v5, 2  ;;  %v7701_v53 = vrot.slane %v16300_v22, 2  ;;  %v7670_v33 = vsel %vm6323_vm0, %v7664_v25, %v7669_v8  ;;  %v7625_v26 = vld [vmem:[#allocation4 + $0xb0] sm:$0xfc]  ;;  %v17645_v22 = vld [vmem:[#allocation90_spill] sm:$0xff] }
 0xe7f   : > { %v7491_v20 = vrot.slane %v7398_v29, 7  ;;  %9976 = vmatmul.mubr.msk.f32.gmra.mxu1 %vm17644_vm12, %v7482_v63  ;;  %v7674_v56 = vsel %vm6323_vm0, %v7669_v8, %v7673_v36  ;;  %v16377_v24 = vsel %vm6090_vm14, %v7485_v28, %v7489_v46  ;;  %7559 = vst [vmem:[#allocation4 + $0x70] sm:$0x1] %v7489_v46  ;;  %v7666_v5 = vrot.slane %v7626_v54, 2  ;;  %v11913_v28 = vld [vmem:[#allocation5] sm:$0xff]  ;;  %v17669_v54 = vld [vmem:[#allocation98_spill] sm:$0xff] }
 0xe80   : > { %7993 = vmatmul.mubr.f32.gmra.mxu0 %v7395_v51  ;;  %vm17646_vm8 = vcmp.eq.s32.totalorder %v17645_v22, 1  ;;  %v7678_v21 = vsel %vm6323_vm0, %v7673_v36, %v7677_v7  ;;  %v7667_v15 = vrot.slane %v16012_v4, 2  ;;  %v7705_v9 = vrot.slane %v16313_v0, 2  ;;  %v17675_v46 = vld [vmem:[#allocation100_spill] sm:$0xff] }
 0xe81   : > { %v16374_v17 = vsel %vm6090_vm14, %v7487_v45, %v7491_v20  ;;  %7560 = vst [vmem:[#allocation4 + $0xd8] sm:$0x1] %v7491_v20  ;;  %9977 = vmatprep.mubr.msk.f32.mxu1 %vm17646_vm8, %v16347_v30  ;;  %7997 = vmatprep.mubr.f32.mxu0 %v7398_v29  ;;  %v7709_v40 = vrot.slane %v16326_v62, 2  ;;  %v7682_v19 = vsel %vm6323_vm0, %v7677_v7, %v7681_v16  ;;  %v7713_v61 = vrot.slane %v7482_v63, 2  ;;  %vm17647_vm14 = vmmov %vm17646_vm8  ;;  %v17666_v29 = vld [vmem:[#allocation95_spill] sm:$0xff] }
 0xe82   : > { %v7717_v13 = vrot.slane %v7486_v43, 2  ;;  %v7686_v34 = vsel %vm6323_vm0, %v7681_v16, %v7685_v44  ;;  %v7690_v52 = vsel %vm6323_vm0, %v7685_v44, %v7689_v31  ;;  %v7663_v2 = vrot.slane %v7625_v26, 2  ;;  %v17660_v16 = vld [vmem:[#allocation93_spill] sm:$0xff]  ;;  %v17663_v44 = vld [vmem:[#allocation96_spill] sm:$0xff] }
 0xe83   : > { %9978 = vmatmul.mubr.msk.f32.gmra.mxu1 %vm17647_vm14, %v7486_v43  ;;  %v7721_v58 = vrot.slane %v16377_v24, 2  ;;  %v7694_v4 = vsel %vm6323_vm0, %v7689_v31, %v7693_v6  ;;  %v7698_v0 = vsel %vm6323_vm0, %v7693_v6, %v7697_v18  ;;  %v7671_v62 = vrot.slane %v16038_v11, 2  ;;  %v17672_v6 = vld [vmem:[#allocation97_spill] sm:$0xff] }
 0xe84   : > { %7998 = vmatmul.mubr.f32.gmra.mxu0 %v7397_v37  ;;  %v7668_v55 = vsel %vm6323_vm0, %v7666_v5, %v7667_v15  ;;  %vm17649_vm13 = vcmp.eq.s32.totalorder %v17648_v59, 1  ;;  %v7702_v41 = vsel %vm6323_vm0, %v7697_v18, %v7701_v53  ;;  %vm17651_vm1 = vcmp.eq.s32.totalorder %v17650_v39, 1 }
 0xe85   : > { %9979 = vmatprep.mubr.msk.f32.mxu1 %vm17649_vm13, %v16374_v17  ;;  %9981 = vmatprep.mubr.msk.f32.mxu0 %vm17651_vm1, %v7668_v55  ;;  %v7706_v57 = vsel %vm6323_vm0, %v7701_v53, %v7705_v9  ;;  %v7710_v45 = vsel %vm6323_vm0, %v7705_v9, %v7709_v40  ;;  %v7714_v12 = vsel %vm6323_vm0, %v7709_v40, %v7713_v61  ;;  %vm17652_vm9 = vmmov %vm17649_vm13  ;;  %v7675_v63 = vrot.slane %v16071_v14, 2  ;;  %v17678_v53 = vld [vmem:[#allocation99_spill] sm:$0xff] }
 0xe86   : > { %v7718_v11 = vsel %vm6323_vm0, %v7713_v61, %v7717_v13  ;;  %v7665_v8 = vsel %vm6323_vm0, %v7663_v2, %v7664_v25  ;;  %v7722_v36 = vsel %vm6323_vm0, %v7717_v13, %v7721_v58  ;;  %vm17653_vm10 = vmmov %vm17651_vm1  ;;  %v7672_v51 = vsel %vm6323_vm0, %v7667_v15, %v7671_v62  ;;  %v17688_v9 = vld [vmem:[#allocation103_spill] sm:$0xff]  ;;  %v17691_v13 = vld [vmem:[#allocation106_spill] sm:$0xff] }
 0xe87   : > { %9980 = vmatmul.mubr.msk.f32.gmra.mxu1 %vm17652_vm9, %v16377_v24  ;;  %vm17655_vm11 = vcmp.eq.s32.totalorder %v17654_v3, 1  ;;  %v7679_v25 = vrot.slane %v16113_v47, 2  ;;  %v7676_v35 = vsel %vm6323_vm0, %v7671_v62, %v7675_v63  ;;  %vm17658_vm3 = vcmp.eq.s32.totalorder %v17657_v38, 1  ;;  %v7627_v61 = vld [vmem:[#allocation4 + $0x70] sm:$0x3] }
 0xe88   : > { %9982 = vmatmul.mubr.msk.f32.vlgmr.msra.gmra.mxu0 %vm17653_vm10, %v7665_v8  ;;  %11288 = vmatprep.mubr.f32.mxu1 %v11913_v28  ;;  %vm17656_vm2 = vmmov %vm17655_vm11  ;;  %v7683_v14 = vrot.slane %v16167_v1, 2  ;;  %vm17661_vm5 = vcmp.eq.s32.totalorder %v17660_v16, 1  ;;  %v7687_v47 = vrot.slane %v16207_v10, 2  ;;  %vm17664_vm7 = vcmp.eq.s32.totalorder %v17663_v44, 1  ;;  %v7628_v40 = vld [vmem:[#allocation4 + $0xd8] sm:$0x3] }
 0xe89   : > { %9983 = vmatprep.mubr.msk.f32.mxu0 %vm17655_vm11, %v7672_v51  ;;  %vm17659_vm4 = vmmov %vm17658_vm3  ;;  %v7680_v7 = vsel %vm6323_vm0, %v7675_v63, %v7679_v25  ;;  %v7691_v1 = vrot.slane %v16234_v42, 2  ;;  %vm17667_vm8 = vcmp.eq.s32.totalorder %v17666_v29, 1  ;;  %v7695_v10 = vrot.slane %v16258_v48, 2 }
 0xe8a   : > { %vm17662_vm6 = vmmov %vm17661_vm5  ;;  %v7684_v27 = vsel %vm6323_vm0, %v7679_v25, %v7683_v14  ;;  %v7688_v43 = vsel %vm6323_vm0, %v7683_v14, %v7687_v47  ;;  %vm17670_vm13 = vcmp.eq.s32.totalorder %v17669_v54, 1  ;;  %v7699_v42 = vrot.slane %v16276_v32, 2 }
 0xe8b   : > { %vm17665_vm12 = vmmov %vm17664_vm7  ;;  %v7692_v37 = vsel %vm6323_vm0, %v7687_v47, %v7691_v1  ;;  %v7696_v31 = vsel %vm6323_vm0, %v7691_v1, %v7695_v10  ;;  %vm17673_vm9 = vcmp.eq.s32.totalorder %v17672_v6, 1  ;;  %v7703_v48 = vrot.slane %v16288_v49, 2 }
 0xe8c   : > { %9984 = vmatmul.mubr.msk.f32.gmra.mxu0 %vm17656_vm2, %v7670_v33  ;;  %vm17668_vm14 = vmmov %vm17667_vm8  ;;  %v7700_v20 = vsel %vm6323_vm0, %v7695_v10, %v7699_v42  ;;  %vm17676_vm11 = vcmp.eq.s32.totalorder %v17675_v46, 1  ;;  %v7707_v32 = vrot.slane %v16306_v23, 2  ;;  %v7711_v49 = vrot.slane %v16320_v60, 2 }
 0xe8d   : > { %9985 = vmatprep.mubr.msk.f32.mxu0 %vm17658_vm3, %v7676_v35  ;;  %vm17671_vm1 = vmmov %vm17670_vm13  ;;  %v7704_v18 = vsel %vm6323_vm0, %v7699_v42, %v7703_v48  ;;  %vm17679_vm3 = vcmp.eq.s32.totalorder %v17678_v53, 1  ;;  %v7715_v23 = vrot.slane %v16339_v50, 2  ;;  %v7719_v60 = vrot.slane %v16347_v30, 2 }
 0xe8e   : > { %vm17674_vm10 = vmmov %vm17673_vm9  ;;  %v7708_v33 = vsel %vm6323_vm0, %v7703_v48, %v7707_v32  ;;  %v7712_v26 = vsel %vm6323_vm0, %v7707_v32, %v7711_v49  ;;  %v7723_v50 = vrot.slane %v16374_v17, 2  ;;  %v7725_v17 = vrot.slane %v7627_v61, 2 }
 0xe8f   : > { %vm17677_vm2 = vmmov %vm17676_vm11  ;;  %v7716_v22 = vsel %vm6323_vm0, %v7711_v49, %v7715_v23  ;;  %v7720_v15 = vsel %vm6323_vm0, %v7715_v23, %v7719_v60 }
 0xe90   : > { %9986 = vmatmul.mubr.msk.f32.gmra.mxu0 %vm17659_vm4, %v7674_v56  ;;  %vm17680_vm4 = vmmov %vm17679_vm3  ;;  %v17681_v56 = vld [vmem:[#allocation102_spill] sm:$0xff]  ;;  %v7724_v30 = vsel %vm6323_vm0, %v7719_v60, %v7723_v50  ;;  %v7726_v2 = vsel %vm6323_vm0, %v7721_v58, %v7725_v17 }
 0xe91   : > { %9987 = vmatprep.mubr.msk.f32.mxu0 %vm17661_vm5, %v7680_v7  ;;  %vm17682_vm5 = vcmp.eq.s32.totalorder %v17681_v56, 1  ;;  %v8455_v60 = vld [vmem:[%s17697_s0 + $0x78] sm:$0xff] }
 0xe92   : > { %11291 = vmatprep.subr.mxu0 %v8455_v60 }
 0xe93   : > { %11292 = vmatpush3.msra.mxu0 %v8455_v60 }
 0xe94   : > { %9988 = vmatmul.mubr.msk.f32.gmra.mxu0 %vm17662_vm6, %v7678_v21  ;;  %vm17683_vm6 = vmmov %vm17682_vm5  ;;  %v17685_v21 = vld [vmem:[#allocation104_spill] sm:$0xff] }
 0xe95   : > { %9989 = vmatprep.mubr.msk.f32.mxu0 %vm17664_vm7, %v7684_v27  ;;  %vm17686_vm7 = vcmp.eq.s32.totalorder %v17685_v21, 1 }
 0xe98   : > { %9990 = vmatmul.mubr.msk.f32.gmra.mxu0 %vm17665_vm12, %v7682_v19  ;;  %vm17687_vm12 = vmmov %vm17686_vm7  ;;  %v7727_v19 = vrot.slane %v7628_v40, 2 }
 0xe99   : > { %9991 = vmatprep.mubr.msk.f32.mxu0 %vm17667_vm8, %v7688_v43  ;;  %vm17689_vm8 = vcmp.eq.s32.totalorder %v17688_v9, 1 }
 0xe9c   : > { %9992 = vmatmul.mubr.msk.f32.gmra.mxu0 %vm17668_vm14, %v7686_v34  ;;  %vm17690_vm14 = vmmov %vm17689_vm8  ;;  %v7728_v34 = vsel %vm6323_vm0, %v7723_v50, %v7727_v19 }
 0xe9d   : > { %9993 = vmatprep.mubr.msk.f32.mxu0 %vm17670_vm13, %v7692_v37 }
 0xea0   : > { %9994 = vmatmul.mubr.msk.f32.gmra.mxu0 %vm17671_vm1, %v7690_v52  ;;  %v17694_v52 = vld [vmem:[#allocation105_spill] sm:$0xff] }
 0xea1   : > { %9995 = vmatprep.mubr.msk.f32.mxu0 %vm17673_vm9, %v7696_v31  ;;  %vm17695_vm1 = vcmp.eq.s32.totalorder %v17694_v52, 1  ;;  %v8450_v52 = vld [vmem:[%s17697_s0 + $0x50] sm:$0xff] }
 0xea2   : > { %vm17696_vm9 = vmmov %vm17695_vm1 }
 0xea4   : > { %9996 = vmatmul.mubr.msk.f32.gmra.mxu0 %vm17674_vm10, %v7694_v4 }
 0xea5   : > { %9997 = vmatprep.mubr.msk.f32.mxu0 %vm17676_vm11, %v7700_v20  ;;  %vm17720_vm11 = vcmask 64512  }
 0xea8   : > { %9998 = vmatmul.mubr.msk.f32.gmra.mxu0 %vm17677_vm2, %v7698_v0  ;;  %vm17721_vm2 = vmmov %vm17720_vm11 }
 0xea9   : > { %9999 = vmatprep.mubr.msk.f32.mxu0 %vm17679_vm3, %v7704_v18  ;;  %vm17722_vm3 = vcmask 130048  }
 0xeac   : > { %10000 = vmatmul.mubr.msk.f32.gmra.mxu0 %vm17680_vm4, %v7702_v41  ;;  %vm17723_vm4 = vmmov %vm17722_vm3 }
 0xead   : > { %10001 = vmatprep.mubr.msk.f32.mxu0 %vm17682_vm5, %v7708_v33  ;;  %vm17724_vm5 = vmmov %vm17722_vm3 }
 0xeb0   : > { %10002 = vmatmul.mubr.msk.f32.gmra.mxu0 %vm17683_vm6, %v7706_v57  ;;  %vm17725_vm6 = vmmov %vm17722_vm3 }
 0xeb1   : > { %10003 = vmatprep.mubr.msk.f32.mxu0 %vm1482_vm15, %v7712_v26 }
 0xeb4   : > { %10004 = vmatmul.mubr.msk.f32.gmra.mxu0 %vm1482_vm15, %v7710_v45  ;;  %vm17692_vm15 = vcmp.eq.s32.totalorder %v17691_v13, 1  ;;  %v8451_v13 = vld [vmem:[%s17697_s0 + $0x58] sm:$0xff] }
 0xeb5   : > { %10005 = vmatprep.mubr.msk.f32.mxu0 %vm17686_vm7, %v7716_v22  ;;  %vm17693_vm13 = vmmov %vm17692_vm15  ;;  %v8454_v22 = vld [vmem:[%s17697_s0 + $0x70] sm:$0xff] }
 0xeb6   : > { %11293 = vmatprep.subr.mxu0 %v8454_v22  ;;  %vm17726_vm7 = vmmov %vm17722_vm3 }
 0xeb7   : > { %11294 = vmatpush3.msra.mxu0 %v8454_v22 }
 0xeb8   : > { %10006 = vmatmul.mubr.msk.f32.gmra.mxu0 %vm17687_vm12, %v7714_v12  ;;  %vm17727_vm12 = vmmov %vm17722_vm3 }
 0xeb9   : > { %10007 = vmatprep.mubr.msk.f32.mxu0 %vm17689_vm8, %v7720_v15  ;;  %v8453_v15 = vld [vmem:[%s17697_s0 + $0x68] sm:$0xff]  ;;  %vm17728_vm8 = vmmov %vm17722_vm3 }
 0xeba   : > { %11295 = vmatprep.subr.mxu0 %v8453_v15 }
 0xebb   : > { %11296 = vmatpush3.msra.mxu0 %v8453_v15 }
 0xebc   : > { %10008 = vmatmul.mubr.msk.f32.gmra.mxu0 %vm17690_vm14, %v7718_v11  ;;  %vm17729_vm14 = vmmov %vm17722_vm3 }
 0xebd   : > { %10009 = vmatprep.mubr.msk.f32.mxu0 %vm17692_vm15, %v7724_v30  ;;  %v8452_v30 = vld [vmem:[%s17697_s0 + $0x60] sm:$0xff]  ;;  %vm17730_vm15 = vmmov %vm17722_vm3 }
 0xebe   : > { %11297 = vmatprep.subr.mxu0 %v8452_v30 }
 0xebf   : > { %11298 = vmatpush3.msra.mxu0 %v8452_v30 }
 0xec0   : > { %10010 = vmatmul.mubr.msk.f32.gmra.mxu0 %vm17693_vm13, %v7722_v36  ;;  %11299 = vmatprep.subr.mxu0 %v8451_v13  ;;  %vm17731_vm13 = vmmov %vm17722_vm3 }
 0xec1   : > { %10011 = vmatprep.mubr.msk.f32.mxu0 %vm17695_vm1, %v7728_v34  ;;  %11300 = vmatpush3.msra.mxu0 %v8451_v13  ;;  %vm17732_vm1 = vmmov %vm17722_vm3 }
 0xec2   : > { %11301 = vmatprep.subr.mxu0 %v8450_v52 }
 0xec3   : > { %11302 = vmatpush3.msra.mxu0 %v8450_v52 }
 0xec4   : > { %10012 = vmatmul.mubr.msk.f32.gmra.mxu0 %vm17696_vm9, %v7726_v2  ;;  %vm17733_vm9 = vmmov %vm17732_vm1 }
 0xefd   : > { %v10416_v4 = vpop.f32.mrf.mxu0 }
 0xeff   : > { %v10417_v0 = vpop.f32.mrf.mxu0 }
 0xf00   : > { %v10418_v62 = vadd.f32 %v10417_v0, %v10416_v4  ;;  %v8449_v0 = vld [vmem:[%s17697_s0 + $0x48] sm:$0xff] }
 0xf01   : > { %v10419_v55 = vpop.f32.mrf.mxu0  ;;  %11303 = vmatprep.subr.mxu0 %v8449_v0 }
 0xf02   : > { %11304 = vmatpush3.msra.mxu0 %v8449_v0 }
 0xf03   : > { %v10420_v59 = vpop.f32.mrf.mxu0 }
 0xf04   : > { %v10421_v41 = vadd.f32 %v10420_v59, %v10419_v55  ;;  %v8448_v59 = vld [vmem:[%s17697_s0 + $0x40] sm:$0xff] }
 0xf05   : > { %v10422_v39 = vpop.f32.mrf.mxu0  ;;  %11305 = vmatprep.subr.mxu0 %v8448_v59 }
 0xf06   : > { %11306 = vmatpush3.msra.mxu0 %v8448_v59 }
 0xf07   : > { %v10423_v57 = vpop.f32.mrf.mxu0 }
 0xf08   : > { %v10424_v45 = vadd.f32 %v10423_v57, %v10422_v39  ;;  %v10496_v12 = vpop.f32.mrf.mxu1  ;;  %v8447_v57 = vld [vmem:[%s17697_s0 + $0x38] sm:$0xff] }
 0xf09   : > { %11307 = vmatprep.subr.mxu0 %v8447_v57 }
 0xf0a   : > { %v10497_v11 = vpop.f32.mrf.mxu1  ;;  %11308 = vmatpush3.msra.mxu0 %v8447_v57 }
 0xf0b   : > { %v10498_v8 = vadd.f32 %v10497_v11, %v10496_v12  ;;  %v8446_v11 = vld [vmem:[%s17697_s0 + $0x30] sm:$0xff] }
 0xf0c   : > { %v10425_v36 = vpop.f32.mrf.mxu0  ;;  %v10499_v63 = vpop.f32.mrf.mxu1  ;;  %11309 = vmatprep.subr.mxu0 %v8446_v11 }
 0xf0d   : > { %v16508_v24 = vadd.f32 %v10498_v8, %v10418_v62  ;;  %11310 = vmatpush3.msra.mxu0 %v8446_v11 }
 0xf0e   : > { %v10426_v58 = vpop.f32.mrf.mxu0  ;;  %v10500_v51 = vpop.f32.mrf.mxu1 }
 0xf0f   : > { %v10427_v28 = vadd.f32 %v10426_v58, %v10425_v36  ;;  %v10501_v3 = vadd.f32 %v10500_v51, %v10499_v63  ;;  %v8445_v63 = vld [vmem:[%s17697_s0 + $0x28] sm:$0xff] }
 0xf10   : > { %v10502_v25 = vpop.f32.mrf.mxu1  ;;  %11311 = vmatprep.subr.mxu0 %v8445_v63 }
 0xf11   : > { %v16510_v35 = vadd.f32 %v10501_v3, %v10421_v41  ;;  %11312 = vmatpush3.msra.mxu0 %v8445_v63 }
 0xf12   : > { %v10428_v38 = vpop.f32.mrf.mxu0  ;;  %v10503_v14 = vpop.f32.mrf.mxu1 }
 0xf13   : > { %v10504_v7 = vadd.f32 %v10503_v14, %v10502_v25 }
 0xf14   : > { %v10429_v16 = vpop.f32.mrf.mxu0  ;;  %v10505_v47 = vpop.f32.mrf.mxu1 }
 0xf15   : > { %v10430_v27 = vadd.f32 %v10429_v16, %v10428_v38  ;;  %v16512_v44 = vadd.f32 %v10504_v7, %v10424_v45  ;;  %v8443_v38 = vld [vmem:[%s17697_s0 + $0x18] sm:$0xff]  ;;  %v8442_v16 = vld [vmem:[%s17697_s0 + $0x10] sm:$0xff] }
 0xf16   : > { %v10506_v1 = vpop.f32.mrf.mxu1 }
 0xf17   : > { %v10507_v43 = vadd.f32 %v10506_v1, %v10505_v47 }
 0xf18   : > { %v10431_v29 = vpop.f32.mrf.mxu0  ;;  %v10508_v10 = vpop.f32.mrf.mxu1 }
 0xf19   : > { %v16514_v37 = vadd.f32 %v10507_v43, %v10427_v28  ;;  %v8444_v28 = vld [vmem:[%s17697_s0 + $0x20] sm:$0xff] }
 0xf1a   : > { %v10432_v54 = vpop.f32.mrf.mxu0  ;;  %v10509_v42 = vpop.f32.mrf.mxu1  ;;  %11313 = vmatprep.subr.mxu0 %v8444_v28 }
 0xf1b   : > { %v16516_v31 = vadd.f32 %v10432_v54, %v10431_v29  ;;  %v10510_v6 = vadd.f32 %v10509_v42, %v10508_v10  ;;  %11314 = vmatpush3.msra.mxu0 %v8444_v28 }
 0xf1c   : > { %v16526_v26 = vpop.f32.mrf.mxu1  ;;  %11315 = vmatprep.subr.mxu0 %v8443_v38 }
 0xf1d   : > { %17698 = vst [vmem:[#allocation59_spill] sm:$0xff] %v16516_v31  ;;  %v10434_v48 = vpop.f32.mrf.mxu0  ;;  %v16518_v20 = vadd.f32 %v10510_v6, %v10430_v27  ;;  %11316 = vmatpush3.msra.mxu0 %v8443_v38 }
 0xf1e   : > { %v16533_v9 = vpop.f32.mrf.mxu1  ;;  %11317 = vmatprep.subr.mxu0 %v8442_v16 }
 0xf1f   : > { %v10435_v46 = vpop.f32.mrf.mxu0  ;;  %11318 = vmatpush3.msra.mxu0 %v8442_v16 }
 0xf20   : > { %v16520_v32 = vadd.f32 %v10435_v46, %v10434_v48  ;;  %v16539_v17 = vpop.f32.mrf.mxu1 }
 0xf22   : > { %17699 = vst [vmem:[#allocation62_spill] sm:$0xff] %v16520_v32  ;;  %v16545_v62 = vpop.f32.mrf.mxu1 }
 0xf23   : > { %v10437_v18 = vpop.f32.mrf.mxu0 }
 0xf25   : > { %v10438_v53 = vpop.f32.mrf.mxu0 }
 0xf26   : > { %v16522_v49 = vadd.f32 %v10438_v53, %v10437_v18  ;;  %v16551_v45 = vpop.f32.mrf.mxu1 }
 0xf28   : > { %v10440_v33 = vpop.f32.mrf.mxu0  ;;  %v16557_v58 = vpop.f32.mrf.mxu1 }
 0xf2a   : > { %v10441_v56 = vpop.f32.mrf.mxu0 }
 0xf2b   : > { %v16524_v23 = vadd.f32 %v10441_v56, %v10440_v33  ;;  %v16563_v14 = vpop.f32.mrf.mxu1 }
 0xf2c   : > { %v10443_v5 = vpop.f32.mrf.mxu0 }
 0xf2d   : > { %v16570_v27 = vpop.f32.mrf.mxu1 }
 0xf2e   : > { %v10444_v21 = vpop.f32.mrf.mxu0 }
 0xf2f   : > { %v16530_v50 = vadd.f32 %v10444_v21, %v10443_v5  ;;  %v16572_v10 = vpop.f32.mrf.mxu1 }
 0xf30   : > { %v10446_v40 = vpop.f32.mrf.mxu0 }
 0xf31   : > { %v16577_v46 = vpop.f32.mrf.mxu1 }
 0xf32   : > { %v10447_v19 = vpop.f32.mrf.mxu0 }
 0xf33   : > { %v16536_v61 = vadd.f32 %v10447_v19, %v10446_v40  ;;  %v10526_v5 = vpop.f32.mrf.mxu1 }
 0xf34   : > { %v10449_v34 = vpop.f32.mrf.mxu0 }
 0xf35   : > { %v10527_v40 = vpop.f32.mrf.mxu1 }
 0xf36   : > { %v10450_v2 = vpop.f32.mrf.mxu0 }
 0xf37   : > { %v16542_v4 = vadd.f32 %v10450_v2, %v10449_v34  ;;  %v10529_v34 = vpop.f32.mrf.mxu1 }
 0xf38   : > { %v10452_v55 = vpop.f32.mrf.mxu0 }
 0xf39   : > { %v10530_v0 = vpop.f32.mrf.mxu1 }
 0xf3a   : > { %v10453_v41 = vpop.f32.mrf.mxu0 }
 0xf3b   : > { %v16548_v39 = vadd.f32 %v10453_v41, %v10452_v55  ;;  %v10532_v59 = vpop.f32.mrf.mxu1 }
 0xf3c   : > { %v10455_v12 = vpop.f32.mrf.mxu0 }
 0xf3d   : > { %v10533_v57 = vpop.f32.mrf.mxu1 }
 0xf3e   : > { %v10456_v8 = vpop.f32.mrf.mxu0 }
 0xf3f   : > { %v16554_v36 = vadd.f32 %v10456_v8, %v10455_v12  ;;  %v10535_v8 = vpop.f32.mrf.mxu1 }
 0xf40   : > { %v10458_v51 = vpop.f32.mrf.mxu0 }
 0xf42   : > { %v10459_v3 = vpop.f32.mrf.mxu0 }
 0xf43   : > { %v16560_v25 = vadd.f32 %v10459_v3, %v10458_v51 }
 0xf44   : > { %v16565_v7 = vpop.f32.mrf.mxu0 }
 0xf46   : > { %v16568_v47 = vpop.f32.mrf.mxu0 }
 0xf48   : > { %v10576_v1 = vpop.f32.mrf.mxu0 }
 0xf4a   : > { %v10577_v43 = vpop.f32.mrf.mxu0 }
 0xf4b   : > { %v10578_v29 = vadd.f32 %v10577_v43, %v10576_v1 }
 0xf4c   : > { %v10579_v54 = vpop.f32.mrf.mxu0 }
 0xf4d   : > { %v16575_v42 = vadd.f32 %v10578_v29, %v16508_v24 }
 0xf4e   : > { %v10580_v6 = vpop.f32.mrf.mxu0 }
 0xf4f   : > { %17700 = vst [vmem:[#allocation61_spill] sm:$0xff] %v16575_v42  ;;  %v10581_v48 = vadd.f32 %v10580_v6, %v10579_v54 }
 0xf50   : > { %v10582_v18 = vpop.f32.mrf.mxu0 }
 0xf51   : > { %v16580_v53 = vadd.f32 %v10581_v48, %v16510_v35 }
 0xf52   : > { %v10583_v33 = vpop.f32.mrf.mxu0 }
 0xf53   : > { %17701 = vst [vmem:[#allocation64_spill] sm:$0xff] %v16580_v53  ;;  %v10584_v56 = vadd.f32 %v10583_v33, %v10582_v18  ;;  %v10534_v53 = vadd.f32 %v10533_v57, %v10532_v59 }
 0xf54   : > { %v10585_v60 = vpop.f32.mrf.mxu0 }
 0xf55   : > { %v16583_v22 = vadd.f32 %v10584_v56, %v16512_v44 }
 0xf56   : > { %v10586_v21 = vpop.f32.mrf.mxu0 }
 0xf57   : > { %17702 = vst [vmem:[#allocation63_spill] sm:$0xff] %v16583_v22  ;;  %v10587_v15 = vadd.f32 %v10586_v21, %v10585_v60 }
 0xf58   : > { %v10588_v24 = vpop.f32.mrf.mxu0 }
 0xf59   : > { %v16586_v30 = vadd.f32 %v10587_v15, %v16514_v37 }
 0xf5a   : > { %v10589_v19 = vpop.f32.mrf.mxu0 }
 0xf5b   : > { %17703 = vst [vmem:[#allocation66_spill] sm:$0xff] %v16586_v30  ;;  %v10590_v13 = vadd.f32 %v10589_v19, %v10588_v24  ;;  %v10463_v19 = vadd.f32 %v16568_v47, %v16565_v7  ;;  %v8130_v7 = vadd.f32 %v10534_v53, %v16548_v39  ;;  %v10522_v39 = vadd.f32 %v16570_v27, %v16563_v14 }
 0xf5c   : > { %v16588_v52 = vpop.f32.mrf.mxu0  ;;  %v10516_v27 = vadd.f32 %v16545_v62, %v16539_v17 }
 0xf5d   : > { %17704 = vst [vmem:[#allocation65_spill] sm:$0xff] %v16588_v52  ;;  %v16591_v35 = vadd.f32 %v10590_v13, %v16518_v20  ;;  %v10536_v20 = vpop.f32.mrf.mxu1  ;;  %v10531_v52 = vadd.f32 %v10530_v0, %v10529_v34  ;;  %v17711_v0 = vld [vmem:[#allocation62_spill] sm:$0xff] }
 0xf5e   : > { %v16593_v2 = vpop.f32.mrf.mxu0  ;;  %v10537_v13 = vadd.f32 %v10536_v20, %v10535_v8 }
 0xf5f   : > { %17705 = vst [vmem:[#allocation68_spill] sm:$0xff] %v16591_v35  ;;  %17706 = vst [vmem:[#allocation67_spill] sm:$0xff] %v16593_v2  ;;  %v10538_v38 = vpop.f32.mrf.mxu1 }
 0xf60   : > { %v16595_v44 = vpop.f32.mrf.mxu0  ;;  %v8135_v32 = vadd.f32 %v10537_v13, %v16554_v36 }
 0xf61   : > { %17707 = vst [vmem:[#allocation70_spill] sm:$0xff] %v16595_v44  ;;  %v10539_v43 = vpop.f32.mrf.mxu1 }
 0xf62   : > { %v16597_v55 = vpop.f32.mrf.mxu0  ;;  %v10540_v21 = vadd.f32 %v10539_v43, %v10538_v38  ;;  %v10528_v43 = vadd.f32 %v10527_v40, %v10526_v5  ;;  %v8110_v40 = vadd.f32 %v10522_v39, %v16524_v23 }
 0xf63   : > { %17708 = vst [vmem:[#allocation69_spill] sm:$0xff] %v16597_v55  ;;  %v10541_v6 = vpop.f32.mrf.mxu1 }
 0xf64   : > { %v16599_v41 = vpop.f32.mrf.mxu0  ;;  %v8140_v30 = vadd.f32 %v10540_v21, %v16560_v25  ;;  %v10525_v25 = vadd.f32 %v16577_v46, %v16572_v10  ;;  %v10519_v10 = vadd.f32 %v16557_v58, %v16551_v45  ;;  %v11914_v21 = vld [vmem:[#allocation5 + $0x8] sm:$0xff] }
 0xf65   : > { %v10542_v33 = vpop.f32.mrf.mxu1 }
 0xf66   : > { %v16601_v37 = vpop.f32.mrf.mxu0  ;;  %v10543_v15 = vadd.f32 %v10542_v33, %v10541_v6  ;;  %v16607_v6 = vld [vmem:[#allocation28] ss:$0 sm:$0xff]  ;;  %v8115_v46 = vadd.f32 %v10525_v25, %v16530_v50  ;;  %v8105_v17 = vadd.f32 %v10519_v10, %v16522_v49 }
 0xf67   : > { %v10599_v45 = vadd.f32 %v16601_v37, %v16599_v41  ;;  %v17713_v41 = vld [vmem:[#allocation67_spill] sm:$0xff] }
 0xf68   : > { %v10600_v12 = vpop.f32.mrf.mxu0  ;;  %v8145_v35 = vadd.f32 %v10543_v15, %v10463_v19  ;;  %v17709_v62 = vld [vmem:[#allocation70_spill] sm:$0xff]  ;;  %v17714_v37 = vld [vmem:[#allocation59_spill] sm:$0xff]  ;;  %v8441_v15 = vld [vmem:[%s17697_s0 + $0x8] sm:$0xff] }
 0xf69   : > { %11319 = vmatprep.subr.mxu0 %v8441_v15 }
 0xf6a   : > { %v10601_v11 = vpop.f32.mrf.mxu0  ;;  %11320 = vmatpush3.msra.mxu0 %v8441_v15  ;;  %v8807_v15 = vld [vmem:[#allocation31 + $0xc8] sm:$0xff] }
 0xf6b   : > { %v10602_v5 = vadd.f32 %v10601_v11, %v10600_v12 }
 0xf6c   : > { %v10603_v63 = vpop.f32.mrf.mxu0 }
 0xf6d   : > { %v8334_v23 = vadd.f32 %v10602_v5, %v8110_v40 }
 0xf6e   : > { %v10604_v51 = vpop.f32.mrf.mxu0 }
 0xf6f   : > { %v16668_v11 = vadd.f32 %v16607_v6, %v8334_v23  ;;  %v8797_v23 = vld [vmem:[#allocation31 + $0x78] sm:$0xff] }
 0xf70   : > { %v10606_v28 = vpop.f32.mrf.mxu0 }
 0xf72   : > { %v10607_v3 = vpop.f32.mrf.mxu0 }
 0xf73   : > { %v10608_v34 = vadd.f32 %v10607_v3, %v10606_v28  ;;  %v17715_v3 = vld [vmem:[#allocation68_spill] sm:$0xff] }
 0xf74   : > { %v10609_v16 = vpop.f32.mrf.mxu0 }
 0xf76   : > { %v10610_v1 = vpop.f32.mrf.mxu0 }
 0xf77   : > { %v10611_v47 = vadd.f32 %v10610_v1, %v10609_v16  ;;  %v16689_v16 = vadd.f32 %v16607_v6, %v17715_v3  ;;  %v17716_v1 = vld [vmem:[#allocation66_spill] sm:$0xff] }
 0xf78   : > { %v10612_v29 = vpop.f32.mrf.mxu0  ;;  %v8809_v3 = vld [vmem:[#allocation31 + $0xd8] sm:$0xff] }
 0xf7a   : > { %v10613_v54 = vpop.f32.mrf.mxu0 }
 0xf7b   : > { %v10614_v55 = vadd.f32 %v10613_v54, %v10612_v29  ;;  %v16695_v29 = vadd.f32 %v16607_v6, %v17716_v1  ;;  %v17717_v54 = vld [vmem:[#allocation63_spill] sm:$0xff]  ;;  %v8793_v1 = vld [vmem:[#allocation31 + $0x58] sm:$0xff] }
 0xf7c   : > { %v10615_v48 = vpop.f32.mrf.mxu0 }
 0xf7d   : > { %v8338_v36 = vadd.f32 %v10614_v55, %v8130_v7  ;;  %v17712_v55 = vld [vmem:[#allocation65_spill] sm:$0xff] }
 0xf7e   : > { %v10616_v18 = vpop.f32.mrf.mxu0 }
 0xf7f   : > { %v10617_v31 = vadd.f32 %v10616_v18, %v10615_v48  ;;  %v16701_v48 = vadd.f32 %v16607_v6, %v17717_v54  ;;  %v17718_v18 = vld [vmem:[#allocation64_spill] sm:$0xff] }
 0xf80   : > { %v10618_v56 = vpop.f32.mrf.mxu0  ;;  %v16707_v33 = vadd.f32 %v16607_v6, %v17718_v18  ;;  %v8808_v54 = vld [vmem:[#allocation31 + $0xd0] sm:$0xff]  ;;  %v11920_v18 = vld [vmem:[#allocation7 + $0x28] sm:$0xff] }
 0xf81   : > { %v8339_v8 = vadd.f32 %v10617_v31, %v8135_v32  ;;  %v8120_v31 = vadd.f32 %v10528_v43, %v16536_v61  ;;  %v10605_v32 = vadd.f32 %v10604_v51, %v10603_v63  ;;  %v16634_v61 = vadd.f32 %v16607_v6, %v8338_v36 }
 0xf82   : > { %v10619_v60 = vpop.f32.mrf.mxu0 }
 0xf83   : > { %v10620_v42 = vadd.f32 %v10619_v60, %v10618_v56  ;;  %v8336_v14 = vadd.f32 %v10608_v34, %v8120_v31  ;;  %v8335_v58 = vadd.f32 %v10605_v32, %v8115_v46  ;;  %v17719_v56 = vld [vmem:[#allocation61_spill] sm:$0xff] }
 0xf84   : > { %v10621_v24 = vpop.f32.mrf.mxu0  ;;  %v16713_v60 = vadd.f32 %v16607_v6, %v17719_v56  ;;  %v8792_v56 = vld [vmem:[#allocation31 + $0x50] sm:$0xff] }
 0xf85   : > { %v8340_v44 = vadd.f32 %v10620_v42, %v8140_v30  ;;  %v10513_v30 = vadd.f32 %v16533_v9, %v16526_v26  ;;  %v10593_v26 = vadd.f32 %v17713_v41, %v17712_v55  ;;  %v8333_v9 = vadd.f32 %v10599_v45, %v8105_v17  ;;  %v8796_v55 = vld [vmem:[#allocation31 + $0x70] sm:$0xff]  ;;  %v11917_v41 = vld [vmem:[#allocation7 + $0x10] sm:$0xff] }
 0xf86   : > { %v10622_v22 = vpop.f32.mrf.mxu0  ;;  %v16662_v49 = vadd.f32 %v16607_v6, %v8335_v58 }
 0xf87   : > { %v10623_v2 = vadd.f32 %v10622_v22, %v10621_v24  ;;  %v8125_v22 = vadd.f32 %v10531_v52, %v16542_v4  ;;  %v16618_v42 = vadd.f32 %v16607_v6, %v8340_v44  ;;  %v16626_v4 = vadd.f32 %v16607_v6, %v8339_v8  ;;  %v17710_v52 = vld [vmem:[#allocation69_spill] sm:$0xff]  ;;  %v8440_v24 = vld [vmem:[%s17697_s0] sm:$0xff] }
 0xf88   : > { %v8100_v44 = vadd.f32 %v10516_v27, %v17711_v0  ;;  %v8095_v57 = vadd.f32 %v10513_v30, %v17714_v37  ;;  %v16673_v51 = vadd.f32 %v16607_v6, %v8333_v9  ;;  %11321 = vmatprep.subr.mxu0 %v8440_v24  ;;  %v8812_v0 = vld [vmem:[#allocation31 + $0xf0] sm:$0xff]  ;;  %v8795_v9 = vld [vmem:[#allocation31 + $0x68] sm:$0xff]  ;;  %v8810_v37 = vld [vmem:[#allocation31 + $0xe0] sm:$0xff] }
 0xf89   : > { %v8341_v38 = vadd.f32 %v10623_v2, %v8145_v35  ;;  %v8337_v53 = vadd.f32 %v10611_v47, %v8125_v22  ;;  %v10596_v35 = vadd.f32 %v17710_v52, %v17709_v62  ;;  %v16654_v2 = vadd.f32 %v16607_v6, %v8336_v14  ;;  %11322 = vmatpush3.msra.mxu0 %v8440_v24  ;;  %v8791_v24 = vld [vmem:[#allocation31 + $0x48] sm:$0xff] }
 0xf8a   : > { %v8331_v63 = vadd.f32 %v10593_v26, %v8095_v57  ;;  %v8811_v26 = vld [vmem:[#allocation31 + $0xe8] sm:$0xff] }
 0xf8b   : > { %v16611_v59 = vadd.f32 %v16607_v6, %v8341_v38  ;;  %v16644_v50 = vadd.f32 %v16607_v6, %v8337_v53  ;;  %v8332_v12 = vadd.f32 %v10596_v35, %v8100_v44  ;;  %v8543_v38 = vld [vmem:[#allocation30] sm:$0xff]  ;;  %v11918_v57 = vld [vmem:[#allocation7 + $0x18] sm:$0xff] }
 0xf8c   : > { %v16683_v28 = vadd.f32 %v16607_v6, %v8331_v63  ;;  %v11915_v53 = vld [vmem:[#allocation7] sm:$0xff]  ;;  %v11916_v44 = vld [vmem:[#allocation7 + $0x8] sm:$0xff] }
 0xf8d   : > { %11256 = vmatprep.subr.mxu1 %v16611_v59  ;;  %v16678_v20 = vadd.f32 %v16607_v6, %v8332_v12  ;;  %v8813_v35 = vld [vmem:[#allocation31 + $0xf8] sm:$0xff]  ;;  %v8794_v12 = vld [vmem:[#allocation31 + $0x60] sm:$0xff] }
 0xf8e   : > { %11257 = vmatpush3.msra.mxu1 %v16611_v59  ;;  %v11919_v63 = vld [vmem:[#allocation7 + $0x20] sm:$0xff] }
 0xf8f   : > { %11258 = vmatprep.subr.mxu1 %v16618_v42 }
 0xf90   : > { %11259 = vmatpush3.msra.mxu1 %v16618_v42 }
 0xf91   : > { %11260 = vmatprep.subr.mxu1 %v16626_v4 }
 0xf92   : > { %11261 = vmatpush3.msra.mxu1 %v16626_v4 }
 0xf93   : > { %11262 = vmatprep.subr.mxu1 %v16634_v61 }
 0xf94   : > { %11263 = vmatpush3.msra.mxu1 %v16634_v61 }
 0xf95   : > { %11264 = vmatprep.subr.mxu1 %v16644_v50 }
 0xf96   : > { %11265 = vmatpush3.msra.mxu1 %v16644_v50 }
 0xf97   : > { %11266 = vmatprep.subr.mxu1 %v16654_v2 }
 0xf98   : > { %11267 = vmatpush3.msra.mxu1 %v16654_v2 }
 0xf99   : > { %11268 = vmatprep.subr.mxu1 %v16662_v49 }
 0xf9a   : > { %11269 = vmatpush3.msra.mxu1 %v16662_v49 }
 0xf9b   : > { %11270 = vmatprep.subr.mxu1 %v16668_v11 }
 0xf9c   : > { %11271 = vmatpush3.msra.mxu1 %v16668_v11 }
 0xf9d   : > { %11272 = vmatprep.subr.mxu1 %v16673_v51 }
 0xf9e   : > { %11273 = vmatpush3.msra.mxu1 %v16673_v51 }
 0xf9f   : > { %11274 = vmatprep.subr.mxu1 %v16678_v20 }
 0xfa0   : > { %11275 = vmatpush3.msra.mxu1 %v16678_v20 }
 0xfa1   : > { %11276 = vmatprep.subr.mxu1 %v16683_v28 }
 0xfa2   : > { %11277 = vmatpush3.msra.mxu1 %v16683_v28 }
 0xfa3   : > { %11278 = vmatprep.subr.mxu1 %v16689_v16 }
 0xfa4   : > { %11279 = vmatpush3.msra.mxu1 %v16689_v16 }
 0xfa5   : > { %11280 = vmatprep.subr.mxu1 %v16695_v29 }
 0xfa6   : > { %11281 = vmatpush3.msra.mxu1 %v16695_v29 }
 0xfa7   : > { %11282 = vmatprep.subr.mxu1 %v16701_v48 }
 0xfa8   : > { %11283 = vmatpush3.msra.mxu1 %v16701_v48 }
 0xfa9   : > { %11284 = vmatprep.subr.mxu1 %v16707_v33 }
 0xfaa   : > { %11285 = vmatpush3.msra.mxu1 %v16707_v33 }
 0xfab   : > { %11286 = vmatprep.subr.mxu1 %v16713_v60 }
 0xfac   : > { %11287 = vmatpush3.msra.mxu1 %v16713_v60 }
 0xfad   : > { %11289 = vmatmul.mubr.f32.vlgmr.msra.gmra.mxu1 %v11914_v21  ;;  %11326 = vmatprep.subr.mxu1 %v8543_v38  ;;  %v11921_v21 = vld [vmem:[#allocation7 + $0x30] sm:$0xff] }
 0xfae   : > { %11327 = vmatpush3.msra.mxu1 %v8543_v38  ;;  %v8790_v38 = vld [vmem:[#allocation31 + $0x40] sm:$0xff] }
0x106d   : > { %v11290_v19 = vpop.f32.mrf.mxu1 }
0x106f   : > { %v8431_v13 = vpop.f32.mrf.mxu1 }
0x1070   : > { %11323 = vmatprep.mubr.f32.mxu0 %v8431_v13  ;;  %v11922_v13 = vld [vmem:[#allocation7 + $0x38] sm:$0xff] }
0x1071   : > { %11324 = vmatmul.mubr.f32.vlgmr.msra.gmra.mxu0 %v11290_v19  ;;  %v8806_v19 = vld [vmem:[#allocation31 + $0xc0] sm:$0xff] }
0x1131   : > { %v11325_v43 = vpop.f32.mrf.mxu0 }
0x1132   : > { %v8534_v6 = vmin.f32 %v11325_v43, 0.0  ;;  %vm8532_vm10 = vcmp.gt.f32.partialorder %v11325_v43, 0.0 }
0x1133   : > { %v8522_v7 = vpop.f32.mrf.mxu0 }
0x1134   : > { %v8537_v47 = vmul.f32 1.442695, %v8534_v6  ;;  %v8533_v8 = vmin.f32 %v8522_v7, 0.0  ;;  %vm8531_vm0 = vcmp.gt.f32.partialorder %v8522_v7, 0.0  ;;  %v8805_v6 = vld [vmem:[#allocation31 + $0xb8] sm:$0xff] }
0x1136   : > { %11851 = vpow2.f32 %v8537_v47  ;;  %v8535_v25 = vmul.f32 1.442695, %v8533_v8  ;;  %v8804_v47 = vld [vmem:[#allocation31 + $0xb0] sm:$0xff]  ;;  %v11924_v8 = vld [vmem:[#allocation7 + $0x48] sm:$0xff] }
0x1138   : > { %11853 = vpow2.f32 %v8535_v25  ;;  %v8788_v25 = vld [vmem:[#allocation31 + $0x30] sm:$0xff] }
0x1143   : > { %v11852_v22 = vpop.eup %11851 }
0x1144   : > { %v10015_v36 = vadd.f32 -1.0, %v11852_v22  ;;  %v11925_v22 = vld [vmem:[#allocation7 + $0x50] sm:$0xff] }
0x1145   : > { %v11854_v34 = vpop.eup %11853 }
0x1146   : > { %v10014_v39 = vadd.f32 -1.0, %v11854_v34  ;;  %v8542_v32 = vsel %vm8532_vm10, %v11325_v43, %v10015_v36  ;;  %v11923_v43 = vld [vmem:[#allocation7 + $0x40] sm:$0xff]  ;;  %v8803_v34 = vld [vmem:[#allocation31 + $0xa8] sm:$0xff] }
0x1147   : > { %v8787_v36 = vld [vmem:[#allocation31 + $0x28] sm:$0xff] }
0x1148   : > { %v8541_v31 = vsel %vm8531_vm0, %v8522_v7, %v10014_v39  ;;  %v8789_v7 = vld [vmem:[#allocation31 + $0x38] sm:$0xff]  ;;  %v8802_v39 = vld [vmem:[#allocation31 + $0xa0] sm:$0xff]  ;;  %vm17734_vm0 = vmmov %vm17732_vm1 }
0x1149   : > { %11328 = vmatprep.mubr.msk.f32.mxu1 %vm17720_vm11, %v8541_v31  ;;  %v11926_v31 = vld [vmem:[#allocation7 + $0x58] sm:$0xff]  ;;  %vm17735_vm10 = vmmov %vm17734_vm0 }
0x114a   : > { %11329 = vmatmul.mubr.msk.f32.vlgmr.msra.gmra.mxu1 %vm17721_vm2, %v8542_v32  ;;  %v8786_v32 = vld [vmem:[#allocation31 + $0x20] sm:$0xff]  ;;  %vm17736_vm11 = vmmov %vm17734_vm0 }
0x114b   : > { %11335 = vmatprep.mubr.msk.f32.mxu1 %vm17722_vm3, %v11915_v53  ;;  %v11927_v53 = vld [vmem:[#allocation7 + $0x60] sm:$0xff]  ;;  %vm17737_vm2 = vmmov %vm17734_vm0 }
0x120a   : > { %v11330_v10 = vpop.f32.mrf.mxu1 }
0x120b   : > { %v8626_v46 = vsub.f32 0.0, %v11330_v10  ;;  %v8801_v10 = vld [vmem:[#allocation31 + $0x98] sm:$0xff] }
0x120c   : > { %v8616_v5 = vpop.f32.mrf.mxu1 }
0x120d   : > { %v8629_v14 = vmul.f32 1.442695, %v8626_v46  ;;  %v8625_v27 = vsub.f32 0.0, %v8616_v5  ;;  %v8785_v46 = vld [vmem:[#allocation31 + $0x18] sm:$0xff]  ;;  %v8800_v5 = vld [vmem:[#allocation31 + $0x90] sm:$0xff] }
0x120f   : > { %11855 = vpow2.f32 %v8629_v14  ;;  %v8627_v40 = vmul.f32 1.442695, %v8625_v27  ;;  %v11928_v14 = vld [vmem:[#allocation7 + $0x68] sm:$0xff]  ;;  %v8784_v27 = vld [vmem:[#allocation31 + $0x10] sm:$0xff] }
0x1211   : > { %11857 = vpow2.f32 %v8627_v40  ;;  %v11929_v40 = vld [vmem:[#allocation7 + $0x70] sm:$0xff] }
0x121c   : > { %v11856_v45 = vpop.eup %11855 }
0x121d   : > { %v8632_v58 = vadd.f32 1.0, %v11856_v45  ;;  %v8799_v45 = vld [vmem:[#allocation31 + $0x88] sm:$0xff] }
0x121e   : > { %v11858_v30 = vpop.eup %11857 }
0x121f   : > { %11859 = vrcp.f32 %v8632_v58  ;;  %v8631_v17 = vadd.f32 1.0, %v11858_v30  ;;  %v8783_v58 = vld [vmem:[#allocation31 + $0x8] sm:$0xff]  ;;  %v8798_v30 = vld [vmem:[#allocation31 + $0x80] sm:$0xff] }
0x1221   : > { %11861 = vrcp.f32 %v8631_v17  ;;  %v11930_v17 = vld [vmem:[#allocation7 + $0x78] sm:$0xff] }
0x122c   : > { %v11860_v62 = vpop.eup %11859 }
0x122d   : > { %11331 = vmatprep.subr.mxu1 %v11860_v62 }
0x122e   : > { %v11862_v52 = vpop.eup %11861  ;;  %11332 = vmatpush3.msra.mxu1 %v11860_v62  ;;  %v8782_v62 = vld [vmem:[#allocation31] sm:$0xff] }
0x122f   : > { %11333 = vmatprep.subr.mxu1 %v11862_v52 }
0x1230   : > { %11334 = vmatpush3.msra.mxu1 %v11862_v52  ;;  %v17738_v52 = vld [vmem:[#allocation142_spill] sm:$0xff] }
0x1231   : > { %11336 = vmatmul.mubr.msk.f32.vlgmr.msra.gmra.mxu1 %vm17723_vm4, %v11916_v44  ;;  %10681 = vmatprep.subr.mxu1 %v8813_v35  ;;  %v17739_v35 = vld [vmem:[#allocation125_spill] sm:$0xff] }
0x1232   : > { %10682 = vmatpush3.msra.mxu1 %v8797_v23  ;;  %11338 = vmatprep.mubr.msk.f32.mxu1 %vm17724_vm5, %v11917_v41  ;;  %v17740_v23 = vld [vmem:[#allocation119_spill] sm:$0xff]  ;;  %v17742_v44 = vld [vmem:[#allocation141_spill] sm:$0xff] }
0x1233   : > { %10683 = vmatprep.subr.mxu1 %v8812_v0  ;;  %v17741_v0 = vld [vmem:[#allocation124_spill] sm:$0xff]  ;;  %v17744_v41 = vld [vmem:[#allocation123_spill] sm:$0xff] }
0x1234   : > { %10684 = vmatpush3.msra.mxu1 %v8796_v55  ;;  %v17743_v55 = vld [vmem:[#allocation118_spill] sm:$0xff] }
0x1235   : > { %11339 = vmatmul.mubr.msk.f32.gmra.mxu1 %vm17725_vm6, %v11918_v57  ;;  %10685 = vmatprep.subr.mxu1 %v8811_v26  ;;  %v17745_v26 = vld [vmem:[#allocation140_spill] sm:$0xff]  ;;  %v17748_v57 = vld [vmem:[#allocation139_spill] sm:$0xff] }
0x1236   : > { %10686 = vmatpush3.msra.mxu1 %v8795_v9  ;;  %11341 = vmatprep.mubr.msk.f32.mxu1 %vm17726_vm7, %v11919_v63  ;;  %v17746_v9 = vld [vmem:[#allocation116_spill] sm:$0xff]  ;;  %v17750_v63 = vld [vmem:[#allocation121_spill] sm:$0xff] }
0x1237   : > { %10687 = vmatprep.subr.mxu1 %v8810_v37  ;;  %v17747_v37 = vld [vmem:[#allocation122_spill] sm:$0xff] }
0x1238   : > { %10688 = vmatpush3.msra.mxu1 %v8794_v12  ;;  %v17749_v12 = vld [vmem:[#allocation115_spill] sm:$0xff] }
0x1239   : > { %11342 = vmatmul.mubr.msk.f32.gmra.mxu1 %vm17727_vm12, %v11920_v18  ;;  %10689 = vmatprep.subr.mxu1 %v8809_v3  ;;  %v17751_v3 = vld [vmem:[#allocation138_spill] sm:$0xff]  ;;  %v17754_v18 = vld [vmem:[#allocation137_spill] sm:$0xff] }
0x123a   : > { %10690 = vmatpush3.msra.mxu1 %v8793_v1  ;;  %11344 = vmatprep.mubr.msk.f32.mxu1 %vm17728_vm8, %v11921_v21  ;;  %v17752_v1 = vld [vmem:[#allocation113_spill] sm:$0xff]  ;;  %v17756_v21 = vld [vmem:[#allocation111_spill] sm:$0xff] }
0x123b   : > { %10691 = vmatprep.subr.mxu1 %v8808_v54  ;;  %v17753_v54 = vld [vmem:[#allocation120_spill] sm:$0xff] }
0x123c   : > { %10692 = vmatpush3.msra.mxu1 %v8792_v56  ;;  %v17755_v56 = vld [vmem:[#allocation136_spill] sm:$0xff] }
0x123d   : > { %11345 = vmatmul.mubr.msk.f32.gmra.mxu1 %vm17729_vm14, %v11922_v13  ;;  %10693 = vmatprep.subr.mxu1 %v8807_v15  ;;  %v17757_v15 = vld [vmem:[#allocation117_spill] sm:$0xff]  ;;  %v17760_v13 = vld [vmem:[#allocation114_spill] sm:$0xff] }
0x123e   : > { %10694 = vmatpush3.msra.mxu1 %v8791_v24  ;;  %11347 = vmatprep.mubr.msk.f32.mxu1 %vm17730_vm15, %v11923_v43  ;;  %v17758_v24 = vld [vmem:[#allocation135_spill] sm:$0xff]  ;;  %v17762_v43 = vld [vmem:[#allocation108_spill] sm:$0xff] }
0x123f   : > { %10695 = vmatprep.subr.mxu1 %v8806_v19  ;;  %v17759_v19 = vld [vmem:[#allocation109_spill] sm:$0xff] }
0x1240   : > { %10696 = vmatpush3.msra.mxu1 %v8790_v38  ;;  %v17761_v38 = vld [vmem:[#allocation133_spill] sm:$0xff] }
0x1241   : > { %11348 = vmatmul.mubr.msk.f32.gmra.mxu1 %vm17731_vm13, %v11924_v8  ;;  %10697 = vmatprep.subr.mxu1 %v8805_v6  ;;  %v17763_v6 = vld [vmem:[#allocation112_spill] sm:$0xff]  ;;  %v17766_v8 = vld [vmem:[#allocation107_spill] sm:$0xff] }
0x1242   : > { %10698 = vmatpush3.msra.mxu1 %v8789_v7  ;;  %11350 = vmatprep.mubr.msk.f32.mxu1 %vm17732_vm1, %v11925_v22  ;;  %v17764_v7 = vld [vmem:[#allocation131_spill] sm:$0xff]  ;;  %v17768_v22 = vld [vmem:[#allocation129_spill] sm:$0xff] }
0x1243   : > { %10699 = vmatprep.subr.mxu1 %v8804_v47  ;;  %v17765_v47 = vld [vmem:[#allocation134_spill] sm:$0xff] }
0x1244   : > { %10700 = vmatpush3.msra.mxu1 %v8788_v25  ;;  %v17767_v25 = vld [vmem:[#allocation110_spill] sm:$0xff] }
0x1245   : > { %11351 = vmatmul.mubr.msk.f32.gmra.mxu1 %vm17733_vm9, %v11926_v31  ;;  %10701 = vmatprep.subr.mxu1 %v8803_v34  ;;  %v17769_v34 = vld [vmem:[#allocation132_spill] sm:$0xff] }
0x1246   : > { %10702 = vmatpush3.msra.mxu1 %v8787_v36  ;;  %11353 = vmatprep.mubr.msk.f32.mxu1 %vm17734_vm0, %v11927_v53 }
0x1247   : > { %10703 = vmatprep.subr.mxu1 %v8802_v39 }
0x1248   : > { %10704 = vmatpush3.msra.mxu1 %v8786_v32 }
0x1249   : > { %11354 = vmatmul.mubr.msk.f32.gmra.mxu1 %vm17735_vm10, %v11928_v14  ;;  %10705 = vmatprep.subr.mxu1 %v8801_v10 }
0x124a   : > { %10706 = vmatpush3.msra.mxu1 %v8785_v46  ;;  %11356 = vmatprep.mubr.msk.f32.mxu1 %vm17736_vm11, %v11929_v40 }
0x124b   : > { %10707 = vmatprep.subr.mxu1 %v8800_v5 }
0x124c   : > { %10708 = vmatpush3.msra.mxu1 %v8784_v27 }
0x124d   : > { %11357 = vmatmul.mubr.msk.f32.gmra.mxu1 %vm17737_vm2, %v11930_v17  ;;  %10709 = vmatprep.subr.mxu1 %v8799_v45 }
0x124e   : > { %10710 = vmatpush3.msra.mxu1 %v8783_v58  ;;  %8885 = vmatprep.mubr.f32.mxu1 %v17738_v52 }
0x124f   : > { %10711 = vmatprep.subr.mxu1 %v8798_v30 }
0x1250   : > { %10712 = vmatpush3.msra.mxu1 %v8782_v62 }
0x1251   : > { %8886 = vmatmul.mubr.f32.vlgmr.msra.gmra.mxu1 %v17739_v35  ;;  %v16790_v35 = vld [vmem:[#allocation33] ss:$0 sm:$0xff] }
0x1252   : > { %8890 = vmatprep.mubr.f32.mxu1 %v17740_v23 }
0x1255   : > { %8891 = vmatmul.mubr.f32.gmra.mxu1 %v17741_v0 }
0x1256   : > { %8895 = vmatprep.mubr.f32.mxu1 %v17742_v44 }
0x1259   : > { %8896 = vmatmul.mubr.f32.gmra.mxu1 %v17743_v55 }
0x125a   : > { %8900 = vmatprep.mubr.f32.mxu1 %v17744_v41 }
0x125d   : > { %8901 = vmatmul.mubr.f32.gmra.mxu1 %v17745_v26 }
0x125e   : > { %8905 = vmatprep.mubr.f32.mxu1 %v17746_v9 }
0x1261   : > { %8906 = vmatmul.mubr.f32.gmra.mxu1 %v17747_v37 }
0x1262   : > { %8910 = vmatprep.mubr.f32.mxu1 %v17748_v57 }
0x1265   : > { %8911 = vmatmul.mubr.f32.gmra.mxu1 %v17749_v12 }
0x1266   : > { %8915 = vmatprep.mubr.f32.mxu1 %v17750_v63 }
0x1269   : > { %8916 = vmatmul.mubr.f32.gmra.mxu1 %v17751_v3 }
0x126a   : > { %8920 = vmatprep.mubr.f32.mxu1 %v17752_v1 }
0x126d   : > { %8921 = vmatmul.mubr.f32.gmra.mxu1 %v17753_v54 }
0x126e   : > { %8925 = vmatprep.mubr.f32.mxu1 %v17754_v18 }
0x1271   : > { %8926 = vmatmul.mubr.f32.gmra.mxu1 %v17755_v56 }
0x1272   : > { %8930 = vmatprep.mubr.f32.mxu1 %v17756_v21 }
0x1275   : > { %8931 = vmatmul.mubr.f32.gmra.mxu1 %v17757_v15 }
0x1276   : > { %8935 = vmatprep.mubr.f32.mxu1 %v17758_v24 }
0x1279   : > { %8936 = vmatmul.mubr.f32.gmra.mxu1 %v17759_v19 }
0x127a   : > { %8940 = vmatprep.mubr.f32.mxu1 %v17760_v13 }
0x127d   : > { %8941 = vmatmul.mubr.f32.gmra.mxu1 %v17761_v38 }
0x127e   : > { %8945 = vmatprep.mubr.f32.mxu1 %v17762_v43 }
0x1281   : > { %8946 = vmatmul.mubr.f32.gmra.mxu1 %v17763_v6 }
0x1282   : > { %8950 = vmatprep.mubr.f32.mxu1 %v17764_v7 }
0x1285   : > { %8951 = vmatmul.mubr.f32.gmra.mxu1 %v17765_v47 }
0x1286   : > { %8955 = vmatprep.mubr.f32.mxu1 %v17766_v8 }
0x1289   : > { %8956 = vmatmul.mubr.f32.gmra.mxu1 %v17767_v25 }
0x128a   : > { %8960 = vmatprep.mubr.f32.mxu1 %v17768_v22 }
0x128d   : > { %8961 = vmatmul.mubr.f32.gmra.mxu1 %v17769_v34 }
0x12f1   : > { %v11337_v36 = vpop.f32.mrf.mxu1 }
0x12f2   : > { %v8967_v12 = vmul.f32 %v11337_v36, %v16707_v33 }
0x12f3   : > { %v8703_v39 = vpop.f32.mrf.mxu1 }
0x12f4   : > { %v8966_v55 = vmul.f32 %v8703_v39, %v16713_v60 }
0x12f5   : > { %v11340_v31 = vpop.f32.mrf.mxu1 }
0x12f6   : > { %v8969_v6 = vmul.f32 %v11340_v31, %v16695_v29 }
0x12f7   : > { %v8713_v32 = vpop.f32.mrf.mxu1 }
0x12f8   : > { %v8968_v15 = vmul.f32 %v8713_v32, %v16701_v48 }
0x12f9   : > { %v11343_v53 = vpop.f32.mrf.mxu1 }
0x12fb   : > { %v8723_v10 = vpop.f32.mrf.mxu1 }
0x12fc   : > { %v8970_v36 = vmul.f32 %v8723_v10, %v16689_v16 }
0x12fd   : > { %v16770_v46 = vpop.f32.mrf.mxu1 }
0x12ff   : > { %v16772_v5 = vpop.f32.mrf.mxu1 }
0x1301   : > { %v16774_v14 = vpop.f32.mrf.mxu1 }
0x1303   : > { %v16776_v27 = vpop.f32.mrf.mxu1 }
0x1305   : > { %v16778_v40 = vpop.f32.mrf.mxu1 }
0x1307   : > { %v16780_v45 = vpop.f32.mrf.mxu1 }
0x1309   : > { %v16782_v58 = vpop.f32.mrf.mxu1 }
0x130b   : > { %v16784_v30 = vpop.f32.mrf.mxu1 }
0x130d   : > { %v16786_v17 = vpop.f32.mrf.mxu1 }
0x130f   : > { %v16788_v62 = vpop.f32.mrf.mxu1 }
0x1311   : > { %v10713_v52 = vpop.f32.mrf.mxu1 }
0x1313   : > { %v10714_v23 = vpop.f32.mrf.mxu1 }
0x1314   : > { %v10715_v0 = vadd.f32 %v10714_v23, %v10713_v52 }
0x1315   : > { %v10716_v44 = vpop.f32.mrf.mxu1 }
0x1316   : > { %v8888_v41 = vadd.f32 %v10715_v0, %v16790_v35 }
0x1317   : > { %v10717_v26 = vpop.f32.mrf.mxu1 }
0x1318   : > { %v8982_v9 = vadd.f32 %v8966_v55, %v8888_v41  ;;  %v10718_v37 = vadd.f32 %v10717_v26, %v10716_v44  ;;  %v8971_v44 = vmul.f32 %v11343_v53, %v16683_v28 }
0x1319   : > { %v10719_v57 = vpop.f32.mrf.mxu1 }
0x131a   : > { %v9014_v63 = vmin.f32 %v8982_v9, 0.0  ;;  %v8893_v3 = vadd.f32 %v10718_v37, %v16790_v35  ;;  %vm8998_vm3 = vcmp.gt.f32.partialorder %v8982_v9, 0.0 }
0x131b   : > { %v10720_v1 = vpop.f32.mrf.mxu1 }
0x131c   : > { %v9030_v54 = vmul.f32 1.442695, %v9014_v63  ;;  %v8983_v18 = vadd.f32 %v8967_v12, %v8893_v3  ;;  %v10721_v56 = vadd.f32 %v10720_v1, %v10719_v57  ;;  %v8972_v1 = vmul.f32 %v16772_v5, %v16678_v20 }
0x131d   : > { %v10722_v21 = vpop.f32.mrf.mxu1 }
0x131e   : > { %11863 = vpow2.f32 %v9030_v54  ;;  %v9015_v60 = vmin.f32 %v8983_v18, 0.0  ;;  %v8898_v24 = vadd.f32 %v10721_v56, %v16790_v35  ;;  %vm8999_vm4 = vcmp.gt.f32.partialorder %v8983_v18, 0.0 }
0x131f   : > { %v10723_v19 = vpop.f32.mrf.mxu1 }
0x1320   : > { %v9032_v13 = vmul.f32 1.442695, %v9015_v60  ;;  %v16798_v38 = vadd.f32 %v8968_v15, %v8898_v24  ;;  %v10724_v43 = vadd.f32 %v10723_v19, %v10722_v21 }
0x1321   : > { %v10725_v33 = vpop.f32.mrf.mxu1 }
0x1322   : > { %11865 = vpow2.f32 %v9032_v13  ;;  %v9016_v7 = vmin.f32 %v16798_v38, 0.0  ;;  %v8903_v47 = vadd.f32 %v10724_v43, %v16790_v35  ;;  %vm9000_vm5 = vcmp.gt.f32.partialorder %v16798_v38, 0.0 }
0x1323   : > { %v10726_v8 = vpop.f32.mrf.mxu1 }
0x1324   : > { %v9034_v25 = vmul.f32 1.442695, %v9016_v7  ;;  %v16803_v48 = vadd.f32 %v8969_v6, %v8903_v47  ;;  %v10727_v22 = vadd.f32 %v10726_v8, %v10725_v33 }
0x1325   : > { %v10728_v34 = vpop.f32.mrf.mxu1 }
0x1326   : > { %11867 = vpow2.f32 %v9034_v25  ;;  %v9017_v39 = vmin.f32 %v16803_v48, 0.0  ;;  %v8908_v29 = vadd.f32 %v10727_v22, %v16790_v35  ;;  %vm9001_vm6 = vcmp.gt.f32.partialorder %v16803_v48, 0.0 }
0x1327   : > { %v10729_v31 = vpop.f32.mrf.mxu1 }
0x1328   : > { %v9036_v32 = vmul.f32 1.442695, %v9017_v39  ;;  %v16808_v52 = vadd.f32 %v8970_v36, %v8908_v29  ;;  %v10730_v23 = vadd.f32 %v10729_v31, %v10728_v34 }
0x1329   : > { %v10731_v0 = vpop.f32.mrf.mxu1 }
0x132a   : > { %11869 = vpow2.f32 %v9036_v32  ;;  %v9018_v55 = vmin.f32 %v16808_v52, 0.0  ;;  %v8913_v41 = vadd.f32 %v10730_v23, %v16790_v35  ;;  %vm9002_vm7 = vcmp.gt.f32.partialorder %v16808_v52, 0.0 }
0x132b   : > { %v11864_v26 = vpop.eup %11863  ;;  %v10732_v16 = vpop.f32.mrf.mxu1 }
0x132c   : > { %v10035_v10 = vadd.f32 -1.0, %v11864_v26  ;;  %v9038_v37 = vmul.f32 1.442695, %v9018_v55  ;;  %v16818_v57 = vadd.f32 %v8971_v44, %v8913_v41  ;;  %v10733_v12 = vadd.f32 %v10732_v16, %v10731_v0 }
0x132d   : > { %v10734_v63 = vpop.f32.mrf.mxu1  ;;  %v8975_v0 = vmul.f32 %v16774_v14, %v16662_v49 }
0x132e   : > { %v9078_v3 = vsel %vm8998_vm3, %v8982_v9, %v10035_v10  ;;  %11871 = vpow2.f32 %v9038_v37  ;;  %v9019_v28 = vmin.f32 %v16818_v57, 0.0  ;;  %v8918_v54 = vadd.f32 %v10733_v12, %v16790_v35 }
0x132f   : > { %v11866_v53 = vpop.eup %11865  ;;  %9094 = vst [vmem:[%s16816_s18] sm:$0xff] %v9078_v3  ;;  %v10735_v56 = vpop.f32.mrf.mxu1  ;;  %v8973_v9 = vmul.f32 %v16770_v46, %v16673_v51  ;;  %v8974_v51 = vmul.f32 %v16776_v27, %v16668_v11  ;;  %v8976_v37 = vmul.f32 %v16780_v45, %v16654_v2  ;;  %vm9003_vm12 = vcmp.gt.f32.partialorder %v16818_v57, 0.0 }
0x1330   : > { %v10036_v21 = vadd.f32 -1.0, %v11866_v53  ;;  %v9040_v15 = vmul.f32 1.442695, %v9019_v28  ;;  %v10736_v60 = vadd.f32 %v10735_v56, %v10734_v63  ;;  %v16825_v24 = vadd.f32 %v8972_v1, %v8918_v54 }
0x1331   : > { %v10737_v19 = vpop.f32.mrf.mxu1  ;;  %v8977_v2 = vmul.f32 %v16778_v40, %v16644_v50 }
0x1332   : > { %v9079_v13 = vsel %vm8999_vm4, %v8983_v18, %v10036_v21  ;;  %11873 = vpow2.f32 %v9040_v15  ;;  %v8923_v43 = vadd.f32 %v10736_v60, %v16790_v35  ;;  %v9020_v5 = vmin.f32 %v16825_v24, 0.0 }
0x1333   : > { %v11868_v20 = vpop.eup %11867  ;;  %9095 = vst [vmem:[%s16816_s18 + $0x8] sm:$0xff] %v9079_v13  ;;  %v10738_v33 = vpop.f32.mrf.mxu1  ;;  %vm9004_vm8 = vcmp.gt.f32.partialorder %v16825_v24, 0.0 }
0x1334   : > { %v10037_v6 = vadd.f32 -1.0, %v11868_v20  ;;  %v16832_v7 = vadd.f32 %v8973_v9, %v8923_v43  ;;  %v10739_v47 = vadd.f32 %v10738_v33, %v10737_v19  ;;  %v9042_v8 = vmul.f32 1.442695, %v9020_v5 }
0x1335   : > { %v10740_v25 = vpop.f32.mrf.mxu1  ;;  %v8978_v43 = vmul.f32 %v16784_v30, %v16634_v61 }
0x1336   : > { %v9080_v46 = vsel %vm9000_vm5, %v16798_v38, %v10037_v6  ;;  %v9021_v18 = vmin.f32 %v16832_v7, 0.0  ;;  %v8928_v22 = vadd.f32 %v10739_v47, %v16790_v35  ;;  %11875 = vpow2.f32 %v9042_v8 }
0x1337   : > { %v11870_v34 = vpop.eup %11869  ;;  %9096 = vst [vmem:[%s16816_s18 + $0x10] sm:$0xff] %v9080_v46  ;;  %v10741_v36 = vpop.f32.mrf.mxu1  ;;  %vm9005_vm14 = vcmp.gt.f32.partialorder %v16832_v7, 0.0 }
0x1338   : > { %v10038_v39 = vadd.f32 -1.0, %v11870_v34  ;;  %v9044_v29 = vmul.f32 1.442695, %v9021_v18  ;;  %v16841_v31 = vadd.f32 %v8974_v51, %v8928_v22  ;;  %v10742_v32 = vadd.f32 %v10741_v36, %v10740_v25 }
0x1339   : > { %v10743_v23 = vpop.f32.mrf.mxu1  ;;  %v8979_v22 = vmul.f32 %v16782_v58, %v16626_v4 }
0x133a   : > { %v9081_v11 = vsel %vm9001_vm6, %v16803_v48, %v10038_v39  ;;  %11877 = vpow2.f32 %v9044_v29  ;;  %v9022_v27 = vmin.f32 %v16841_v31, 0.0  ;;  %v8933_v44 = vadd.f32 %v10742_v32, %v16790_v35 }
0x133b   : > { %v11872_v38 = vpop.eup %11871  ;;  %9097 = vst [vmem:[%s16816_s18 + $0x18] sm:$0xff] %v9081_v11  ;;  %v10744_v55 = vpop.f32.mrf.mxu1  ;;  %vm9006_vm15 = vcmp.gt.f32.partialorder %v16841_v31, 0.0 }
0x133c   : > { %v10039_v41 = vadd.f32 -1.0, %v11872_v38  ;;  %v9046_v26 = vmul.f32 1.442695, %v9022_v27  ;;  %v10745_v16 = vadd.f32 %v10744_v55, %v10743_v23  ;;  %v16851_v10 = vadd.f32 %v8975_v0, %v8933_v44 }
0x133d   : > { %v10746_v48 = vpop.f32.mrf.mxu1 }
0x133e   : > { %v9082_v12 = vsel %vm9002_vm7, %v16808_v52, %v10039_v41  ;;  %11879 = vpow2.f32 %v9046_v26  ;;  %v8938_v49 = vadd.f32 %v10745_v16, %v16790_v35  ;;  %v9023_v63 = vmin.f32 %v16851_v10, 0.0 }
0x133f   : > { %v11874_v14 = vpop.eup %11873  ;;  %9098 = vst [vmem:[%s16816_s18 + $0x20] sm:$0xff] %v9082_v12  ;;  %v10747_v3 = vpop.f32.mrf.mxu1  ;;  %v8981_v26 = vmul.f32 %v16786_v17, %v16611_v59  ;;  %vm9007_vm13 = vcmp.gt.f32.partialorder %v16851_v10, 0.0 }
0x1340   : > { %v10040_v28 = vadd.f32 -1.0, %v11874_v14  ;;  %v16859_v53 = vadd.f32 %v8976_v37, %v8938_v49  ;;  %v10748_v1 = vadd.f32 %v10747_v3, %v10746_v48  ;;  %v9048_v54 = vmul.f32 1.442695, %v9023_v63 }
0x1341   : > { %v10749_v56 = vpop.f32.mrf.mxu1 }
0x1342   : > { %v9083_v45 = vsel %vm9003_vm12, %v16818_v57, %v10040_v28  ;;  %v9024_v52 = vmin.f32 %v16859_v53, 0.0  ;;  %v8943_v21 = vadd.f32 %v10748_v1, %v16790_v35  ;;  %11881 = vpow2.f32 %v9048_v54 }
0x1343   : > { %9099 = vst [vmem:[%s16816_s18 + $0x28] sm:$0xff] %v9083_v45  ;;  %v10750_v15 = vpop.f32.mrf.mxu1  ;;  %v11876_v60 = vpop.eup %11875  ;;  %vm9008_vm1 = vcmp.gt.f32.partialorder %v16859_v53, 0.0 }
0x1344   : > { %v9050_v19 = vmul.f32 1.442695, %v9024_v52  ;;  %v16868_v9 = vadd.f32 %v8977_v2, %v8943_v21  ;;  %v10751_v13 = vadd.f32 %v10750_v15, %v10749_v56  ;;  %v10041_v20 = vadd.f32 -1.0, %v11876_v60 }
0x1345   : > { %v10752_v50 = vpop.f32.mrf.mxu1 }
0x1346   : > { %11883 = vpow2.f32 %v9050_v19  ;;  %v9025_v40 = vmin.f32 %v16868_v9, 0.0  ;;  %v8948_v57 = vadd.f32 %v10751_v13, %v16790_v35  ;;  %v9084_v33 = vsel %vm9004_vm8, %v16825_v24, %v10041_v20 }
0x1347   : > { %v11878_v5 = vpop.eup %11877  ;;  %v10753_v6 = vpop.f32.mrf.mxu1  ;;  %9100 = vst [vmem:[%s16816_s18 + $0x30] sm:$0xff] %v9084_v33  ;;  %vm9009_vm9 = vcmp.gt.f32.partialorder %v16868_v9, 0.0 }
0x1348   : > { %v10042_v47 = vadd.f32 -1.0, %v11878_v5  ;;  %v9052_v8 = vmul.f32 1.442695, %v9025_v40  ;;  %v8994_v25 = vadd.f32 %v8978_v43, %v8948_v57  ;;  %v10754_v51 = vadd.f32 %v10753_v6, %v10752_v50 }
0x1349   : > { %v10755_v61 = vpop.f32.mrf.mxu1 }
0x134a   : > { %v9085_v30 = vsel %vm9005_vm14, %v16832_v7, %v10042_v47  ;;  %11885 = vpow2.f32 %v9052_v8  ;;  %v9026_v46 = vmin.f32 %v8994_v25, 0.0  ;;  %v8953_v24 = vadd.f32 %v10754_v51, %v16790_v35 }
0x134b   : > { %v11880_v18 = vpop.eup %11879  ;;  %9101 = vst [vmem:[%s16816_s18 + $0x38] sm:$0xff] %v9085_v30  ;;  %v10756_v34 = vpop.f32.mrf.mxu1  ;;  %v8980_v7 = vmul.f32 %v16788_v62, %v16618_v42  ;;  %vm9010_vm0 = vcmp.gt.f32.partialorder %v8994_v25, 0.0 }
0x134c   : > { %v10043_v36 = vadd.f32 -1.0, %v11880_v18  ;;  %v9054_v39 = vmul.f32 1.442695, %v9026_v46  ;;  %v10757_v29 = vadd.f32 %v10756_v34, %v10755_v61  ;;  %v8995_v32 = vadd.f32 %v8979_v22, %v8953_v24 }
0x134d   : > { %v10758_v23 = vpop.f32.mrf.mxu1 }
0x134e   : > { %v9086_v11 = vsel %vm9006_vm15, %v16841_v31, %v10043_v36  ;;  %11887 = vpow2.f32 %v9054_v39  ;;  %v8958_v27 = vadd.f32 %v10757_v29, %v16790_v35  ;;  %v9027_v4 = vmin.f32 %v8995_v32, 0.0 }
0x134f   : > { %9102 = vst [vmem:[%s16816_s18 + $0x40] sm:$0xff] %v9086_v11  ;;  %v10759_v58 = vpop.f32.mrf.mxu1  ;;  %v11882_v38 = vpop.eup %11881  ;;  %vm9011_vm10 = vcmp.gt.f32.partialorder %v8995_v32, 0.0 }
0x1350   : > { %v8996_v0 = vadd.f32 %v8980_v7, %v8958_v27  ;;  %v10760_v44 = vadd.f32 %v10759_v58, %v10758_v23  ;;  %v10044_v55 = vadd.f32 -1.0, %v11882_v38  ;;  %v9056_v41 = vmul.f32 1.442695, %v9027_v4 }
0x1352   : > { %v9028_v42 = vmin.f32 %v8996_v0, 0.0  ;;  %v8963_v62 = vadd.f32 %v10760_v44, %v16790_v35  ;;  %v9087_v16 = vsel %vm9007_vm13, %v16851_v10, %v10044_v55  ;;  %11889 = vpow2.f32 %v9056_v41 }
0x1353   : > { %v11884_v31 = vpop.eup %11883  ;;  %9103 = vst [vmem:[%s16816_s18 + $0x48] sm:$0xff] %v9087_v16  ;;  %vm9012_vm11 = vcmp.gt.f32.partialorder %v8996_v0, 0.0 }
0x1354   : > { %v10045_v48 = vadd.f32 -1.0, %v11884_v31  ;;  %v9058_v37 = vmul.f32 1.442695, %v9028_v42  ;;  %v8997_v12 = vadd.f32 %v8981_v26, %v8963_v62 }
0x1356   : > { %v9088_v59 = vsel %vm9008_vm1, %v16859_v53, %v10045_v48  ;;  %11891 = vpow2.f32 %v9058_v37  ;;  %v9029_v17 = vmin.f32 %v8997_v12, 0.0  ;;  %vm9013_vm2 = vcmp.gt.f32.partialorder %v8997_v12, 0.0 }
0x1357   : > { %v11886_v49 = vpop.eup %11885  ;;  %9104 = vst [vmem:[%s16816_s18 + $0x50] sm:$0xff] %v9088_v59 }
0x1358   : > { %v10046_v14 = vadd.f32 -1.0, %v11886_v49  ;;  %v9060_v35 = vmul.f32 1.442695, %v9029_v17 }
0x135a   : > { %v9089_v10 = vsel %vm9009_vm9, %v16868_v9, %v10046_v14  ;;  %11893 = vpow2.f32 %v9060_v35 }
0x135b   : > { %v11888_v63 = vpop.eup %11887  ;;  %9105 = vst [vmem:[%s16816_s18 + $0x58] sm:$0xff] %v9089_v10 }
0x135c   : > { %v10047_v3 = vadd.f32 -1.0, %v11888_v63 }
0x135e   : > { %v9090_v28 = vsel %vm9010_vm0, %v8994_v25, %v10047_v3 }
0x135f   : > { %9106 = vst [vmem:[%s16816_s18 + $0x60] sm:$0xff] %v9090_v28  ;;  %v11890_v53 = vpop.eup %11889 }
0x1360   : > { %v10048_v1 = vadd.f32 -1.0, %v11890_v53 }
0x1362   : > { %v9091_v56 = vsel %vm9011_vm10, %v8995_v32, %v10048_v1 }
0x1363   : > { %v11892_v54 = vpop.eup %11891  ;;  %9107 = vst [vmem:[%s16816_s18 + $0x68] sm:$0xff] %v9091_v56 }
0x1364   : > { %v10049_v2 = vadd.f32 -1.0, %v11892_v54 }
0x1366   : > { %v9092_v45 = vsel %vm9012_vm11, %v8996_v0, %v10049_v2 }
0x1367   : > { %v11894_v52 = vpop.eup %11893  ;;  %9108 = vst [vmem:[%s16816_s18 + $0x70] sm:$0xff] %v9092_v45 }
0x1368   : > { %v10050_v21 = vadd.f32 -1.0, %v11894_v52 }
0x136a   : > { %v9093_v15 = vsel %vm9013_vm2, %v8997_v12, %v10050_v21 }
0x136b   : > { %9109 = vst [vmem:[%s16816_s18 + $0x78] sm:$0xff] %v9093_v15 }
0x136c PF: > { %s79_s7 = sadd.s32 1, %s12471_s7  }
0x136d   : > { %p76_p6 = scmp.ge.s32.totalorder %s79_s7, 4  }
0x136f   :  { %78 = sbr.rel (!%p76_p6) target bundleno = 58 (0x3a), region = 284 }
0x1374   :  { %9132 = vsyncpa [#allocation6], 1 }
0x1375   :  { %9134 = vsyncpa [#allocation6 + $0x1], 1 }
0x1376   :  { %9135 = vsyncpa [#allocation8], 1 }
0x1377   :  { %9136 = vsyncpa [#allocation11], 1 }
0x1378   :  { %9137 = vsyncpa [#allocation14], 1 }
0x1379   :  { %9138 = vsyncpa [#allocation17], 1 }
0x137a   :  { %9139 = vsyncpa [#allocation20], 1 }
0x137b   :  { %9140 = vsyncpa [#allocation23], 1 }
0x137c   :  { %9141 = vsyncpa [#allocation26], 1 }
0x137d   :  { %9142 = vsyncpa [#allocation29], 1 }
0x137e   :  { %9143 = vsyncpa [#allocation32], 1 }

</bundles_post_ra>
